<compile_context>
chip_gen: v7x
topology: tpu7x:2x2x1
jax: 0.10.0
libtpu: 0.0.40
codegen_flags: <defaults>
</compile_context>

<pallas_src>
import functools

import jax
import jax.numpy as jnp
from jax import lax
from jax.experimental import pallas as pl
from jax.experimental.pallas import tpu as pltpu


def _round_up(x, m):
    return ((x + m - 1) // m) * m


# ------------------------------ Pallas kernel ------------------------------

def _downsample_block_kernel(x_ref, w1_ref, b1_ref, w25_ref, b25_ref, o_ref,
                             xbuf, ybuf, *, H, W, Ci, Co, G):
    """Fused DownSampleBlock forward for one batch element.

    x_ref  : (1, H*W, Ci)   input plane, pixels row-major (h, w), channels last
    w1_ref : (9*Ci, Co)     conv1 weights, row order (kh, kw, ci); the 1x1
                            downconv is pre-folded into the centre-tap rows
    b1_ref : (1, Co)        conv1_b + downconv_b
    w25_ref: (4, 9*Co, Co)  conv2..conv5 weights
    b25_ref: (4, 1, Co)     conv2..conv5 biases
    o_ref  : (1, H*W, Co)   output plane
    xbuf   : VMEM (H*W + 2*G, Ci) f32 scratch (zero guard rows of size G)
    ybuf   : VMEM (H*W + 2*G, Co) f32 scratch (zero guard rows of size G)
    """
    HW = H * W

    # Zero the guard regions (whole buffers - cheap), then place the input
    # plane in the interior rows [G, G+HW).
    xbuf[...] = jnp.zeros_like(xbuf)
    ybuf[...] = jnp.zeros_like(ybuf)
    xbuf[G:G + HW, :] = x_ref[0].astype(jnp.float32)

    # A 3x3 tap with offset (oy, ox) on the flattened plane is the row window
    # starting at G + oy*W + ox.  Out-of-range image rows (oy) land in the
    # zero guard rows automatically; out-of-range image columns (ox) wrap into
    # the neighbouring image row and are zeroed with a column-validity mask.
    w_idx = lax.broadcasted_iota(jnp.int32, (HW, 1), 0) % W
    col_ok = {-1: w_idx > 0, 0: None, 1: w_idx < (W - 1)}
    offsets = [(dy - 1, dx - 1) for dy in range(3) for dx in range(3)]

    def conv3x3(buf, get_w, acc):
        for t, (oy, ox) in enumerate(offsets):
            start = G + oy * W + ox                     # static offset
            tap = buf[start:start + HW, :]              # (HW, cin) f32
            mask = col_ok[ox]
            if mask is not None:
                tap = jnp.where(mask, tap, 0.0)
            acc = acc + jnp.dot(tap, get_w(t),
                                preferred_element_type=jnp.float32)
        return acc

    # Layer 1: relu(conv1(x) + downconv(x)); downconv is folded into w1/b1.
    y = conv3x3(xbuf, lambda t: w1_ref[t * Ci:(t + 1) * Ci, :],
                b1_ref[...].astype(jnp.float32))
    y = jnp.maximum(y, 0.0)                             # (HW, Co) f32

    # Layers 2..5: relu(conv_k(y) + y); y stays resident on-chip.
    for l in range(4):
        ybuf[G:G + HW, :] = y
        acc0 = y + b25_ref[l].astype(jnp.float32)       # residual + bias (f32)
        y = conv3x3(ybuf,
                    lambda t, l=l: w25_ref[l, t * Co:(t + 1) * Co, :],
                    acc0)
        y = jnp.maximum(y, 0.0)

    o_ref[0] = y.astype(o_ref.dtype)


# ------------------------------ Pallas wrapper ------------------------------

def _w3x3_to_mat(w_oihw):
    """PyTorch OIHW (Co, Ci, 3, 3) -> (9*Ci, Co), row order (kh, kw, ci)."""
    Co, Ci, kh, kw = w_oihw.shape
    return jnp.transpose(w_oihw, (2, 3, 1, 0)).reshape(kh * kw * Ci, Co)


@jax.jit
def downsample_block_forward(x_nchw, params):
    """Pallas implementation of DownSampleBlock.forward (NCHW in, NCHW out)."""
    N, Ci, H, W = x_nchw.shape
    Co = params["downconv_w"].shape[0]
    HW = H * W
    G = _round_up(W + 1, 8)          # guard rows; aligned interior offset

    # NCHW -> (N, H*W, C) pixel-major planes.
    x_rows = jnp.transpose(x_nchw, (0, 2, 3, 1)).reshape(N, HW, Ci)

    # Fold the 1x1 downconv into conv1's centre tap and bias.
    w1 = _w3x3_to_mat(params["conv1_w"])                         # (9*Ci, Co)
    wd = jnp.transpose(params["downconv_w"].reshape(Co, Ci), (1, 0))
    w1 = w1.at[4 * Ci:5 * Ci, :].add(wd)
    b1 = (params["conv1_b"] + params["downconv_b"]).reshape(1, Co)

    w25 = jnp.stack([_w3x3_to_mat(params[f"conv{k}_w"]) for k in range(2, 6)])
    b25 = jnp.stack([params[f"conv{k}_b"].reshape(1, Co) for k in range(2, 6)])

    kernel = functools.partial(_downsample_block_kernel,
                               H=H, W=W, Ci=Ci, Co=Co, G=G)

    # One batch element's whole (H*W, C) plane is kept resident in VMEM across
    # all 5 layers.  TODO(synk): for planes too large for VMEM, add spatial
    # tiling with 5-pixel halos; not needed at these shapes.
    out = pl.pallas_call(
        kernel,
        out_shape=jax.ShapeDtypeStruct((N, HW, Co), x_nchw.dtype),
        grid=(N,),
        in_specs=[
            pl.BlockSpec((1, HW, Ci), lambda n: (n, 0, 0)),
            pl.BlockSpec((9 * Ci, Co), lambda n: (0, 0)),
            pl.BlockSpec((1, Co), lambda n: (0, 0)),
            pl.BlockSpec((4, 9 * Co, Co), lambda n: (0, 0, 0)),
            pl.BlockSpec((4, 1, Co), lambda n: (0, 0, 0)),
        ],
        out_specs=pl.BlockSpec((1, HW, Co), lambda n: (n, 0, 0)),
        scratch_shapes=[
            pltpu.VMEM((HW + 2 * G, Ci), jnp.float32),
            pltpu.VMEM((HW + 2 * G, Co), jnp.float32),
        ],
        compiler_params=pltpu.CompilerParams(
            dimension_semantics=("parallel",),
            vmem_limit_bytes=32 * 1024 * 1024),
    )(x_rows, w1, b1, w25, b25)

    return jnp.transpose(out.reshape(N, H, W, Co), (0, 3, 1, 2))


# --------------------------- pure-JAX reference ---------------------------

def _conv_ref(x, w, b, pad):
    out = lax.conv_general_dilated(
        x, w, window_strides=(1, 1), padding=(pad, pad),
        dimension_numbers=("NCHW", "OIHW", "NCHW"))
    return out + b[None, :, None, None]


def downsample_block_ref(x, p):
    d = _conv_ref(x, p["downconv_w"], p["downconv_b"], (0, 0))
    y = jax.nn.relu(_conv_ref(x, p["conv1_w"], p["conv1_b"], (1, 1)) + d)
    for k in range(2, 6):
        y = jax.nn.relu(_conv_ref(y, p[f"conv{k}_w"], p[f"conv{k}_b"], (1, 1)) + y)
    return y


# --------------------------------- main ----------------------------------

def _init_params(key, input_size, output_size):
    ks = jax.random.split(key, 12)
    p = {}
    p["downconv_w"] = 0.1 * jax.random.normal(ks[0], (output_size, input_size, 1, 1), jnp.float32)
    p["downconv_b"] = 0.05 * jax.random.normal(ks[1], (output_size,), jnp.float32)
    p["conv1_w"] = 0.1 * jax.random.normal(ks[2], (output_size, input_size, 3, 3), jnp.float32)
    p["conv1_b"] = 0.05 * jax.random.normal(ks[3], (output_size,), jnp.float32)
    for i, k in enumerate(range(2, 6)):
        p[f"conv{k}_w"] = 0.1 * jax.random.normal(
            ks[4 + 2 * i], (output_size, output_size, 3, 3), jnp.float32)
        p[f"conv{k}_b"] = 0.05 * jax.random.normal(
            ks[5 + 2 * i], (output_size,), jnp.float32)
    return p


if __name__ == "__main__":
    key = jax.random.PRNGKey(0)
    k_x, k_p = jax.random.split(key)

    N, Cin, Cout, H, W = 2, 4, 8, 16, 16
    x = jax.random.normal(k_x, (N, Cin, H, W), jnp.float32)
    params = _init_params(k_p, Cin, Cout)

    out = downsample_block_forward(x, params)
    out = jax.block_until_ready(out)

    ref = downsample_block_ref(x, params)
    assert out.shape == (N, Cout, H, W)
    assert jnp.allclose(out, ref, atol=1e-4, rtol=1e-4), (
        float(jnp.max(jnp.abs(out - ref))))

    print("KERNEL_OK")
</pallas_src>

<mosaic_0001>
module attributes {stable_mosaic.version = 11 : i64} {
  func.func @_downsample_block_kernel(%arg0: i32, %arg1: memref<1x256x4xf32, #tpu.memory_space<vmem>>, %arg2: memref<36x8xf32, #tpu.memory_space<vmem>>, %arg3: memref<1x8xf32, #tpu.memory_space<vmem>>, %arg4: memref<4x72x8xf32, #tpu.memory_space<vmem>>, %arg5: memref<4x1x8xf32, #tpu.memory_space<vmem>>, %arg6: memref<1x256x8xf32, #tpu.memory_space<vmem>>, %arg7: memref<304x4xf32, #tpu.memory_space<vmem>>, %arg8: memref<304x8xf32, #tpu.memory_space<vmem>>) attributes {dimension_semantics = [#tpu.dimension_semantics<parallel>], iteration_bounds = array<i64: 2>, scalar_prefetch = 0 : i64, scratch_operands = 2 : i64, tpu.core_type = #tpu.core_type<tc>, window_params = [{transform_indices = @transform_0, window_bounds = array<i64: 1, 256, 4>}, {pipeline_mode = #tpu.pipeline_mode<synchronous>, transform_indices = @transform_1, window_bounds = array<i64: 36, 8>}, {pipeline_mode = #tpu.pipeline_mode<synchronous>, transform_indices = @transform_2, window_bounds = array<i64: 1, 8>}, {pipeline_mode = #tpu.pipeline_mode<synchronous>, transform_indices = @transform_3, window_bounds = array<i64: 4, 72, 8>}, {pipeline_mode = #tpu.pipeline_mode<synchronous>, transform_indices = @transform_4, window_bounds = array<i64: 4, 1, 8>}, {transform_indices = @transform_5, window_bounds = array<i64: 1, 256, 8>}]} {
    %cst = arith.constant 0.000000e+00 : f32
    %0 = vector.broadcast %cst : f32 to vector<304x4xf32>
    %c0 = arith.constant 0 : index
    %c0_0 = arith.constant 0 : index
    %1 = vector.load %arg7[%c0, %c0_0] : memref<304x4xf32, #tpu.memory_space<vmem>>, vector<304x4xf32>
    tpu.vector_store %arg7[%c0, %c0_0], %0 {strides = array<i32>} : memref<304x4xf32, #tpu.memory_space<vmem>>, vector<304x4xf32>,
    %cst_1 = arith.constant 0.000000e+00 : f32
    %2 = vector.broadcast %cst_1 : f32 to vector<304x8xf32>
    %c0_2 = arith.constant 0 : index
    %c0_3 = arith.constant 0 : index
    %3 = vector.load %arg8[%c0_2, %c0_3] : memref<304x8xf32, #tpu.memory_space<vmem>>, vector<304x8xf32>
    tpu.vector_store %arg8[%c0_2, %c0_3], %2 {strides = array<i32>} : memref<304x8xf32, #tpu.memory_space<vmem>>, vector<304x8xf32>,
    %c0_4 = arith.constant 0 : index
    %c0_5 = arith.constant 0 : index
    %c0_6 = arith.constant 0 : index
    %4 = vector.load %arg1[%c0_4, %c0_5, %c0_6] : memref<1x256x4xf32, #tpu.memory_space<vmem>>, vector<1x256x4xf32>
    %5 = vector.shape_cast %4 : vector<1x256x4xf32> to vector<256x4xf32>
    %c24 = arith.constant 24 : index
    %c0_7 = arith.constant 0 : index
    %6 = vector.load %arg7[%c24, %c0_7] : memref<304x4xf32, #tpu.memory_space<vmem>>, vector<256x4xf32>
    tpu.vector_store %arg7[%c24, %c0_7], %5 {strides = array<i32>} : memref<304x4xf32, #tpu.memory_space<vmem>>, vector<256x4xf32>,
    %7 = tpu.iota {dimensions = array<i32: 0>} : vector<256x1xi32>
    %c16_i32 = arith.constant 16 : i32
    %c0_i32 = arith.constant 0 : i32
    %8 = arith.cmpi eq, %c16_i32, %c0_i32 : i32
    %c1_i32 = arith.constant 1 : i32
    %9 = arith.select %8, %c1_i32, %c16_i32 : i32
    %10 = vector.broadcast %9 : i32 to vector<256x1xi32>
    %11 = arith.remsi %7, %10 : vector<256x1xi32>
    %c0_i32_8 = arith.constant 0 : i32
    %12 = vector.broadcast %c0_i32_8 : i32 to vector<256x1xi32>
    %13 = arith.cmpi ne, %11, %12 : vector<256x1xi32>
    %c0_i32_9 = arith.constant 0 : i32
    %14 = vector.broadcast %c0_i32_9 : i32 to vector<256x1xi32>
    %15 = arith.cmpi slt, %11, %14 : vector<256x1xi32>
    %c0_i32_10 = arith.constant 0 : i32
    %16 = arith.cmpi slt, %9, %c0_i32_10 : i32
    %17 = vector.broadcast %16 : i1 to vector<256x1xi1>
    %18 = vector.broadcast %17 : vector<256x1xi1> to vector<256x1xi1>
    %19 = arith.xori %15, %18 : vector<256x1xi1>
    %20 = arith.andi %19, %13 : vector<256x1xi1>
    %21 = vector.broadcast %9 : i32 to vector<256x1xi32>
    %22 = arith.addi %11, %21 : vector<256x1xi32>
    %23 = arith.select %20, %22, %11 : vector<256x1xi1>, vector<256x1xi32>
    %c0_i32_11 = arith.constant 0 : i32
    %24 = vector.broadcast %c0_i32_11 : i32 to vector<256x1xi32>
    %25 = arith.cmpi sgt, %23, %24 : vector<256x1xi32>
    %c15_i32 = arith.constant 15 : i32
    %26 = vector.broadcast %c15_i32 : i32 to vector<256x1xi32>
    %27 = arith.cmpi slt, %23, %26 : vector<256x1xi32>
    %c0_12 = arith.constant 0 : index
    %c0_13 = arith.constant 0 : index
    %28 = vector.load %arg3[%c0_12, %c0_13] : memref<1x8xf32, #tpu.memory_space<vmem>>, vector<1x8xf32>
    %c7 = arith.constant 7 : index
    %c0_14 = arith.constant 0 : index
    %29 = vector.load %arg7[%c7, %c0_14] : memref<304x4xf32, #tpu.memory_space<vmem>>, vector<256x4xf32>
    %cst_15 = arith.constant 0.000000e+00 : f32
    %30 = vector.shape_cast %25 : vector<256x1xi1> to vector<256x1xi1>
    %31 = vector.broadcast %30 : vector<256x1xi1> to vector<256x4xi1>
    %32 = vector.broadcast %cst_15 : f32 to vector<256x4xf32>
    %33 = arith.select %31, %29, %32 : vector<256x4xi1>, vector<256x4xf32>
    %c0_16 = arith.constant 0 : index
    %c0_17 = arith.constant 0 : index
    %34 = vector.load %arg2[%c0_16, %c0_17] : memref<36x8xf32, #tpu.memory_space<vmem>>, vector<4x8xf32>
    %cst_18 = arith.constant dense<0.000000e+00> : vector<256x8xf32>
    %35 = tpu.matmul %33, %34, %cst_18 {dimension_numbers = #tpu.dot_dimension_numbers<[1], [0], [0], [1], [0, 0, 1, 1], [], []>} : vector<256x4xf32>, vector<4x8xf32>, vector<256x8xf32> -> vector<256x8xf32>
    %36 = vector.broadcast %28 : vector<1x8xf32> to vector<256x8xf32>
    %37 = arith.addf %36, %35 : vector<256x8xf32>
    %c8 = arith.constant 8 : index
    %c0_19 = arith.constant 0 : index
    %38 = vector.load %arg7[%c8, %c0_19] : memref<304x4xf32, #tpu.memory_space<vmem>>, vector<256x4xf32>
    %c4 = arith.constant 4 : index
    %c0_20 = arith.constant 0 : index
    %39 = vector.load %arg2[%c4, %c0_20] : memref<36x8xf32, #tpu.memory_space<vmem>>, vector<4x8xf32>
    %cst_21 = arith.constant dense<0.000000e+00> : vector<256x8xf32>
    %40 = tpu.matmul %38, %39, %cst_21 {dimension_numbers = #tpu.dot_dimension_numbers<[1], [0], [0], [1], [0, 0, 1, 1], [], []>} : vector<256x4xf32>, vector<4x8xf32>, vector<256x8xf32> -> vector<256x8xf32>
    %41 = arith.addf %37, %40 : vector<256x8xf32>
    %c9 = arith.constant 9 : index
    %c0_22 = arith.constant 0 : index
    %42 = vector.load %arg7[%c9, %c0_22] : memref<304x4xf32, #tpu.memory_space<vmem>>, vector<256x4xf32>
    %cst_23 = arith.constant 0.000000e+00 : f32
    %43 = vector.shape_cast %27 : vector<256x1xi1> to vector<256x1xi1>
    %44 = vector.broadcast %43 : vector<256x1xi1> to vector<256x4xi1>
    %45 = vector.broadcast %cst_23 : f32 to vector<256x4xf32>
    %46 = arith.select %44, %42, %45 : vector<256x4xi1>, vector<256x4xf32>
    %c8_24 = arith.constant 8 : index
    %c0_25 = arith.constant 0 : index
    %47 = vector.load %arg2[%c8_24, %c0_25] : memref<36x8xf32, #tpu.memory_space<vmem>>, vector<4x8xf32>
    %cst_26 = arith.constant dense<0.000000e+00> : vector<256x8xf32>
    %48 = tpu.matmul %46, %47, %cst_26 {dimension_numbers = #tpu.dot_dimension_numbers<[1], [0], [0], [1], [0, 0, 1, 1], [], []>} : vector<256x4xf32>, vector<4x8xf32>, vector<256x8xf32> -> vector<256x8xf32>
    %49 = arith.addf %41, %48 : vector<256x8xf32>
    %c23 = arith.constant 23 : index
    %c0_27 = arith.constant 0 : index
    %50 = vector.load %arg7[%c23, %c0_27] : memref<304x4xf32, #tpu.memory_space<vmem>>, vector<256x4xf32>
    %cst_28 = arith.constant 0.000000e+00 : f32
    %51 = vector.shape_cast %25 : vector<256x1xi1> to vector<256x1xi1>
    %52 = vector.broadcast %51 : vector<256x1xi1> to vector<256x4xi1>
    %53 = vector.broadcast %cst_28 : f32 to vector<256x4xf32>
    %54 = arith.select %52, %50, %53 : vector<256x4xi1>, vector<256x4xf32>
    %c12 = arith.constant 12 : index
    %c0_29 = arith.constant 0 : index
    %55 = vector.load %arg2[%c12, %c0_29] : memref<36x8xf32, #tpu.memory_space<vmem>>, vector<4x8xf32>
    %cst_30 = arith.constant dense<0.000000e+00> : vector<256x8xf32>
    %56 = tpu.matmul %54, %55, %cst_30 {dimension_numbers = #tpu.dot_dimension_numbers<[1], [0], [0], [1], [0, 0, 1, 1], [], []>} : vector<256x4xf32>, vector<4x8xf32>, vector<256x8xf32> -> vector<256x8xf32>
    %57 = arith.addf %49, %56 : vector<256x8xf32>
    %c24_31 = arith.constant 24 : index
    %c0_32 = arith.constant 0 : index
    %58 = vector.load %arg7[%c24_31, %c0_32] : memref<304x4xf32, #tpu.memory_space<vmem>>, vector<256x4xf32>
    %c16 = arith.constant 16 : index
    %c0_33 = arith.constant 0 : index
    %59 = vector.load %arg2[%c16, %c0_33] : memref<36x8xf32, #tpu.memory_space<vmem>>, vector<4x8xf32>
    %cst_34 = arith.constant dense<0.000000e+00> : vector<256x8xf32>
    %60 = tpu.matmul %58, %59, %cst_34 {dimension_numbers = #tpu.dot_dimension_numbers<[1], [0], [0], [1], [0, 0, 1, 1], [], []>} : vector<256x4xf32>, vector<4x8xf32>, vector<256x8xf32> -> vector<256x8xf32>
    %61 = arith.addf %57, %60 : vector<256x8xf32>
    %c25 = arith.constant 25 : index
    %c0_35 = arith.constant 0 : index
    %62 = vector.load %arg7[%c25, %c0_35] : memref<304x4xf32, #tpu.memory_space<vmem>>, vector<256x4xf32>
    %cst_36 = arith.constant 0.000000e+00 : f32
    %63 = vector.shape_cast %27 : vector<256x1xi1> to vector<256x1xi1>
    %64 = vector.broadcast %63 : vector<256x1xi1> to vector<256x4xi1>
    %65 = vector.broadcast %cst_36 : f32 to vector<256x4xf32>
    %66 = arith.select %64, %62, %65 : vector<256x4xi1>, vector<256x4xf32>
    %c20 = arith.constant 20 : index
    %c0_37 = arith.constant 0 : index
    %67 = vector.load %arg2[%c20, %c0_37] : memref<36x8xf32, #tpu.memory_space<vmem>>, vector<4x8xf32>
    %cst_38 = arith.constant dense<0.000000e+00> : vector<256x8xf32>
    %68 = tpu.matmul %66, %67, %cst_38 {dimension_numbers = #tpu.dot_dimension_numbers<[1], [0], [0], [1], [0, 0, 1, 1], [], []>} : vector<256x4xf32>, vector<4x8xf32>, vector<256x8xf32> -> vector<256x8xf32>
    %69 = arith.addf %61, %68 : vector<256x8xf32>
    %c39 = arith.constant 39 : index
    %c0_39 = arith.constant 0 : index
    %70 = vector.load %arg7[%c39, %c0_39] : memref<304x4xf32, #tpu.memory_space<vmem>>, vector<256x4xf32>
    %cst_40 = arith.constant 0.000000e+00 : f32
    %71 = vector.shape_cast %25 : vector<256x1xi1> to vector<256x1xi1>
    %72 = vector.broadcast %71 : vector<256x1xi1> to vector<256x4xi1>
    %73 = vector.broadcast %cst_40 : f32 to vector<256x4xf32>
    %74 = arith.select %72, %70, %73 : vector<256x4xi1>, vector<256x4xf32>
    %c24_41 = arith.constant 24 : index
    %c0_42 = arith.constant 0 : index
    %75 = vector.load %arg2[%c24_41, %c0_42] : memref<36x8xf32, #tpu.memory_space<vmem>>, vector<4x8xf32>
    %cst_43 = arith.constant dense<0.000000e+00> : vector<256x8xf32>
    %76 = tpu.matmul %74, %75, %cst_43 {dimension_numbers = #tpu.dot_dimension_numbers<[1], [0], [0], [1], [0, 0, 1, 1], [], []>} : vector<256x4xf32>, vector<4x8xf32>, vector<256x8xf32> -> vector<256x8xf32>
    %77 = arith.addf %69, %76 : vector<256x8xf32>
    %c40 = arith.constant 40 : index
    %c0_44 = arith.constant 0 : index
    %78 = vector.load %arg7[%c40, %c0_44] : memref<304x4xf32, #tpu.memory_space<vmem>>, vector<256x4xf32>
    %c28 = arith.constant 28 : index
    %c0_45 = arith.constant 0 : index
    %79 = vector.load %arg2[%c28, %c0_45] : memref<36x8xf32, #tpu.memory_space<vmem>>, vector<4x8xf32>
    %cst_46 = arith.constant dense<0.000000e+00> : vector<256x8xf32>
    %80 = tpu.matmul %78, %79, %cst_46 {dimension_numbers = #tpu.dot_dimension_numbers<[1], [0], [0], [1], [0, 0, 1, 1], [], []>} : vector<256x4xf32>, vector<4x8xf32>, vector<256x8xf32> -> vector<256x8xf32>
    %81 = arith.addf %77, %80 : vector<256x8xf32>
    %c41 = arith.constant 41 : index
    %c0_47 = arith.constant 0 : index
    %82 = vector.load %arg7[%c41, %c0_47] : memref<304x4xf32, #tpu.memory_space<vmem>>, vector<256x4xf32>
    %cst_48 = arith.constant 0.000000e+00 : f32
    %83 = vector.shape_cast %27 : vector<256x1xi1> to vector<256x1xi1>
    %84 = vector.broadcast %83 : vector<256x1xi1> to vector<256x4xi1>
    %85 = vector.broadcast %cst_48 : f32 to vector<256x4xf32>
    %86 = arith.select %84, %82, %85 : vector<256x4xi1>, vector<256x4xf32>
    %c32 = arith.constant 32 : index
    %c0_49 = arith.constant 0 : index
    %87 = vector.load %arg2[%c32, %c0_49] : memref<36x8xf32, #tpu.memory_space<vmem>>, vector<4x8xf32>
    %cst_50 = arith.constant dense<0.000000e+00> : vector<256x8xf32>
    %88 = tpu.matmul %86, %87, %cst_50 {dimension_numbers = #tpu.dot_dimension_numbers<[1], [0], [0], [1], [0, 0, 1, 1], [], []>} : vector<256x4xf32>, vector<4x8xf32>, vector<256x8xf32> -> vector<256x8xf32>
    %89 = arith.addf %81, %88 : vector<256x8xf32>
    %cst_51 = arith.constant 0.000000e+00 : f32
    %90 = vector.broadcast %cst_51 : f32 to vector<256x8xf32>
    %91 = arith.maximumf %89, %90 : vector<256x8xf32>
    %c24_52 = arith.constant 24 : index
    %c0_53 = arith.constant 0 : index
    %92 = vector.load %arg8[%c24_52, %c0_53] : memref<304x8xf32, #tpu.memory_space<vmem>>, vector<256x8xf32>
    tpu.vector_store %arg8[%c24_52, %c0_53], %91 {strides = array<i32>} : memref<304x8xf32, #tpu.memory_space<vmem>>, vector<256x8xf32>,
    %c0_54 = arith.constant 0 : index
    %c0_55 = arith.constant 0 : index
    %c0_56 = arith.constant 0 : index
    %93 = vector.load %arg5[%c0_54, %c0_55, %c0_56] : memref<4x1x8xf32, #tpu.memory_space<vmem>>, vector<1x1x8xf32>
    %94 = vector.shape_cast %93 : vector<1x1x8xf32> to vector<1x8xf32>
    %95 = vector.broadcast %94 : vector<1x8xf32> to vector<256x8xf32>
    %96 = arith.addf %91, %95 : vector<256x8xf32>
    %c7_57 = arith.constant 7 : index
    %c0_58 = arith.constant 0 : index
    %97 = vector.load %arg8[%c7_57, %c0_58] : memref<304x8xf32, #tpu.memory_space<vmem>>, vector<256x8xf32>
    %cst_59 = arith.constant 0.000000e+00 : f32
    %98 = vector.shape_cast %25 : vector<256x1xi1> to vector<256x1xi1>
    %99 = vector.broadcast %98 : vector<256x1xi1> to vector<256x8xi1>
    %100 = vector.broadcast %cst_59 : f32 to vector<256x8xf32>
    %101 = arith.select %99, %97, %100 : vector<256x8xi1>, vector<256x8xf32>
    %c0_60 = arith.constant 0 : index
    %c0_61 = arith.constant 0 : index
    %c0_62 = arith.constant 0 : index
    %102 = vector.load %arg4[%c0_60, %c0_61, %c0_62] : memref<4x72x8xf32, #tpu.memory_space<vmem>>, vector<1x8x8xf32>
    %103 = vector.shape_cast %102 : vector<1x8x8xf32> to vector<8x8xf32>
    %cst_63 = arith.constant dense<0.000000e+00> : vector<256x8xf32>
    %104 = tpu.matmul %101, %103, %cst_63 {dimension_numbers = #tpu.dot_dimension_numbers<[1], [0], [0], [1], [0, 0, 1, 1], [], []>} : vector<256x8xf32>, vector<8x8xf32>, vector<256x8xf32> -> vector<256x8xf32>
    %105 = arith.addf %96, %104 : vector<256x8xf32>
    %c8_64 = arith.constant 8 : index
    %c0_65 = arith.constant 0 : index
    %106 = vector.load %arg8[%c8_64, %c0_65] : memref<304x8xf32, #tpu.memory_space<vmem>>, vector<256x8xf32>
    %c0_66 = arith.constant 0 : index
    %c8_67 = arith.constant 8 : index
    %c0_68 = arith.constant 0 : index
    %107 = vector.load %arg4[%c0_66, %c8_67, %c0_68] : memref<4x72x8xf32, #tpu.memory_space<vmem>>, vector<1x8x8xf32>
    %108 = vector.shape_cast %107 : vector<1x8x8xf32> to vector<8x8xf32>
    %cst_69 = arith.constant dense<0.000000e+00> : vector<256x8xf32>
    %109 = tpu.matmul %106, %108, %cst_69 {dimension_numbers = #tpu.dot_dimension_numbers<[1], [0], [0], [1], [0, 0, 1, 1], [], []>} : vector<256x8xf32>, vector<8x8xf32>, vector<256x8xf32> -> vector<256x8xf32>
    %110 = arith.addf %105, %109 : vector<256x8xf32>
    %c9_70 = arith.constant 9 : index
    %c0_71 = arith.constant 0 : index
    %111 = vector.load %arg8[%c9_70, %c0_71] : memref<304x8xf32, #tpu.memory_space<vmem>>, vector<256x8xf32>
    %cst_72 = arith.constant 0.000000e+00 : f32
    %112 = vector.shape_cast %27 : vector<256x1xi1> to vector<256x1xi1>
    %113 = vector.broadcast %112 : vector<256x1xi1> to vector<256x8xi1>
    %114 = vector.broadcast %cst_72 : f32 to vector<256x8xf32>
    %115 = arith.select %113, %111, %114 : vector<256x8xi1>, vector<256x8xf32>
    %c0_73 = arith.constant 0 : index
    %c16_74 = arith.constant 16 : index
    %c0_75 = arith.constant 0 : index
    %116 = vector.load %arg4[%c0_73, %c16_74, %c0_75] : memref<4x72x8xf32, #tpu.memory_space<vmem>>, vector<1x8x8xf32>
    %117 = vector.shape_cast %116 : vector<1x8x8xf32> to vector<8x8xf32>
    %cst_76 = arith.constant dense<0.000000e+00> : vector<256x8xf32>
    %118 = tpu.matmul %115, %117, %cst_76 {dimension_numbers = #tpu.dot_dimension_numbers<[1], [0], [0], [1], [0, 0, 1, 1], [], []>} : vector<256x8xf32>, vector<8x8xf32>, vector<256x8xf32> -> vector<256x8xf32>
    %119 = arith.addf %110, %118 : vector<256x8xf32>
    %c23_77 = arith.constant 23 : index
    %c0_78 = arith.constant 0 : index
    %120 = vector.load %arg8[%c23_77, %c0_78] : memref<304x8xf32, #tpu.memory_space<vmem>>, vector<256x8xf32>
    %cst_79 = arith.constant 0.000000e+00 : f32
    %121 = vector.shape_cast %25 : vector<256x1xi1> to vector<256x1xi1>
    %122 = vector.broadcast %121 : vector<256x1xi1> to vector<256x8xi1>
    %123 = vector.broadcast %cst_79 : f32 to vector<256x8xf32>
    %124 = arith.select %122, %120, %123 : vector<256x8xi1>, vector<256x8xf32>
    %c0_80 = arith.constant 0 : index
    %c24_81 = arith.constant 24 : index
    %c0_82 = arith.constant 0 : index
    %125 = vector.load %arg4[%c0_80, %c24_81, %c0_82] : memref<4x72x8xf32, #tpu.memory_space<vmem>>, vector<1x8x8xf32>
    %126 = vector.shape_cast %125 : vector<1x8x8xf32> to vector<8x8xf32>
    %cst_83 = arith.constant dense<0.000000e+00> : vector<256x8xf32>
    %127 = tpu.matmul %124, %126, %cst_83 {dimension_numbers = #tpu.dot_dimension_numbers<[1], [0], [0], [1], [0, 0, 1, 1], [], []>} : vector<256x8xf32>, vector<8x8xf32>, vector<256x8xf32> -> vector<256x8xf32>
    %128 = arith.addf %119, %127 : vector<256x8xf32>
    %c24_84 = arith.constant 24 : index
    %c0_85 = arith.constant 0 : index
    %129 = vector.load %arg8[%c24_84, %c0_85] : memref<304x8xf32, #tpu.memory_space<vmem>>, vector<256x8xf32>
    %c0_86 = arith.constant 0 : index
    %c32_87 = arith.constant 32 : index
    %c0_88 = arith.constant 0 : index
    %130 = vector.load %arg4[%c0_86, %c32_87, %c0_88] : memref<4x72x8xf32, #tpu.memory_space<vmem>>, vector<1x8x8xf32>
    %131 = vector.shape_cast %130 : vector<1x8x8xf32> to vector<8x8xf32>
    %cst_89 = arith.constant dense<0.000000e+00> : vector<256x8xf32>
    %132 = tpu.matmul %129, %131, %cst_89 {dimension_numbers = #tpu.dot_dimension_numbers<[1], [0], [0], [1], [0, 0, 1, 1], [], []>} : vector<256x8xf32>, vector<8x8xf32>, vector<256x8xf32> -> vector<256x8xf32>
    %133 = arith.addf %128, %132 : vector<256x8xf32>
    %c25_90 = arith.constant 25 : index
    %c0_91 = arith.constant 0 : index
    %134 = vector.load %arg8[%c25_90, %c0_91] : memref<304x8xf32, #tpu.memory_space<vmem>>, vector<256x8xf32>
    %cst_92 = arith.constant 0.000000e+00 : f32
    %135 = vector.shape_cast %27 : vector<256x1xi1> to vector<256x1xi1>
    %136 = vector.broadcast %135 : vector<256x1xi1> to vector<256x8xi1>
    %137 = vector.broadcast %cst_92 : f32 to vector<256x8xf32>
    %138 = arith.select %136, %134, %137 : vector<256x8xi1>, vector<256x8xf32>
    %c0_93 = arith.constant 0 : index
    %c40_94 = arith.constant 40 : index
    %c0_95 = arith.constant 0 : index
    %139 = vector.load %arg4[%c0_93, %c40_94, %c0_95] : memref<4x72x8xf32, #tpu.memory_space<vmem>>, vector<1x8x8xf32>
    %140 = vector.shape_cast %139 : vector<1x8x8xf32> to vector<8x8xf32>
    %cst_96 = arith.constant dense<0.000000e+00> : vector<256x8xf32>
    %141 = tpu.matmul %138, %140, %cst_96 {dimension_numbers = #tpu.dot_dimension_numbers<[1], [0], [0], [1], [0, 0, 1, 1], [], []>} : vector<256x8xf32>, vector<8x8xf32>, vector<256x8xf32> -> vector<256x8xf32>
    %142 = arith.addf %133, %141 : vector<256x8xf32>
    %c39_97 = arith.constant 39 : index
    %c0_98 = arith.constant 0 : index
    %143 = vector.load %arg8[%c39_97, %c0_98] : memref<304x8xf32, #tpu.memory_space<vmem>>, vector<256x8xf32>
    %cst_99 = arith.constant 0.000000e+00 : f32
    %144 = vector.shape_cast %25 : vector<256x1xi1> to vector<256x1xi1>
    %145 = vector.broadcast %144 : vector<256x1xi1> to vector<256x8xi1>
    %146 = vector.broadcast %cst_99 : f32 to vector<256x8xf32>
    %147 = arith.select %145, %143, %146 : vector<256x8xi1>, vector<256x8xf32>
    %c0_100 = arith.constant 0 : index
    %c48 = arith.constant 48 : index
    %c0_101 = arith.constant 0 : index
    %148 = vector.load %arg4[%c0_100, %c48, %c0_101] : memref<4x72x8xf32, #tpu.memory_space<vmem>>, vector<1x8x8xf32>
    %149 = vector.shape_cast %148 : vector<1x8x8xf32> to vector<8x8xf32>
    %cst_102 = arith.constant dense<0.000000e+00> : vector<256x8xf32>
    %150 = tpu.matmul %147, %149, %cst_102 {dimension_numbers = #tpu.dot_dimension_numbers<[1], [0], [0], [1], [0, 0, 1, 1], [], []>} : vector<256x8xf32>, vector<8x8xf32>, vector<256x8xf32> -> vector<256x8xf32>
    %151 = arith.addf %142, %150 : vector<256x8xf32>
    %c40_103 = arith.constant 40 : index
    %c0_104 = arith.constant 0 : index
    %152 = vector.load %arg8[%c40_103, %c0_104] : memref<304x8xf32, #tpu.memory_space<vmem>>, vector<256x8xf32>
    %c0_105 = arith.constant 0 : index
    %c56 = arith.constant 56 : index
    %c0_106 = arith.constant 0 : index
    %153 = vector.load %arg4[%c0_105, %c56, %c0_106] : memref<4x72x8xf32, #tpu.memory_space<vmem>>, vector<1x8x8xf32>
    %154 = vector.shape_cast %153 : vector<1x8x8xf32> to vector<8x8xf32>
    %cst_107 = arith.constant dense<0.000000e+00> : vector<256x8xf32>
    %155 = tpu.matmul %152, %154, %cst_107 {dimension_numbers = #tpu.dot_dimension_numbers<[1], [0], [0], [1], [0, 0, 1, 1], [], []>} : vector<256x8xf32>, vector<8x8xf32>, vector<256x8xf32> -> vector<256x8xf32>
    %156 = arith.addf %151, %155 : vector<256x8xf32>
    %c41_108 = arith.constant 41 : index
    %c0_109 = arith.constant 0 : index
    %157 = vector.load %arg8[%c41_108, %c0_109] : memref<304x8xf32, #tpu.memory_space<vmem>>, vector<256x8xf32>
    %cst_110 = arith.constant 0.000000e+00 : f32
    %158 = vector.shape_cast %27 : vector<256x1xi1> to vector<256x1xi1>
    %159 = vector.broadcast %158 : vector<256x1xi1> to vector<256x8xi1>
    %160 = vector.broadcast %cst_110 : f32 to vector<256x8xf32>
    %161 = arith.select %159, %157, %160 : vector<256x8xi1>, vector<256x8xf32>
    %c0_111 = arith.constant 0 : index
    %c64 = arith.constant 64 : index
    %c0_112 = arith.constant 0 : index
    %162 = vector.load %arg4[%c0_111, %c64, %c0_112] : memref<4x72x8xf32, #tpu.memory_space<vmem>>, vector<1x8x8xf32>
    %163 = vector.shape_cast %162 : vector<1x8x8xf32> to vector<8x8xf32>
    %cst_113 = arith.constant dense<0.000000e+00> : vector<256x8xf32>
    %164 = tpu.matmul %161, %163, %cst_113 {dimension_numbers = #tpu.dot_dimension_numbers<[1], [0], [0], [1], [0, 0, 1, 1], [], []>} : vector<256x8xf32>, vector<8x8xf32>, vector<256x8xf32> -> vector<256x8xf32>
    %165 = arith.addf %156, %164 : vector<256x8xf32>
    %cst_114 = arith.constant 0.000000e+00 : f32
    %166 = vector.broadcast %cst_114 : f32 to vector<256x8xf32>
    %167 = arith.maximumf %165, %166 : vector<256x8xf32>
    %c24_115 = arith.constant 24 : index
    %c0_116 = arith.constant 0 : index
    %168 = vector.load %arg8[%c24_115, %c0_116] : memref<304x8xf32, #tpu.memory_space<vmem>>, vector<256x8xf32>
    tpu.vector_store %arg8[%c24_115, %c0_116], %167 {strides = array<i32>} : memref<304x8xf32, #tpu.memory_space<vmem>>, vector<256x8xf32>,
    %c1 = arith.constant 1 : index
    %c0_117 = arith.constant 0 : index
    %c0_118 = arith.constant 0 : index
    %169 = vector.load %arg5[%c1, %c0_117, %c0_118] : memref<4x1x8xf32, #tpu.memory_space<vmem>>, vector<1x1x8xf32>
    %170 = vector.shape_cast %169 : vector<1x1x8xf32> to vector<1x8xf32>
    %171 = vector.broadcast %170 : vector<1x8xf32> to vector<256x8xf32>
    %172 = arith.addf %167, %171 : vector<256x8xf32>
    %c7_119 = arith.constant 7 : index
    %c0_120 = arith.constant 0 : index
    %173 = vector.load %arg8[%c7_119, %c0_120] : memref<304x8xf32, #tpu.memory_space<vmem>>, vector<256x8xf32>
    %cst_121 = arith.constant 0.000000e+00 : f32
    %174 = vector.shape_cast %25 : vector<256x1xi1> to vector<256x1xi1>
    %175 = vector.broadcast %174 : vector<256x1xi1> to vector<256x8xi1>
    %176 = vector.broadcast %cst_121 : f32 to vector<256x8xf32>
    %177 = arith.select %175, %173, %176 : vector<256x8xi1>, vector<256x8xf32>
    %c1_122 = arith.constant 1 : index
    %c0_123 = arith.constant 0 : index
    %c0_124 = arith.constant 0 : index
    %178 = vector.load %arg4[%c1_122, %c0_123, %c0_124] : memref<4x72x8xf32, #tpu.memory_space<vmem>>, vector<1x8x8xf32>
    %179 = vector.shape_cast %178 : vector<1x8x8xf32> to vector<8x8xf32>
    %cst_125 = arith.constant dense<0.000000e+00> : vector<256x8xf32>
    %180 = tpu.matmul %177, %179, %cst_125 {dimension_numbers = #tpu.dot_dimension_numbers<[1], [0], [0], [1], [0, 0, 1, 1], [], []>} : vector<256x8xf32>, vector<8x8xf32>, vector<256x8xf32> -> vector<256x8xf32>
    %181 = arith.addf %172, %180 : vector<256x8xf32>
    %c8_126 = arith.constant 8 : index
    %c0_127 = arith.constant 0 : index
    %182 = vector.load %arg8[%c8_126, %c0_127] : memref<304x8xf32, #tpu.memory_space<vmem>>, vector<256x8xf32>
    %c1_128 = arith.constant 1 : index
    %c8_129 = arith.constant 8 : index
    %c0_130 = arith.constant 0 : index
    %183 = vector.load %arg4[%c1_128, %c8_129, %c0_130] : memref<4x72x8xf32, #tpu.memory_space<vmem>>, vector<1x8x8xf32>
    %184 = vector.shape_cast %183 : vector<1x8x8xf32> to vector<8x8xf32>
    %cst_131 = arith.constant dense<0.000000e+00> : vector<256x8xf32>
    %185 = tpu.matmul %182, %184, %cst_131 {dimension_numbers = #tpu.dot_dimension_numbers<[1], [0], [0], [1], [0, 0, 1, 1], [], []>} : vector<256x8xf32>, vector<8x8xf32>, vector<256x8xf32> -> vector<256x8xf32>
    %186 = arith.addf %181, %185 : vector<256x8xf32>
    %c9_132 = arith.constant 9 : index
    %c0_133 = arith.constant 0 : index
    %187 = vector.load %arg8[%c9_132, %c0_133] : memref<304x8xf32, #tpu.memory_space<vmem>>, vector<256x8xf32>
    %cst_134 = arith.constant 0.000000e+00 : f32
    %188 = vector.shape_cast %27 : vector<256x1xi1> to vector<256x1xi1>
    %189 = vector.broadcast %188 : vector<256x1xi1> to vector<256x8xi1>
    %190 = vector.broadcast %cst_134 : f32 to vector<256x8xf32>
    %191 = arith.select %189, %187, %190 : vector<256x8xi1>, vector<256x8xf32>
    %c1_135 = arith.constant 1 : index
    %c16_136 = arith.constant 16 : index
    %c0_137 = arith.constant 0 : index
    %192 = vector.load %arg4[%c1_135, %c16_136, %c0_137] : memref<4x72x8xf32, #tpu.memory_space<vmem>>, vector<1x8x8xf32>
    %193 = vector.shape_cast %192 : vector<1x8x8xf32> to vector<8x8xf32>
    %cst_138 = arith.constant dense<0.000000e+00> : vector<256x8xf32>
    %194 = tpu.matmul %191, %193, %cst_138 {dimension_numbers = #tpu.dot_dimension_numbers<[1], [0], [0], [1], [0, 0, 1, 1], [], []>} : vector<256x8xf32>, vector<8x8xf32>, vector<256x8xf32> -> vector<256x8xf32>
    %195 = arith.addf %186, %194 : vector<256x8xf32>
    %c23_139 = arith.constant 23 : index
    %c0_140 = arith.constant 0 : index
    %196 = vector.load %arg8[%c23_139, %c0_140] : memref<304x8xf32, #tpu.memory_space<vmem>>, vector<256x8xf32>
    %cst_141 = arith.constant 0.000000e+00 : f32
    %197 = vector.shape_cast %25 : vector<256x1xi1> to vector<256x1xi1>
    %198 = vector.broadcast %197 : vector<256x1xi1> to vector<256x8xi1>
    %199 = vector.broadcast %cst_141 : f32 to vector<256x8xf32>
    %200 = arith.select %198, %196, %199 : vector<256x8xi1>, vector<256x8xf32>
    %c1_142 = arith.constant 1 : index
    %c24_143 = arith.constant 24 : index
    %c0_144 = arith.constant 0 : index
    %201 = vector.load %arg4[%c1_142, %c24_143, %c0_144] : memref<4x72x8xf32, #tpu.memory_space<vmem>>, vector<1x8x8xf32>
    %202 = vector.shape_cast %201 : vector<1x8x8xf32> to vector<8x8xf32>
    %cst_145 = arith.constant dense<0.000000e+00> : vector<256x8xf32>
    %203 = tpu.matmul %200, %202, %cst_145 {dimension_numbers = #tpu.dot_dimension_numbers<[1], [0], [0], [1], [0, 0, 1, 1], [], []>} : vector<256x8xf32>, vector<8x8xf32>, vector<256x8xf32> -> vector<256x8xf32>
    %204 = arith.addf %195, %203 : vector<256x8xf32>
    %c24_146 = arith.constant 24 : index
    %c0_147 = arith.constant 0 : index
    %205 = vector.load %arg8[%c24_146, %c0_147] : memref<304x8xf32, #tpu.memory_space<vmem>>, vector<256x8xf32>
    %c1_148 = arith.constant 1 : index
    %c32_149 = arith.constant 32 : index
    %c0_150 = arith.constant 0 : index
    %206 = vector.load %arg4[%c1_148, %c32_149, %c0_150] : memref<4x72x8xf32, #tpu.memory_space<vmem>>, vector<1x8x8xf32>
    %207 = vector.shape_cast %206 : vector<1x8x8xf32> to vector<8x8xf32>
    %cst_151 = arith.constant dense<0.000000e+00> : vector<256x8xf32>
    %208 = tpu.matmul %205, %207, %cst_151 {dimension_numbers = #tpu.dot_dimension_numbers<[1], [0], [0], [1], [0, 0, 1, 1], [], []>} : vector<256x8xf32>, vector<8x8xf32>, vector<256x8xf32> -> vector<256x8xf32>
    %209 = arith.addf %204, %208 : vector<256x8xf32>
    %c25_152 = arith.constant 25 : index
    %c0_153 = arith.constant 0 : index
    %210 = vector.load %arg8[%c25_152, %c0_153] : memref<304x8xf32, #tpu.memory_space<vmem>>, vector<256x8xf32>
    %cst_154 = arith.constant 0.000000e+00 : f32
    %211 = vector.shape_cast %27 : vector<256x1xi1> to vector<256x1xi1>
    %212 = vector.broadcast %211 : vector<256x1xi1> to vector<256x8xi1>
    %213 = vector.broadcast %cst_154 : f32 to vector<256x8xf32>
    %214 = arith.select %212, %210, %213 : vector<256x8xi1>, vector<256x8xf32>
    %c1_155 = arith.constant 1 : index
    %c40_156 = arith.constant 40 : index
    %c0_157 = arith.constant 0 : index
    %215 = vector.load %arg4[%c1_155, %c40_156, %c0_157] : memref<4x72x8xf32, #tpu.memory_space<vmem>>, vector<1x8x8xf32>
    %216 = vector.shape_cast %215 : vector<1x8x8xf32> to vector<8x8xf32>
    %cst_158 = arith.constant dense<0.000000e+00> : vector<256x8xf32>
    %217 = tpu.matmul %214, %216, %cst_158 {dimension_numbers = #tpu.dot_dimension_numbers<[1], [0], [0], [1], [0, 0, 1, 1], [], []>} : vector<256x8xf32>, vector<8x8xf32>, vector<256x8xf32> -> vector<256x8xf32>
    %218 = arith.addf %209, %217 : vector<256x8xf32>
    %c39_159 = arith.constant 39 : index
    %c0_160 = arith.constant 0 : index
    %219 = vector.load %arg8[%c39_159, %c0_160] : memref<304x8xf32, #tpu.memory_space<vmem>>, vector<256x8xf32>
    %cst_161 = arith.constant 0.000000e+00 : f32
    %220 = vector.shape_cast %25 : vector<256x1xi1> to vector<256x1xi1>
    %221 = vector.broadcast %220 : vector<256x1xi1> to vector<256x8xi1>
    %222 = vector.broadcast %cst_161 : f32 to vector<256x8xf32>
    %223 = arith.select %221, %219, %222 : vector<256x8xi1>, vector<256x8xf32>
    %c1_162 = arith.constant 1 : index
    %c48_163 = arith.constant 48 : index
    %c0_164 = arith.constant 0 : index
    %224 = vector.load %arg4[%c1_162, %c48_163, %c0_164] : memref<4x72x8xf32, #tpu.memory_space<vmem>>, vector<1x8x8xf32>
    %225 = vector.shape_cast %224 : vector<1x8x8xf32> to vector<8x8xf32>
    %cst_165 = arith.constant dense<0.000000e+00> : vector<256x8xf32>
    %226 = tpu.matmul %223, %225, %cst_165 {dimension_numbers = #tpu.dot_dimension_numbers<[1], [0], [0], [1], [0, 0, 1, 1], [], []>} : vector<256x8xf32>, vector<8x8xf32>, vector<256x8xf32> -> vector<256x8xf32>
    %227 = arith.addf %218, %226 : vector<256x8xf32>
    %c40_166 = arith.constant 40 : index
    %c0_167 = arith.constant 0 : index
    %228 = vector.load %arg8[%c40_166, %c0_167] : memref<304x8xf32, #tpu.memory_space<vmem>>, vector<256x8xf32>
    %c1_168 = arith.constant 1 : index
    %c56_169 = arith.constant 56 : index
    %c0_170 = arith.constant 0 : index
    %229 = vector.load %arg4[%c1_168, %c56_169, %c0_170] : memref<4x72x8xf32, #tpu.memory_space<vmem>>, vector<1x8x8xf32>
    %230 = vector.shape_cast %229 : vector<1x8x8xf32> to vector<8x8xf32>
    %cst_171 = arith.constant dense<0.000000e+00> : vector<256x8xf32>
    %231 = tpu.matmul %228, %230, %cst_171 {dimension_numbers = #tpu.dot_dimension_numbers<[1], [0], [0], [1], [0, 0, 1, 1], [], []>} : vector<256x8xf32>, vector<8x8xf32>, vector<256x8xf32> -> vector<256x8xf32>
    %232 = arith.addf %227, %231 : vector<256x8xf32>
    %c41_172 = arith.constant 41 : index
    %c0_173 = arith.constant 0 : index
    %233 = vector.load %arg8[%c41_172, %c0_173] : memref<304x8xf32, #tpu.memory_space<vmem>>, vector<256x8xf32>
    %cst_174 = arith.constant 0.000000e+00 : f32
    %234 = vector.shape_cast %27 : vector<256x1xi1> to vector<256x1xi1>
    %235 = vector.broadcast %234 : vector<256x1xi1> to vector<256x8xi1>
    %236 = vector.broadcast %cst_174 : f32 to vector<256x8xf32>
    %237 = arith.select %235, %233, %236 : vector<256x8xi1>, vector<256x8xf32>
    %c1_175 = arith.constant 1 : index
    %c64_176 = arith.constant 64 : index
    %c0_177 = arith.constant 0 : index
    %238 = vector.load %arg4[%c1_175, %c64_176, %c0_177] : memref<4x72x8xf32, #tpu.memory_space<vmem>>, vector<1x8x8xf32>
    %239 = vector.shape_cast %238 : vector<1x8x8xf32> to vector<8x8xf32>
    %cst_178 = arith.constant dense<0.000000e+00> : vector<256x8xf32>
    %240 = tpu.matmul %237, %239, %cst_178 {dimension_numbers = #tpu.dot_dimension_numbers<[1], [0], [0], [1], [0, 0, 1, 1], [], []>} : vector<256x8xf32>, vector<8x8xf32>, vector<256x8xf32> -> vector<256x8xf32>
    %241 = arith.addf %232, %240 : vector<256x8xf32>
    %cst_179 = arith.constant 0.000000e+00 : f32
    %242 = vector.broadcast %cst_179 : f32 to vector<256x8xf32>
    %243 = arith.maximumf %241, %242 : vector<256x8xf32>
    %c24_180 = arith.constant 24 : index
    %c0_181 = arith.constant 0 : index
    %244 = vector.load %arg8[%c24_180, %c0_181] : memref<304x8xf32, #tpu.memory_space<vmem>>, vector<256x8xf32>
    tpu.vector_store %arg8[%c24_180, %c0_181], %243 {strides = array<i32>} : memref<304x8xf32, #tpu.memory_space<vmem>>, vector<256x8xf32>,
    %c2 = arith.constant 2 : index
    %c0_182 = arith.constant 0 : index
    %c0_183 = arith.constant 0 : index
    %245 = vector.load %arg5[%c2, %c0_182, %c0_183] : memref<4x1x8xf32, #tpu.memory_space<vmem>>, vector<1x1x8xf32>
    %246 = vector.shape_cast %245 : vector<1x1x8xf32> to vector<1x8xf32>
    %247 = vector.broadcast %246 : vector<1x8xf32> to vector<256x8xf32>
    %248 = arith.addf %243, %247 : vector<256x8xf32>
    %c7_184 = arith.constant 7 : index
    %c0_185 = arith.constant 0 : index
    %249 = vector.load %arg8[%c7_184, %c0_185] : memref<304x8xf32, #tpu.memory_space<vmem>>, vector<256x8xf32>
    %cst_186 = arith.constant 0.000000e+00 : f32
    %250 = vector.shape_cast %25 : vector<256x1xi1> to vector<256x1xi1>
    %251 = vector.broadcast %250 : vector<256x1xi1> to vector<256x8xi1>
    %252 = vector.broadcast %cst_186 : f32 to vector<256x8xf32>
    %253 = arith.select %251, %249, %252 : vector<256x8xi1>, vector<256x8xf32>
    %c2_187 = arith.constant 2 : index
    %c0_188 = arith.constant 0 : index
    %c0_189 = arith.constant 0 : index
    %254 = vector.load %arg4[%c2_187, %c0_188, %c0_189] : memref<4x72x8xf32, #tpu.memory_space<vmem>>, vector<1x8x8xf32>
    %255 = vector.shape_cast %254 : vector<1x8x8xf32> to vector<8x8xf32>
    %cst_190 = arith.constant dense<0.000000e+00> : vector<256x8xf32>
    %256 = tpu.matmul %253, %255, %cst_190 {dimension_numbers = #tpu.dot_dimension_numbers<[1], [0], [0], [1], [0, 0, 1, 1], [], []>} : vector<256x8xf32>, vector<8x8xf32>, vector<256x8xf32> -> vector<256x8xf32>
    %257 = arith.addf %248, %256 : vector<256x8xf32>
    %c8_191 = arith.constant 8 : index
    %c0_192 = arith.constant 0 : index
    %258 = vector.load %arg8[%c8_191, %c0_192] : memref<304x8xf32, #tpu.memory_space<vmem>>, vector<256x8xf32>
    %c2_193 = arith.constant 2 : index
    %c8_194 = arith.constant 8 : index
    %c0_195 = arith.constant 0 : index
    %259 = vector.load %arg4[%c2_193, %c8_194, %c0_195] : memref<4x72x8xf32, #tpu.memory_space<vmem>>, vector<1x8x8xf32>
    %260 = vector.shape_cast %259 : vector<1x8x8xf32> to vector<8x8xf32>
    %cst_196 = arith.constant dense<0.000000e+00> : vector<256x8xf32>
    %261 = tpu.matmul %258, %260, %cst_196 {dimension_numbers = #tpu.dot_dimension_numbers<[1], [0], [0], [1], [0, 0, 1, 1], [], []>} : vector<256x8xf32>, vector<8x8xf32>, vector<256x8xf32> -> vector<256x8xf32>
    %262 = arith.addf %257, %261 : vector<256x8xf32>
    %c9_197 = arith.constant 9 : index
    %c0_198 = arith.constant 0 : index
    %263 = vector.load %arg8[%c9_197, %c0_198] : memref<304x8xf32, #tpu.memory_space<vmem>>, vector<256x8xf32>
    %cst_199 = arith.constant 0.000000e+00 : f32
    %264 = vector.shape_cast %27 : vector<256x1xi1> to vector<256x1xi1>
    %265 = vector.broadcast %264 : vector<256x1xi1> to vector<256x8xi1>
    %266 = vector.broadcast %cst_199 : f32 to vector<256x8xf32>
    %267 = arith.select %265, %263, %266 : vector<256x8xi1>, vector<256x8xf32>
    %c2_200 = arith.constant 2 : index
    %c16_201 = arith.constant 16 : index
    %c0_202 = arith.constant 0 : index
    %268 = vector.load %arg4[%c2_200, %c16_201, %c0_202] : memref<4x72x8xf32, #tpu.memory_space<vmem>>, vector<1x8x8xf32>
    %269 = vector.shape_cast %268 : vector<1x8x8xf32> to vector<8x8xf32>
    %cst_203 = arith.constant dense<0.000000e+00> : vector<256x8xf32>
    %270 = tpu.matmul %267, %269, %cst_203 {dimension_numbers = #tpu.dot_dimension_numbers<[1], [0], [0], [1], [0, 0, 1, 1], [], []>} : vector<256x8xf32>, vector<8x8xf32>, vector<256x8xf32> -> vector<256x8xf32>
    %271 = arith.addf %262, %270 : vector<256x8xf32>
    %c23_204 = arith.constant 23 : index
    %c0_205 = arith.constant 0 : index
    %272 = vector.load %arg8[%c23_204, %c0_205] : memref<304x8xf32, #tpu.memory_space<vmem>>, vector<256x8xf32>
    %cst_206 = arith.constant 0.000000e+00 : f32
    %273 = vector.shape_cast %25 : vector<256x1xi1> to vector<256x1xi1>
    %274 = vector.broadcast %273 : vector<256x1xi1> to vector<256x8xi1>
    %275 = vector.broadcast %cst_206 : f32 to vector<256x8xf32>
    %276 = arith.select %274, %272, %275 : vector<256x8xi1>, vector<256x8xf32>
    %c2_207 = arith.constant 2 : index
    %c24_208 = arith.constant 24 : index
    %c0_209 = arith.constant 0 : index
    %277 = vector.load %arg4[%c2_207, %c24_208, %c0_209] : memref<4x72x8xf32, #tpu.memory_space<vmem>>, vector<1x8x8xf32>
    %278 = vector.shape_cast %277 : vector<1x8x8xf32> to vector<8x8xf32>
    %cst_210 = arith.constant dense<0.000000e+00> : vector<256x8xf32>
    %279 = tpu.matmul %276, %278, %cst_210 {dimension_numbers = #tpu.dot_dimension_numbers<[1], [0], [0], [1], [0, 0, 1, 1], [], []>} : vector<256x8xf32>, vector<8x8xf32>, vector<256x8xf32> -> vector<256x8xf32>
    %280 = arith.addf %271, %279 : vector<256x8xf32>
    %c24_211 = arith.constant 24 : index
    %c0_212 = arith.constant 0 : index
    %281 = vector.load %arg8[%c24_211, %c0_212] : memref<304x8xf32, #tpu.memory_space<vmem>>, vector<256x8xf32>
    %c2_213 = arith.constant 2 : index
    %c32_214 = arith.constant 32 : index
    %c0_215 = arith.constant 0 : index
    %282 = vector.load %arg4[%c2_213, %c32_214, %c0_215] : memref<4x72x8xf32, #tpu.memory_space<vmem>>, vector<1x8x8xf32>
    %283 = vector.shape_cast %282 : vector<1x8x8xf32> to vector<8x8xf32>
    %cst_216 = arith.constant dense<0.000000e+00> : vector<256x8xf32>
    %284 = tpu.matmul %281, %283, %cst_216 {dimension_numbers = #tpu.dot_dimension_numbers<[1], [0], [0], [1], [0, 0, 1, 1], [], []>} : vector<256x8xf32>, vector<8x8xf32>, vector<256x8xf32> -> vector<256x8xf32>
    %285 = arith.addf %280, %284 : vector<256x8xf32>
    %c25_217 = arith.constant 25 : index
    %c0_218 = arith.constant 0 : index
    %286 = vector.load %arg8[%c25_217, %c0_218] : memref<304x8xf32, #tpu.memory_space<vmem>>, vector<256x8xf32>
    %cst_219 = arith.constant 0.000000e+00 : f32
    %287 = vector.shape_cast %27 : vector<256x1xi1> to vector<256x1xi1>
    %288 = vector.broadcast %287 : vector<256x1xi1> to vector<256x8xi1>
    %289 = vector.broadcast %cst_219 : f32 to vector<256x8xf32>
    %290 = arith.select %288, %286, %289 : vector<256x8xi1>, vector<256x8xf32>
    %c2_220 = arith.constant 2 : index
    %c40_221 = arith.constant 40 : index
    %c0_222 = arith.constant 0 : index
    %291 = vector.load %arg4[%c2_220, %c40_221, %c0_222] : memref<4x72x8xf32, #tpu.memory_space<vmem>>, vector<1x8x8xf32>
    %292 = vector.shape_cast %291 : vector<1x8x8xf32> to vector<8x8xf32>
    %cst_223 = arith.constant dense<0.000000e+00> : vector<256x8xf32>
    %293 = tpu.matmul %290, %292, %cst_223 {dimension_numbers = #tpu.dot_dimension_numbers<[1], [0], [0], [1], [0, 0, 1, 1], [], []>} : vector<256x8xf32>, vector<8x8xf32>, vector<256x8xf32> -> vector<256x8xf32>
    %294 = arith.addf %285, %293 : vector<256x8xf32>
    %c39_224 = arith.constant 39 : index
    %c0_225 = arith.constant 0 : index
    %295 = vector.load %arg8[%c39_224, %c0_225] : memref<304x8xf32, #tpu.memory_space<vmem>>, vector<256x8xf32>
    %cst_226 = arith.constant 0.000000e+00 : f32
    %296 = vector.shape_cast %25 : vector<256x1xi1> to vector<256x1xi1>
    %297 = vector.broadcast %296 : vector<256x1xi1> to vector<256x8xi1>
    %298 = vector.broadcast %cst_226 : f32 to vector<256x8xf32>
    %299 = arith.select %297, %295, %298 : vector<256x8xi1>, vector<256x8xf32>
    %c2_227 = arith.constant 2 : index
    %c48_228 = arith.constant 48 : index
    %c0_229 = arith.constant 0 : index
    %300 = vector.load %arg4[%c2_227, %c48_228, %c0_229] : memref<4x72x8xf32, #tpu.memory_space<vmem>>, vector<1x8x8xf32>
    %301 = vector.shape_cast %300 : vector<1x8x8xf32> to vector<8x8xf32>
    %cst_230 = arith.constant dense<0.000000e+00> : vector<256x8xf32>
    %302 = tpu.matmul %299, %301, %cst_230 {dimension_numbers = #tpu.dot_dimension_numbers<[1], [0], [0], [1], [0, 0, 1, 1], [], []>} : vector<256x8xf32>, vector<8x8xf32>, vector<256x8xf32> -> vector<256x8xf32>
    %303 = arith.addf %294, %302 : vector<256x8xf32>
    %c40_231 = arith.constant 40 : index
    %c0_232 = arith.constant 0 : index
    %304 = vector.load %arg8[%c40_231, %c0_232] : memref<304x8xf32, #tpu.memory_space<vmem>>, vector<256x8xf32>
    %c2_233 = arith.constant 2 : index
    %c56_234 = arith.constant 56 : index
    %c0_235 = arith.constant 0 : index
    %305 = vector.load %arg4[%c2_233, %c56_234, %c0_235] : memref<4x72x8xf32, #tpu.memory_space<vmem>>, vector<1x8x8xf32>
    %306 = vector.shape_cast %305 : vector<1x8x8xf32> to vector<8x8xf32>
    %cst_236 = arith.constant dense<0.000000e+00> : vector<256x8xf32>
    %307 = tpu.matmul %304, %306, %cst_236 {dimension_numbers = #tpu.dot_dimension_numbers<[1], [0], [0], [1], [0, 0, 1, 1], [], []>} : vector<256x8xf32>, vector<8x8xf32>, vector<256x8xf32> -> vector<256x8xf32>
    %308 = arith.addf %303, %307 : vector<256x8xf32>
    %c41_237 = arith.constant 41 : index
    %c0_238 = arith.constant 0 : index
    %309 = vector.load %arg8[%c41_237, %c0_238] : memref<304x8xf32, #tpu.memory_space<vmem>>, vector<256x8xf32>
    %cst_239 = arith.constant 0.000000e+00 : f32
    %310 = vector.shape_cast %27 : vector<256x1xi1> to vector<256x1xi1>
    %311 = vector.broadcast %310 : vector<256x1xi1> to vector<256x8xi1>
    %312 = vector.broadcast %cst_239 : f32 to vector<256x8xf32>
    %313 = arith.select %311, %309, %312 : vector<256x8xi1>, vector<256x8xf32>
    %c2_240 = arith.constant 2 : index
    %c64_241 = arith.constant 64 : index
    %c0_242 = arith.constant 0 : index
    %314 = vector.load %arg4[%c2_240, %c64_241, %c0_242] : memref<4x72x8xf32, #tpu.memory_space<vmem>>, vector<1x8x8xf32>
    %315 = vector.shape_cast %314 : vector<1x8x8xf32> to vector<8x8xf32>
    %cst_243 = arith.constant dense<0.000000e+00> : vector<256x8xf32>
    %316 = tpu.matmul %313, %315, %cst_243 {dimension_numbers = #tpu.dot_dimension_numbers<[1], [0], [0], [1], [0, 0, 1, 1], [], []>} : vector<256x8xf32>, vector<8x8xf32>, vector<256x8xf32> -> vector<256x8xf32>
    %317 = arith.addf %308, %316 : vector<256x8xf32>
    %cst_244 = arith.constant 0.000000e+00 : f32
    %318 = vector.broadcast %cst_244 : f32 to vector<256x8xf32>
    %319 = arith.maximumf %317, %318 : vector<256x8xf32>
    %c24_245 = arith.constant 24 : index
    %c0_246 = arith.constant 0 : index
    %320 = vector.load %arg8[%c24_245, %c0_246] : memref<304x8xf32, #tpu.memory_space<vmem>>, vector<256x8xf32>
    tpu.vector_store %arg8[%c24_245, %c0_246], %319 {strides = array<i32>} : memref<304x8xf32, #tpu.memory_space<vmem>>, vector<256x8xf32>,
    %c3 = arith.constant 3 : index
    %c0_247 = arith.constant 0 : index
    %c0_248 = arith.constant 0 : index
    %321 = vector.load %arg5[%c3, %c0_247, %c0_248] : memref<4x1x8xf32, #tpu.memory_space<vmem>>, vector<1x1x8xf32>
    %322 = vector.shape_cast %321 : vector<1x1x8xf32> to vector<1x8xf32>
    %323 = vector.broadcast %322 : vector<1x8xf32> to vector<256x8xf32>
    %324 = arith.addf %319, %323 : vector<256x8xf32>
    %c7_249 = arith.constant 7 : index
    %c0_250 = arith.constant 0 : index
    %325 = vector.load %arg8[%c7_249, %c0_250] : memref<304x8xf32, #tpu.memory_space<vmem>>, vector<256x8xf32>
    %cst_251 = arith.constant 0.000000e+00 : f32
    %326 = vector.shape_cast %25 : vector<256x1xi1> to vector<256x1xi1>
    %327 = vector.broadcast %326 : vector<256x1xi1> to vector<256x8xi1>
    %328 = vector.broadcast %cst_251 : f32 to vector<256x8xf32>
    %329 = arith.select %327, %325, %328 : vector<256x8xi1>, vector<256x8xf32>
    %c3_252 = arith.constant 3 : index
    %c0_253 = arith.constant 0 : index
    %c0_254 = arith.constant 0 : index
    %330 = vector.load %arg4[%c3_252, %c0_253, %c0_254] : memref<4x72x8xf32, #tpu.memory_space<vmem>>, vector<1x8x8xf32>
    %331 = vector.shape_cast %330 : vector<1x8x8xf32> to vector<8x8xf32>
    %cst_255 = arith.constant dense<0.000000e+00> : vector<256x8xf32>
    %332 = tpu.matmul %329, %331, %cst_255 {dimension_numbers = #tpu.dot_dimension_numbers<[1], [0], [0], [1], [0, 0, 1, 1], [], []>} : vector<256x8xf32>, vector<8x8xf32>, vector<256x8xf32> -> vector<256x8xf32>
    %333 = arith.addf %324, %332 : vector<256x8xf32>
    %c8_256 = arith.constant 8 : index
    %c0_257 = arith.constant 0 : index
    %334 = vector.load %arg8[%c8_256, %c0_257] : memref<304x8xf32, #tpu.memory_space<vmem>>, vector<256x8xf32>
    %c3_258 = arith.constant 3 : index
    %c8_259 = arith.constant 8 : index
    %c0_260 = arith.constant 0 : index
    %335 = vector.load %arg4[%c3_258, %c8_259, %c0_260] : memref<4x72x8xf32, #tpu.memory_space<vmem>>, vector<1x8x8xf32>
    %336 = vector.shape_cast %335 : vector<1x8x8xf32> to vector<8x8xf32>
    %cst_261 = arith.constant dense<0.000000e+00> : vector<256x8xf32>
    %337 = tpu.matmul %334, %336, %cst_261 {dimension_numbers = #tpu.dot_dimension_numbers<[1], [0], [0], [1], [0, 0, 1, 1], [], []>} : vector<256x8xf32>, vector<8x8xf32>, vector<256x8xf32> -> vector<256x8xf32>
    %338 = arith.addf %333, %337 : vector<256x8xf32>
    %c9_262 = arith.constant 9 : index
    %c0_263 = arith.constant 0 : index
    %339 = vector.load %arg8[%c9_262, %c0_263] : memref<304x8xf32, #tpu.memory_space<vmem>>, vector<256x8xf32>
    %cst_264 = arith.constant 0.000000e+00 : f32
    %340 = vector.shape_cast %27 : vector<256x1xi1> to vector<256x1xi1>
    %341 = vector.broadcast %340 : vector<256x1xi1> to vector<256x8xi1>
    %342 = vector.broadcast %cst_264 : f32 to vector<256x8xf32>
    %343 = arith.select %341, %339, %342 : vector<256x8xi1>, vector<256x8xf32>
    %c3_265 = arith.constant 3 : index
    %c16_266 = arith.constant 16 : index
    %c0_267 = arith.constant 0 : index
    %344 = vector.load %arg4[%c3_265, %c16_266, %c0_267] : memref<4x72x8xf32, #tpu.memory_space<vmem>>, vector<1x8x8xf32>
    %345 = vector.shape_cast %344 : vector<1x8x8xf32> to vector<8x8xf32>
    %cst_268 = arith.constant dense<0.000000e+00> : vector<256x8xf32>
    %346 = tpu.matmul %343, %345, %cst_268 {dimension_numbers = #tpu.dot_dimension_numbers<[1], [0], [0], [1], [0, 0, 1, 1], [], []>} : vector<256x8xf32>, vector<8x8xf32>, vector<256x8xf32> -> vector<256x8xf32>
    %347 = arith.addf %338, %346 : vector<256x8xf32>
    %c23_269 = arith.constant 23 : index
    %c0_270 = arith.constant 0 : index
    %348 = vector.load %arg8[%c23_269, %c0_270] : memref<304x8xf32, #tpu.memory_space<vmem>>, vector<256x8xf32>
    %cst_271 = arith.constant 0.000000e+00 : f32
    %349 = vector.shape_cast %25 : vector<256x1xi1> to vector<256x1xi1>
    %350 = vector.broadcast %349 : vector<256x1xi1> to vector<256x8xi1>
    %351 = vector.broadcast %cst_271 : f32 to vector<256x8xf32>
    %352 = arith.select %350, %348, %351 : vector<256x8xi1>, vector<256x8xf32>
    %c3_272 = arith.constant 3 : index
    %c24_273 = arith.constant 24 : index
    %c0_274 = arith.constant 0 : index
    %353 = vector.load %arg4[%c3_272, %c24_273, %c0_274] : memref<4x72x8xf32, #tpu.memory_space<vmem>>, vector<1x8x8xf32>
    %354 = vector.shape_cast %353 : vector<1x8x8xf32> to vector<8x8xf32>
    %cst_275 = arith.constant dense<0.000000e+00> : vector<256x8xf32>
    %355 = tpu.matmul %352, %354, %cst_275 {dimension_numbers = #tpu.dot_dimension_numbers<[1], [0], [0], [1], [0, 0, 1, 1], [], []>} : vector<256x8xf32>, vector<8x8xf32>, vector<256x8xf32> -> vector<256x8xf32>
    %356 = arith.addf %347, %355 : vector<256x8xf32>
    %c24_276 = arith.constant 24 : index
    %c0_277 = arith.constant 0 : index
    %357 = vector.load %arg8[%c24_276, %c0_277] : memref<304x8xf32, #tpu.memory_space<vmem>>, vector<256x8xf32>
    %c3_278 = arith.constant 3 : index
    %c32_279 = arith.constant 32 : index
    %c0_280 = arith.constant 0 : index
    %358 = vector.load %arg4[%c3_278, %c32_279, %c0_280] : memref<4x72x8xf32, #tpu.memory_space<vmem>>, vector<1x8x8xf32>
    %359 = vector.shape_cast %358 : vector<1x8x8xf32> to vector<8x8xf32>
    %cst_281 = arith.constant dense<0.000000e+00> : vector<256x8xf32>
    %360 = tpu.matmul %357, %359, %cst_281 {dimension_numbers = #tpu.dot_dimension_numbers<[1], [0], [0], [1], [0, 0, 1, 1], [], []>} : vector<256x8xf32>, vector<8x8xf32>, vector<256x8xf32> -> vector<256x8xf32>
    %361 = arith.addf %356, %360 : vector<256x8xf32>
    %c25_282 = arith.constant 25 : index
    %c0_283 = arith.constant 0 : index
    %362 = vector.load %arg8[%c25_282, %c0_283] : memref<304x8xf32, #tpu.memory_space<vmem>>, vector<256x8xf32>
    %cst_284 = arith.constant 0.000000e+00 : f32
    %363 = vector.shape_cast %27 : vector<256x1xi1> to vector<256x1xi1>
    %364 = vector.broadcast %363 : vector<256x1xi1> to vector<256x8xi1>
    %365 = vector.broadcast %cst_284 : f32 to vector<256x8xf32>
    %366 = arith.select %364, %362, %365 : vector<256x8xi1>, vector<256x8xf32>
    %c3_285 = arith.constant 3 : index
    %c40_286 = arith.constant 40 : index
    %c0_287 = arith.constant 0 : index
    %367 = vector.load %arg4[%c3_285, %c40_286, %c0_287] : memref<4x72x8xf32, #tpu.memory_space<vmem>>, vector<1x8x8xf32>
    %368 = vector.shape_cast %367 : vector<1x8x8xf32> to vector<8x8xf32>
    %cst_288 = arith.constant dense<0.000000e+00> : vector<256x8xf32>
    %369 = tpu.matmul %366, %368, %cst_288 {dimension_numbers = #tpu.dot_dimension_numbers<[1], [0], [0], [1], [0, 0, 1, 1], [], []>} : vector<256x8xf32>, vector<8x8xf32>, vector<256x8xf32> -> vector<256x8xf32>
    %370 = arith.addf %361, %369 : vector<256x8xf32>
    %c39_289 = arith.constant 39 : index
    %c0_290 = arith.constant 0 : index
    %371 = vector.load %arg8[%c39_289, %c0_290] : memref<304x8xf32, #tpu.memory_space<vmem>>, vector<256x8xf32>
    %cst_291 = arith.constant 0.000000e+00 : f32
    %372 = vector.shape_cast %25 : vector<256x1xi1> to vector<256x1xi1>
    %373 = vector.broadcast %372 : vector<256x1xi1> to vector<256x8xi1>
    %374 = vector.broadcast %cst_291 : f32 to vector<256x8xf32>
    %375 = arith.select %373, %371, %374 : vector<256x8xi1>, vector<256x8xf32>
    %c3_292 = arith.constant 3 : index
    %c48_293 = arith.constant 48 : index
    %c0_294 = arith.constant 0 : index
    %376 = vector.load %arg4[%c3_292, %c48_293, %c0_294] : memref<4x72x8xf32, #tpu.memory_space<vmem>>, vector<1x8x8xf32>
    %377 = vector.shape_cast %376 : vector<1x8x8xf32> to vector<8x8xf32>
    %cst_295 = arith.constant dense<0.000000e+00> : vector<256x8xf32>
    %378 = tpu.matmul %375, %377, %cst_295 {dimension_numbers = #tpu.dot_dimension_numbers<[1], [0], [0], [1], [0, 0, 1, 1], [], []>} : vector<256x8xf32>, vector<8x8xf32>, vector<256x8xf32> -> vector<256x8xf32>
    %379 = arith.addf %370, %378 : vector<256x8xf32>
    %c40_296 = arith.constant 40 : index
    %c0_297 = arith.constant 0 : index
    %380 = vector.load %arg8[%c40_296, %c0_297] : memref<304x8xf32, #tpu.memory_space<vmem>>, vector<256x8xf32>
    %c3_298 = arith.constant 3 : index
    %c56_299 = arith.constant 56 : index
    %c0_300 = arith.constant 0 : index
    %381 = vector.load %arg4[%c3_298, %c56_299, %c0_300] : memref<4x72x8xf32, #tpu.memory_space<vmem>>, vector<1x8x8xf32>
    %382 = vector.shape_cast %381 : vector<1x8x8xf32> to vector<8x8xf32>
    %cst_301 = arith.constant dense<0.000000e+00> : vector<256x8xf32>
    %383 = tpu.matmul %380, %382, %cst_301 {dimension_numbers = #tpu.dot_dimension_numbers<[1], [0], [0], [1], [0, 0, 1, 1], [], []>} : vector<256x8xf32>, vector<8x8xf32>, vector<256x8xf32> -> vector<256x8xf32>
    %384 = arith.addf %379, %383 : vector<256x8xf32>
    %c41_302 = arith.constant 41 : index
    %c0_303 = arith.constant 0 : index
    %385 = vector.load %arg8[%c41_302, %c0_303] : memref<304x8xf32, #tpu.memory_space<vmem>>, vector<256x8xf32>
    %cst_304 = arith.constant 0.000000e+00 : f32
    %386 = vector.shape_cast %27 : vector<256x1xi1> to vector<256x1xi1>
    %387 = vector.broadcast %386 : vector<256x1xi1> to vector<256x8xi1>
    %388 = vector.broadcast %cst_304 : f32 to vector<256x8xf32>
    %389 = arith.select %387, %385, %388 : vector<256x8xi1>, vector<256x8xf32>
    %c3_305 = arith.constant 3 : index
    %c64_306 = arith.constant 64 : index
    %c0_307 = arith.constant 0 : index
    %390 = vector.load %arg4[%c3_305, %c64_306, %c0_307] : memref<4x72x8xf32, #tpu.memory_space<vmem>>, vector<1x8x8xf32>
    %391 = vector.shape_cast %390 : vector<1x8x8xf32> to vector<8x8xf32>
    %cst_308 = arith.constant dense<0.000000e+00> : vector<256x8xf32>
    %392 = tpu.matmul %389, %391, %cst_308 {dimension_numbers = #tpu.dot_dimension_numbers<[1], [0], [0], [1], [0, 0, 1, 1], [], []>} : vector<256x8xf32>, vector<8x8xf32>, vector<256x8xf32> -> vector<256x8xf32>
    %393 = arith.addf %384, %392 : vector<256x8xf32>
    %cst_309 = arith.constant 0.000000e+00 : f32
    %394 = vector.broadcast %cst_309 : f32 to vector<256x8xf32>
    %395 = arith.maximumf %393, %394 : vector<256x8xf32>
    %c0_310 = arith.constant 0 : index
    %c0_311 = arith.constant 0 : index
    %c0_312 = arith.constant 0 : index
    %396 = vector.load %arg6[%c0_310, %c0_311, %c0_312] : memref<1x256x8xf32, #tpu.memory_space<vmem>>, vector<1x256x8xf32>
    %397 = vector.shape_cast %396 : vector<1x256x8xf32> to vector<256x8xf32>
    %398 = vector.shape_cast %395 : vector<256x8xf32> to vector<1x256x8xf32>
    tpu.vector_store %arg6[%c0_310, %c0_311, %c0_312], %398 {strides = array<i32>} : memref<1x256x8xf32, #tpu.memory_space<vmem>>, vector<1x256x8xf32>,
    return
  }
  func.func @transform_0(%arg0: i32) -> (i32, i32, i32) {
    %c0_i32 = arith.constant 0 : i32
    %c0_i32_0 = arith.constant 0 : i32
    %c0_i32_1 = arith.constant 0 : i32
    return %arg0, %c0_i32, %c0_i32_0 : i32, i32, i32
  }
  func.func @transform_1(%arg0: i32) -> (i32, i32) {
    %c0_i32 = arith.constant 0 : i32
    %c0_i32_0 = arith.constant 0 : i32
    %c0_i32_1 = arith.constant 0 : i32
    return %c0_i32, %c0_i32_0 : i32, i32
  }
  func.func @transform_2(%arg0: i32) -> (i32, i32) {
    %c0_i32 = arith.constant 0 : i32
    %c0_i32_0 = arith.constant 0 : i32
    %c0_i32_1 = arith.constant 0 : i32
    return %c0_i32, %c0_i32_0 : i32, i32
  }
  func.func @transform_3(%arg0: i32) -> (i32, i32, i32) {
    %c0_i32 = arith.constant 0 : i32
    %c0_i32_0 = arith.constant 0 : i32
    %c0_i32_1 = arith.constant 0 : i32
    %c0_i32_2 = arith.constant 0 : i32
    return %c0_i32, %c0_i32_0, %c0_i32_1 : i32, i32, i32
  }
  func.func @transform_4(%arg0: i32) -> (i32, i32, i32) {
    %c0_i32 = arith.constant 0 : i32
    %c0_i32_0 = arith.constant 0 : i32
    %c0_i32_1 = arith.constant 0 : i32
    %c0_i32_2 = arith.constant 0 : i32
    return %c0_i32, %c0_i32_0, %c0_i32_1 : i32, i32, i32
  }
  func.func @transform_5(%arg0: i32) -> (i32, i32, i32) {
    %c0_i32 = arith.constant 0 : i32
    %c0_i32_0 = arith.constant 0 : i32
    %c0_i32_1 = arith.constant 0 : i32
    return %arg0, %c0_i32, %c0_i32_0 : i32, i32, i32
  }
}

</mosaic_0001>

<bundles_post_ra>
// kernel: downsample_block_forward.1
= control target key start
LH: loop header
LB: loop body
LE: loop exit
PB: predicated region body
PF: predicated region fallthrough
CT: control target
= control target key end

     0   :  { %s26601_s18 = smov 0   ;;  %s33205_s0 = inlined_call_operand.vmem [shape: f32[2,256,4], index: 0, kind: input, shape index: {}]   ;;  %s33206_s1 = inlined_call_operand.vmem [shape: f32[36,8], index: 1, kind: input, shape index: {}]   ;;  %s33207_s2 = inlined_call_operand.vmem [shape: f32[1,8], index: 2, kind: input, shape index: {}]   ;;  %s33208_s3 = inlined_call_operand.vmem [shape: f32[4,72,8], index: 3, kind: input, shape index: {}]   ;;  %s33209_s4 = inlined_call_operand.vmem [shape: f32[4,1,8], index: 4, kind: input, shape index: {}]   ;;  %s33210_s5 = inlined_call_operand.vmem [shape: f32[2,256,8], index: 5, kind: output, shape index: {}]  }
   0x1 LB: > { %s19878_s19 = sadd.s32 4294967295, %s26568_s18   ;;  %p19882_p0 = scmp.ge.s32.totalorder %s26568_s18, 1  ;;  %s26568_s18 = sphi %s26601_s18, %s15_s18  }
   0x2   : > { %p187_p1 = scmp.lt.s32.totalorder %s26568_s18, 3 }
   0x4   : > { %p188_p2 = pnand %p19882_p0, %p187_p1 }
   0x6   : > { %191 = sbr.rel (%p188_p2) target bundleno = 3515 (0xdbb), region = 40 }
   0xd   : > { %v977_v0 = vld [vmem:[%s33206_s1] sm:$0xf]  ;;  %vm33227_vm0 = vcmask 1043456   ;;  %vm225_vm1 = vcmask 31744   ;;  %v367_v1 = vlaneseq  ;;  %p26614_p3 = scmp.lt.s32.totalorder %s19878_s19, 1  ;;  %v33211_v2 = vmov 0.0  }
   0xe   : > { %22860 = vmatprep.subr.msk.mxu1 %vm33227_vm0, %v977_v0  ;;  %226 = vst.msk [vmem:[#allocation2] sm:$0xff] %vm225_vm1, %v33211_v2  ;;  %227 = vst.msk [vmem:[#allocation2 + $0x8] sm:$0xff] %vm225_vm1, %v33211_v2  ;;  %v1373_v3 = vld [vmem:[%s33206_s1 + $0x4] sm:$0xf]  ;;  %v26701_v4 = vld [vmem:[%s33206_s1 + $0x10] sm:$0xf] }
   0xf   : > { %228 = vst.msk [vmem:[#allocation2 + $0x10] sm:$0xff] %vm225_vm1, %v33211_v2  ;;  %229 = vst.msk [vmem:[#allocation2 + $0x18] sm:$0xff] %vm225_vm1, %v33211_v2  ;;  %v26706_v5 = vld [vmem:[%s33206_s1 + $0x14] sm:$0xf]  ;;  %22861 = vmatpush3.msk.msra.mxu1 %vm33227_vm0, %v977_v0  ;;  %v26709_v6 = vshrl.u32 %v367_v1, 7  ;;  %23060 = vmatprep.subr.msk.mxu0 %vm33227_vm0, %v26701_v4  ;;  %s35710_s19 = smov (!%p26614_p3, %s19878_s19), 1 }
  0x10   : > { %230 = vst.msk [vmem:[#allocation2 + $0x20] sm:$0xff] %vm225_vm1, %v33211_v2  ;;  %231 = vst.msk [vmem:[#allocation2 + $0x28] sm:$0xff] %vm225_vm1, %v33211_v2  ;;  %22910 = vmatprep.subr.msk.mxu1 %vm33227_vm0, %v1373_v3  ;;  %23061 = vmatpush3.msk.msra.mxu0 %vm33227_vm0, %v26701_v4  ;;  %s21373_s29 = sshll.u32 %s35710_s19, 8  ;;  %v34171_v10 = vmov 0  ;;  %v26761_v26 = vld [vmem:[%s33206_s1 + $0x8] sm:$0xf] }
  0x11   : > { %232 = vst.msk [vmem:[#allocation2 + $0x30] sm:$0xff] %vm225_vm1, %v33211_v2  ;;  %233 = vst.msk [vmem:[#allocation2 + $0x38] sm:$0xff] %vm225_vm1, %v33211_v2  ;;  %v404_v7 = vand.u32 15, %v26709_v6  ;;  %23110 = vmatprep.subr.msk.mxu0 %vm33227_vm0, %v26706_v5  ;;  %v370_v8 = vadd.s32 16, %v26709_v6  ;;  %s26732_s7 = scalar_lea.vmem %s33205_s0, %s21373_s29  ;;  %v372_v9 = vadd.s32 32, %v26709_v6  ;;  %v374_v20 = vadd.s32 48, %v26709_v6  ;;  %s33046_s16 = scalar_lea.vmem %s33210_s5, %s21373_s29 }
  0x12   : > { %234 = vst.msk [vmem:[#allocation2 + $0x40] sm:$0xff] %vm225_vm1, %v33211_v2  ;;  %235 = vst.msk [vmem:[#allocation2 + $0x48] sm:$0xff] %vm225_vm1, %v33211_v2  ;;  %v303_v11 = vld [vmem:[%s26732_s7] sm:$0xff]  ;;  %v304_v12 = vld [vmem:[%s26732_s7 + $0x8] sm:$0xff]  ;;  %v34174_v33 = vmov 0  ;;  %v376_v35 = vadd.s32 64, %v26709_v6 }
  0x13   : > { %236 = vst.msk [vmem:[#allocation2 + $0x50] sm:$0xff] %vm225_vm1, %v33211_v2  ;;  %237 = vst.msk [vmem:[#allocation2 + $0x58] sm:$0xff] %vm225_vm1, %v33211_v2  ;;  %vm26735_vm2 = vcmp.gt.s32.totalorder %v404_v7, 0  ;;  %v305_v13 = vld [vmem:[%s26732_s7 + $0x10] sm:$0xff]  ;;  %v306_v14 = vld [vmem:[%s26732_s7 + $0x18] sm:$0xff]  ;;  %v418_v19 = vand.u32 15, %v370_v8 }
  0x14   : > { %238 = vst.msk [vmem:[#allocation2 + $0x60] sm:$0xff] %vm225_vm1, %v33211_v2  ;;  %239 = vst.msk [vmem:[#allocation2 + $0x68] sm:$0xff] %vm225_vm1, %v33211_v2  ;;  %v34172_v10 = vsel %vm26735_vm2, 4294967295, %v34171_v10  ;;  %v307_v15 = vld [vmem:[%s26732_s7 + $0x20] sm:$0xff]  ;;  %v308_v16 = vld [vmem:[%s26732_s7 + $0x28] sm:$0xff]  ;;  %v432_v23 = vand.u32 15, %v372_v9 }
  0x15   : > { %240 = vst.msk [vmem:[#allocation2 + $0x70] sm:$0xff] %vm225_vm1, %v33211_v2  ;;  %241 = vst.msk [vmem:[#allocation2 + $0x78] sm:$0xff] %vm225_vm1, %v33211_v2  ;;  %v849_v17 = vld [vmem:[#allocation2 + $0x7] sm:$0xff]  ;;  %v309_v21 = vld [vmem:[%s26732_s7 + $0x30] sm:$0xff]  ;;  %vm26777_vm3 = vcmp.gt.s32.totalorder %v418_v19, 0  ;;  %v446_v34 = vand.u32 15, %v374_v20 }
  0x16   : > { %242 = vst.msk [vmem:[#allocation2 + $0x80] sm:$0xff] %vm225_vm1, %v33211_v2  ;;  %243 = vst.msk [vmem:[#allocation2 + $0x88] sm:$0xff] %vm225_vm1, %v33211_v2  ;;  %v850_v18 = vld [vmem:[#allocation2 + $0xf] sm:$0xff]  ;;  %v945_v22 = vsel %vm26735_vm2, %v849_v17, 0.0  ;;  %v310_v24 = vld [vmem:[%s26732_s7 + $0x38] sm:$0xff]  ;;  %v34175_v33 = vsel %vm26777_vm3, 4294967295, %v34174_v33 }
  0x17   : > { %244 = vst.msk [vmem:[#allocation2 + $0x90] sm:$0xff] %vm225_vm1, %v33211_v2  ;;  %245 = vst.msk [vmem:[#allocation2 + $0x98] sm:$0xff] %vm225_vm1, %v33211_v2  ;;  %v311_v25 = vld [vmem:[%s26732_s7 + $0x40] sm:$0xff]  ;;  %22862 = vmatprep.mubr.msk.f32.mxu1 %vm225_vm1, %v945_v22  ;;  %v312_v27 = vld [vmem:[%s26732_s7 + $0x48] sm:$0xff]  ;;  %vm26788_vm4 = vcmp.gt.s32.totalorder %v432_v23, 0  ;;  %v34176_v39 = vmov 0 }
  0x18   : > { %246 = vst.msk [vmem:[#allocation2 + $0xa0] sm:$0xff] %vm225_vm1, %v33211_v2  ;;  %247 = vst.msk [vmem:[#allocation2 + $0xa8] sm:$0xff] %vm225_vm1, %v33211_v2  ;;  %v313_v28 = vld [vmem:[%s26732_s7 + $0x50] sm:$0xff]  ;;  %v314_v29 = vld [vmem:[%s26732_s7 + $0x58] sm:$0xff]  ;;  %22863 = vmatmul.mubr.msk.f32.vlgmr.msra.gmra.mrb[0].mxu1 %vm225_vm1, %v850_v18  ;;  %v34177_v39 = vsel %vm26788_vm4, 4294967295, %v34176_v39  ;;  %vm26821_vm5 = vcmp.gt.s32.totalorder %v446_v34, 0 }
  0x19   : > { %248 = vst.msk [vmem:[#allocation2 + $0xb0] sm:$0xff] %vm225_vm1, %v33211_v2  ;;  %249 = vst.msk [vmem:[#allocation2 + $0xb8] sm:$0xff] %vm225_vm1, %v33211_v2  ;;  %v315_v30 = vld [vmem:[%s26732_s7 + $0x60] sm:$0xff]  ;;  %v316_v31 = vld [vmem:[%s26732_s7 + $0x68] sm:$0xff]  ;;  %22911 = vmatpush3.msk.msra.mxu1 %vm33227_vm0, %v1373_v3  ;;  %v34179_v51 = vmov 0  ;;  %v460_v52 = vand.u32 15, %v376_v35 }
  0x1a   : > { %250 = vst.msk [vmem:[#allocation2 + $0xc0] sm:$0xff] %vm225_vm1, %v33211_v2  ;;  %251 = vst.msk [vmem:[#allocation2 + $0xc8] sm:$0xff] %vm225_vm1, %v33211_v2  ;;  %v317_v32 = vld [vmem:[%s26732_s7 + $0x70] sm:$0xff]  ;;  %v318_v36 = vld [vmem:[%s26732_s7 + $0x78] sm:$0xff]  ;;  %22960 = vmatprep.subr.msk.mxu1 %vm33227_vm0, %v26761_v26  ;;  %v34180_v51 = vsel %vm26821_vm5, 4294967295, %v34179_v51  ;;  %v378_v53 = vadd.s32 80, %v26709_v6 }
  0x1b   : > { %252 = vst.msk [vmem:[#allocation2 + $0xd0] sm:$0xff] %vm225_vm1, %v33211_v2  ;;  %253 = vst.msk [vmem:[#allocation2 + $0xd8] sm:$0xff] %vm225_vm1, %v33211_v2  ;;  %v319_v37 = vld [vmem:[%s26732_s7 + $0x80] sm:$0xff]  ;;  %v320_v38 = vld [vmem:[%s26732_s7 + $0x88] sm:$0xff]  ;;  %vm26852_vm6 = vcmp.gt.s32.totalorder %v460_v52, 0  ;;  %v34182_v60 = vmov 0 }
  0x1c   : > { %254 = vst.msk [vmem:[#allocation2 + $0xe0] sm:$0xff] %vm225_vm1, %v33211_v2  ;;  %255 = vst.msk [vmem:[#allocation2 + $0xe8] sm:$0xff] %vm225_vm1, %v33211_v2  ;;  %v321_v40 = vld [vmem:[%s26732_s7 + $0x90] sm:$0xff]  ;;  %v322_v41 = vld [vmem:[%s26732_s7 + $0x98] sm:$0xff]  ;;  %v34183_v60 = vsel %vm26852_vm6, 4294967295, %v34182_v60  ;;  %v474_v62 = vand.u32 15, %v378_v53 }
  0x1d   : > { %256 = vst.msk [vmem:[#allocation2 + $0xf0] sm:$0xff] %vm225_vm1, %v33211_v2  ;;  %257 = vst.msk [vmem:[#allocation2 + $0xf8] sm:$0xff] %vm225_vm1, %v33211_v2  ;;  %v323_v42 = vld [vmem:[%s26732_s7 + $0xa0] sm:$0xff]  ;;  %v26829_v54 = vld [vmem:[%s33206_s1 + $0x18] sm:$0xf]  ;;  %v380_v63 = vadd.s32 96, %v26709_v6 }
  0x1e   : > { %258 = vst.msk [vmem:[#allocation2 + $0x100] sm:$0xff] %vm225_vm1, %v33211_v2  ;;  %259 = vst.msk [vmem:[#allocation2 + $0x108] sm:$0xff] %vm225_vm1, %v33211_v2  ;;  %vm26875_vm7 = vcmp.gt.s32.totalorder %v474_v62, 0  ;;  %v34185_v7 = vmov 0  ;;  %v384_v19 = vadd.s32 128, %v26709_v6  ;;  %v324_v20 = vld [vmem:[%s26732_s7 + $0xa8] sm:$0xff] }
  0x1f   : > { %260 = vst.msk [vmem:[#allocation2 + $0x110] sm:$0xff] %vm225_vm1, %v33211_v2  ;;  %261 = vst.msk [vmem:[#allocation2 + $0x118] sm:$0xff] %vm225_vm1, %v33211_v2  ;;  %v34186_v7 = vsel %vm26875_vm7, 4294967295, %v34185_v7  ;;  %v488_v9 = vand.u32 15, %v380_v63  ;;  %v325_v22 = vld [vmem:[%s26732_s7 + $0xb0] sm:$0xff]  ;;  %v326_v23 = vld [vmem:[%s26732_s7 + $0xb8] sm:$0xff] }
  0x20   : > { %262 = vst.msk [vmem:[#allocation2 + $0x120] sm:$0xff] %vm225_vm1, %v33211_v2  ;;  %263 = vst.msk [vmem:[#allocation2 + $0x128] sm:$0xff] %vm225_vm1, %v33211_v2  ;;  %v516_v34 = vand.u32 15, %v384_v19  ;;  %v386_v35 = vadd.s32 144, %v26709_v6  ;;  %v388_v53 = vadd.s32 160, %v26709_v6 }
  0x21   : > { %34170 = vst [vmem:[#allocation4_spill] sm:$0xff] %v26701_v4  ;;  %34173 = vst [vmem:[#allocation5_spill] sm:$0xff] %v34172_v10  ;;  %vm26898_vm8 = vcmp.gt.s32.totalorder %v488_v9, 0  ;;  %v371_v9 = vadd.s32 24, %v26709_v6  ;;  %v394_v4 = vadd.s32 208, %v26709_v6 }
  0x22   : > { %335 = vst.msk [vmem:[#allocation2 + $0x18] sm:$0xff] %vm225_vm1, %v303_v11  ;;  %336 = vst.msk [vmem:[#allocation2 + $0x20] sm:$0xff] %vm225_vm1, %v304_v12  ;;  %v382_v11 = vadd.s32 112, %v26709_v6  ;;  %vm26963_vm10 = vcmp.gt.s32.totalorder %v516_v34, 0  ;;  %v530_v52 = vand.u32 15, %v386_v35  ;;  %v544_v19 = vand.u32 15, %v388_v53 }
  0x23   : > { %337 = vst.msk [vmem:[#allocation2 + $0x28] sm:$0xff] %vm225_vm1, %v305_v13  ;;  %338 = vst.msk [vmem:[#allocation2 + $0x30] sm:$0xff] %vm225_vm1, %v306_v14  ;;  %v373_v34 = vadd.s32 40, %v26709_v6  ;;  %v333_v35 = vld [vmem:[%s26732_s7 + $0xf0] sm:$0xff] }
  0x24   : > { %339 = vst.msk [vmem:[#allocation2 + $0x38] sm:$0xff] %vm225_vm1, %v307_v15  ;;  %340 = vst.msk [vmem:[#allocation2 + $0x40] sm:$0xff] %vm225_vm1, %v308_v16  ;;  %v34188_v16 = vmov 0  ;;  %v502_v18 = vand.u32 15, %v382_v11  ;;  %vm26987_vm11 = vcmp.gt.s32.totalorder %v530_v52, 0  ;;  %vm27020_vm13 = vcmp.gt.s32.totalorder %v544_v19, 0 }
  0x25   : > { %341 = vst.msk [vmem:[#allocation2 + $0x48] sm:$0xff] %vm225_vm1, %v309_v21  ;;  %342 = vst.msk [vmem:[#allocation2 + $0x50] sm:$0xff] %vm225_vm1, %v310_v24  ;;  %v34189_v16 = vsel %vm26898_vm8, 4294967295, %v34188_v16  ;;  %v392_v52 = vadd.s32 192, %v26709_v6  ;;  %v439_v19 = vand.u32 15, %v373_v34 }
  0x26   : > { %343 = vst.msk [vmem:[#allocation2 + $0x58] sm:$0xff] %vm225_vm1, %v311_v25  ;;  %344 = vst.msk [vmem:[#allocation2 + $0x60] sm:$0xff] %vm225_vm1, %v312_v27  ;;  %v327_v27 = vld [vmem:[%s26732_s7 + $0xc0] sm:$0xff]  ;;  %vm26931_vm9 = vcmp.gt.s32.totalorder %v502_v18, 0  ;;  %v27061_v34 = vld [vmem:[%s33206_s1 + $0x1c] sm:$0xf] }
  0x27   : > { %345 = vst.msk [vmem:[#allocation2 + $0x68] sm:$0xff] %vm225_vm1, %v313_v28  ;;  %346 = vst.msk [vmem:[#allocation2 + $0x70] sm:$0xff] %vm225_vm1, %v314_v29  ;;  %v328_v29 = vld [vmem:[%s26732_s7 + $0xc8] sm:$0xff]  ;;  %v572_v2 = vand.u32 15, %v392_v52 }
  0x28   : > { %347 = vst.msk [vmem:[#allocation2 + $0x78] sm:$0xff] %vm225_vm1, %v315_v30  ;;  %348 = vst.msk [vmem:[#allocation2 + $0x80] sm:$0xff] %vm225_vm1, %v316_v31  ;;  %v329_v30 = vld [vmem:[%s26732_s7 + $0xd0] sm:$0xff]  ;;  %v34191_v31 = vmov 0 }
  0x29   : > { %349 = vst.msk [vmem:[#allocation2 + $0x88] sm:$0xff] %vm225_vm1, %v317_v32  ;;  %34178 = vst [vmem:[#allocation6_spill] sm:$0xff] %v34177_v39  ;;  %v26800_v43 = vld [vmem:[#allocation2 + $0x18] sm:$0xff]  ;;  %v26802_v45 = vld [vmem:[#allocation2 + $0x20] sm:$0xff]  ;;  %v34192_v31 = vsel %vm26931_vm9, 4294967295, %v34191_v31 }
  0x2a   : > { %350 = vst.msk [vmem:[#allocation2 + $0x90] sm:$0xff] %vm225_vm1, %v318_v36  ;;  %351 = vst.msk [vmem:[#allocation2 + $0x98] sm:$0xff] %vm225_vm1, %v319_v37  ;;  %v851_v44 = vld [vmem:[#allocation2 + $0x17] sm:$0xff]  ;;  %23062 = vmatprep.mubr.msk.f32.mxu0 %vm225_vm1, %v26800_v43  ;;  %v852_v47 = vld [vmem:[#allocation2 + $0x1f] sm:$0xff] }
  0x2b   : > { %352 = vst.msk [vmem:[#allocation2 + $0xa0] sm:$0xff] %vm225_vm1, %v320_v38  ;;  %353 = vst.msk [vmem:[#allocation2 + $0xa8] sm:$0xff] %vm225_vm1, %v321_v40  ;;  %v947_v46 = vsel %vm26777_vm3, %v851_v44, 0.0  ;;  %v26811_v48 = vld [vmem:[#allocation2 + $0x28] sm:$0xff]  ;;  %23063 = vmatmul.mubr.msk.f32.vlgmr.msra.gmra.mrb[0].mxu0 %vm225_vm1, %v26802_v45  ;;  %v26834_v55 = vld [vmem:[#allocation2 + $0x30] sm:$0xff]  ;;  %v369_v44 = vadd.s32 8, %v26709_v6 }
  0x2c   : > { %354 = vst.msk [vmem:[#allocation2 + $0xb0] sm:$0xff] %vm225_vm1, %v322_v41  ;;  %355 = vst.msk [vmem:[#allocation2 + $0xb8] sm:$0xff] %vm225_vm1, %v323_v42  ;;  %v26813_v49 = vld [vmem:[#allocation2 + $0x27] sm:$0xff]  ;;  %22865 = vmatprep.mubr.msk.f32.mxu1 %vm225_vm1, %v947_v46  ;;  %23111 = vmatpush3.msk.msra.mxu0 %vm33227_vm0, %v26706_v5  ;;  %v26836_v56 = vld [vmem:[#allocation2 + $0x37] sm:$0xff] }
  0x2d   : > { %v949_v50 = vsel %vm26788_vm4, %v26813_v49, 0.0  ;;  %34181 = vst [vmem:[#allocation7_spill] sm:$0xff] %v34180_v51  ;;  %22866 = vmatmul.mubr.msk.f32.gmra.mrb[2].mxu1 %vm225_vm1, %v852_v47  ;;  %23065 = vmatprep.mubr.msk.f32.mxu0 %vm225_vm1, %v26811_v48  ;;  %v26841_v57 = vld [vmem:[#allocation2 + $0x2f] sm:$0xff]  ;;  %v26843_v58 = vld [vmem:[#allocation2 + $0x38] sm:$0xff]  ;;  %v951_v59 = vsel %vm26821_vm5, %v26836_v56, 0.0  ;;  %34184 = vst [vmem:[#allocation8_spill] sm:$0xff] %v34183_v60 }
  0x2e   : > { %22868 = vmatprep.mubr.msk.f32.mxu1 %vm225_vm1, %v949_v50  ;;  %23160 = vmatprep.subr.msk.mxu0 %vm33227_vm0, %v26829_v54  ;;  %v26856_v61 = vld [vmem:[#allocation2 + $0x47] sm:$0xff]  ;;  %v26866_v1 = vld [vmem:[#allocation2 + $0x3f] sm:$0xff]  ;;  %34187 = vst [vmem:[#allocation9_spill] sm:$0xff] %v34186_v7  ;;  %v26879_v8 = vld [vmem:[#allocation2 + $0x57] sm:$0xff]  ;;  %v34194_v47 = vmov 0 }
  0x2f   : > { %23066 = vmatmul.mubr.msk.f32.gmra.mrb[2].mxu0 %vm225_vm1, %v26834_v55  ;;  %v26863_v0 = vld [vmem:[#allocation2 + $0x40] sm:$0xff]  ;;  %v26868_v3 = vld [vmem:[#allocation2 + $0x48] sm:$0xff]  ;;  %v953_v5 = vsel %vm26852_vm6, %v26856_v61, 0.0  ;;  %v26886_v12 = vld [vmem:[#allocation2 + $0x50] sm:$0xff]  ;;  %v955_v15 = vsel %vm26875_vm7, %v26879_v8, 0.0  ;;  %34190 = vst [vmem:[#allocation10_spill] sm:$0xff] %v34189_v16 }
  0x30   : > { %23068 = vmatprep.mubr.msk.f32.mxu0 %vm225_vm1, %v26843_v58  ;;  %v26889_v13 = vld [vmem:[#allocation2 + $0x4f] sm:$0xff]  ;;  %v26891_v14 = vld [vmem:[#allocation2 + $0x58] sm:$0xff]  ;;  %v26902_v17 = vld [vmem:[#allocation2 + $0x67] sm:$0xff]  ;;  %356 = vst.msk [vmem:[#allocation2 + $0xc0] sm:$0xff] %vm225_vm1, %v324_v20  ;;  %v34195_v47 = vsel %vm26963_vm10, 4294967295, %v34194_v47  ;;  %v390_v20 = vadd.s32 176, %v26709_v6 }
  0x31   : > { %22869 = vmatmul.mubr.msk.f32.gmra.mrb[4].mxu1 %vm225_vm1, %v26841_v57  ;;  %v26910_v21 = vld [vmem:[#allocation2 + $0x60] sm:$0xff]  ;;  %v26918_v25 = vld [vmem:[#allocation2 + $0x68] sm:$0xff]  ;;  %357 = vst.msk [vmem:[#allocation2 + $0xc8] sm:$0xff] %vm225_vm1, %v325_v22  ;;  %358 = vst.msk [vmem:[#allocation2 + $0xd0] sm:$0xff] %vm225_vm1, %v326_v23  ;;  %v957_v28 = vsel %vm26898_vm8, %v26902_v17, 0.0 }
  0x32   : > { %22871 = vmatprep.mubr.msk.f32.mxu1 %vm225_vm1, %v951_v59  ;;  %v26916_v24 = vld [vmem:[#allocation2 + $0x5f] sm:$0xff]  ;;  %359 = vst.msk [vmem:[#allocation2 + $0xd8] sm:$0xff] %vm225_vm1, %v327_v27  ;;  %34193 = vst [vmem:[#allocation11_spill] sm:$0xff] %v34192_v31  ;;  %v26935_v32 = vld [vmem:[#allocation2 + $0x77] sm:$0xff] }
  0x33   : > { %23069 = vmatmul.mubr.msk.f32.gmra.mrb[4].mxu0 %vm225_vm1, %v26863_v0  ;;  %360 = vst.msk [vmem:[#allocation2 + $0xe0] sm:$0xff] %vm225_vm1, %v328_v29  ;;  %361 = vst.msk [vmem:[#allocation2 + $0xe8] sm:$0xff] %vm225_vm1, %v329_v30  ;;  %v330_v36 = vld [vmem:[%s26732_s7 + $0xd8] sm:$0xff]  ;;  %v26945_v37 = vld [vmem:[#allocation2 + $0x70] sm:$0xff]  ;;  %v959_v46 = vsel %vm26931_vm9, %v26935_v32, 0.0  ;;  %v425_v30 = vand.u32 15, %v371_v9 }
  0x34   : > { %23071 = vmatprep.mubr.msk.f32.mxu0 %vm225_vm1, %v26868_v3  ;;  %362 = vst.msk [vmem:[#allocation2 + $0xf0] sm:$0xff] %vm225_vm1, %v330_v36  ;;  %v331_v38 = vld [vmem:[%s26732_s7 + $0xe0] sm:$0xff]  ;;  %v332_v40 = vld [vmem:[%s26732_s7 + $0xe8] sm:$0xff]  ;;  %v26953_v42 = vld [vmem:[#allocation2 + $0x78] sm:$0xff]  ;;  %v34207_v9 = vmov 0 }
  0x35   : > { %22872 = vmatmul.mubr.msk.f32.gmra.mrb[6].mxu1 %vm225_vm1, %v26866_v1  ;;  %v26951_v41 = vld [vmem:[#allocation2 + $0x6f] sm:$0xff]  ;;  %363 = vst.msk [vmem:[#allocation2 + $0xf8] sm:$0xff] %vm225_vm1, %v331_v38  ;;  %364 = vst.msk [vmem:[#allocation2 + $0x100] sm:$0xff] %vm225_vm1, %v332_v40  ;;  %v26967_v50 = vld [vmem:[#allocation2 + $0x87] sm:$0xff]  ;;  %v34204_v40 = vmov 0  ;;  %vm27038_vm14 = vcmp.lt.s32.totalorder %v425_v30, 15 }
  0x36   : > { %22874 = vmatprep.mubr.msk.f32.mxu1 %vm225_vm1, %v953_v5  ;;  %34196 = vst [vmem:[#allocation12_spill] sm:$0xff] %v34195_v47  ;;  %v26974_v59 = vld [vmem:[#allocation2 + $0x80] sm:$0xff]  ;;  %v26979_v63 = vld [vmem:[#allocation2 + $0x88] sm:$0xff]  ;;  %v411_v5 = vand.u32 15, %v369_v44  ;;  %v961_v11 = vsel %vm26963_vm10, %v26967_v50, 0.0  ;;  %v26991_v18 = vld [vmem:[#allocation2 + $0x97] sm:$0xff] }
  0x37   : > { %23072 = vmatmul.mubr.msk.f32.gmra.mrb[6].mxu0 %vm225_vm1, %v26886_v12  ;;  %v26977_v62 = vld [vmem:[#allocation2 + $0x7f] sm:$0xff]  ;;  %v26998_v22 = vld [vmem:[#allocation2 + $0x90] sm:$0xff]  ;;  %v963_v36 = vsel %vm26987_vm11, %v26991_v18, 0.0  ;;  %365 = vst.msk [vmem:[#allocation2 + $0x108] sm:$0xff] %vm225_vm1, %v333_v35  ;;  %v34205_v40 = vsel %vm27020_vm13, 4294967295, %v34204_v40  ;;  %v27024_v44 = vld [vmem:[#allocation2 + $0xa7] sm:$0xff] }
  0x38   : > { %23074 = vmatprep.mubr.msk.f32.mxu0 %vm225_vm1, %v26891_v14  ;;  %v27000_v23 = vld [vmem:[#allocation2 + $0x8f] sm:$0xff]  ;;  %v27003_v27 = vld [vmem:[#allocation2 + $0x19] sm:$0xff]  ;;  %vm27005_vm12 = vcmp.lt.s32.totalorder %v411_v5, 15  ;;  %v27009_v29 = vld [vmem:[#allocation2 + $0x21] sm:$0xff]  ;;  %34206 = vst [vmem:[#allocation16_spill] sm:$0xff] %v34205_v40  ;;  %v34208_v9 = vsel %vm27038_vm14, 4294967295, %v34207_v9 }
  0x39   : > { %22875 = vmatmul.mubr.msk.f32.gmra.mrb[8].mxu1 %vm225_vm1, %v26889_v13  ;;  %34203 = vst [vmem:[#allocation15_spill] sm:$0xff] %v27009_v29  ;;  %v334_v38 = vld [vmem:[%s26732_s7 + $0xf8] sm:$0xff]  ;;  %v3058_v53 = vsel %vm27005_vm12, %v27009_v29, 0.0  ;;  %34209 = vst [vmem:[#allocation17_spill] sm:$0xff] %v34208_v9  ;;  %v27045_v35 = vld [vmem:[#allocation2 + $0x29] sm:$0xff]  ;;  %v34218_v40 = vmov 0 }
  0x3a   : > { %22877 = vmatprep.mubr.msk.f32.mxu1 %vm225_vm1, %v955_v15  ;;  %v34197_v15 = vmov 0  ;;  %366 = vst.msk [vmem:[#allocation2 + $0x110] sm:$0xff] %vm225_vm1, %v334_v38  ;;  %v27036_v5 = vld [vmem:[#allocation2 + $0x9f] sm:$0xff]  ;;  %34211 = vst [vmem:[#allocation19_spill] sm:$0xff] %v27045_v35  ;;  %v965_v38 = vsel %vm27020_vm13, %v27024_v44, 0.0  ;;  %v27055_v30 = vld [vmem:[#allocation2 + $0xb7] sm:$0xff] }
  0x3b   : > { %23075 = vmatmul.mubr.msk.f32.gmra.mrb[8].mxu0 %vm225_vm1, %v26910_v21  ;;  %v34198_v15 = vsel %vm26987_vm11, 4294967295, %v34197_v15  ;;  %34215 = vst [vmem:[#allocation21_spill] sm:$0xff] %v27055_v30  ;;  %v27073_v52 = vld [vmem:[#allocation2 + $0xaf] sm:$0xff]  ;;  %vm27077_vm13 = vcmp.lt.s32.totalorder %v439_v19, 15  ;;  %v377_v29 = vadd.s32 72, %v26709_v6  ;;  %vm27090_vm11 = vcmp.gt.s32.totalorder %v572_v2, 0 }
  0x3c   : > { %23077 = vmatprep.mubr.msk.f32.mxu0 %vm225_vm1, %v26918_v25  ;;  %34199 = vst [vmem:[#allocation13_spill] sm:$0xff] %v34198_v15  ;;  %34216 = vst [vmem:[#allocation22_spill] sm:$0xff] %v27073_v52  ;;  %v34219_v40 = vsel %vm27077_vm13, 4294967295, %v34218_v40  ;;  %v27094_v19 = vld [vmem:[#allocation2 + $0xc7] sm:$0xff]  ;;  %v27105_v2 = vld [vmem:[#allocation2 + $0xbf] sm:$0xff]  ;;  %v379_v9 = vadd.s32 88, %v26709_v6 }
  0x3d   : > { %22878 = vmatmul.mubr.msk.f32.gmra.mrb[10].mxu1 %vm225_vm1, %v26916_v24  ;;  %34220 = vst [vmem:[#allocation24_spill] sm:$0xff] %v34219_v40  ;;  %34225 = vst [vmem:[#allocation27_spill] sm:$0xff] %v27094_v19  ;;  %v398_v40 = vadd.s32 240, %v26709_v6  ;;  %v2232_v31 = vld [vmem:[#allocation2 + $0x9f] sm:$0xff]  ;;  %v4256_v16 = vld [vmem:[#allocation2 + $0x29] sm:$0xff] }
  0x3e   : > { %22880 = vmatprep.mubr.msk.f32.mxu1 %vm225_vm1, %v957_v28  ;;  %v34200_v28 = vmov 0  ;;  %34226 = vst [vmem:[#allocation28_spill] sm:$0xff] %v27105_v2  ;;  %v4257_v7 = vld [vmem:[#allocation2 + $0x31] sm:$0xff]  ;;  %v4259_v51 = vld [vmem:[#allocation2 + $0x41] sm:$0xff] }
  0x3f   : > { %23078 = vmatmul.mubr.msk.f32.gmra.mrb[10].mxu0 %vm225_vm1, %v26945_v37  ;;  %v34201_v28 = vsel %vm27005_vm12, 4294967295, %v34200_v28 }
  0x40   : > { %23080 = vmatprep.mubr.msk.f32.mxu0 %vm225_vm1, %v26953_v42  ;;  %34202 = vst [vmem:[#allocation14_spill] sm:$0xff] %v34201_v28  ;;  %v34311_v28 = vld [vmem:[#allocation4_spill] sm:$0xff] }
  0x41   : > { %22881 = vmatmul.mubr.msk.f32.gmra.mrb[12].mxu1 %vm225_vm1, %v26951_v41 }
  0x42   : > { %22883 = vmatprep.mubr.msk.f32.mxu1 %vm225_vm1, %v959_v46  ;;  %v558_v46 = vand.u32 15, %v390_v20  ;;  %v375_v20 = vadd.s32 56, %v26709_v6 }
  0x43   : > { %23081 = vmatmul.mubr.msk.f32.gmra.mrb[12].mxu0 %vm225_vm1, %v26974_v59 }
  0x44   : > { %23083 = vmatprep.mubr.msk.f32.mxu0 %vm225_vm1, %v26979_v63  ;;  %vm27051_vm15 = vcmp.gt.s32.totalorder %v558_v46, 0  ;;  %v453_v15 = vand.u32 15, %v375_v20  ;;  %v396_v20 = vadd.s32 224, %v26709_v6 }
  0x45   : > { %22884 = vmatmul.mubr.msk.f32.gmra.mrb[14].mxu1 %vm225_vm1, %v26977_v62 }
  0x46   : > { %22886 = vmatprep.mubr.msk.f32.mxu1 %vm225_vm1, %v961_v11  ;;  %v27042_v11 = vld [vmem:[#allocation2 + $0x31] sm:$0xff] }
  0x47   : > { %23084 = vmatmul.mubr.msk.f32.gmra.mrb[14].mxu0 %vm225_vm1, %v26998_v22  ;;  %34210 = vst [vmem:[#allocation18_spill] sm:$0xff] %v27042_v11  ;;  %v3060_v46 = vsel %vm27038_vm14, %v27042_v11, 0.0  ;;  %v967_v11 = vsel %vm27051_vm15, %v27055_v30, 0.0  ;;  %v27113_v30 = vld [vmem:[#allocation2 + $0x51] sm:$0xff] }
  0x48   : > { %23112 = vmatprep.mubr.msk.f32.mxu0 %vm225_vm1, %v27003_v27  ;;  %34231 = vst [vmem:[#allocation31_spill] sm:$0xff] %v27113_v30  ;;  %v34375_v47 = vld [vmem:[#allocation14_spill] sm:$0xff] }
  0x49   : > { %22887 = vmatmul.mubr.msk.f32.gmra.mrb[16].mxu1 %vm225_vm1, %v27000_v23 }
  0x4a   : > { %22889 = vmatprep.mubr.msk.f32.mxu1 %vm225_vm1, %v963_v36  ;;  %v34212_v36 = vmov 0 }
  0x4b   : > { %23113 = vmatmul.mubr.msk.f32.vlgmr.msra.gmra.mrb[0].mxu0 %vm225_vm1, %v3058_v53  ;;  %v34213_v36 = vsel %vm27051_vm15, 4294967295, %v34212_v36  ;;  %v27075_v53 = vld [vmem:[#allocation2 + $0x39] sm:$0xff] }
  0x4c   : > { %34214 = vst [vmem:[#allocation20_spill] sm:$0xff] %v34213_v36  ;;  %23161 = vmatpush3.msk.msra.mxu0 %vm33227_vm0, %v26829_v54  ;;  %23115 = vmatprep.mubr.msk.f32.mxu0 %vm225_vm1, %v27045_v35  ;;  %34217 = vst [vmem:[#allocation23_spill] sm:$0xff] %v27075_v53  ;;  %v27081_v54 = vld [vmem:[#allocation2 + $0x41] sm:$0xff]  ;;  %v586_v35 = vand.u32 15, %v394_v4  ;;  %v34228_v4 = vmov 0 }
  0x4d   : > { %22890 = vmatmul.mubr.msk.f32.gmra.mrb[18].mxu1 %vm225_vm1, %v27036_v5  ;;  %34221 = vst [vmem:[#allocation25_spill] sm:$0xff] %v27081_v54  ;;  %23210 = vmatprep.subr.msk.mxu0 %vm33227_vm0, %v27061_v34  ;;  %v3062_v36 = vsel %vm27077_vm13, %v27081_v54, 0.0  ;;  %vm27109_vm0 = vcmp.lt.s32.totalorder %v453_v15, 15  ;;  %v27124_v54 = vld [vmem:[#allocation2 + $0xd7] sm:$0xff]  ;;  %v600_v15 = vand.u32 15, %v396_v20  ;;  %v34238_v20 = vmov 0 }
  0x4e   : > { %22892 = vmatprep.mubr.msk.f32.mxu1 %vm225_vm1, %v965_v38  ;;  %v34222_v38 = vmov 0  ;;  %v34229_v4 = vsel %vm27109_vm0, 4294967295, %v34228_v4  ;;  %vm27120_vm15 = vcmp.gt.s32.totalorder %v586_v35, 0  ;;  %34235 = vst [vmem:[#allocation33_spill] sm:$0xff] %v27124_v54  ;;  %v27135_v35 = vld [vmem:[#allocation2 + $0xcf] sm:$0xff] }
  0x4f   : > { %23116 = vmatmul.mubr.msk.f32.gmra.mrb[2].mxu0 %vm225_vm1, %v3060_v46  ;;  %v34223_v38 = vsel %vm27090_vm11, 4294967295, %v34222_v38  ;;  %v27107_v46 = vld [vmem:[#allocation2 + $0x49] sm:$0xff]  ;;  %34230 = vst [vmem:[#allocation30_spill] sm:$0xff] %v34229_v4  ;;  %34236 = vst [vmem:[#allocation34_spill] sm:$0xff] %v27135_v35 }
  0x50   : > { %34224 = vst [vmem:[#allocation26_spill] sm:$0xff] %v34223_v38  ;;  %23118 = vmatprep.mubr.msk.f32.mxu0 %vm225_vm1, %v27075_v53  ;;  %34227 = vst [vmem:[#allocation29_spill] sm:$0xff] %v27107_v46  ;;  %v969_v53 = vsel %vm27090_vm11, %v27094_v19, 0.0  ;;  %v27143_v38 = vld [vmem:[#allocation2 + $0x61] sm:$0xff]  ;;  %v381_v19 = vadd.s32 104, %v26709_v6 }
  0x51   : > { %22893 = vmatmul.mubr.msk.f32.gmra.mrb[20].mxu1 %vm225_vm1, %v27073_v52  ;;  %v467_v52 = vand.u32 15, %v377_v29  ;;  %v3064_v29 = vsel %vm27109_vm0, %v27113_v30, 0.0  ;;  %34241 = vst [vmem:[#allocation37_spill] sm:$0xff] %v27143_v38  ;;  %vm27150_vm0 = vcmp.gt.s32.totalorder %v600_v15, 0  ;;  %v27154_v30 = vld [vmem:[#allocation2 + $0xe7] sm:$0xff] }
  0x52   : > { %22895 = vmatprep.mubr.msk.f32.mxu1 %vm225_vm1, %v967_v11  ;;  %v34232_v11 = vmov 0  ;;  %34245 = vst [vmem:[#allocation39_spill] sm:$0xff] %v27154_v30  ;;  %v27166_v15 = vld [vmem:[#allocation2 + $0x69] sm:$0xff] }
  0x53   : > { %23119 = vmatmul.mubr.msk.f32.gmra.mrb[4].mxu0 %vm225_vm1, %v3062_v36  ;;  %v34233_v11 = vsel %vm27120_vm15, 4294967295, %v34232_v11  ;;  %v27137_v36 = vld [vmem:[#allocation2 + $0x59] sm:$0xff]  ;;  %vm27139_vm11 = vcmp.lt.s32.totalorder %v467_v52, 15  ;;  %v614_v52 = vand.u32 15, %v398_v40  ;;  %34247 = vst [vmem:[#allocation41_spill] sm:$0xff] %v27166_v15  ;;  %v27172_v40 = vld [vmem:[#allocation2 + $0x71] sm:$0xff] }
  0x54   : > { %34234 = vst [vmem:[#allocation32_spill] sm:$0xff] %v34233_v11  ;;  %23121 = vmatprep.mubr.msk.f32.mxu0 %vm225_vm1, %v27107_v46  ;;  %34237 = vst [vmem:[#allocation35_spill] sm:$0xff] %v27137_v36  ;;  %v34239_v20 = vsel %vm27139_vm11, 4294967295, %v34238_v20  ;;  %v971_v46 = vsel %vm27120_vm15, %v27124_v54, 0.0  ;;  %v34248_v11 = vmov 0  ;;  %v383_v54 = vadd.s32 120, %v26709_v6 }
  0x55   : > { %22896 = vmatmul.mubr.msk.f32.gmra.mrb[22].mxu1 %vm225_vm1, %v27105_v2  ;;  %34240 = vst [vmem:[#allocation36_spill] sm:$0xff] %v34239_v20  ;;  %v481_v2 = vand.u32 15, %v379_v9  ;;  %v3066_v9 = vsel %vm27139_vm11, %v27143_v38, 0.0  ;;  %34251 = vst [vmem:[#allocation43_spill] sm:$0xff] %v27172_v40  ;;  %vm27179_vm11 = vcmp.gt.s32.totalorder %v614_v52, 0  ;;  %v27183_v38 = vld [vmem:[#allocation2 + $0xf7] sm:$0xff] }
  0x56   : > { %22898 = vmatprep.mubr.msk.f32.mxu1 %vm225_vm1, %v969_v53  ;;  %v34242_v53 = vmov 0  ;;  %34255 = vst [vmem:[#allocation45_spill] sm:$0xff] %v27183_v38  ;;  %v27195_v52 = vld [vmem:[#allocation2 + $0x79] sm:$0xff] }
  0x57   : > { %23122 = vmatmul.mubr.msk.f32.gmra.mrb[6].mxu0 %vm225_vm1, %v3064_v29  ;;  %v34243_v53 = vsel %vm27150_vm0, 4294967295, %v34242_v53  ;;  %v27164_v29 = vld [vmem:[#allocation2 + $0xdf] sm:$0xff]  ;;  %vm27168_vm15 = vcmp.lt.s32.totalorder %v481_v2, 15  ;;  %v27193_v2 = vld [vmem:[#allocation2 + $0xef] sm:$0xff]  ;;  %34257 = vst [vmem:[#allocation47_spill] sm:$0xff] %v27195_v52 }
  0x58   : > { %34244 = vst [vmem:[#allocation38_spill] sm:$0xff] %v34243_v53  ;;  %23124 = vmatprep.mubr.msk.f32.mxu0 %vm225_vm1, %v27137_v36  ;;  %34246 = vst [vmem:[#allocation40_spill] sm:$0xff] %v27164_v29  ;;  %v34249_v11 = vsel %vm27168_vm15, 4294967295, %v34248_v11  ;;  %v973_v36 = vsel %vm27150_vm0, %v27154_v30, 0.0  ;;  %v27201_v53 = vld [vmem:[#allocation2 + $0x81] sm:$0xff]  ;;  %v385_v30 = vadd.s32 136, %v26709_v6 }
  0x59   : > { %22899 = vmatmul.mubr.msk.f32.gmra.mrb[24].mxu1 %vm225_vm1, %v27135_v35  ;;  %34250 = vst [vmem:[#allocation42_spill] sm:$0xff] %v34249_v11  ;;  %v495_v35 = vand.u32 15, %v381_v19  ;;  %v3068_v19 = vsel %vm27168_vm15, %v27172_v40, 0.0  ;;  %34256 = vst [vmem:[#allocation46_spill] sm:$0xff] %v27193_v2 }
  0x5a   : > { %22901 = vmatprep.mubr.msk.f32.mxu1 %vm225_vm1, %v971_v46  ;;  %v34252_v46 = vmov 0  ;;  %34261 = vst [vmem:[#allocation49_spill] sm:$0xff] %v27201_v53  ;;  %v523_v40 = vand.u32 15, %v385_v30  ;;  %v34268_v30 = vmov 0 }
  0x5b   : > { %23125 = vmatmul.mubr.msk.f32.gmra.mrb[8].mxu0 %vm225_vm1, %v3066_v9  ;;  %v34253_v46 = vsel %vm27179_vm11, 4294967295, %v34252_v46  ;;  %vm27197_vm0 = vcmp.lt.s32.totalorder %v495_v35, 15  ;;  %v34258_v9 = vmov 0 }
  0x5c   : > { %34254 = vst [vmem:[#allocation44_spill] sm:$0xff] %v34253_v46  ;;  %23127 = vmatprep.mubr.msk.f32.mxu0 %vm225_vm1, %v27166_v15  ;;  %v34259_v9 = vsel %vm27197_vm0, 4294967295, %v34258_v9  ;;  %v975_v15 = vsel %vm27179_vm11, %v27183_v38, 0.0  ;;  %v3070_v35 = vsel %vm27197_vm0, %v27201_v53, 0.0  ;;  %v34263_v46 = vmov 0  ;;  %v27236_v53 = vld [vmem:[#allocation2 + $0x99] sm:$0xff] }
  0x5d   : > { %22902 = vmatmul.mubr.msk.f32.gmra.mrb[26].mxu1 %vm225_vm1, %v27164_v29  ;;  %34260 = vst [vmem:[#allocation48_spill] sm:$0xff] %v34259_v9  ;;  %v509_v29 = vand.u32 15, %v383_v54  ;;  %v27216_v54 = vld [vmem:[#allocation2 + $0xff] sm:$0xff]  ;;  %34267 = vst [vmem:[#allocation53_spill] sm:$0xff] %v27236_v53  ;;  %vm27238_vm11 = vcmp.lt.s32.totalorder %v523_v40, 15 }
  0x5e   : > { %22904 = vmatprep.mubr.msk.f32.mxu1 %vm225_vm1, %v973_v36  ;;  %34262 = vst [vmem:[#allocation50_spill] sm:$0xff] %v27216_v54  ;;  %v27218_v36 = vld [vmem:[#allocation2 + $0x89] sm:$0xff]  ;;  %v34269_v30 = vsel %vm27238_vm11, 4294967295, %v34268_v30 }
  0x5f   : > { %23128 = vmatmul.mubr.msk.f32.gmra.mrb[10].mxu0 %vm225_vm1, %v3068_v19  ;;  %vm27220_vm15 = vcmp.lt.s32.totalorder %v509_v29, 15  ;;  %v27224_v19 = vld [vmem:[#allocation2 + $0x91] sm:$0xff]  ;;  %34270 = vst [vmem:[#allocation54_spill] sm:$0xff] %v34269_v30 }
  0x60   : > { %23130 = vmatprep.mubr.msk.f32.mxu0 %vm225_vm1, %v27195_v52  ;;  %v34264_v46 = vsel %vm27220_vm15, 4294967295, %v34263_v46  ;;  %34266 = vst [vmem:[#allocation52_spill] sm:$0xff] %v27224_v19  ;;  %v1341_v52 = vld [vmem:[#allocation2 + $0x8] sm:$0xff]  ;;  %v3072_v29 = vsel %vm27220_vm15, %v27224_v19, 0.0  ;;  %vm34271_vm15 = vcmask 1043456  }
  0x61   : > { %22905 = vmatmul.mubr.msk.f32.gmra.mrb[28].mxu1 %vm225_vm1, %v27193_v2  ;;  %34265 = vst [vmem:[#allocation51_spill] sm:$0xff] %v34264_v46  ;;  %v387_v2 = vadd.s32 152, %v26709_v6  ;;  %v27249_v19 = vld [vmem:[%s33206_s1 + $0xc] sm:$0xf]  ;;  %vm34276_vm13 = vmmov %vm34271_vm15 }
  0x62   : > { %22907 = vmatprep.mubr.msk.f32.mxu1 %vm225_vm1, %v975_v15  ;;  %v1342_v15 = vld [vmem:[#allocation2 + $0x10] sm:$0xff] }
  0x63   : > { %23131 = vmatmul.mubr.msk.f32.gmra.mrb[12].mxu0 %vm225_vm1, %v3070_v35  ;;  %v27242_v35 = vld [vmem:[#allocation2 + $0xa1] sm:$0xff]  ;;  %v537_v9 = vand.u32 15, %v387_v2  ;;  %v27261_v2 = vld [vmem:[#allocation2 + $0xa9] sm:$0xff] }
  0x64   : > { %23133 = vmatprep.mubr.msk.f32.mxu0 %vm225_vm1, %v27218_v36  ;;  %v3074_v40 = vsel %vm27238_vm11, %v27242_v35, 0.0 }
  0x65   : > { %22908 = vmatmul.mubr.msk.f32.gmra.mrb[30].mxu1 %vm225_vm1, %v27216_v54  ;;  %v389_v54 = vadd.s32 168, %v26709_v6  ;;  %vm27263_vm0 = vcmp.lt.s32.totalorder %v537_v9, 15  ;;  %v34277_v9 = vmov 0 }
  0x66   : > { %22912 = vmatprep.mubr.msk.f32.mxu1 %vm225_vm1, %v1341_v52  ;;  %v34272_v52 = vmov 0 }
  0x67   : > { %23134 = vmatmul.mubr.msk.f32.gmra.mrb[14].mxu0 %vm225_vm1, %v3072_v29  ;;  %v34273_v52 = vsel %vm27263_vm0, 4294967295, %v34272_v52  ;;  %v27267_v29 = vld [vmem:[#allocation2 + $0xb1] sm:$0xff] }
  0x68   : > { %23136 = vmatprep.mubr.msk.f32.mxu0 %vm225_vm1, %v27236_v53  ;;  %34274 = vst [vmem:[#allocation55_spill] sm:$0xff] %v34273_v52  ;;  %34275 = vst [vmem:[#allocation56_spill] sm:$0xff] %v27267_v29  ;;  %v391_v53 = vadd.s32 184, %v26709_v6  ;;  %v3871_v52 = vld [vmem:[#allocation2 + $0x48] sm:$0xff] }
  0x69   : > { %22913 = vmatmul.mubr.msk.f32.vlgmr.msra.gmra.mrb[0].mxu1 %vm225_vm1, %v1342_v15  ;;  %v551_v15 = vand.u32 15, %v389_v54  ;;  %v27288_v54 = vld [vmem:[#allocation2 + $0xc1] sm:$0xff] }
  0x6a   : > { %22961 = vmatpush3.msk.msra.mxu1 %vm34271_vm15, %v26761_v26  ;;  %22915 = vmatprep.mubr.msk.f32.mxu1 %vm225_vm1, %v26800_v43  ;;  %v3076_v26 = vsel %vm27263_vm0, %v27267_v29, 0.0  ;;  %v27282_v43 = vld [vmem:[#allocation2 + $0xb9] sm:$0xff]  ;;  %34280 = vst [vmem:[#allocation58_spill] sm:$0xff] %v27288_v54 }
  0x6b   : > { %23010 = vmatprep.subr.msk.mxu1 %vm34276_vm13, %v27249_v19  ;;  %23137 = vmatmul.mubr.msk.f32.gmra.mrb[16].mxu0 %vm225_vm1, %v3074_v40  ;;  %vm27284_vm15 = vcmp.lt.s32.totalorder %v551_v15, 15  ;;  %v565_v40 = vand.u32 15, %v391_v53  ;;  %v27301_v15 = vld [vmem:[#allocation2 + $0xc9] sm:$0xff]  ;;  %v34282_v53 = vmov 0 }
  0x6c   : > { %23139 = vmatprep.mubr.msk.f32.mxu0 %vm225_vm1, %v27261_v2  ;;  %v34278_v9 = vsel %vm27284_vm15, 4294967295, %v34277_v9  ;;  %34281 = vst [vmem:[#allocation59_spill] sm:$0xff] %v27301_v15 }
  0x6d   : > { %22916 = vmatmul.mubr.msk.f32.gmra.mrb[2].mxu1 %vm225_vm1, %v26802_v45  ;;  %34279 = vst [vmem:[#allocation57_spill] sm:$0xff] %v34278_v9  ;;  %v393_v45 = vadd.s32 200, %v26709_v6  ;;  %vm27303_vm13 = vcmp.lt.s32.totalorder %v565_v40, 15  ;;  %v27320_v40 = vld [vmem:[#allocation2 + $0xd9] sm:$0xff] }
  0x6e   : > { %22918 = vmatprep.mubr.msk.f32.mxu1 %vm225_vm1, %v26811_v48  ;;  %v3078_v48 = vsel %vm27284_vm15, %v27288_v54, 0.0  ;;  %v34283_v53 = vsel %vm27303_vm13, 4294967295, %v34282_v53 }
  0x6f   : > { %23140 = vmatmul.mubr.msk.f32.gmra.mrb[18].mxu0 %vm225_vm1, %v3076_v26  ;;  %34284 = vst [vmem:[#allocation60_spill] sm:$0xff] %v34283_v53  ;;  %v27307_v26 = vld [vmem:[#allocation2 + $0xd1] sm:$0xff]  ;;  %v579_v29 = vand.u32 15, %v393_v45  ;;  %v34286_v45 = vmov 0 }
  0x70   : > { %23142 = vmatprep.mubr.msk.f32.mxu0 %vm225_vm1, %v27282_v43  ;;  %34285 = vst [vmem:[#allocation61_spill] sm:$0xff] %v27307_v26 }
  0x71   : > { %22919 = vmatmul.mubr.msk.f32.gmra.mrb[4].mxu1 %vm225_vm1, %v26834_v55  ;;  %v395_v55 = vadd.s32 216, %v26709_v6  ;;  %vm27322_vm15 = vcmp.lt.s32.totalorder %v579_v29, 15  ;;  %v27339_v29 = vld [vmem:[#allocation2 + $0xe9] sm:$0xff] }
  0x72   : > { %22921 = vmatprep.mubr.msk.f32.mxu1 %vm225_vm1, %v26843_v58  ;;  %v3080_v58 = vsel %vm27303_vm13, %v27307_v26, 0.0  ;;  %v34287_v45 = vsel %vm27322_vm15, 4294967295, %v34286_v45  ;;  %34290 = vst [vmem:[#allocation64_spill] sm:$0xff] %v27339_v29 }
  0x73   : > { %23143 = vmatmul.mubr.msk.f32.gmra.mrb[20].mxu0 %vm225_vm1, %v3078_v48  ;;  %34288 = vst [vmem:[#allocation62_spill] sm:$0xff] %v34287_v45  ;;  %v27326_v48 = vld [vmem:[#allocation2 + $0xe1] sm:$0xff]  ;;  %v593_v54 = vand.u32 15, %v395_v55  ;;  %v34291_v55 = vmov 0 }
  0x74   : > { %23145 = vmatprep.mubr.msk.f32.mxu0 %vm225_vm1, %v27301_v15  ;;  %34289 = vst [vmem:[#allocation63_spill] sm:$0xff] %v27326_v48  ;;  %v399_v15 = vadd.s32 248, %v26709_v6 }
  0x75   : > { %22922 = vmatmul.mubr.msk.f32.gmra.mrb[6].mxu1 %vm225_vm1, %v26863_v0  ;;  %v397_v0 = vadd.s32 232, %v26709_v6  ;;  %vm27341_vm13 = vcmp.lt.s32.totalorder %v593_v54, 15  ;;  %v27364_v6 = vld [vmem:[#allocation2 + $0x101] sm:$0xff] }
  0x76   : > { %22924 = vmatprep.mubr.msk.f32.mxu1 %vm225_vm1, %v26868_v3  ;;  %v3082_v3 = vsel %vm27322_vm15, %v27326_v48, 0.0  ;;  %v34292_v55 = vsel %vm27341_vm13, 4294967295, %v34291_v55  ;;  %v27358_v48 = vld [vmem:[#allocation2 + $0xf9] sm:$0xff]  ;;  %34298 = vst [vmem:[#allocation68_spill] sm:$0xff] %v27364_v6 }
  0x77   : > { %23146 = vmatmul.mubr.msk.f32.gmra.mrb[22].mxu0 %vm225_vm1, %v3080_v58  ;;  %34293 = vst [vmem:[#allocation65_spill] sm:$0xff] %v34292_v55  ;;  %v27345_v58 = vld [vmem:[#allocation2 + $0xf1] sm:$0xff]  ;;  %v607_v26 = vand.u32 15, %v397_v0  ;;  %v34295_v0 = vmov 0 }
  0x78   : > { %23148 = vmatprep.mubr.msk.f32.mxu0 %vm225_vm1, %v27320_v40  ;;  %34294 = vst [vmem:[#allocation66_spill] sm:$0xff] %v27345_v58  ;;  %v3084_v54 = vsel %vm27341_vm13, %v27345_v58, 0.0 }
  0x79   : > { %22925 = vmatmul.mubr.msk.f32.gmra.mrb[8].mxu1 %vm225_vm1, %v26886_v12  ;;  %vm27360_vm15 = vcmp.lt.s32.totalorder %v607_v26, 15  ;;  %v27376_v26 = vld [vmem:[#allocation2 + $0x109] sm:$0xff] }
  0x7a   : > { %22927 = vmatprep.mubr.msk.f32.mxu1 %vm225_vm1, %v26891_v14  ;;  %v34296_v0 = vsel %vm27360_vm15, 4294967295, %v34295_v0  ;;  %v3086_v58 = vsel %vm27360_vm15, %v27364_v6, 0.0  ;;  %34299 = vst [vmem:[#allocation69_spill] sm:$0xff] %v27376_v26  ;;  %v27397_v6 = vld [vmem:[#allocation2 + $0x98] sm:$0xff] }
  0x7b   : > { %23149 = vmatmul.mubr.msk.f32.gmra.mrb[24].mxu0 %vm225_vm1, %v3082_v3  ;;  %34297 = vst [vmem:[#allocation67_spill] sm:$0xff] %v34296_v0  ;;  %v621_v3 = vand.u32 15, %v399_v15  ;;  %v27382_v15 = vld [vmem:[#allocation2 + $0x111] sm:$0xff] }
  0x7c   : > { %23151 = vmatprep.mubr.msk.f32.mxu0 %vm225_vm1, %v27339_v29  ;;  %v34300_v29 = vmov 0  ;;  %34303 = vst [vmem:[#allocation71_spill] sm:$0xff] %v27382_v15 }
  0x7d   : > { %22928 = vmatmul.mubr.msk.f32.gmra.mrb[10].mxu1 %vm225_vm1, %v26910_v21  ;;  %vm27378_vm13 = vcmp.lt.s32.totalorder %v621_v3, 15  ;;  %v3478_v3 = vsel %vm26735_vm2, %v26813_v49, 0.0  ;;  %v27417_v49 = vld [vmem:[%s33206_s1 + $0x20] sm:$0xf]  ;;  %vm34304_vm2 = vcmask 1043456  }
  0x7e   : > { %22930 = vmatprep.mubr.msk.f32.mxu1 %vm225_vm1, %v26918_v25  ;;  %v34301_v29 = vsel %vm27378_vm13, 4294967295, %v34300_v29 }
  0x7f   : > { %23152 = vmatmul.mubr.msk.f32.gmra.mrb[26].mxu0 %vm225_vm1, %v3084_v54  ;;  %34302 = vst [vmem:[#allocation70_spill] sm:$0xff] %v34301_v29  ;;  %v3088_v54 = vsel %vm27378_vm13, %v27382_v15, 0.0  ;;  %v3480_v15 = vsel %vm26777_vm3, %v26836_v56, 0.0  ;;  %v27426_v56 = vld [vmem:[#allocation2 + $0xb0] sm:$0xff]  ;;  %vm34305_vm3 = vmmov %vm34304_vm2 }
  0x80   : > { %23154 = vmatprep.mubr.msk.f32.mxu0 %vm225_vm1, %v27358_v48 }
  0x81   : > { %22931 = vmatmul.mubr.msk.f32.gmra.mrb[12].mxu1 %vm225_vm1, %v26945_v37 }
  0x82   : > { %22933 = vmatprep.mubr.msk.f32.mxu1 %vm225_vm1, %v26953_v42 }
  0x83   : > { %23155 = vmatmul.mubr.msk.f32.gmra.mrb[28].mxu0 %vm225_vm1, %v3086_v58  ;;  %v27405_v58 = vld [vmem:[#allocation2 + $0xa0] sm:$0xff] }
  0x84   : > { %23157 = vmatprep.mubr.msk.f32.mxu0 %vm225_vm1, %v27376_v26  ;;  %v27410_v26 = vld [vmem:[#allocation2 + $0xa8] sm:$0xff] }
  0x85   : > { %22934 = vmatmul.mubr.msk.f32.gmra.mrb[14].mxu1 %vm225_vm1, %v26974_v59 }
  0x86   : > { %22936 = vmatprep.mubr.msk.f32.mxu1 %vm225_vm1, %v26979_v63 }
  0x87   : > { %23158 = vmatmul.mubr.msk.f32.gmra.mrb[30].mxu0 %vm225_vm1, %v3088_v54  ;;  %v27431_v54 = vld [vmem:[#allocation2 + $0xb8] sm:$0xff] }
  0x88   : > { %23162 = vmatprep.mubr.msk.f32.mxu0 %vm225_vm1, %v3478_v3  ;;  %v3486_v3 = vsel %vm26852_vm6, %v26902_v17, 0.0  ;;  %v27475_v17 = vld [vmem:[#allocation2 + $0xe8] sm:$0xff] }
  0x89   : > { %22937 = vmatmul.mubr.msk.f32.gmra.mrb[16].mxu1 %vm225_vm1, %v26998_v22 }
  0x8a   : > { %22939 = vmatprep.mubr.msk.f32.mxu1 %vm225_vm1, %v27397_v6 }
  0x8b   : > { %23163 = vmatmul.mubr.msk.f32.vlgmr.msra.gmra.mrb[0].mxu0 %vm225_vm1, %v26841_v57  ;;  %v3482_v57 = vsel %vm26788_vm4, %v26856_v61, 0.0  ;;  %v3484_v61 = vsel %vm26821_vm5, %v26879_v8, 0.0  ;;  %v27461_v8 = vld [vmem:[#allocation2 + $0xd8] sm:$0xff] }
  0x8c   : > { %23211 = vmatpush3.msk.msra.mxu0 %vm34304_vm2, %v27061_v34  ;;  %23165 = vmatprep.mubr.msk.f32.mxu0 %vm225_vm1, %v3480_v15  ;;  %v27442_v34 = vld [vmem:[#allocation2 + $0xc0] sm:$0xff]  ;;  %v27447_v15 = vld [vmem:[#allocation2 + $0xc8] sm:$0xff] }
  0x8d   : > { %22940 = vmatmul.mubr.msk.f32.gmra.mrb[18].mxu1 %vm225_vm1, %v27405_v58  ;;  %23260 = vmatprep.subr.msk.mxu0 %vm34305_vm3, %v27417_v49 }
  0x8e   : > { %22942 = vmatprep.mubr.msk.f32.mxu1 %vm225_vm1, %v27410_v26 }
  0x8f   : > { %23166 = vmatmul.mubr.msk.f32.gmra.mrb[2].mxu0 %vm225_vm1, %v26866_v1  ;;  %v27456_v1 = vld [vmem:[#allocation2 + $0xd0] sm:$0xff] }
  0x90   : > { %23168 = vmatprep.mubr.msk.f32.mxu0 %vm225_vm1, %v3482_v57  ;;  %v3488_v57 = vsel %vm26875_vm7, %v26935_v32, 0.0  ;;  %v27489_v32 = vld [vmem:[#allocation2 + $0xf8] sm:$0xff] }
  0x91   : > { %22943 = vmatmul.mubr.msk.f32.gmra.mrb[20].mxu1 %vm225_vm1, %v27426_v56 }
  0x92   : > { %22945 = vmatprep.mubr.msk.f32.mxu1 %vm225_vm1, %v27431_v54 }
  0x93   : > { %23169 = vmatmul.mubr.msk.f32.gmra.mrb[4].mxu0 %vm225_vm1, %v26889_v13  ;;  %v27470_v13 = vld [vmem:[#allocation2 + $0xe0] sm:$0xff] }
  0x94   : > { %23171 = vmatprep.mubr.msk.f32.mxu0 %vm225_vm1, %v3484_v61  ;;  %v3490_v61 = vsel %vm26898_vm8, %v26967_v50, 0.0  ;;  %v1730_v50 = vld [vmem:[#allocation2 + $0x9] sm:$0xff] }
  0x95   : > { %22946 = vmatmul.mubr.msk.f32.gmra.mrb[22].mxu1 %vm225_vm1, %v27442_v34 }
  0x96   : > { %22948 = vmatprep.mubr.msk.f32.mxu1 %vm225_vm1, %v27447_v15 }
  0x97   : > { %23172 = vmatmul.mubr.msk.f32.gmra.mrb[6].mxu0 %vm225_vm1, %v26916_v24  ;;  %v27484_v24 = vld [vmem:[#allocation2 + $0xf0] sm:$0xff] }
  0x98   : > { %23174 = vmatprep.mubr.msk.f32.mxu0 %vm225_vm1, %v3486_v3  ;;  %v3492_v3 = vsel %vm26931_vm9, %v26991_v18, 0.0  ;;  %v34306_v18 = vld [vmem:[#allocation15_spill] sm:$0xff] }
  0x99   : > { %22949 = vmatmul.mubr.msk.f32.gmra.mrb[24].mxu1 %vm225_vm1, %v27456_v1 }
  0x9a   : > { %22951 = vmatprep.mubr.msk.f32.mxu1 %vm225_vm1, %v27461_v8 }
  0x9b   : > { %23175 = vmatmul.mubr.msk.f32.gmra.mrb[8].mxu0 %vm225_vm1, %v26951_v41  ;;  %v27498_v41 = vld [vmem:[#allocation2 + $0x100] sm:$0xff] }
  0x9c   : > { %23177 = vmatprep.mubr.msk.f32.mxu0 %vm225_vm1, %v3488_v57  ;;  %v1731_v57 = vld [vmem:[#allocation2 + $0x11] sm:$0xff] }
  0x9d   : > { %22952 = vmatmul.mubr.msk.f32.gmra.mrb[26].mxu1 %vm225_vm1, %v27470_v13 }
  0x9e   : > { %22954 = vmatprep.mubr.msk.f32.mxu1 %vm225_vm1, %v27475_v17 }
  0x9f   : > { %23178 = vmatmul.mubr.msk.f32.gmra.mrb[10].mxu0 %vm225_vm1, %v26977_v62  ;;  %v1827_v62 = vsel %vm27005_vm12, %v1731_v57, 0.0  ;;  %v34309_v57 = vld [vmem:[#allocation13_spill] sm:$0xff]  ;;  %vm34312_vm12 = vmmov %vm34304_vm2 }
  0xa0   : > { %23180 = vmatprep.mubr.msk.f32.mxu0 %vm225_vm1, %v3490_v61  ;;  %v3494_v61 = vsel %vm26963_vm10, %v27024_v44, 0.0  ;;  %vm34310_vm3 = vnez %v34309_v57  ;;  %v34321_v57 = vld [vmem:[#allocation28_spill] sm:$0xff] }
  0xa1   : > { %22955 = vmatmul.mubr.msk.f32.gmra.mrb[28].mxu1 %vm225_vm1, %v27484_v24 }
  0xa2   : > { %22957 = vmatprep.mubr.msk.f32.mxu1 %vm225_vm1, %v27489_v32 }
  0xa3   : > { %23181 = vmatmul.mubr.msk.f32.gmra.mrb[12].mxu0 %vm225_vm1, %v27000_v23  ;;  %v34319_v23 = vld [vmem:[#allocation16_spill] sm:$0xff] }
  0xa4   : > { %23183 = vmatprep.mubr.msk.f32.mxu0 %vm225_vm1, %v3492_v3  ;;  %v1829_v3 = vsel %vm27038_vm14, %v34306_v18, 0.0  ;;  %v34318_v18 = vld [vmem:[#allocation27_spill] sm:$0xff]  ;;  %vm34320_vm14 = vnez %v34319_v23 }
  0xa5   : > { %22958 = vmatmul.mubr.msk.f32.gmra.mrb[30].mxu1 %vm225_vm1, %v27498_v41 }
  0xa6   : > { %22962 = vmatprep.mubr.msk.f32.mxu1 %vm225_vm1, %v1730_v50  ;;  %v34308_v50 = vld [vmem:[#allocation21_spill] sm:$0xff] }
  0xa7   : > { %23184 = vmatmul.mubr.msk.f32.gmra.mrb[14].mxu0 %vm225_vm1, %v27036_v5  ;;  %v3496_v44 = vsel %vm34310_vm3, %v34308_v50, 0.0  ;;  %v34313_v5 = vld [vmem:[#allocation22_spill] sm:$0xff]  ;;  %v3498_v50 = vsel %vm34320_vm14, %v34318_v18, 0.0  ;;  %vm34331_vm14 = vnez %v34239_v20  ;;  %v27578_v20 = vld [vmem:[#allocation2 + $0x107] sm:$0xff] }
  0xa8   : > { %23186 = vmatprep.mubr.msk.f32.mxu0 %vm225_vm1, %v3494_v61  ;;  %34341 = vst [vmem:[#allocation15_spill] sm:$0xff] %v27578_v20 }
  0xa9   : > { %22963 = vmatmul.mubr.msk.f32.vlgmr.msra.gmra.mrb[0].mxu1 %vm225_vm1, %v1827_v62  ;;  %v34316_v62 = vld [vmem:[#allocation24_spill] sm:$0xff] }
  0xaa   : > { %23011 = vmatpush3.msk.msra.mxu1 %vm34304_vm2, %v27249_v19  ;;  %22965 = vmatprep.mubr.msk.f32.mxu1 %vm225_vm1, %v27003_v27  ;;  %v34314_v19 = vld [vmem:[#allocation19_spill] sm:$0xff]  ;;  %v34315_v27 = vld [vmem:[#allocation18_spill] sm:$0xff]  ;;  %vm34317_vm2 = vnez %v34316_v62 }
  0xab   : > { %25110 = vmatprep.subr.msk.mxu1 %vm34312_vm12, %v34311_v28  ;;  %23187 = vmatmul.mubr.msk.f32.gmra.mrb[16].mxu0 %vm225_vm1, %v34313_v5  ;;  %v1831_v61 = vsel %vm34317_vm2, %v34315_v27, 0.0  ;;  %v34322_v28 = vld [vmem:[#allocation23_spill] sm:$0xff]  ;;  %vm34324_vm12 = vnez %v34229_v4  ;;  %v34325_v5 = vld [vmem:[#allocation33_spill] sm:$0xff]  ;;  %v34328_v62 = vld [vmem:[#allocation34_spill] sm:$0xff] }
  0xac   : > { %23189 = vmatprep.mubr.msk.f32.mxu0 %vm225_vm1, %v3496_v44  ;;  %v34335_v4 = vld [vmem:[#allocation40_spill] sm:$0xff] }
  0xad   : > { %22966 = vmatmul.mubr.msk.f32.gmra.mrb[2].mxu1 %vm225_vm1, %v1829_v3  ;;  %v34323_v3 = vld [vmem:[#allocation25_spill] sm:$0xff] }
  0xae   : > { %22968 = vmatprep.mubr.msk.f32.mxu1 %vm225_vm1, %v34314_v19  ;;  %v1833_v44 = vsel %vm34324_vm12, %v34323_v3, 0.0  ;;  %v34326_v19 = vld [vmem:[#allocation20_spill] sm:$0xff] }
  0xaf   : > { %23190 = vmatmul.mubr.msk.f32.gmra.mrb[18].mxu0 %vm225_vm1, %v34321_v57  ;;  %vm34327_vm2 = vnez %v34326_v19  ;;  %v34329_v57 = vld [vmem:[#allocation29_spill] sm:$0xff] }
  0xb0   : > { %23192 = vmatprep.mubr.msk.f32.mxu0 %vm225_vm1, %v3498_v50  ;;  %v3500_v27 = vsel %vm34327_vm2, %v34325_v5, 0.0  ;;  %v34332_v50 = vld [vmem:[#allocation39_spill] sm:$0xff]  ;;  %vm34338_vm2 = vnez %v34249_v11 }
  0xb1   : > { %22969 = vmatmul.mubr.msk.f32.gmra.mrb[4].mxu1 %vm225_vm1, %v1831_v61  ;;  %v34330_v61 = vld [vmem:[#allocation31_spill] sm:$0xff] }
  0xb2   : > { %22971 = vmatprep.mubr.msk.f32.mxu1 %vm225_vm1, %v34322_v28  ;;  %v1835_v18 = vsel %vm34331_vm14, %v34330_v61, 0.0  ;;  %v34333_v28 = vld [vmem:[#allocation26_spill] sm:$0xff] }
  0xb3   : > { %23193 = vmatmul.mubr.msk.f32.gmra.mrb[20].mxu0 %vm225_vm1, %v34328_v62  ;;  %vm34334_vm12 = vnez %v34333_v28  ;;  %v34336_v62 = vld [vmem:[#allocation35_spill] sm:$0xff] }
  0xb4   : > { %23195 = vmatprep.mubr.msk.f32.mxu0 %vm225_vm1, %v3500_v27  ;;  %v3502_v3 = vsel %vm34334_vm12, %v34332_v50, 0.0  ;;  %v34342_v50 = vld [vmem:[#allocation46_spill] sm:$0xff] }
  0xb5   : > { %22972 = vmatmul.mubr.msk.f32.gmra.mrb[6].mxu1 %vm225_vm1, %v1833_v44  ;;  %v34337_v44 = vld [vmem:[#allocation37_spill] sm:$0xff] }
  0xb6   : > { %22974 = vmatprep.mubr.msk.f32.mxu1 %vm225_vm1, %v34329_v57  ;;  %v1837_v27 = vsel %vm34338_vm2, %v34337_v44, 0.0  ;;  %v34339_v57 = vld [vmem:[#allocation32_spill] sm:$0xff]  ;;  %v34349_v44 = vld [vmem:[#allocation50_spill] sm:$0xff] }
  0xb7   : > { %23196 = vmatmul.mubr.msk.f32.gmra.mrb[22].mxu0 %vm225_vm1, %v34335_v4  ;;  %vm34340_vm14 = vnez %v34339_v57  ;;  %v34347_v4 = vld [vmem:[#allocation38_spill] sm:$0xff] }
  0xb8   : > { %23198 = vmatprep.mubr.msk.f32.mxu0 %vm225_vm1, %v3502_v3  ;;  %v3504_v61 = vsel %vm34340_vm14, %v27183_v38, 0.0  ;;  %v34344_v3 = vld [vmem:[#allocation43_spill] sm:$0xff]  ;;  %vm34348_vm2 = vnez %v34347_v4 }
  0xb9   : > { %22975 = vmatmul.mubr.msk.f32.gmra.mrb[8].mxu1 %vm225_vm1, %v1835_v18  ;;  %v34343_v18 = vld [vmem:[#allocation41_spill] sm:$0xff]  ;;  %v3506_v38 = vsel %vm34348_vm2, %v27578_v20, 0.0  ;;  %v3476_v57 = vld [vmem:[#allocation2 + $0x117] sm:$0xff] }
  0xba   : > { %22977 = vmatprep.mubr.msk.f32.mxu1 %vm225_vm1, %v34336_v62  ;;  %v34345_v62 = vld [vmem:[#allocation48_spill] sm:$0xff] }
  0xbb   : > { %23199 = vmatmul.mubr.msk.f32.gmra.mrb[24].mxu0 %vm225_vm1, %v34342_v50  ;;  %vm34346_vm12 = vnez %v34345_v62  ;;  %v34352_v50 = vld [vmem:[#allocation49_spill] sm:$0xff] }
  0xbc   : > { %23201 = vmatprep.mubr.msk.f32.mxu0 %vm225_vm1, %v3504_v61  ;;  %v1839_v11 = vsel %vm34346_vm12, %v34344_v3, 0.0  ;;  %v34351_v61 = vld [vmem:[#allocation47_spill] sm:$0xff]  ;;  %vm34353_vm12 = vnez %v34264_v46  ;;  %v34354_v3 = vld [vmem:[#allocation44_spill] sm:$0xff]  ;;  %v3867_v46 = vld [vmem:[#allocation2 + $0x28] sm:$0xff] }
  0xbd   : > { %22978 = vmatmul.mubr.msk.f32.gmra.mrb[10].mxu1 %vm225_vm1, %v1837_v27  ;;  %v27596_v27 = vld [vmem:[#allocation2 + $0x10f] sm:$0xff]  ;;  %v1841_v62 = vsel %vm34353_vm12, %v34352_v50, 0.0  ;;  %vm34355_vm14 = vnez %v34354_v3  ;;  %vm34360_vm12 = vnez %v34278_v9 }
  0xbe   : > { %22980 = vmatprep.mubr.msk.f32.mxu1 %vm225_vm1, %v34343_v18  ;;  %34350 = vst [vmem:[#allocation21_spill] sm:$0xff] %v27596_v27  ;;  %v3508_v20 = vsel %vm34355_vm14, %v3476_v57, 0.0  ;;  %v3868_v57 = vld [vmem:[#allocation2 + $0x30] sm:$0xff] }
  0xbf   : > { %23202 = vmatmul.mubr.msk.f32.gmra.mrb[26].mxu0 %vm225_vm1, %v34349_v44 }
  0xc0   : > { %23204 = vmatprep.mubr.msk.f32.mxu0 %vm225_vm1, %v3506_v38  ;;  %v3477_v38 = vld [vmem:[#allocation2 + $0x11f] sm:$0xff] }
  0xc1   : > { %22981 = vmatmul.mubr.msk.f32.gmra.mrb[12].mxu1 %vm225_vm1, %v1839_v11  ;;  %v34356_v11 = vld [vmem:[#allocation52_spill] sm:$0xff] }
  0xc2   : > { %22983 = vmatprep.mubr.msk.f32.mxu1 %vm225_vm1, %v34351_v61  ;;  %v1843_v44 = vsel %vm27238_vm11, %v34356_v11, 0.0  ;;  %vm34358_vm11 = vcmask 1043456  }
  0xc3   : > { %23205 = vmatmul.mubr.msk.f32.gmra.mrb[28].mxu0 %vm225_vm1, %v27596_v27  ;;  %v34357_v27 = vld [vmem:[#allocation53_spill] sm:$0xff] }
  0xc4   : > { %23207 = vmatprep.mubr.msk.f32.mxu0 %vm225_vm1, %v3508_v20  ;;  %v1845_v20 = vsel %vm27263_vm0, %v27242_v35, 0.0 }
  0xc5   : > { %22984 = vmatmul.mubr.msk.f32.gmra.mrb[14].mxu1 %vm225_vm1, %v1841_v62  ;;  %v3869_v62 = vld [vmem:[#allocation2 + $0x38] sm:$0xff] }
  0xc6   : > { %22986 = vmatprep.mubr.msk.f32.mxu1 %vm225_vm1, %v27218_v36 }
  0xc7   : > { %23208 = vmatmul.mubr.msk.f32.gmra.mrb[30].mxu0 %vm225_vm1, %v3477_v38  ;;  %v3870_v38 = vld [vmem:[#allocation2 + $0x40] sm:$0xff] }
  0xc8   : > { %23212 = vmatprep.mubr.msk.f32.mxu0 %vm225_vm1, %v3867_v46  ;;  %v34359_v46 = vld [vmem:[#allocation56_spill] sm:$0xff] }
  0xc9   : > { %22987 = vmatmul.mubr.msk.f32.gmra.mrb[16].mxu1 %vm225_vm1, %v1843_v44  ;;  %v1847_v44 = vsel %vm34360_vm12, %v34359_v46, 0.0  ;;  %vm34365_vm12 = vnez %v34287_v45 }
  0xca   : > { %22989 = vmatprep.mubr.msk.f32.mxu1 %vm225_vm1, %v34357_v27 }
  0xcb   : > { %23213 = vmatmul.mubr.msk.f32.vlgmr.msra.gmra.mrb[0].mxu0 %vm225_vm1, %v3868_v57 }
  0xcc   : > { %23261 = vmatpush3.msk.msra.mxu0 %vm34358_vm11, %v27417_v49  ;;  %23215 = vmatprep.mubr.msk.f32.mxu0 %vm225_vm1, %v3869_v62  ;;  %v34361_v49 = vld [vmem:[#allocation58_spill] sm:$0xff]  ;;  %vm34362_vm11 = vnez %v34283_v53  ;;  %v34364_v62 = vld [vmem:[#allocation61_spill] sm:$0xff] }
  0xcd   : > { %22990 = vmatmul.mubr.msk.f32.gmra.mrb[18].mxu1 %vm225_vm1, %v1845_v20  ;;  %v1849_v57 = vsel %vm34362_vm11, %v34361_v49, 0.0  ;;  %v34363_v20 = vld [vmem:[#allocation59_spill] sm:$0xff]  ;;  %vm34367_vm11 = vnez %v34292_v55 }
  0xce   : > { %22992 = vmatprep.mubr.msk.f32.mxu1 %vm225_vm1, %v27261_v2 }
  0xcf   : > { %23216 = vmatmul.mubr.msk.f32.gmra.mrb[2].mxu0 %vm225_vm1, %v3870_v38  ;;  %v34369_v38 = vld [vmem:[#allocation66_spill] sm:$0xff] }
  0xd0   : > { %23218 = vmatprep.mubr.msk.f32.mxu0 %vm225_vm1, %v3871_v52  ;;  %v1851_v52 = vsel %vm34365_vm12, %v34364_v62, 0.0 }
  0xd1   : > { %22993 = vmatmul.mubr.msk.f32.gmra.mrb[20].mxu1 %vm225_vm1, %v1847_v44  ;;  %v2215_v44 = vld [vmem:[#allocation2 + $0x17] sm:$0xff] }
  0xd2   : > { %22995 = vmatprep.mubr.msk.f32.mxu1 %vm225_vm1, %v27282_v43 }
  0xd3   : > { %23219 = vmatmul.mubr.msk.f32.gmra.mrb[4].mxu0 %vm225_vm1, %v26886_v12  ;;  %v34366_v12 = vld [vmem:[#allocation63_spill] sm:$0xff] }
  0xd4   : > { %23221 = vmatprep.mubr.msk.f32.mxu0 %vm225_vm1, %v26891_v14  ;;  %v1853_v14 = vsel %vm34367_vm11, %v34366_v12, 0.0  ;;  %vm34371_vm11 = vnez %v34172_v10 }
  0xd5   : > { %22996 = vmatmul.mubr.msk.f32.gmra.mrb[22].mxu1 %vm225_vm1, %v1849_v57  ;;  %v2247_v57 = vsel %vm34371_vm11, %v2215_v44, 0.0  ;;  %vm34373_vm11 = vcmask 1043456  }
  0xd6   : > { %22998 = vmatprep.mubr.msk.f32.mxu1 %vm225_vm1, %v34363_v20 }
  0xd7   : > { %23222 = vmatmul.mubr.msk.f32.gmra.mrb[6].mxu0 %vm225_vm1, %v26910_v21  ;;  %v34368_v21 = vld [vmem:[#allocation64_spill] sm:$0xff] }
  0xd8   : > { %23224 = vmatprep.mubr.msk.f32.mxu0 %vm225_vm1, %v26918_v25  ;;  %v1855_v25 = vsel %vm27360_vm15, %v34369_v38, 0.0  ;;  %vm34372_vm15 = vnez %v34175_v33 }
  0xd9   : > { %22999 = vmatmul.mubr.msk.f32.gmra.mrb[24].mxu1 %vm225_vm1, %v1851_v52 }
  0xda   : > { %23001 = vmatprep.mubr.msk.f32.mxu1 %vm225_vm1, %v27320_v40 }
  0xdb   : > { %23225 = vmatmul.mubr.msk.f32.gmra.mrb[8].mxu0 %vm225_vm1, %v26945_v37  ;;  %v34370_v37 = vld [vmem:[#allocation68_spill] sm:$0xff] }
  0xdc   : > { %23227 = vmatprep.mubr.msk.f32.mxu0 %vm225_vm1, %v26953_v42  ;;  %v1857_v42 = vsel %vm27378_vm13, %v34370_v37, 0.0 }
  0xdd   : > { %23002 = vmatmul.mubr.msk.f32.gmra.mrb[26].mxu1 %vm225_vm1, %v1853_v14  ;;  %v2219_v14 = vld [vmem:[#allocation2 + $0x37] sm:$0xff] }
  0xde   : > { %23004 = vmatprep.mubr.msk.f32.mxu1 %vm225_vm1, %v34368_v21  ;;  %v2251_v44 = vsel %vm26788_vm4, %v2219_v14, 0.0 }
  0xdf   : > { %23228 = vmatmul.mubr.msk.f32.gmra.mrb[10].mxu0 %vm225_vm1, %v26974_v59  ;;  %v2217_v59 = vld [vmem:[#allocation2 + $0x27] sm:$0xff] }
  0xe0   : > { %23230 = vmatprep.mubr.msk.f32.mxu0 %vm225_vm1, %v26979_v63  ;;  %v2216_v63 = vld [vmem:[#allocation2 + $0x1f] sm:$0xff]  ;;  %v2249_v52 = vsel %vm34372_vm15, %v2217_v59, 0.0 }
  0xe1   : > { %23005 = vmatmul.mubr.msk.f32.gmra.mrb[28].mxu1 %vm225_vm1, %v1855_v25  ;;  %v2218_v25 = vld [vmem:[#allocation2 + $0x2f] sm:$0xff] }
  0xe2   : > { %23007 = vmatprep.mubr.msk.f32.mxu1 %vm225_vm1, %v27358_v48 }
  0xe3   : > { %23231 = vmatmul.mubr.msk.f32.gmra.mrb[12].mxu0 %vm225_vm1, %v26998_v22  ;;  %v26561_v22 = vld [vmem:[%s33206_s1 + $0x10] sm:$0xf] }
  0xe4   : > { %23233 = vmatprep.mubr.msk.f32.mxu0 %vm225_vm1, %v27397_v6 }
  0xe5   : > { %23008 = vmatmul.mubr.msk.f32.gmra.mrb[30].mxu1 %vm225_vm1, %v1857_v42  ;;  %v2221_v42 = vld [vmem:[#allocation2 + $0x47] sm:$0xff] }
  0xe6   : > { %23012 = vmatprep.mubr.msk.f32.mxu1 %vm225_vm1, %v2247_v57  ;;  %v2220_v57 = vld [vmem:[#allocation2 + $0x3f] sm:$0xff]  ;;  %v2253_v59 = vsel %vm26821_vm5, %v2221_v42, 0.0  ;;  %v2227_v42 = vld [vmem:[#allocation2 + $0x77] sm:$0xff] }
  0xe7   : > { %23234 = vmatmul.mubr.msk.f32.gmra.mrb[14].mxu0 %vm225_vm1, %v27405_v58 }
  0xe8   : > { %23236 = vmatprep.mubr.msk.f32.mxu0 %vm225_vm1, %v27410_v26 }
  0xe9   : > { %23013 = vmatmul.mubr.msk.f32.vlgmr.msra.gmra.mrb[0].mxu1 %vm225_vm1, %v2216_v63  ;;  %v2223_v63 = vld [vmem:[#allocation2 + $0x57] sm:$0xff] }
  0xea   : > { %25111 = vmatpush3.msk.msra.mxu1 %vm34373_vm11, %v26561_v22  ;;  %23015 = vmatprep.mubr.msk.f32.mxu1 %vm225_vm1, %v2249_v52  ;;  %v2222_v52 = vld [vmem:[#allocation2 + $0x4f] sm:$0xff]  ;;  %v2255_v14 = vsel %vm26852_vm6, %v2223_v63, 0.0  ;;  %v2225_v22 = vld [vmem:[#allocation2 + $0x67] sm:$0xff]  ;;  %vm34376_vm11 = vnez %v34375_v47 }
  0xeb   : > { %23237 = vmatmul.mubr.msk.f32.gmra.mrb[16].mxu0 %vm225_vm1, %v27426_v56  ;;  %v2229_v63 = vld [vmem:[#allocation2 + $0x87] sm:$0xff] }
  0xec   : > { %23239 = vmatprep.mubr.msk.f32.mxu0 %vm225_vm1, %v27431_v54 }
  0xed   : > { %23016 = vmatmul.mubr.msk.f32.gmra.mrb[2].mxu1 %vm225_vm1, %v2218_v25  ;;  %v2224_v25 = vld [vmem:[#allocation2 + $0x5f] sm:$0xff] }
  0xee   : > { %23018 = vmatprep.mubr.msk.f32.mxu1 %vm225_vm1, %v2251_v44  ;;  %v2257_v44 = vsel %vm26875_vm7, %v2225_v22, 0.0  ;;  %v2261_v22 = vsel %vm26931_vm9, %v2229_v63, 0.0  ;;  %v2233_v63 = vld [vmem:[#allocation2 + $0xa7] sm:$0xff] }
  0xef   : > { %23240 = vmatmul.mubr.msk.f32.gmra.mrb[18].mxu0 %vm225_vm1, %v27442_v34  ;;  %v2265_v60 = vsel %vm34310_vm3, %v2233_v63, 0.0  ;;  %v2237_v63 = vld [vmem:[#allocation2 + $0xc7] sm:$0xff] }
  0xf0   : > { %23242 = vmatprep.mubr.msk.f32.mxu0 %vm225_vm1, %v27447_v15 }
  0xf1   : > { %23019 = vmatmul.mubr.msk.f32.gmra.mrb[4].mxu1 %vm225_vm1, %v2220_v57  ;;  %v2226_v57 = vld [vmem:[#allocation2 + $0x6f] sm:$0xff] }
  0xf2   : > { %23021 = vmatprep.mubr.msk.f32.mxu1 %vm225_vm1, %v2253_v59  ;;  %v2259_v59 = vsel %vm26898_vm8, %v2227_v42, 0.0  ;;  %v2230_v42 = vld [vmem:[#allocation2 + $0x8f] sm:$0xff] }
  0xf3   : > { %23243 = vmatmul.mubr.msk.f32.gmra.mrb[20].mxu0 %vm225_vm1, %v27456_v1 }
  0xf4   : > { %23245 = vmatprep.mubr.msk.f32.mxu0 %vm225_vm1, %v27461_v8 }
  0xf5   : > { %23022 = vmatmul.mubr.msk.f32.gmra.mrb[6].mxu1 %vm225_vm1, %v2222_v52  ;;  %v2228_v52 = vld [vmem:[#allocation2 + $0x7f] sm:$0xff] }
  0xf6   : > { %23024 = vmatprep.mubr.msk.f32.mxu1 %vm225_vm1, %v2255_v14  ;;  %v27740_v14 = vld [vmem:[#allocation2 + $0x108] sm:$0xff] }
  0xf7   : > { %23246 = vmatmul.mubr.msk.f32.gmra.mrb[22].mxu0 %vm225_vm1, %v27470_v13 }
  0xf8   : > { %23248 = vmatprep.mubr.msk.f32.mxu0 %vm225_vm1, %v27475_v17 }
  0xf9   : > { %23025 = vmatmul.mubr.msk.f32.gmra.mrb[8].mxu1 %vm225_vm1, %v2224_v25  ;;  %v2231_v25 = vld [vmem:[#allocation2 + $0x97] sm:$0xff] }
  0xfa   : > { %23027 = vmatprep.mubr.msk.f32.mxu1 %vm225_vm1, %v2257_v44  ;;  %v27749_v44 = vld [vmem:[#allocation2 + $0x110] sm:$0xff] }
  0xfb   : > { %23249 = vmatmul.mubr.msk.f32.gmra.mrb[24].mxu0 %vm225_vm1, %v27484_v24 }
  0xfc   : > { %23251 = vmatprep.mubr.msk.f32.mxu0 %vm225_vm1, %v27489_v32 }
  0xfd   : > { %23028 = vmatmul.mubr.msk.f32.gmra.mrb[10].mxu1 %vm225_vm1, %v2226_v57  ;;  %v3897_v57 = vld [vmem:[#allocation2 + $0x118] sm:$0xff] }
  0xfe   : > { %23030 = vmatprep.mubr.msk.f32.mxu1 %vm225_vm1, %v2259_v59  ;;  %v2263_v59 = vsel %vm26963_vm10, %v2231_v25, 0.0  ;;  %v2235_v25 = vld [vmem:[#allocation2 + $0xb7] sm:$0xff]  ;;  %vm34377_vm10 = vnez %v34319_v23 }
  0xff   : > { %23252 = vmatmul.mubr.msk.f32.gmra.mrb[26].mxu0 %vm225_vm1, %v27498_v41  ;;  %v2267_v39 = vsel %vm34377_vm10, %v2235_v25, 0.0  ;;  %v34381_v25 = vld [vmem:[#allocation24_spill] sm:$0xff] }
 0x100   : > { %23254 = vmatprep.mubr.msk.f32.mxu0 %vm225_vm1, %v27740_v14  ;;  %vm34382_vm10 = vnez %v34381_v25 }
 0x101   : > { %23031 = vmatmul.mubr.msk.f32.gmra.mrb[12].mxu1 %vm225_vm1, %v2228_v52  ;;  %v3898_v52 = vld [vmem:[#allocation2 + $0x120] sm:$0xff] }
 0x102   : > { %23033 = vmatprep.mubr.msk.f32.mxu1 %vm225_vm1, %v2261_v22  ;;  %v34374_v22 = vld [vmem:[#allocation13_spill] sm:$0xff] }
 0x103   : > { %23255 = vmatmul.mubr.msk.f32.gmra.mrb[28].mxu0 %vm225_vm1, %v27749_v44 }
 0x104   : > { %23257 = vmatprep.mubr.msk.f32.mxu0 %vm225_vm1, %v3897_v57  ;;  %v2234_v57 = vld [vmem:[#allocation2 + $0xaf] sm:$0xff] }
 0x105   : > { %23034 = vmatmul.mubr.msk.f32.gmra.mrb[14].mxu1 %vm225_vm1, %v2230_v42  ;;  %v4289_v42 = vsel %vm34376_vm11, %v4257_v7, 0.0  ;;  %v2236_v7 = vld [vmem:[#allocation2 + $0xbf] sm:$0xff]  ;;  %vm34380_vm11 = vnez %v34326_v19 }
 0x106   : > { %23036 = vmatprep.mubr.msk.f32.mxu1 %vm225_vm1, %v2263_v59  ;;  %v4258_v59 = vld [vmem:[#allocation2 + $0x39] sm:$0xff]  ;;  %v2269_v47 = vsel %vm34380_vm11, %v2237_v63, 0.0  ;;  %v34385_v63 = vld [vmem:[#allocation30_spill] sm:$0xff] }
 0x107   : > { %23258 = vmatmul.mubr.msk.f32.gmra.mrb[30].mxu0 %vm225_vm1, %v3898_v52  ;;  %v4261_v52 = vld [vmem:[#allocation2 + $0x51] sm:$0xff]  ;;  %vm34386_vm11 = vnez %v34385_v63 }
 0x108   : > { %23262 = vmatprep.mubr.msk.f32.mxu0 %vm225_vm1, %v4256_v16 }
 0x109   : > { %23037 = vmatmul.mubr.msk.f32.gmra.mrb[16].mxu1 %vm225_vm1, %v2232_v31  ;;  %v34378_v31 = vld [vmem:[#allocation17_spill] sm:$0xff] }
 0x10a   : > { %23039 = vmatprep.mubr.msk.f32.mxu1 %vm225_vm1, %v2265_v60  ;;  %vm34379_vm3 = vnez %v34378_v31  ;;  %v4260_v60 = vld [vmem:[#allocation2 + $0x49] sm:$0xff] }
 0x10b   : > { %23263 = vmatmul.mubr.msk.f32.vlgmr.msra.gmra.mrb[0].mxu0 %vm225_vm1, %v4289_v42  ;;  %v4291_v16 = vsel %vm34379_vm3, %v4259_v51, 0.0  ;;  %v4293_v42 = vsel %vm34382_vm10, %v4261_v52, 0.0  ;;  %v2238_v51 = vld [vmem:[#allocation2 + $0xcf] sm:$0xff]  ;;  %vm34383_vm3 = vnez %v34333_v28  ;;  %v34390_v52 = vld [vmem:[#allocation40_spill] sm:$0xff] }
 0x10c   : > { %23265 = vmatprep.mubr.msk.f32.mxu0 %vm225_vm1, %v4258_v59  ;;  %v34384_v59 = vld [vmem:[#allocation37_spill] sm:$0xff] }
 0x10d   : > { %23040 = vmatmul.mubr.msk.f32.gmra.mrb[18].mxu1 %vm225_vm1, %v2234_v57  ;;  %v4262_v57 = vld [vmem:[#allocation2 + $0x59] sm:$0xff] }
 0x10e   : > { %23042 = vmatprep.mubr.msk.f32.mxu1 %vm225_vm1, %v2267_v39  ;;  %v2271_v39 = vsel %vm34383_vm3, %v34325_v5, 0.0  ;;  %v34391_v5 = vld [vmem:[#allocation43_spill] sm:$0xff] }
 0x10f   : > { %23266 = vmatmul.mubr.msk.f32.gmra.mrb[2].mxu0 %vm225_vm1, %v4291_v16  ;;  %v4295_v16 = vsel %vm34386_vm11, %v34384_v59, 0.0  ;;  %v34395_v59 = vld [vmem:[#allocation46_spill] sm:$0xff] }
 0x110   : > { %23268 = vmatprep.mubr.msk.f32.mxu0 %vm225_vm1, %v4260_v60 }
 0x111   : > { %23043 = vmatmul.mubr.msk.f32.gmra.mrb[20].mxu1 %vm225_vm1, %v2236_v7  ;;  %v34387_v7 = vld [vmem:[#allocation39_spill] sm:$0xff] }
 0x112   : > { %23045 = vmatprep.mubr.msk.f32.mxu1 %vm225_vm1, %v2269_v47  ;;  %v34388_v47 = vld [vmem:[#allocation32_spill] sm:$0xff] }
 0x113   : > { %23269 = vmatmul.mubr.msk.f32.gmra.mrb[4].mxu0 %vm225_vm1, %v4293_v42  ;;  %vm34389_vm10 = vnez %v34388_v47  ;;  %v34392_v42 = vld [vmem:[#allocation36_spill] sm:$0xff] }
 0x114   : > { %23271 = vmatprep.mubr.msk.f32.mxu0 %vm225_vm1, %v4262_v57  ;;  %v2273_v60 = vsel %vm34389_vm10, %v34387_v7, 0.0  ;;  %vm34393_vm3 = vnez %v34392_v42  ;;  %v34394_v57 = vld [vmem:[#allocation45_spill] sm:$0xff]  ;;  %v34398_v7 = vld [vmem:[#allocation15_spill] sm:$0xff] }
 0x115   : > { %23046 = vmatmul.mubr.msk.f32.gmra.mrb[22].mxu1 %vm225_vm1, %v2238_v51  ;;  %v4297_v51 = vsel %vm34393_vm3, %v34391_v5, 0.0 }
 0x116   : > { %23048 = vmatprep.mubr.msk.f32.mxu1 %vm225_vm1, %v2271_v39  ;;  %v2275_v39 = vsel %vm34348_vm2, %v34394_v57, 0.0 }
 0x117   : > { %23272 = vmatmul.mubr.msk.f32.gmra.mrb[6].mxu0 %vm225_vm1, %v4295_v16 }
 0x118   : > { %23274 = vmatprep.mubr.msk.f32.mxu0 %vm225_vm1, %v34343_v18  ;;  %v34396_v18 = vld [vmem:[#allocation42_spill] sm:$0xff] }
 0x119   : > { %23049 = vmatmul.mubr.msk.f32.gmra.mrb[24].mxu1 %vm225_vm1, %v34390_v52  ;;  %vm34397_vm11 = vnez %v34396_v18  ;;  %v34399_v52 = vld [vmem:[#allocation50_spill] sm:$0xff] }
 0x11a   : > { %23051 = vmatprep.mubr.msk.f32.mxu1 %vm225_vm1, %v2273_v60  ;;  %v4299_v16 = vsel %vm34397_vm11, %v34352_v50, 0.0  ;;  %v2277_v60 = vsel %vm34355_vm14, %v34398_v7, 0.0  ;;  %v34402_v50 = vld [vmem:[#allocation21_spill] sm:$0xff] }
 0x11b   : > { %23275 = vmatmul.mubr.msk.f32.gmra.mrb[8].mxu0 %vm225_vm1, %v4297_v51  ;;  %v34403_v51 = vld [vmem:[#allocation51_spill] sm:$0xff] }
 0x11c   : > { %23277 = vmatprep.mubr.msk.f32.mxu0 %vm225_vm1, %v34351_v61  ;;  %v34400_v61 = vld [vmem:[#allocation48_spill] sm:$0xff]  ;;  %vm34404_vm11 = vnez %v34403_v51 }
 0x11d   : > { %23052 = vmatmul.mubr.msk.f32.gmra.mrb[26].mxu1 %vm225_vm1, %v34395_v59  ;;  %vm34401_vm3 = vnez %v34400_v61  ;;  %v4303_v57 = vsel %vm34404_vm11, %v27242_v35, 0.0  ;;  %v34406_v35 = vld [vmem:[#allocation55_spill] sm:$0xff] }
 0x11e   : > { %23054 = vmatprep.mubr.msk.f32.mxu1 %vm225_vm1, %v2275_v39  ;;  %v4301_v5 = vsel %vm34401_vm3, %v34356_v11, 0.0  ;;  %vm34405_vm3 = vnez %v34269_v30 }
 0x11f   : > { %23278 = vmatmul.mubr.msk.f32.gmra.mrb[10].mxu0 %vm225_vm1, %v4299_v16 }
 0x120   : > { %23280 = vmatprep.mubr.msk.f32.mxu0 %vm225_vm1, %v27218_v36  ;;  %v4305_v36 = vsel %vm34405_vm3, %v34359_v46, 0.0  ;;  %vm34407_vm3 = vnez %v34278_v9 }
 0x121   : > { %23055 = vmatmul.mubr.msk.f32.gmra.mrb[28].mxu1 %vm225_vm1, %v34399_v52 }
 0x122   : > { %23057 = vmatprep.mubr.msk.f32.mxu1 %vm225_vm1, %v2277_v60  ;;  %v28021_v60 = vld [vmem:[%s33207_s2] ss:$0 sm:$0xff] }
 0x123   : > { %23281 = vmatmul.mubr.msk.f32.gmra.mrb[12].mxu0 %vm225_vm1, %v4301_v5 }
 0x124   : > { %23283 = vmatprep.mubr.msk.f32.mxu0 %vm225_vm1, %v34357_v27 }
 0x125   : > { %23058 = vmatmul.mubr.msk.f32.gmra.mrb[30].mxu1 %vm225_vm1, %v34402_v50 }
 0x126   : > { %23086 = vmatprep.mubr.msk.f32.mxu1 %vm225_vm1, %v27397_v6  ;;  %v4307_v6 = vsel %vm27263_vm0, %v34361_v49, 0.0  ;;  %vm34408_vm0 = vnez %v34283_v53 }
 0x127   : > { %23284 = vmatmul.mubr.msk.f32.gmra.mrb[14].mxu0 %vm225_vm1, %v4303_v57 }
 0x128   : > { %23286 = vmatprep.mubr.msk.f32.mxu0 %vm225_vm1, %v27261_v2  ;;  %v4309_v2 = vsel %vm34407_vm3, %v34364_v62, 0.0 }
 0x129   : > { %23087 = vmatmul.mubr.msk.f32.vlgmr.msra.gmra.mrb[16].mxu1 %vm225_vm1, %v27405_v58  ;;  %v34410_v58 = vld [vmem:[#allocation69_spill] sm:$0xff] }
 0x12a   : > { %23089 = vmatprep.mubr.msk.f32.mxu1 %vm225_vm1, %v27410_v26  ;;  %v4313_v26 = vsel %vm34365_vm12, %v34369_v38, 0.0  ;;  %vm34412_vm12 = vnez %v34296_v0 }
 0x12b   : > { %23287 = vmatmul.mubr.msk.f32.gmra.mrb[16].mxu0 %vm225_vm1, %v4305_v36 }
 0x12c   : > { %23289 = vmatprep.mubr.msk.f32.mxu0 %vm225_vm1, %v27282_v43  ;;  %v4311_v43 = vsel %vm34408_vm0, %v34366_v12, 0.0  ;;  %vm34409_vm0 = vnez %v34292_v55 }
 0x12d   : > { %23090 = vmatmul.mubr.msk.f32.gmra.mrb[18].mxu1 %vm225_vm1, %v27426_v56  ;;  %v34411_v56 = vld [vmem:[#allocation71_spill] sm:$0xff] }
 0x12e   : > { %23092 = vmatprep.mubr.msk.f32.mxu1 %vm225_vm1, %v27431_v54  ;;  %v4317_v54 = vsel %vm34412_vm12, %v34411_v56, 0.0  ;;  %vm264_vm12 = vcmask 64512  }
 0x12f   : > { %23290 = vmatmul.mubr.msk.f32.gmra.mrb[18].mxu0 %vm225_vm1, %v4307_v6 }
 0x130   : > { %23292 = vmatprep.mubr.msk.f32.mxu0 %vm225_vm1, %v34363_v20 }
 0x131   : > { %23093 = vmatmul.mubr.msk.f32.gmra.mrb[20].mxu1 %vm225_vm1, %v27442_v34  ;;  %v4287_v34 = vld [vmem:[#allocation2 + $0x121] sm:$0xff] }
 0x132   : > { %23095 = vmatprep.mubr.msk.f32.mxu1 %vm225_vm1, %v27447_v15  ;;  %v4319_v15 = vsel %vm27378_vm13, %v4287_v34, 0.0 }
 0x133   : > { %23293 = vmatmul.mubr.msk.f32.gmra.mrb[20].mxu0 %vm225_vm1, %v4309_v2 }
 0x134   : > { %23295 = vmatprep.mubr.msk.f32.mxu0 %vm225_vm1, %v27320_v40  ;;  %v4315_v40 = vsel %vm34409_vm0, %v34370_v37, 0.0 }
 0x135   : > { %23096 = vmatmul.mubr.msk.f32.gmra.mrb[22].mxu1 %vm225_vm1, %v27456_v1  ;;  %v4844_v1 = vld [vmem:[%s33208_s3] sm:$0xff] }
 0x136   : > { %23098 = vmatprep.mubr.msk.f32.mxu1 %vm225_vm1, %v27461_v8  ;;  %23310 = vmatprep.subr.mxu1 %v4844_v1  ;;  %v34413_v8 = vmov 0.0  }
 0x137   : > { %23296 = vmatmul.mubr.msk.f32.gmra.mrb[22].mxu0 %vm225_vm1, %v4311_v43  ;;  %23311 = vmatpush3.msra.mxu1 %v4844_v1  ;;  %269 = vst.msk [vmem:[#allocation3 + $0x20] sm:$0xff] %vm264_vm12, %v34413_v8  ;;  %265 = vst.msk [vmem:[#allocation3] sm:$0xff] %vm264_vm12, %v34413_v8 }
 0x138   : > { %23298 = vmatprep.mubr.msk.f32.mxu0 %vm225_vm1, %v34368_v21  ;;  %266 = vst.msk [vmem:[#allocation3 + $0x8] sm:$0xff] %vm264_vm12, %v34413_v8  ;;  %267 = vst.msk [vmem:[#allocation3 + $0x10] sm:$0xff] %vm264_vm12, %v34413_v8 }
 0x139   : > { %23099 = vmatmul.mubr.msk.f32.gmra.mrb[24].mxu1 %vm225_vm1, %v27470_v13  ;;  %268 = vst.msk [vmem:[#allocation3 + $0x18] sm:$0xff] %vm264_vm12, %v34413_v8  ;;  %270 = vst.msk [vmem:[#allocation3 + $0x28] sm:$0xff] %vm264_vm12, %v34413_v8 }
 0x13a   : > { %23101 = vmatprep.mubr.msk.f32.mxu1 %vm225_vm1, %v27475_v17  ;;  %271 = vst.msk [vmem:[#allocation3 + $0x30] sm:$0xff] %vm264_vm12, %v34413_v8  ;;  %272 = vst.msk [vmem:[#allocation3 + $0x38] sm:$0xff] %vm264_vm12, %v34413_v8 }
 0x13b   : > { %23299 = vmatmul.mubr.msk.f32.gmra.mrb[24].mxu0 %vm225_vm1, %v4313_v26  ;;  %273 = vst.msk [vmem:[#allocation3 + $0x40] sm:$0xff] %vm264_vm12, %v34413_v8  ;;  %274 = vst.msk [vmem:[#allocation3 + $0x48] sm:$0xff] %vm264_vm12, %v34413_v8 }
 0x13c   : > { %23301 = vmatprep.mubr.msk.f32.mxu0 %vm225_vm1, %v27358_v48  ;;  %v4286_v48 = vld [vmem:[#allocation2 + $0x119] sm:$0xff]  ;;  %275 = vst.msk [vmem:[#allocation3 + $0x50] sm:$0xff] %vm264_vm12, %v34413_v8  ;;  %276 = vst.msk [vmem:[#allocation3 + $0x58] sm:$0xff] %vm264_vm12, %v34413_v8 }
 0x13d   : > { %23102 = vmatmul.mubr.msk.f32.gmra.mrb[26].mxu1 %vm225_vm1, %v27484_v24  ;;  %277 = vst.msk [vmem:[#allocation3 + $0x60] sm:$0xff] %vm264_vm12, %v34413_v8  ;;  %278 = vst.msk [vmem:[#allocation3 + $0x68] sm:$0xff] %vm264_vm12, %v34413_v8 }
 0x13e   : > { %23104 = vmatprep.mubr.msk.f32.mxu1 %vm225_vm1, %v27489_v32  ;;  %279 = vst.msk [vmem:[#allocation3 + $0x70] sm:$0xff] %vm264_vm12, %v34413_v8  ;;  %280 = vst.msk [vmem:[#allocation3 + $0x78] sm:$0xff] %vm264_vm12, %v34413_v8  ;;  %v5230_v32 = vld [vmem:[%s33208_s3 + $0x8] sm:$0xff] }
 0x13f   : > { %23302 = vmatmul.mubr.msk.f32.gmra.mrb[26].mxu0 %vm225_vm1, %v4315_v40  ;;  %281 = vst.msk [vmem:[#allocation3 + $0x80] sm:$0xff] %vm264_vm12, %v34413_v8  ;;  %282 = vst.msk [vmem:[#allocation3 + $0x88] sm:$0xff] %vm264_vm12, %v34413_v8  ;;  %v4780_v13 = vld [vmem:[#allocation3 + $0x7] sm:$0xff]  ;;  %v4781_v24 = vld [vmem:[#allocation3 + $0xf] sm:$0xff]  ;;  %23360 = vmatprep.subr.mxu1 %v5230_v32 }
 0x140   : > { %23304 = vmatprep.mubr.msk.f32.mxu0 %vm225_vm1, %v34410_v58  ;;  %283 = vst.msk [vmem:[#allocation3 + $0x90] sm:$0xff] %vm264_vm12, %v34413_v8  ;;  %284 = vst.msk [vmem:[#allocation3 + $0x98] sm:$0xff] %vm264_vm12, %v34413_v8 }
 0x141   : > { %23105 = vmatmul.mubr.msk.f32.gmra.mrb[28].mxu1 %vm225_vm1, %v27498_v41  ;;  %285 = vst.msk [vmem:[#allocation3 + $0xa0] sm:$0xff] %vm264_vm12, %v34413_v8  ;;  %286 = vst.msk [vmem:[#allocation3 + $0xa8] sm:$0xff] %vm264_vm12, %v34413_v8  ;;  %v28005_v41 = vld [vmem:[%s33208_s3 + $0x10] sm:$0xff] }
 0x142   : > { %23107 = vmatprep.mubr.msk.f32.mxu1 %vm225_vm1, %v27740_v14  ;;  %287 = vst.msk [vmem:[#allocation3 + $0xb0] sm:$0xff] %vm264_vm12, %v34413_v8  ;;  %288 = vst.msk [vmem:[#allocation3 + $0xb8] sm:$0xff] %vm264_vm12, %v34413_v8 }
 0x143   : > { %23305 = vmatmul.mubr.msk.f32.gmra.mrb[28].mxu0 %vm225_vm1, %v4317_v54  ;;  %289 = vst.msk [vmem:[#allocation3 + $0xc0] sm:$0xff] %vm264_vm12, %v34413_v8  ;;  %290 = vst.msk [vmem:[#allocation3 + $0xc8] sm:$0xff] %vm264_vm12, %v34413_v8 }
 0x144   : > { %23307 = vmatprep.mubr.msk.f32.mxu0 %vm225_vm1, %v4286_v48  ;;  %291 = vst.msk [vmem:[#allocation3 + $0xd0] sm:$0xff] %vm264_vm12, %v34413_v8  ;;  %292 = vst.msk [vmem:[#allocation3 + $0xd8] sm:$0xff] %vm264_vm12, %v34413_v8 }
 0x145   : > { %23108 = vmatmul.mubr.msk.f32.gmra.mrb[30].mxu1 %vm225_vm1, %v27749_v44  ;;  %293 = vst.msk [vmem:[#allocation3 + $0xe0] sm:$0xff] %vm264_vm12, %v34413_v8  ;;  %294 = vst.msk [vmem:[#allocation3 + $0xe8] sm:$0xff] %vm264_vm12, %v34413_v8 }
 0x146   : > { %295 = vst.msk [vmem:[#allocation3 + $0xf0] sm:$0xff] %vm264_vm12, %v34413_v8  ;;  %296 = vst.msk [vmem:[#allocation3 + $0xf8] sm:$0xff] %vm264_vm12, %v34413_v8 }
 0x147   : > { %23308 = vmatmul.mubr.msk.f32.gmra.mrb[30].mxu0 %vm225_vm1, %v4319_v15  ;;  %297 = vst.msk [vmem:[#allocation3 + $0x100] sm:$0xff] %vm264_vm12, %v34413_v8  ;;  %298 = vst.msk [vmem:[#allocation3 + $0x108] sm:$0xff] %vm264_vm12, %v34413_v8  ;;  %vm34414_vm1 = vnez %v34172_v10 }
 0x148   : > { %299 = vst.msk [vmem:[#allocation3 + $0x110] sm:$0xff] %vm264_vm12, %v34413_v8  ;;  %300 = vst.msk [vmem:[#allocation3 + $0x118] sm:$0xff] %vm264_vm12, %v34413_v8  ;;  %v4812_v17 = vsel %vm34414_vm1, %v4780_v13, 0.0 }
 0x149   : > { %301 = vst.msk [vmem:[#allocation3 + $0x120] sm:$0xff] %vm264_vm12, %v34413_v8  ;;  %302 = vst.msk [vmem:[#allocation3 + $0x128] sm:$0xff] %vm264_vm12, %v34413_v8  ;;  %23312 = vmatprep.mubr.msk.f32.mxu1 %vm264_vm12, %v4812_v17 }
 0x14a   : > { %23313 = vmatmul.mubr.msk.f32.vlgmr.msra.gmra.mrb[32].mxu1 %vm264_vm12, %v4781_v24 }
 0x14b   : > { %23361 = vmatpush3.msra.mxu1 %v5230_v32 }
 0x14c   : > { %23410 = vmatprep.subr.mxu1 %v28005_v41 }
 0x1bc   : > { %v23014_v27 = vpop.f32.mrb[0].mxu1 }
 0x1bd   : > { %v2445_v11 = vpop.f32.mrb[1].mxu1  ;;  %v25112_v52 = vadd.f32 %v23014_v27, %v28021_v60 }
 0x1be   : > { %v25114_v5 = vadd.f32 %v28021_v60, %v2445_v11 }
 0x1c0   : > { %v23017_v46 = vpop.f32.mrb[2].mxu1 }
 0x1c1   : > { %v2455_v49 = vpop.f32.mrb[3].mxu1  ;;  %v25116_v2 = vadd.f32 %v23017_v46, %v28021_v60 }
 0x1c2   : > { %v25118_v26 = vadd.f32 %v28021_v60, %v2455_v49 }
 0x1c4   : > { %v23020_v20 = vpop.f32.mrb[4].mxu1 }
 0x1c5   : > { %v2465_v62 = vpop.f32.mrb[5].mxu1  ;;  %v25120_v34 = vadd.f32 %v23020_v20, %v28021_v60 }
 0x1c6   : > { %v25122_v1 = vadd.f32 %v28021_v60, %v2465_v62 }
 0x1c8   : > { %v23023_v12 = vpop.f32.mrb[6].mxu1 }
 0x1c9   : > { %v2475_v21 = vpop.f32.mrb[7].mxu1  ;;  %v25124_v27 = vadd.f32 %v23023_v12, %v28021_v60 }
 0x1ca   : > { %v25126_v46 = vadd.f32 %v28021_v60, %v2475_v21 }
 0x1cc   : > { %v23026_v38 = vpop.f32.mrb[8].mxu1 }
 0x1cd   : > { %v2485_v37 = vpop.f32.mrb[9].mxu1 }
 0x1d0   : > { %v23029_v14 = vpop.f32.mrb[10].mxu1 }
 0x1d1   : > { %v28008_v44 = vpop.f32.mrb[11].mxu1 }
 0x1d4   : > { %v28010_v39 = vpop.f32.mrb[12].mxu1 }
 0x1d5   : > { %v28012_v59 = vpop.f32.mrb[13].mxu1 }
 0x1d8   : > { %v28014_v16 = vpop.f32.mrb[14].mxu1 }
 0x1d9   : > { %v28016_v7 = vpop.f32.mrb[15].mxu1 }
 0x1de   : > { %v23264_v50 = vpop.f32.mrb[0].mxu0 }
 0x1df   : > { %v28025_v57 = vadd.f32 %v25112_v52, %v23264_v50  ;;  %v4486_v36 = vpop.f32.mrb[1].mxu0  ;;  %v25128_v50 = vadd.f32 %v23026_v38, %v28021_v60 }
 0x1e0   : > { %v28027_v6 = vadd.f32 %v25114_v5, %v4486_v36 }
 0x1e1   : > { %34415 = vst [vmem:[#allocation4_spill] sm:$0xff] %v28025_v57  ;;  %v33382_v43 = vmax.f32 %v28025_v57, 0.0 }
 0x1e2   : > { %34416 = vst [vmem:[#allocation22_spill] sm:$0xff] %v28027_v6  ;;  %v33381_v40 = vmax.f32 %v28027_v6, 0.0  ;;  %v23267_v58 = vpop.f32.mrb[2].mxu0 }
 0x1e3   : > { %4710 = vst.msk [vmem:[#allocation3 + $0x20] sm:$0xff] %vm264_vm12, %v33382_v43  ;;  %v28036_v56 = vadd.f32 %v25116_v2, %v23267_v58  ;;  %v4496_v54 = vpop.f32.mrb[3].mxu0  ;;  %v34434_v43 = vld [vmem:[#allocation9_spill] sm:$0xff] }
 0x1e4   : > { %4709 = vst.msk [vmem:[#allocation3 + $0x18] sm:$0xff] %vm264_vm12, %v33381_v40  ;;  %v28041_v48 = vadd.f32 %v25118_v26, %v4496_v54  ;;  %v25130_v26 = vadd.f32 %v28021_v60, %v2485_v37 }
 0x1e5   : > { %34417 = vst [vmem:[#allocation19_spill] sm:$0xff] %v28036_v56  ;;  %v33380_v15 = vmax.f32 %v28036_v56, 0.0 }
 0x1e6   : > { %34418 = vst [vmem:[#allocation18_spill] sm:$0xff] %v28041_v48  ;;  %v33379_v8 = vmax.f32 %v28041_v48, 0.0  ;;  %v23270_v13 = vpop.f32.mrb[4].mxu0  ;;  %v34443_v48 = vld [vmem:[#allocation12_spill] sm:$0xff] }
 0x1e7   : > { %4712 = vst.msk [vmem:[#allocation3 + $0x30] sm:$0xff] %vm264_vm12, %v33380_v15  ;;  %v28050_v17 = vadd.f32 %v25120_v34, %v23270_v13  ;;  %v4506_v24 = vpop.f32.mrb[5].mxu0  ;;  %v34425_v13 = vld [vmem:[#allocation6_spill] sm:$0xff] }
 0x1e8   : > { %4711 = vst.msk [vmem:[#allocation3 + $0x28] sm:$0xff] %vm264_vm12, %v33379_v8  ;;  %v28055_v32 = vadd.f32 %v25122_v1, %v4506_v24 }
 0x1e9   : > { %34419 = vst [vmem:[#allocation27_spill] sm:$0xff] %v28050_v17  ;;  %v33376_v11 = vmax.f32 %v28050_v17, 0.0 }
 0x1ea   : > { %34420 = vst [vmem:[#allocation28_spill] sm:$0xff] %v28055_v32  ;;  %v33375_v49 = vmax.f32 %v28055_v32, 0.0  ;;  %v23273_v20 = vpop.f32.mrb[6].mxu0 }
 0x1eb   : > { %4714 = vst.msk [vmem:[#allocation3 + $0x40] sm:$0xff] %vm264_vm12, %v33376_v11  ;;  %v28064_v62 = vadd.f32 %v25124_v27, %v23273_v20  ;;  %v4516_v52 = vpop.f32.mrb[7].mxu0  ;;  %v28066_v5 = vld [vmem:[#allocation3 + $0x17] sm:$0xff]  ;;  %v28079_v2 = vld [vmem:[#allocation3 + $0x1f] sm:$0xff]  ;;  %v25132_v27 = vadd.f32 %v23029_v14, %v28021_v60  ;;  %v25140_v11 = vadd.f32 %v28014_v16, %v28021_v60 }
 0x1ec   : > { %4713 = vst.msk [vmem:[#allocation3 + $0x38] sm:$0xff] %vm264_vm12, %v33375_v49  ;;  %v28071_v12 = vadd.f32 %v25126_v46, %v4516_v52  ;;  %v4814_v21 = vsel %vm34372_vm15, %v28066_v5, 0.0  ;;  %v25134_v52 = vadd.f32 %v28021_v60, %v28008_v44 }
 0x1ed   : > { %34421 = vst [vmem:[#allocation23_spill] sm:$0xff] %v28064_v62  ;;  %v33374_v36 = vmax.f32 %v28064_v62, 0.0  ;;  %23315 = vmatprep.mubr.msk.f32.mxu1 %vm264_vm12, %v4814_v21  ;;  %v34440_v62 = vld [vmem:[#allocation11_spill] sm:$0xff] }
 0x1ee   : > { %34422 = vst [vmem:[#allocation25_spill] sm:$0xff] %v28071_v12  ;;  %v33371_v58 = vmax.f32 %v28071_v12, 0.0  ;;  %v23276_v54 = vpop.f32.mrb[8].mxu0  ;;  %23316 = vmatmul.mubr.msk.f32.gmra.mrb[34].mxu1 %vm264_vm12, %v28079_v2 }
 0x1ef   : > { %4716 = vst.msk [vmem:[#allocation3 + $0x50] sm:$0xff] %vm264_vm12, %v33374_v36  ;;  %v28088_v34 = vadd.f32 %v25128_v50, %v23276_v54  ;;  %v4526_v38 = vpop.f32.mrb[9].mxu0  ;;  %v28090_v1 = vld [vmem:[#allocation3 + $0x27] sm:$0xff]  ;;  %v28103_v20 = vld [vmem:[#allocation3 + $0x2f] sm:$0xff] }
 0x1f0   : > { %4715 = vst.msk [vmem:[#allocation3 + $0x48] sm:$0xff] %vm264_vm12, %v33371_v58  ;;  %v28095_v37 = vadd.f32 %v25130_v26, %v4526_v38  ;;  %v4816_v24 = vsel %vm26788_vm4, %v28090_v1, 0.0  ;;  %v34428_v38 = vld [vmem:[#allocation7_spill] sm:$0xff]  ;;  %v25136_v58 = vadd.f32 %v28010_v39, %v28021_v60  ;;  %v6036_v29 = vsel %vm34372_vm15, %v28090_v1, 0.0 }
 0x1f1   : > { %34423 = vst [vmem:[#allocation33_spill] sm:$0xff] %v28088_v34  ;;  %v33372_v46 = vmax.f32 %v28088_v34, 0.0  ;;  %23318 = vmatprep.mubr.msk.f32.mxu1 %vm264_vm12, %v4816_v24  ;;  %v28542_v3 = vld [vmem:[#allocation3 + $0x21] sm:$0xff] }
 0x1f2   : > { %34424 = vst [vmem:[#allocation34_spill] sm:$0xff] %v28095_v37  ;;  %v33373_v21 = vmax.f32 %v28095_v37, 0.0  ;;  %v23279_v50 = vpop.f32.mrb[10].mxu0  ;;  %23319 = vmatmul.mubr.msk.f32.gmra.mrb[36].mxu1 %vm264_vm12, %v28103_v20  ;;  %v34437_v37 = vld [vmem:[#allocation10_spill] sm:$0xff] }
 0x1f3   : > { %4718 = vst.msk [vmem:[#allocation3 + $0x60] sm:$0xff] %vm264_vm12, %v33372_v46  ;;  %v28113_v14 = vadd.f32 %v25132_v27, %v23279_v50  ;;  %v4536_v26 = vpop.f32.mrb[11].mxu0  ;;  %v28115_v54 = vld [vmem:[#allocation3 + $0x37] sm:$0xff]  ;;  %v28129_v27 = vld [vmem:[#allocation3 + $0x3f] sm:$0xff]  ;;  %v25138_v50 = vadd.f32 %v28021_v60, %v28012_v59  ;;  %v7224_v55 = vld [vmem:[#allocation3 + $0x27] sm:$0xff] }
 0x1f4   : > { %4717 = vst.msk [vmem:[#allocation3 + $0x58] sm:$0xff] %vm264_vm12, %v33373_v21  ;;  %v28120_v44 = vadd.f32 %v25134_v52, %v4536_v26  ;;  %v4818_v24 = vsel %vm26821_vm5, %v28115_v54, 0.0 }
 0x1f5   : > { %34426 = vst [vmem:[#allocation29_spill] sm:$0xff] %v28113_v14  ;;  %v33377_v46 = vmax.f32 %v28113_v14, 0.0  ;;  %23321 = vmatprep.mubr.msk.f32.mxu1 %vm264_vm12, %v4818_v24  ;;  %v34431_v24 = vld [vmem:[#allocation8_spill] sm:$0xff] }
 0x1f6   : > { %34427 = vst [vmem:[#allocation31_spill] sm:$0xff] %v28120_v44  ;;  %v33378_v21 = vmax.f32 %v28120_v44, 0.0  ;;  %v23282_v52 = vpop.f32.mrb[12].mxu0  ;;  %23322 = vmatmul.mubr.msk.f32.gmra.mrb[38].mxu1 %vm264_vm12, %v28129_v27 }
 0x1f7   : > { %4720 = vst.msk [vmem:[#allocation3 + $0x70] sm:$0xff] %vm264_vm12, %v33377_v46  ;;  %v28139_v39 = vadd.f32 %v25136_v58, %v23282_v52  ;;  %v4546_v26 = vpop.f32.mrb[13].mxu0  ;;  %v28141_v36 = vld [vmem:[#allocation3 + $0x47] sm:$0xff]  ;;  %v28155_v58 = vld [vmem:[#allocation3 + $0x4f] sm:$0xff]  ;;  %v25142_v52 = vadd.f32 %v28021_v60, %v28016_v7 }
 0x1f8   : > { %4719 = vst.msk [vmem:[#allocation3 + $0x68] sm:$0xff] %vm264_vm12, %v33378_v21  ;;  %v28146_v59 = vadd.f32 %v25138_v50, %v4546_v26  ;;  %v4820_v49 = vsel %vm26852_vm6, %v28141_v36, 0.0 }
 0x1f9   : > { %34429 = vst [vmem:[#allocation35_spill] sm:$0xff] %v28139_v39  ;;  %v33384_v46 = vmax.f32 %v28139_v39, 0.0  ;;  %23324 = vmatprep.mubr.msk.f32.mxu1 %vm264_vm12, %v4820_v49 }
 0x1fa   : > { %34430 = vst [vmem:[#allocation41_spill] sm:$0xff] %v28146_v59  ;;  %v33386_v21 = vmax.f32 %v28146_v59, 0.0  ;;  %v23285_v50 = vpop.f32.mrb[14].mxu0  ;;  %23325 = vmatmul.mubr.msk.f32.gmra.mrb[40].mxu1 %vm264_vm12, %v28155_v58 }
 0x1fb   : > { %4722 = vst.msk [vmem:[#allocation3 + $0x80] sm:$0xff] %vm264_vm12, %v33384_v46  ;;  %v28165_v16 = vadd.f32 %v25140_v11, %v23285_v50  ;;  %v4556_v8 = vpop.f32.mrb[15].mxu0  ;;  %v28167_v49 = vld [vmem:[#allocation3 + $0x57] sm:$0xff]  ;;  %v28181_v46 = vld [vmem:[#allocation3 + $0x5f] sm:$0xff] }
 0x1fc   : > { %v23088_v26 = vpop.f32.mrb[16].mxu1  ;;  %4721 = vst.msk [vmem:[#allocation3 + $0x78] sm:$0xff] %vm264_vm12, %v33386_v21  ;;  %v28173_v15 = vadd.f32 %v25142_v52, %v4556_v8  ;;  %v4822_v39 = vsel %vm26875_vm7, %v28167_v49, 0.0  ;;  %v7230_v10 = vld [vmem:[#allocation3 + $0x57] sm:$0xff] }
 0x1fd   : > { %34432 = vst [vmem:[#allocation38_spill] sm:$0xff] %v28165_v16  ;;  %v25144_v7 = vadd.f32 %v23088_v26, %v28021_v60  ;;  %v2914_v40 = vpop.f32.mrb[17].mxu1  ;;  %v33391_v11 = vmax.f32 %v28165_v16, 0.0  ;;  %23327 = vmatprep.mubr.msk.f32.mxu1 %vm264_vm12, %v4822_v39 }
 0x1fe   : > { %34433 = vst [vmem:[#allocation47_spill] sm:$0xff] %v28173_v15  ;;  %v25146_v50 = vadd.f32 %v28021_v60, %v2914_v40  ;;  %v33393_v59 = vmax.f32 %v28173_v15, 0.0  ;;  %v23288_v21 = vpop.f32.mrb[16].mxu0  ;;  %23328 = vmatmul.mubr.msk.f32.gmra.mrb[42].mxu1 %vm264_vm12, %v28181_v46 }
 0x1ff   : > { %4724 = vst.msk [vmem:[#allocation3 + $0x90] sm:$0xff] %vm264_vm12, %v33391_v11  ;;  %v28189_v8 = vadd.f32 %v25144_v7, %v23288_v21  ;;  %v4566_v26 = vpop.f32.mrb[17].mxu0  ;;  %v28191_v44 = vld [vmem:[#allocation3 + $0x67] sm:$0xff]  ;;  %v28205_v11 = vld [vmem:[#allocation3 + $0x6f] sm:$0xff] }
 0x200   : > { %v23091_v52 = vpop.f32.mrb[18].mxu1  ;;  %4723 = vst.msk [vmem:[#allocation3 + $0x88] sm:$0xff] %vm264_vm12, %v33393_v59  ;;  %v28197_v39 = vadd.f32 %v25146_v50, %v4566_v26  ;;  %v4824_v16 = vsel %vm26898_vm8, %v28191_v44, 0.0 }
 0x201   : > { %34435 = vst [vmem:[#allocation49_spill] sm:$0xff] %v28189_v8  ;;  %v25148_v40 = vadd.f32 %v23091_v52, %v28021_v60  ;;  %v2924_v14 = vpop.f32.mrb[19].mxu1  ;;  %v33398_v21 = vmax.f32 %v28189_v8, 0.0  ;;  %23330 = vmatprep.mubr.msk.f32.mxu1 %vm264_vm12, %v4824_v16 }
 0x202   : > { %34436 = vst [vmem:[#allocation52_spill] sm:$0xff] %v28197_v39  ;;  %v25150_v7 = vadd.f32 %v28021_v60, %v2924_v14  ;;  %v33400_v15 = vmax.f32 %v28197_v39, 0.0  ;;  %v23291_v59 = vpop.f32.mrb[18].mxu0  ;;  %23331 = vmatmul.mubr.msk.f32.gmra.mrb[44].mxu1 %vm264_vm12, %v28205_v11 }
 0x203   : > { %4726 = vst.msk [vmem:[#allocation3 + $0xa0] sm:$0xff] %vm264_vm12, %v33398_v21  ;;  %v28213_v50 = vadd.f32 %v25148_v40, %v23291_v59  ;;  %v4576_v26 = vpop.f32.mrb[19].mxu0  ;;  %v28215_v34 = vld [vmem:[#allocation3 + $0x77] sm:$0xff]  ;;  %v28229_v21 = vld [vmem:[#allocation3 + $0x7f] sm:$0xff] }
 0x204   : > { %v23094_v52 = vpop.f32.mrb[20].mxu1  ;;  %4725 = vst.msk [vmem:[#allocation3 + $0x98] sm:$0xff] %vm264_vm12, %v33400_v15  ;;  %v28221_v16 = vadd.f32 %v25150_v7, %v4576_v26  ;;  %v4826_v8 = vsel %vm26931_vm9, %v28215_v34, 0.0  ;;  %vm34444_vm9 = vnez %v34443_v48 }
 0x205   : > { %34438 = vst [vmem:[#allocation53_spill] sm:$0xff] %v28213_v50  ;;  %v25152_v14 = vadd.f32 %v23094_v52, %v28021_v60  ;;  %v2934_v12 = vpop.f32.mrb[21].mxu1  ;;  %v33407_v59 = vmax.f32 %v28213_v50, 0.0  ;;  %23333 = vmatprep.mubr.msk.f32.mxu1 %vm264_vm12, %v4826_v8 }
 0x206   : > { %34439 = vst [vmem:[#allocation56_spill] sm:$0xff] %v28221_v16  ;;  %v25154_v40 = vadd.f32 %v28021_v60, %v2934_v12  ;;  %v33409_v39 = vmax.f32 %v28221_v16, 0.0  ;;  %v23294_v15 = vpop.f32.mrb[20].mxu0  ;;  %23334 = vmatmul.mubr.msk.f32.gmra.mrb[46].mxu1 %vm264_vm12, %v28229_v21 }
 0x207   : > { %4728 = vst.msk [vmem:[#allocation3 + $0xb0] sm:$0xff] %vm264_vm12, %v33407_v59  ;;  %v28237_v7 = vadd.f32 %v25152_v14, %v23294_v15  ;;  %v4586_v26 = vpop.f32.mrb[21].mxu0  ;;  %v28239_v32 = vld [vmem:[#allocation3 + $0x87] sm:$0xff]  ;;  %v28253_v59 = vld [vmem:[#allocation3 + $0x8f] sm:$0xff] }
 0x208   : > { %v23097_v52 = vpop.f32.mrb[22].mxu1  ;;  %4727 = vst.msk [vmem:[#allocation3 + $0xa8] sm:$0xff] %vm264_vm12, %v33409_v39  ;;  %v28245_v8 = vadd.f32 %v25154_v40, %v4586_v26  ;;  %v4828_v50 = vsel %vm34444_vm9, %v28239_v32, 0.0  ;;  %vm34447_vm9 = vnez %v34374_v22 }
 0x209   : > { %34441 = vst [vmem:[#allocation58_spill] sm:$0xff] %v28237_v7  ;;  %v25156_v12 = vadd.f32 %v23097_v52, %v28021_v60  ;;  %v2944_v17 = vpop.f32.mrb[23].mxu1  ;;  %v33413_v15 = vmax.f32 %v28237_v7, 0.0  ;;  %23336 = vmatprep.mubr.msk.f32.mxu1 %vm264_vm12, %v4828_v50 }
 0x20a   : > { %34442 = vst [vmem:[#allocation59_spill] sm:$0xff] %v28245_v8  ;;  %v25158_v14 = vadd.f32 %v28021_v60, %v2944_v17  ;;  %v33415_v16 = vmax.f32 %v28245_v8, 0.0  ;;  %v23297_v39 = vpop.f32.mrb[22].mxu0  ;;  %23337 = vmatmul.mubr.msk.f32.gmra.mrb[48].mxu1 %vm264_vm12, %v28253_v59 }
 0x20b   : > { %4730 = vst.msk [vmem:[#allocation3 + $0xc0] sm:$0xff] %vm264_vm12, %v33413_v15  ;;  %v28261_v40 = vadd.f32 %v25156_v12, %v23297_v39  ;;  %v4596_v26 = vpop.f32.mrb[23].mxu0  ;;  %v28263_v56 = vld [vmem:[#allocation3 + $0x97] sm:$0xff]  ;;  %v28277_v15 = vld [vmem:[#allocation3 + $0x9f] sm:$0xff] }
 0x20c   : > { %v23100_v52 = vpop.f32.mrb[24].mxu1  ;;  %4729 = vst.msk [vmem:[#allocation3 + $0xb8] sm:$0xff] %vm264_vm12, %v33415_v16  ;;  %v28269_v50 = vadd.f32 %v25158_v14, %v4596_v26  ;;  %v4830_v7 = vsel %vm34447_vm9, %v28263_v56, 0.0  ;;  %vm34451_vm9 = vnez %v34319_v23 }
 0x20d   : > { %34445 = vst [vmem:[#allocation61_spill] sm:$0xff] %v28261_v40  ;;  %v25160_v17 = vadd.f32 %v23100_v52, %v28021_v60  ;;  %v2954_v6 = vpop.f32.mrb[25].mxu1  ;;  %v33419_v39 = vmax.f32 %v28261_v40, 0.0  ;;  %23339 = vmatprep.mubr.msk.f32.mxu1 %vm264_vm12, %v4830_v7 }
 0x20e   : > { %34446 = vst [vmem:[#allocation63_spill] sm:$0xff] %v28269_v50  ;;  %v25162_v12 = vadd.f32 %v28021_v60, %v2954_v6  ;;  %v33421_v8 = vmax.f32 %v28269_v50, 0.0  ;;  %v23300_v16 = vpop.f32.mrb[24].mxu0  ;;  %23340 = vmatmul.mubr.msk.f32.gmra.mrb[50].mxu1 %vm264_vm12, %v28277_v15 }
 0x20f   : > { %4732 = vst.msk [vmem:[#allocation3 + $0xd0] sm:$0xff] %vm264_vm12, %v33419_v39  ;;  %v28285_v14 = vadd.f32 %v25160_v17, %v23300_v16  ;;  %v4606_v26 = vpop.f32.mrb[25].mxu0  ;;  %v28287_v57 = vld [vmem:[#allocation3 + $0xa7] sm:$0xff]  ;;  %v28301_v39 = vld [vmem:[#allocation3 + $0xaf] sm:$0xff] }
 0x210   : > { %v23103_v52 = vpop.f32.mrb[26].mxu1  ;;  %34449 = vst [vmem:[#allocation66_spill] sm:$0xff] %v28287_v57  ;;  %4731 = vst.msk [vmem:[#allocation3 + $0xc8] sm:$0xff] %vm264_vm12, %v33421_v8  ;;  %v28293_v7 = vadd.f32 %v25162_v12, %v4606_v26  ;;  %v4832_v40 = vsel %vm34451_vm9, %v28287_v57, 0.0  ;;  %vm34455_vm9 = vnez %v34326_v19  ;;  %v28632_v51 = vld [vmem:[#allocation3 + $0xa9] sm:$0xff] }
 0x211   : > { %34448 = vst [vmem:[#allocation64_spill] sm:$0xff] %v28285_v14  ;;  %v25164_v6 = vadd.f32 %v23103_v52, %v28021_v60  ;;  %v2964_v22 = vpop.f32.mrb[27].mxu1  ;;  %v33426_v16 = vmax.f32 %v28285_v14, 0.0  ;;  %23342 = vmatprep.mubr.msk.f32.mxu1 %vm264_vm12, %v4832_v40  ;;  %34510 = vst [vmem:[#allocation99_spill] sm:$0xff] %v28632_v51 }
 0x212   : > { %34450 = vst [vmem:[#allocation68_spill] sm:$0xff] %v28293_v7  ;;  %v25166_v17 = vadd.f32 %v28021_v60, %v2964_v22  ;;  %v33428_v50 = vmax.f32 %v28293_v7, 0.0  ;;  %v23303_v8 = vpop.f32.mrb[26].mxu0  ;;  %23343 = vmatmul.mubr.msk.f32.gmra.mrb[52].mxu1 %vm264_vm12, %v28301_v39 }
 0x213   : > { %4734 = vst.msk [vmem:[#allocation3 + $0xe0] sm:$0xff] %vm264_vm12, %v33426_v16  ;;  %v28309_v12 = vadd.f32 %v25164_v6, %v23303_v8  ;;  %v4616_v26 = vpop.f32.mrb[27].mxu0  ;;  %v28311_v23 = vld [vmem:[#allocation3 + $0xb7] sm:$0xff]  ;;  %v28325_v16 = vld [vmem:[#allocation3 + $0xbf] sm:$0xff] }
 0x214   : > { %v23106_v52 = vpop.f32.mrb[28].mxu1  ;;  %34453 = vst [vmem:[#allocation39_spill] sm:$0xff] %v28311_v23  ;;  %4733 = vst.msk [vmem:[#allocation3 + $0xd8] sm:$0xff] %vm264_vm12, %v33428_v50  ;;  %v28317_v40 = vadd.f32 %v25166_v17, %v4616_v26  ;;  %v4834_v14 = vsel %vm34455_vm9, %v28311_v23, 0.0  ;;  %vm34458_vm9 = vnez %v34333_v28 }
 0x215   : > { %34452 = vst [vmem:[#allocation37_spill] sm:$0xff] %v28309_v12  ;;  %v25168_v22 = vadd.f32 %v23106_v52, %v28021_v60  ;;  %v2974_v57 = vpop.f32.mrb[29].mxu1  ;;  %v33433_v8 = vmax.f32 %v28309_v12, 0.0  ;;  %23345 = vmatprep.mubr.msk.f32.mxu1 %vm264_vm12, %v4834_v14 }
 0x216   : > { %34454 = vst [vmem:[#allocation32_spill] sm:$0xff] %v28317_v40  ;;  %v25170_v6 = vadd.f32 %v28021_v60, %v2974_v57  ;;  %v33435_v7 = vmax.f32 %v28317_v40, 0.0  ;;  %v23306_v50 = vpop.f32.mrb[28].mxu0  ;;  %23346 = vmatmul.mubr.msk.f32.gmra.mrb[54].mxu1 %vm264_vm12, %v28325_v16 }
 0x217   : > { %4736 = vst.msk [vmem:[#allocation3 + $0xf0] sm:$0xff] %vm264_vm12, %v33433_v8  ;;  %v28333_v17 = vadd.f32 %v25168_v22, %v23306_v50  ;;  %v4626_v26 = vpop.f32.mrb[29].mxu0  ;;  %v28335_v19 = vld [vmem:[#allocation3 + $0xc7] sm:$0xff]  ;;  %v28349_v8 = vld [vmem:[#allocation3 + $0xcf] sm:$0xff] }
 0x218   : > { %v23109_v52 = vpop.f32.mrb[30].mxu1  ;;  %4735 = vst.msk [vmem:[#allocation3 + $0xe8] sm:$0xff] %vm264_vm12, %v33435_v7  ;;  %v28341_v14 = vadd.f32 %v25170_v6, %v4626_v26  ;;  %v4836_v12 = vsel %vm34458_vm9, %v28335_v19, 0.0 }
 0x219   : > { %34456 = vst [vmem:[#allocation40_spill] sm:$0xff] %v28333_v17  ;;  %v25172_v57 = vadd.f32 %v23109_v52, %v28021_v60  ;;  %v2984_v23 = vpop.f32.mrb[31].mxu1  ;;  %v33436_v50 = vmax.f32 %v28333_v17, 0.0  ;;  %23348 = vmatprep.mubr.msk.f32.mxu1 %vm264_vm12, %v4836_v12  ;;  %v28435_v17 = vld [vmem:[#allocation3 + $0x48] sm:$0xff] }
 0x21a   : > { %34457 = vst [vmem:[#allocation43_spill] sm:$0xff] %v28341_v14  ;;  %v25174_v22 = vadd.f32 %v28021_v60, %v2984_v23  ;;  %v33438_v40 = vmax.f32 %v28341_v14, 0.0  ;;  %v23309_v7 = vpop.f32.mrb[30].mxu0  ;;  %23349 = vmatmul.mubr.msk.f32.gmra.mrb[56].mxu1 %vm264_vm12, %v28349_v8  ;;  %v28431_v14 = vld [vmem:[#allocation3 + $0x40] sm:$0xff]  ;;  %34467 = vst [vmem:[#allocation7_spill] sm:$0xff] %v28435_v17 }
 0x21b   : > { %4738 = vst.msk [vmem:[#allocation3 + $0x100] sm:$0xff] %vm264_vm12, %v33436_v50  ;;  %v28357_v6 = vadd.f32 %v25172_v57, %v23309_v7  ;;  %v4636_v52 = vpop.f32.mrb[31].mxu0  ;;  %v28359_v26 = vld [vmem:[#allocation3 + $0xd7] sm:$0xff]  ;;  %v28371_v50 = vld [vmem:[#allocation3 + $0xdf] sm:$0xff]  ;;  %34466 = vst [vmem:[#allocation6_spill] sm:$0xff] %v28431_v14 }
 0x21c   : > { %4737 = vst.msk [vmem:[#allocation3 + $0xf8] sm:$0xff] %vm264_vm12, %v33438_v40  ;;  %v28364_v23 = vadd.f32 %v25174_v22, %v4636_v52  ;;  %v4838_v60 = vsel %vm34389_vm10, %v28359_v26, 0.0  ;;  %v5198_v40 = vld [vmem:[#allocation3 + $0x8] sm:$0xff]  ;;  %v28662_v9 = vld [vmem:[#allocation3 + $0xd9] sm:$0xff] }
 0x21d   : > { %34459 = vst [vmem:[#allocation45_spill] sm:$0xff] %v28357_v6  ;;  %v33437_v12 = vmax.f32 %v28357_v6, 0.0  ;;  %23351 = vmatprep.mubr.msk.f32.mxu1 %vm264_vm12, %v4838_v60  ;;  %v28409_v6 = vld [vmem:[#allocation3 + $0x18] sm:$0xff]  ;;  %34515 = vst [vmem:[#allocation102_spill] sm:$0xff] %v28662_v9 }
 0x21e   : > { %34460 = vst [vmem:[#allocation46_spill] sm:$0xff] %v28364_v23  ;;  %v33439_v7 = vmax.f32 %v28364_v23, 0.0  ;;  %23352 = vmatmul.mubr.msk.f32.gmra.mrb[58].mxu1 %vm264_vm12, %v28371_v50  ;;  %v28406_v23 = vld [vmem:[%s33208_s3 + $0x18] sm:$0xff]  ;;  %34461 = vst [vmem:[#allocation15_spill] sm:$0xff] %v28409_v6 }
 0x21f   : > { %4740 = vst.msk [vmem:[#allocation3 + $0x110] sm:$0xff] %vm264_vm12, %v33437_v12  ;;  %v28379_v57 = vld [vmem:[#allocation3 + $0xe7] sm:$0xff]  ;;  %v28388_v52 = vld [vmem:[#allocation3 + $0xef] sm:$0xff] }
 0x220   : > { %4739 = vst.msk [vmem:[#allocation3 + $0x108] sm:$0xff] %vm264_vm12, %v33439_v7  ;;  %v4840_v22 = vsel %vm34348_vm2, %v28379_v57, 0.0  ;;  %vm34496_vm2 = vnez %v34381_v25  ;;  %v28582_v25 = vld [vmem:[#allocation3 + $0x59] sm:$0xff] }
 0x221   : > { %23354 = vmatprep.mubr.msk.f32.mxu1 %vm264_vm12, %v4840_v22  ;;  %v5199_v22 = vld [vmem:[#allocation3 + $0x10] sm:$0xff]  ;;  %34501 = vst [vmem:[#allocation94_spill] sm:$0xff] %v28582_v25 }
 0x222   : > { %23355 = vmatmul.mubr.msk.f32.gmra.mrb[60].mxu1 %vm264_vm12, %v28388_v52 }
 0x223   : > { %v28392_v60 = vld [vmem:[#allocation3 + $0xf7] sm:$0xff]  ;;  %v28398_v7 = vld [vmem:[#allocation3 + $0xff] sm:$0xff] }
 0x224   : > { %v4842_v12 = vsel %vm34355_vm14, %v28392_v60, 0.0 }
 0x225   : > { %23357 = vmatprep.mubr.msk.f32.mxu1 %vm264_vm12, %v4842_v12  ;;  %v28415_v12 = vld [vmem:[#allocation3 + $0x20] sm:$0xff] }
 0x226   : > { %23358 = vmatmul.mubr.msk.f32.gmra.mrb[62].mxu1 %vm264_vm12, %v28398_v7  ;;  %34462 = vst [vmem:[#allocation50_spill] sm:$0xff] %v28415_v12 }
 0x227   : > { %23362 = vmatprep.mubr.msk.f32.mxu1 %vm264_vm12, %v5198_v40  ;;  %v28419_v40 = vld [vmem:[#allocation3 + $0x28] sm:$0xff] }
 0x228   : > { %34463 = vst [vmem:[#allocation21_spill] sm:$0xff] %v28419_v40 }
 0x22a   : > { %23363 = vmatmul.mubr.msk.f32.vlgmr.msra.gmra.mrb[32].mxu1 %vm264_vm12, %v5199_v22  ;;  %v28423_v22 = vld [vmem:[#allocation3 + $0x30] sm:$0xff] }
 0x22b   : > { %23411 = vmatpush3.msra.mxu1 %v28005_v41  ;;  %23365 = vmatprep.mubr.msk.f32.mxu1 %vm264_vm12, %v28409_v6  ;;  %34464 = vst [vmem:[#allocation69_spill] sm:$0xff] %v28423_v22  ;;  %v28427_v41 = vld [vmem:[#allocation3 + $0x38] sm:$0xff] }
 0x22c   : > { %23460 = vmatprep.subr.mxu1 %v28406_v23  ;;  %34465 = vst [vmem:[#allocation71_spill] sm:$0xff] %v28427_v41 }
 0x22e   : > { %23366 = vmatmul.mubr.msk.f32.gmra.mrb[34].mxu1 %vm264_vm12, %v28415_v12  ;;  %v28527_v12 = vld [vmem:[#allocation3 + $0x100] sm:$0xff] }
 0x22f   : > { %23368 = vmatprep.mubr.msk.f32.mxu1 %vm264_vm12, %v28419_v40  ;;  %v28439_v40 = vld [vmem:[#allocation3 + $0x50] sm:$0xff]  ;;  %34490 = vst [vmem:[#allocation89_spill] sm:$0xff] %v28527_v12 }
 0x230   : > { %34468 = vst [vmem:[#allocation8_spill] sm:$0xff] %v28439_v40 }
 0x232   : > { %23369 = vmatmul.mubr.msk.f32.gmra.mrb[36].mxu1 %vm264_vm12, %v28423_v22  ;;  %v28443_v22 = vld [vmem:[#allocation3 + $0x58] sm:$0xff] }
 0x233   : > { %23371 = vmatprep.mubr.msk.f32.mxu1 %vm264_vm12, %v28427_v41  ;;  %34469 = vst [vmem:[#allocation9_spill] sm:$0xff] %v28443_v22  ;;  %v28447_v41 = vld [vmem:[#allocation3 + $0x60] sm:$0xff] }
 0x234   : > { %34470 = vst [vmem:[#allocation10_spill] sm:$0xff] %v28447_v41 }
 0x236   : > { %23372 = vmatmul.mubr.msk.f32.gmra.mrb[38].mxu1 %vm264_vm12, %v28431_v14  ;;  %v28451_v14 = vld [vmem:[#allocation3 + $0x68] sm:$0xff] }
 0x237   : > { %23374 = vmatprep.mubr.msk.f32.mxu1 %vm264_vm12, %v28435_v17  ;;  %34471 = vst [vmem:[#allocation11_spill] sm:$0xff] %v28451_v14  ;;  %v28455_v17 = vld [vmem:[#allocation3 + $0x70] sm:$0xff] }
 0x238   : > { %34472 = vst [vmem:[#allocation12_spill] sm:$0xff] %v28455_v17 }
 0x23a   : > { %23375 = vmatmul.mubr.msk.f32.gmra.mrb[40].mxu1 %vm264_vm12, %v28439_v40  ;;  %v28459_v40 = vld [vmem:[#allocation3 + $0x78] sm:$0xff] }
 0x23b   : > { %23377 = vmatprep.mubr.msk.f32.mxu1 %vm264_vm12, %v28443_v22  ;;  %34473 = vst [vmem:[#allocation72_spill] sm:$0xff] %v28459_v40  ;;  %v28463_v22 = vld [vmem:[#allocation3 + $0x80] sm:$0xff] }
 0x23c   : > { %34474 = vst [vmem:[#allocation73_spill] sm:$0xff] %v28463_v22 }
 0x23e   : > { %23378 = vmatmul.mubr.msk.f32.gmra.mrb[42].mxu1 %vm264_vm12, %v28447_v41  ;;  %v28467_v41 = vld [vmem:[#allocation3 + $0x88] sm:$0xff] }
 0x23f   : > { %23380 = vmatprep.mubr.msk.f32.mxu1 %vm264_vm12, %v28451_v14  ;;  %34475 = vst [vmem:[#allocation74_spill] sm:$0xff] %v28467_v41  ;;  %v28471_v14 = vld [vmem:[#allocation3 + $0x90] sm:$0xff] }
 0x240   : > { %34476 = vst [vmem:[#allocation75_spill] sm:$0xff] %v28471_v14 }
 0x242   : > { %23381 = vmatmul.mubr.msk.f32.gmra.mrb[44].mxu1 %vm264_vm12, %v28455_v17  ;;  %v28475_v17 = vld [vmem:[#allocation3 + $0x98] sm:$0xff] }
 0x243   : > { %23383 = vmatprep.mubr.msk.f32.mxu1 %vm264_vm12, %v28459_v40  ;;  %34477 = vst [vmem:[#allocation76_spill] sm:$0xff] %v28475_v17  ;;  %v28479_v40 = vld [vmem:[#allocation3 + $0xa0] sm:$0xff] }
 0x244   : > { %34478 = vst [vmem:[#allocation77_spill] sm:$0xff] %v28479_v40 }
 0x246   : > { %23384 = vmatmul.mubr.msk.f32.gmra.mrb[46].mxu1 %vm264_vm12, %v28463_v22  ;;  %v28483_v22 = vld [vmem:[#allocation3 + $0xa8] sm:$0xff] }
 0x247   : > { %23386 = vmatprep.mubr.msk.f32.mxu1 %vm264_vm12, %v28467_v41  ;;  %34479 = vst [vmem:[#allocation78_spill] sm:$0xff] %v28483_v22  ;;  %v28487_v41 = vld [vmem:[#allocation3 + $0xb0] sm:$0xff] }
 0x248   : > { %34480 = vst [vmem:[#allocation79_spill] sm:$0xff] %v28487_v41 }
 0x24a   : > { %23387 = vmatmul.mubr.msk.f32.gmra.mrb[48].mxu1 %vm264_vm12, %v28471_v14  ;;  %v28491_v14 = vld [vmem:[#allocation3 + $0xb8] sm:$0xff] }
 0x24b   : > { %23389 = vmatprep.mubr.msk.f32.mxu1 %vm264_vm12, %v28475_v17  ;;  %34481 = vst [vmem:[#allocation80_spill] sm:$0xff] %v28491_v14  ;;  %v28495_v17 = vld [vmem:[#allocation3 + $0xc0] sm:$0xff] }
 0x24c   : > { %34482 = vst [vmem:[#allocation81_spill] sm:$0xff] %v28495_v17 }
 0x24e   : > { %23390 = vmatmul.mubr.msk.f32.gmra.mrb[50].mxu1 %vm264_vm12, %v28479_v40  ;;  %v28499_v40 = vld [vmem:[#allocation3 + $0xc8] sm:$0xff] }
 0x24f   : > { %23392 = vmatprep.mubr.msk.f32.mxu1 %vm264_vm12, %v28483_v22  ;;  %34483 = vst [vmem:[#allocation82_spill] sm:$0xff] %v28499_v40  ;;  %v28503_v22 = vld [vmem:[#allocation3 + $0xd0] sm:$0xff] }
 0x250   : > { %34484 = vst [vmem:[#allocation83_spill] sm:$0xff] %v28503_v22 }
 0x252   : > { %23393 = vmatmul.mubr.msk.f32.gmra.mrb[52].mxu1 %vm264_vm12, %v28487_v41  ;;  %v28507_v41 = vld [vmem:[#allocation3 + $0xd8] sm:$0xff] }
 0x253   : > { %23395 = vmatprep.mubr.msk.f32.mxu1 %vm264_vm12, %v28491_v14  ;;  %34485 = vst [vmem:[#allocation84_spill] sm:$0xff] %v28507_v41  ;;  %v28511_v14 = vld [vmem:[#allocation3 + $0xe0] sm:$0xff] }
 0x254   : > { %34486 = vst [vmem:[#allocation85_spill] sm:$0xff] %v28511_v14 }
 0x256   : > { %23396 = vmatmul.mubr.msk.f32.gmra.mrb[54].mxu1 %vm264_vm12, %v28495_v17  ;;  %v28515_v17 = vld [vmem:[#allocation3 + $0xe8] sm:$0xff] }
 0x257   : > { %23398 = vmatprep.mubr.msk.f32.mxu1 %vm264_vm12, %v28499_v40  ;;  %34487 = vst [vmem:[#allocation86_spill] sm:$0xff] %v28515_v17  ;;  %v28519_v40 = vld [vmem:[#allocation3 + $0xf0] sm:$0xff] }
 0x258   : > { %34488 = vst [vmem:[#allocation87_spill] sm:$0xff] %v28519_v40 }
 0x25a   : > { %23399 = vmatmul.mubr.msk.f32.gmra.mrb[56].mxu1 %vm264_vm12, %v28503_v22  ;;  %v28523_v22 = vld [vmem:[#allocation3 + $0xf8] sm:$0xff] }
 0x25b   : > { %23401 = vmatprep.mubr.msk.f32.mxu1 %vm264_vm12, %v28507_v41  ;;  %34489 = vst [vmem:[#allocation88_spill] sm:$0xff] %v28523_v22  ;;  %v5584_v41 = vld [vmem:[#allocation3 + $0x9] sm:$0xff] }
 0x25e   : > { %23402 = vmatmul.mubr.msk.f32.gmra.mrb[58].mxu1 %vm264_vm12, %v28511_v14  ;;  %v5585_v14 = vld [vmem:[#allocation3 + $0x11] sm:$0xff] }
 0x25f   : > { %23404 = vmatprep.mubr.msk.f32.mxu1 %vm264_vm12, %v28515_v17  ;;  %v34491_v17 = vld [vmem:[#allocation14_spill] sm:$0xff] }
 0x260   : > { %vm34492_vm14 = vnez %v34491_v17  ;;  %v28562_v17 = vld [vmem:[#allocation3 + $0x39] sm:$0xff] }
 0x261   : > { %v5617_v6 = vsel %vm34492_vm14, %v5585_v14, 0.0  ;;  %vm34494_vm14 = vnez %v34378_v31  ;;  %34497 = vst [vmem:[#allocation92_spill] sm:$0xff] %v28562_v17  ;;  %v28572_v31 = vld [vmem:[#allocation3 + $0x49] sm:$0xff] }
 0x262   : > { %23405 = vmatmul.mubr.msk.f32.gmra.mrb[60].mxu1 %vm264_vm12, %v28519_v40  ;;  %v28537_v40 = vld [vmem:[%s33208_s3 + $0x20] sm:$0xff]  ;;  %v5619_v14 = vsel %vm34494_vm14, %v28542_v3, 0.0  ;;  %vm34498_vm14 = vnez %v34385_v63  ;;  %34499 = vst [vmem:[#allocation93_spill] sm:$0xff] %v28572_v31 }
 0x263   : > { %23407 = vmatprep.mubr.msk.f32.mxu1 %vm264_vm12, %v28523_v22  ;;  %v28540_v22 = vld [vmem:[#allocation3 + $0x19] sm:$0xff]  ;;  %v28592_v63 = vld [vmem:[#allocation3 + $0x69] sm:$0xff] }
 0x264   : > { %34493 = vst [vmem:[#allocation90_spill] sm:$0xff] %v28540_v22  ;;  %34503 = vst [vmem:[#allocation95_spill] sm:$0xff] %v28592_v63 }
 0x266   : > { %23408 = vmatmul.mubr.msk.f32.gmra.mrb[62].mxu1 %vm264_vm12, %v28527_v12 }
 0x267   : > { %23412 = vmatprep.mubr.msk.f32.mxu1 %vm264_vm12, %v5584_v41  ;;  %v28552_v41 = vld [vmem:[#allocation3 + $0x29] sm:$0xff] }
 0x268   : > { %34495 = vst [vmem:[#allocation91_spill] sm:$0xff] %v28552_v41 }
 0x26a   : > { %23413 = vmatmul.mubr.msk.f32.vlgmr.msra.gmra.mrb[32].mxu1 %vm264_vm12, %v5617_v6  ;;  %v28554_v6 = vld [vmem:[#allocation3 + $0x31] sm:$0xff] }
 0x26b   : > { %23461 = vmatpush3.msra.mxu1 %v28406_v23  ;;  %23415 = vmatprep.mubr.msk.f32.mxu1 %vm264_vm12, %v28540_v22  ;;  %v5621_v23 = vsel %vm34496_vm2, %v28554_v6, 0.0  ;;  %v28564_v22 = vld [vmem:[#allocation3 + $0x41] sm:$0xff]  ;;  %vm34500_vm2 = vnez %v34392_v42  ;;  %v28602_v42 = vld [vmem:[#allocation3 + $0x79] sm:$0xff] }
 0x26c   : > { %23510 = vmatprep.subr.mxu1 %v28537_v40  ;;  %34505 = vst [vmem:[#allocation96_spill] sm:$0xff] %v28602_v42 }
 0x26e   : > { %23416 = vmatmul.mubr.msk.f32.gmra.mrb[34].mxu1 %vm264_vm12, %v5619_v14  ;;  %v5623_v14 = vsel %vm34498_vm14, %v28564_v22, 0.0  ;;  %vm34502_vm14 = vnez %v34396_v18  ;;  %v28612_v18 = vld [vmem:[#allocation3 + $0x89] sm:$0xff] }
 0x26f   : > { %23418 = vmatprep.mubr.msk.f32.mxu1 %vm264_vm12, %v28552_v41  ;;  %v28574_v41 = vld [vmem:[#allocation3 + $0x51] sm:$0xff]  ;;  %34506 = vst [vmem:[#allocation97_spill] sm:$0xff] %v28612_v18 }
 0x272   : > { %23419 = vmatmul.mubr.msk.f32.gmra.mrb[36].mxu1 %vm264_vm12, %v5621_v23  ;;  %v5625_v23 = vsel %vm34500_vm2, %v28574_v41, 0.0  ;;  %vm34504_vm2 = vnez %v34400_v61  ;;  %v28622_v61 = vld [vmem:[#allocation3 + $0x99] sm:$0xff] }
 0x273   : > { %23421 = vmatprep.mubr.msk.f32.mxu1 %vm264_vm12, %v28562_v17  ;;  %v28584_v17 = vld [vmem:[#allocation3 + $0x61] sm:$0xff]  ;;  %34508 = vst [vmem:[#allocation98_spill] sm:$0xff] %v28622_v61 }
 0x276   : > { %23422 = vmatmul.mubr.msk.f32.gmra.mrb[38].mxu1 %vm264_vm12, %v5623_v14  ;;  %v5627_v14 = vsel %vm34502_vm14, %v28584_v17, 0.0 }
 0x277   : > { %23424 = vmatprep.mubr.msk.f32.mxu1 %vm264_vm12, %v28572_v31  ;;  %v28594_v31 = vld [vmem:[#allocation3 + $0x71] sm:$0xff] }
 0x27a   : > { %23425 = vmatmul.mubr.msk.f32.gmra.mrb[40].mxu1 %vm264_vm12, %v5625_v23  ;;  %v5629_v23 = vsel %vm34504_vm2, %v28594_v31, 0.0  ;;  %vm34507_vm2 = vnez %v34269_v30  ;;  %v28642_v30 = vld [vmem:[#allocation3 + $0xb9] sm:$0xff] }
 0x27b   : > { %23427 = vmatprep.mubr.msk.f32.mxu1 %vm264_vm12, %v28582_v25  ;;  %v28604_v25 = vld [vmem:[#allocation3 + $0x81] sm:$0xff]  ;;  %34511 = vst [vmem:[#allocation100_spill] sm:$0xff] %v28642_v30 }
 0x27e   : > { %23428 = vmatmul.mubr.msk.f32.gmra.mrb[42].mxu1 %vm264_vm12, %v5627_v14  ;;  %v5631_v14 = vsel %vm34404_vm11, %v28604_v25, 0.0  ;;  %vm34509_vm11 = vnez %v34406_v35  ;;  %v28652_v35 = vld [vmem:[#allocation3 + $0xc9] sm:$0xff] }
 0x27f   : > { %23430 = vmatprep.mubr.msk.f32.mxu1 %vm264_vm12, %v28592_v63  ;;  %v28614_v63 = vld [vmem:[#allocation3 + $0x91] sm:$0xff]  ;;  %34513 = vst [vmem:[#allocation101_spill] sm:$0xff] %v28652_v35 }
 0x282   : > { %23431 = vmatmul.mubr.msk.f32.gmra.mrb[44].mxu1 %vm264_vm12, %v5629_v23  ;;  %v5633_v23 = vsel %vm34507_vm2, %v28614_v63, 0.0 }
 0x283   : > { %23433 = vmatprep.mubr.msk.f32.mxu1 %vm264_vm12, %v28602_v42  ;;  %v28624_v42 = vld [vmem:[#allocation3 + $0xa1] sm:$0xff] }
 0x286   : > { %23434 = vmatmul.mubr.msk.f32.gmra.mrb[46].mxu1 %vm264_vm12, %v5631_v14  ;;  %v5635_v14 = vsel %vm34509_vm11, %v28624_v42, 0.0  ;;  %vm34512_vm11 = vnez %v34283_v53  ;;  %v28672_v53 = vld [vmem:[#allocation3 + $0xe9] sm:$0xff] }
 0x287   : > { %23436 = vmatprep.mubr.msk.f32.mxu1 %vm264_vm12, %v28612_v18  ;;  %v28634_v18 = vld [vmem:[#allocation3 + $0xb1] sm:$0xff] }
 0x28a   : > { %23437 = vmatmul.mubr.msk.f32.gmra.mrb[48].mxu1 %vm264_vm12, %v5633_v23  ;;  %v5637_v23 = vsel %vm34407_vm3, %v28634_v18, 0.0  ;;  %vm34514_vm3 = vnez %v34287_v45  ;;  %v28682_v45 = vld [vmem:[#allocation3 + $0xf9] sm:$0xff] }
 0x28b   : > { %23439 = vmatprep.mubr.msk.f32.mxu1 %vm264_vm12, %v28622_v61  ;;  %v28644_v61 = vld [vmem:[#allocation3 + $0xc1] sm:$0xff]  ;;  %34518 = vst [vmem:[#allocation104_spill] sm:$0xff] %v28682_v45 }
 0x28e   : > { %23440 = vmatmul.mubr.msk.f32.gmra.mrb[50].mxu1 %vm264_vm12, %v5635_v14  ;;  %v5639_v14 = vsel %vm34512_vm11, %v28644_v61, 0.0 }
 0x28f   : > { %23442 = vmatprep.mubr.msk.f32.mxu1 %vm264_vm12, %v28632_v51  ;;  %v28654_v51 = vld [vmem:[#allocation3 + $0xd1] sm:$0xff] }
 0x292   : > { %23443 = vmatmul.mubr.msk.f32.gmra.mrb[52].mxu1 %vm264_vm12, %v5637_v23  ;;  %v5641_v23 = vsel %vm34514_vm3, %v28654_v51, 0.0  ;;  %vm34517_vm3 = vnez %v34296_v0  ;;  %v6034_v0 = vsel %vm34414_vm1, %v28066_v5, 0.0  ;;  %v6040_v5 = vsel %vm26821_vm5, %v28141_v36, 0.0 }
 0x293   : > { %23445 = vmatprep.mubr.msk.f32.mxu1 %vm264_vm12, %v28642_v30  ;;  %v28664_v30 = vld [vmem:[#allocation3 + $0xe1] sm:$0xff]  ;;  %v6046_v36 = vsel %vm26898_vm8, %v28215_v34, 0.0 }
 0x294   : > { %v34522_v34 = vld [vmem:[#allocation66_spill] sm:$0xff] }
 0x296   : > { %23446 = vmatmul.mubr.msk.f32.gmra.mrb[54].mxu1 %vm264_vm12, %v5639_v14  ;;  %v5643_v14 = vsel %vm34409_vm0, %v28664_v30, 0.0 }
 0x297   : > { %23448 = vmatprep.mubr.msk.f32.mxu1 %vm264_vm12, %v28652_v35  ;;  %v28674_v35 = vld [vmem:[#allocation3 + $0xf1] sm:$0xff] }
 0x298   : > { %34516 = vst [vmem:[#allocation103_spill] sm:$0xff] %v28674_v35 }
 0x29a   : > { %23449 = vmatmul.mubr.msk.f32.gmra.mrb[56].mxu1 %vm264_vm12, %v5641_v23  ;;  %v5645_v23 = vsel %vm34517_vm3, %v28674_v35, 0.0 }
 0x29b   : > { %23451 = vmatprep.mubr.msk.f32.mxu1 %vm264_vm12, %v28662_v9  ;;  %v28684_v9 = vld [vmem:[#allocation3 + $0x101] sm:$0xff] }
 0x29c   : > { %34519 = vst [vmem:[#allocation105_spill] sm:$0xff] %v28684_v9 }
 0x29e   : > { %23452 = vmatmul.mubr.msk.f32.gmra.mrb[58].mxu1 %vm264_vm12, %v5643_v14  ;;  %v5647_v14 = vsel %vm27378_vm13, %v28684_v9, 0.0 }
 0x29f   : > { %23454 = vmatprep.mubr.msk.f32.mxu1 %vm264_vm12, %v28672_v53 }
 0x2a2   : > { %23455 = vmatmul.mubr.msk.f32.gmra.mrb[60].mxu1 %vm264_vm12, %v5645_v23  ;;  %v6870_v23 = vld [vmem:[%s33208_s3 + $0x28] sm:$0xff] }
 0x2a3   : > { %23457 = vmatprep.mubr.msk.f32.mxu1 %vm264_vm12, %v28682_v45 }
 0x2a6   : > { %23458 = vmatmul.mubr.msk.f32.gmra.mrb[62].mxu1 %vm264_vm12, %v5647_v14 }
 0x2a7   : > { %23462 = vmatprep.mubr.msk.f32.mxu1 %vm264_vm12, %v6034_v0  ;;  %v6038_v0 = vsel %vm26788_vm4, %v28115_v54, 0.0 }
 0x2aa   : > { %23463 = vmatmul.mubr.msk.f32.vlgmr.msra.gmra.mrb[32].mxu1 %vm264_vm12, %v28079_v2  ;;  %v6044_v2 = vsel %vm26875_vm7, %v28191_v44, 0.0  ;;  %vm34521_vm7 = vnez %v34443_v48  ;;  %v34525_v44 = vld [vmem:[#allocation39_spill] sm:$0xff] }
 0x2ab   : > { %23511 = vmatpush3.msra.mxu1 %v28537_v40  ;;  %23465 = vmatprep.mubr.msk.f32.mxu1 %vm264_vm12, %v6036_v29  ;;  %v6042_v29 = vsel %vm26852_vm6, %v28167_v49, 0.0  ;;  %vm34520_vm6 = vnez %v34440_v62  ;;  %v34528_v49 = vld [vmem:[#allocation20_spill] sm:$0xff]  ;;  %v6060_v40 = vsel %vm34389_vm10, %v28379_v57, 0.0 }
 0x2ac   : > { %23560 = vmatprep.subr.mxu1 %v6870_v23  ;;  %v6048_v1 = vsel %vm34520_vm6, %v28239_v32, 0.0 }
 0x2ae   : > { %23466 = vmatmul.mubr.msk.f32.gmra.mrb[34].mxu1 %vm264_vm12, %v28103_v20  ;;  %v34523_v20 = vld [vmem:[#allocation13_spill] sm:$0xff] }
 0x2af   : > { %23468 = vmatprep.mubr.msk.f32.mxu1 %vm264_vm12, %v6038_v0  ;;  %vm34524_vm8 = vnez %v34523_v20  ;;  %v28784_v0 = vld [vmem:[#allocation3 + $0x107] sm:$0xff] }
 0x2b0   : > { %v6052_v54 = vsel %vm34524_vm8, %v34522_v34, 0.0 }
 0x2b2   : > { %23469 = vmatmul.mubr.msk.f32.gmra.mrb[36].mxu1 %vm264_vm12, %v28129_v27  ;;  %v34526_v27 = vld [vmem:[#allocation16_spill] sm:$0xff] }
 0x2b3   : > { %23471 = vmatprep.mubr.msk.f32.mxu1 %vm264_vm12, %v6040_v5  ;;  %vm34527_vm6 = vnez %v34526_v27  ;;  %v34531_v5 = vld [vmem:[#allocation44_spill] sm:$0xff] }
 0x2b6   : > { %23472 = vmatmul.mubr.msk.f32.gmra.mrb[38].mxu1 %vm264_vm12, %v28155_v58  ;;  %v6054_v58 = vsel %vm34527_vm6, %v34525_v44, 0.0 }
 0x2b7   : > { %23474 = vmatprep.mubr.msk.f32.mxu1 %vm264_vm12, %v6042_v29 }
 0x2ba   : > { %23475 = vmatmul.mubr.msk.f32.gmra.mrb[40].mxu1 %vm264_vm12, %v28181_v46  ;;  %v6050_v46 = vsel %vm34521_vm7, %v28263_v56, 0.0  ;;  %vm34529_vm7 = vnez %v34528_v49 }
 0x2bb   : > { %23477 = vmatprep.mubr.msk.f32.mxu1 %vm264_vm12, %v6044_v2  ;;  %v28792_v2 = vld [vmem:[#allocation3 + $0x10f] sm:$0xff] }
 0x2be   : > { %23478 = vmatmul.mubr.msk.f32.gmra.mrb[42].mxu1 %vm264_vm12, %v28205_v11  ;;  %v6056_v11 = vsel %vm34529_vm7, %v28335_v19, 0.0  ;;  %vm34530_vm7 = vnez %v34347_v4 }
 0x2bf   : > { %23480 = vmatprep.mubr.msk.f32.mxu1 %vm264_vm12, %v6046_v36  ;;  %v6062_v14 = vsel %vm34530_vm7, %v28392_v60, 0.0  ;;  %v34533_v36 = vld [vmem:[#allocation15_spill] sm:$0xff] }
 0x2c2   : > { %23481 = vmatmul.mubr.msk.f32.gmra.mrb[44].mxu1 %vm264_vm12, %v28229_v21  ;;  %v6058_v21 = vsel %vm34458_vm9, %v28359_v26, 0.0  ;;  %vm34532_vm9 = vnez %v34531_v5 }
 0x2c3   : > { %23483 = vmatprep.mubr.msk.f32.mxu1 %vm264_vm12, %v6048_v1  ;;  %v6064_v29 = vsel %vm34532_vm9, %v28784_v0, 0.0  ;;  %v7288_v1 = vld [vmem:[%s33208_s3 + $0x30] sm:$0xff] }
 0x2c6   : > { %23484 = vmatmul.mubr.msk.f32.gmra.mrb[46].mxu1 %vm264_vm12, %v28253_v59 }
 0x2c7   : > { %23486 = vmatprep.mubr.msk.f32.mxu1 %vm264_vm12, %v6050_v46  ;;  %v34534_v46 = vld [vmem:[#allocation50_spill] sm:$0xff] }
 0x2ca   : > { %23487 = vmatmul.mubr.msk.f32.gmra.mrb[48].mxu1 %vm264_vm12, %v28277_v15 }
 0x2cb   : > { %23489 = vmatprep.mubr.msk.f32.mxu1 %vm264_vm12, %v6052_v54  ;;  %v34535_v54 = vld [vmem:[#allocation21_spill] sm:$0xff] }
 0x2ce   : > { %23490 = vmatmul.mubr.msk.f32.gmra.mrb[50].mxu1 %vm264_vm12, %v28301_v39 }
 0x2cf   : > { %23492 = vmatprep.mubr.msk.f32.mxu1 %vm264_vm12, %v6054_v58  ;;  %v34536_v58 = vld [vmem:[#allocation69_spill] sm:$0xff] }
 0x2d2   : > { %23493 = vmatmul.mubr.msk.f32.gmra.mrb[52].mxu1 %vm264_vm12, %v28325_v16 }
 0x2d3   : > { %23495 = vmatprep.mubr.msk.f32.mxu1 %vm264_vm12, %v6056_v11  ;;  %v34537_v11 = vld [vmem:[#allocation71_spill] sm:$0xff] }
 0x2d6   : > { %23496 = vmatmul.mubr.msk.f32.gmra.mrb[54].mxu1 %vm264_vm12, %v28349_v8 }
 0x2d7   : > { %23498 = vmatprep.mubr.msk.f32.mxu1 %vm264_vm12, %v6058_v21  ;;  %v34538_v21 = vld [vmem:[#allocation6_spill] sm:$0xff] }
 0x2da   : > { %23499 = vmatmul.mubr.msk.f32.gmra.mrb[56].mxu1 %vm264_vm12, %v28371_v50 }
 0x2db   : > { %23501 = vmatprep.mubr.msk.f32.mxu1 %vm264_vm12, %v6060_v40  ;;  %v34539_v40 = vld [vmem:[#allocation7_spill] sm:$0xff] }
 0x2de   : > { %23502 = vmatmul.mubr.msk.f32.gmra.mrb[58].mxu1 %vm264_vm12, %v28388_v52 }
 0x2df   : > { %23504 = vmatprep.mubr.msk.f32.mxu1 %vm264_vm12, %v6062_v14  ;;  %v34540_v14 = vld [vmem:[#allocation8_spill] sm:$0xff] }
 0x2e2   : > { %23505 = vmatmul.mubr.msk.f32.gmra.mrb[60].mxu1 %vm264_vm12, %v28398_v7 }
 0x2e3   : > { %23507 = vmatprep.mubr.msk.f32.mxu1 %vm264_vm12, %v6064_v29  ;;  %v34542_v29 = vld [vmem:[#allocation10_spill] sm:$0xff] }
 0x2e6   : > { %23508 = vmatmul.mubr.msk.f32.gmra.mrb[62].mxu1 %vm264_vm12, %v28792_v2 }
 0x2e7   : > { %23512 = vmatprep.mubr.msk.f32.mxu1 %vm264_vm12, %v34533_v36  ;;  %v34543_v36 = vld [vmem:[#allocation11_spill] sm:$0xff] }
 0x2ea   : > { %23513 = vmatmul.mubr.msk.f32.vlgmr.msra.gmra.mrb[32].mxu1 %vm264_vm12, %v34534_v46  ;;  %v34544_v46 = vld [vmem:[#allocation12_spill] sm:$0xff] }
 0x2eb   : > { %23561 = vmatpush3.msra.mxu1 %v6870_v23  ;;  %23515 = vmatprep.mubr.msk.f32.mxu1 %vm264_vm12, %v34535_v54  ;;  %v34541_v23 = vld [vmem:[#allocation9_spill] sm:$0xff] }
 0x2ec   : > { %23610 = vmatprep.subr.mxu1 %v7288_v1 }
 0x2ee   : > { %23516 = vmatmul.mubr.msk.f32.gmra.mrb[34].mxu1 %vm264_vm12, %v34536_v58 }
 0x2ef   : > { %23518 = vmatprep.mubr.msk.f32.mxu1 %vm264_vm12, %v34537_v11  ;;  %v34545_v11 = vld [vmem:[#allocation72_spill] sm:$0xff] }
 0x2f2   : > { %23519 = vmatmul.mubr.msk.f32.gmra.mrb[36].mxu1 %vm264_vm12, %v34538_v21  ;;  %v34546_v21 = vld [vmem:[#allocation73_spill] sm:$0xff] }
 0x2f3   : > { %23521 = vmatprep.mubr.msk.f32.mxu1 %vm264_vm12, %v34539_v40  ;;  %v34547_v40 = vld [vmem:[#allocation74_spill] sm:$0xff] }
 0x2f6   : > { %23522 = vmatmul.mubr.msk.f32.gmra.mrb[38].mxu1 %vm264_vm12, %v34540_v14  ;;  %v34548_v14 = vld [vmem:[#allocation75_spill] sm:$0xff] }
 0x2f7   : > { %23524 = vmatprep.mubr.msk.f32.mxu1 %vm264_vm12, %v34541_v23  ;;  %v34549_v23 = vld [vmem:[#allocation76_spill] sm:$0xff] }
 0x2fa   : > { %23525 = vmatmul.mubr.msk.f32.gmra.mrb[40].mxu1 %vm264_vm12, %v34542_v29  ;;  %v34550_v29 = vld [vmem:[#allocation77_spill] sm:$0xff] }
 0x2fb   : > { %23527 = vmatprep.mubr.msk.f32.mxu1 %vm264_vm12, %v34543_v36  ;;  %v34551_v36 = vld [vmem:[#allocation78_spill] sm:$0xff] }
 0x2fe   : > { %23528 = vmatmul.mubr.msk.f32.gmra.mrb[42].mxu1 %vm264_vm12, %v34544_v46  ;;  %v34552_v46 = vld [vmem:[#allocation79_spill] sm:$0xff] }
 0x2ff   : > { %23530 = vmatprep.mubr.msk.f32.mxu1 %vm264_vm12, %v34545_v11  ;;  %v34553_v11 = vld [vmem:[#allocation80_spill] sm:$0xff] }
 0x302   : > { %23531 = vmatmul.mubr.msk.f32.gmra.mrb[44].mxu1 %vm264_vm12, %v34546_v21  ;;  %v34554_v21 = vld [vmem:[#allocation81_spill] sm:$0xff] }
 0x303   : > { %23533 = vmatprep.mubr.msk.f32.mxu1 %vm264_vm12, %v34547_v40  ;;  %v34555_v40 = vld [vmem:[#allocation82_spill] sm:$0xff] }
 0x306   : > { %23534 = vmatmul.mubr.msk.f32.gmra.mrb[46].mxu1 %vm264_vm12, %v34548_v14  ;;  %v34556_v14 = vld [vmem:[#allocation83_spill] sm:$0xff] }
 0x307   : > { %23536 = vmatprep.mubr.msk.f32.mxu1 %vm264_vm12, %v34549_v23  ;;  %v34557_v23 = vld [vmem:[#allocation84_spill] sm:$0xff] }
 0x30a   : > { %23537 = vmatmul.mubr.msk.f32.gmra.mrb[48].mxu1 %vm264_vm12, %v34550_v29  ;;  %v34558_v29 = vld [vmem:[#allocation85_spill] sm:$0xff] }
 0x30b   : > { %23539 = vmatprep.mubr.msk.f32.mxu1 %vm264_vm12, %v34551_v36  ;;  %v34559_v36 = vld [vmem:[#allocation86_spill] sm:$0xff] }
 0x30e   : > { %23540 = vmatmul.mubr.msk.f32.gmra.mrb[50].mxu1 %vm264_vm12, %v34552_v46  ;;  %v34560_v46 = vld [vmem:[#allocation87_spill] sm:$0xff] }
 0x30f   : > { %23542 = vmatprep.mubr.msk.f32.mxu1 %vm264_vm12, %v34553_v11  ;;  %v34561_v11 = vld [vmem:[#allocation88_spill] sm:$0xff] }
 0x312   : > { %23543 = vmatmul.mubr.msk.f32.gmra.mrb[52].mxu1 %vm264_vm12, %v34554_v21 }
 0x313   : > { %23545 = vmatprep.mubr.msk.f32.mxu1 %vm264_vm12, %v34555_v40  ;;  %v28859_v40 = vld [vmem:[#allocation3 + $0x108] sm:$0xff] }
 0x314   : > { %34562 = vst [vmem:[#allocation66_spill] sm:$0xff] %v28859_v40 }
 0x316   : > { %23546 = vmatmul.mubr.msk.f32.gmra.mrb[54].mxu1 %vm264_vm12, %v34556_v14 }
 0x317   : > { %23548 = vmatprep.mubr.msk.f32.mxu1 %vm264_vm12, %v34557_v23  ;;  %v28863_v23 = vld [vmem:[#allocation3 + $0x110] sm:$0xff] }
 0x318   : > { %34563 = vst [vmem:[#allocation39_spill] sm:$0xff] %v28863_v23 }
 0x31a   : > { %23549 = vmatmul.mubr.msk.f32.gmra.mrb[56].mxu1 %vm264_vm12, %v34558_v29 }
 0x31b   : > { %23551 = vmatprep.mubr.msk.f32.mxu1 %vm264_vm12, %v34559_v36  ;;  %v34564_v36 = vld [vmem:[#allocation90_spill] sm:$0xff] }
 0x31e   : > { %23552 = vmatmul.mubr.msk.f32.gmra.mrb[58].mxu1 %vm264_vm12, %v34560_v46  ;;  %v34565_v46 = vld [vmem:[#allocation14_spill] sm:$0xff] }
 0x31f   : > { %23554 = vmatprep.mubr.msk.f32.mxu1 %vm264_vm12, %v34561_v11  ;;  %vm34566_vm9 = vnez %v34565_v46 }
 0x320   : > { %v6839_v11 = vsel %vm34566_vm9, %v28542_v3, 0.0  ;;  %v34571_v3 = vld [vmem:[#allocation24_spill] sm:$0xff] }
 0x321   : > { %vm34572_vm9 = vnez %v34571_v3  ;;  %v34579_v3 = vld [vmem:[#allocation95_spill] sm:$0xff] }
 0x322   : > { %23555 = vmatmul.mubr.msk.f32.gmra.mrb[60].mxu1 %vm264_vm12, %v28527_v12  ;;  %v7674_v12 = vld [vmem:[%s33208_s3 + $0x38] sm:$0xff]  ;;  %v6843_v46 = vsel %vm34572_vm9, %v28564_v22, 0.0 }
 0x323   : > { %23557 = vmatprep.mubr.msk.f32.mxu1 %vm264_vm12, %v28859_v40  ;;  %v34567_v40 = vld [vmem:[#allocation91_spill] sm:$0xff] }
 0x326   : > { %23558 = vmatmul.mubr.msk.f32.gmra.mrb[62].mxu1 %vm264_vm12, %v28863_v23  ;;  %v34568_v23 = vld [vmem:[#allocation17_spill] sm:$0xff] }
 0x327   : > { %23562 = vmatprep.mubr.msk.f32.mxu1 %vm264_vm12, %v34564_v36  ;;  %vm34569_vm7 = vnez %v34568_v23  ;;  %v34570_v36 = vld [vmem:[#allocation92_spill] sm:$0xff]  ;;  %v34576_v23 = vld [vmem:[#allocation94_spill] sm:$0xff] }
 0x328   : > { %v6841_v29 = vsel %vm34569_vm7, %v28554_v6, 0.0 }
 0x32a   : > { %23563 = vmatmul.mubr.msk.f32.vlgmr.msra.gmra.mrb[32].mxu1 %vm264_vm12, %v6839_v11  ;;  %v34574_v11 = vld [vmem:[#allocation30_spill] sm:$0xff] }
 0x32b   : > { %23611 = vmatpush3.msra.mxu1 %v7288_v1  ;;  %23565 = vmatprep.mubr.msk.f32.mxu1 %vm264_vm12, %v34567_v40  ;;  %v34573_v1 = vld [vmem:[#allocation93_spill] sm:$0xff]  ;;  %vm34575_vm10 = vnez %v34574_v11  ;;  %v34581_v11 = vld [vmem:[#allocation96_spill] sm:$0xff] }
 0x32c   : > { %23660 = vmatprep.subr.mxu1 %v7674_v12  ;;  %v6845_v40 = vsel %vm34575_vm10, %v28574_v41, 0.0 }
 0x32e   : > { %23566 = vmatmul.mubr.msk.f32.gmra.mrb[34].mxu1 %vm264_vm12, %v6841_v29  ;;  %v34577_v29 = vld [vmem:[#allocation36_spill] sm:$0xff] }
 0x32f   : > { %23568 = vmatprep.mubr.msk.f32.mxu1 %vm264_vm12, %v34570_v36  ;;  %vm34578_vm7 = vnez %v34577_v29  ;;  %v34584_v29 = vld [vmem:[#allocation97_spill] sm:$0xff] }
 0x330   : > { %v6847_v36 = vsel %vm34578_vm7, %v28584_v17, 0.0 }
 0x332   : > { %23569 = vmatmul.mubr.msk.f32.gmra.mrb[36].mxu1 %vm264_vm12, %v6843_v46  ;;  %v34587_v46 = vld [vmem:[#allocation98_spill] sm:$0xff] }
 0x333   : > { %23571 = vmatprep.mubr.msk.f32.mxu1 %vm264_vm12, %v34573_v1  ;;  %v6849_v1 = vsel %vm34502_vm14, %v28594_v31, 0.0 }
 0x336   : > { %23572 = vmatmul.mubr.msk.f32.gmra.mrb[38].mxu1 %vm264_vm12, %v6845_v40  ;;  %v34582_v40 = vld [vmem:[#allocation48_spill] sm:$0xff] }
 0x337   : > { %23574 = vmatprep.mubr.msk.f32.mxu1 %vm264_vm12, %v34576_v23  ;;  %vm34583_vm10 = vnez %v34582_v40  ;;  %v34589_v40 = vld [vmem:[#allocation99_spill] sm:$0xff] }
 0x338   : > { %v6851_v23 = vsel %vm34583_vm10, %v28604_v25, 0.0 }
 0x33a   : > { %23575 = vmatmul.mubr.msk.f32.gmra.mrb[40].mxu1 %vm264_vm12, %v6847_v36  ;;  %v34585_v36 = vld [vmem:[#allocation51_spill] sm:$0xff] }
 0x33b   : > { %23577 = vmatprep.mubr.msk.f32.mxu1 %vm264_vm12, %v34579_v3  ;;  %vm34586_vm7 = vnez %v34585_v36  ;;  %v34592_v36 = vld [vmem:[#allocation100_spill] sm:$0xff] }
 0x33c   : > { %v6853_v3 = vsel %vm34586_vm7, %v28614_v63, 0.0 }
 0x33e   : > { %23578 = vmatmul.mubr.msk.f32.gmra.mrb[42].mxu1 %vm264_vm12, %v6849_v1  ;;  %v34595_v1 = vld [vmem:[#allocation101_spill] sm:$0xff] }
 0x33f   : > { %23580 = vmatprep.mubr.msk.f32.mxu1 %vm264_vm12, %v34581_v11  ;;  %v6855_v11 = vsel %vm34507_vm2, %v28624_v42, 0.0 }
 0x342   : > { %23581 = vmatmul.mubr.msk.f32.gmra.mrb[44].mxu1 %vm264_vm12, %v6851_v23  ;;  %v34590_v23 = vld [vmem:[#allocation55_spill] sm:$0xff] }
 0x343   : > { %23583 = vmatprep.mubr.msk.f32.mxu1 %vm264_vm12, %v34584_v29  ;;  %vm34591_vm10 = vnez %v34590_v23  ;;  %v34597_v23 = vld [vmem:[#allocation102_spill] sm:$0xff] }
 0x344   : > { %v6857_v29 = vsel %vm34591_vm10, %v28634_v18, 0.0 }
 0x346   : > { %23584 = vmatmul.mubr.msk.f32.gmra.mrb[46].mxu1 %vm264_vm12, %v6853_v3  ;;  %v34593_v3 = vld [vmem:[#allocation57_spill] sm:$0xff] }
 0x347   : > { %23586 = vmatprep.mubr.msk.f32.mxu1 %vm264_vm12, %v34587_v46  ;;  %vm34594_vm7 = vnez %v34593_v3 }
 0x348   : > { %v6859_v46 = vsel %vm34594_vm7, %v28644_v61, 0.0 }
 0x34a   : > { %23587 = vmatmul.mubr.msk.f32.gmra.mrb[48].mxu1 %vm264_vm12, %v6855_v11  ;;  %v6867_v11 = vsel %vm34517_vm3, %v28684_v9, 0.0  ;;  %v7225_v9 = vld [vmem:[#allocation3 + $0x2f] sm:$0xff] }
 0x34b   : > { %23589 = vmatprep.mubr.msk.f32.mxu1 %vm264_vm12, %v34589_v40  ;;  %v6861_v40 = vsel %vm34512_vm11, %v28654_v51, 0.0 }
 0x34e   : > { %23590 = vmatmul.mubr.msk.f32.gmra.mrb[50].mxu1 %vm264_vm12, %v6857_v29  ;;  %v34598_v29 = vld [vmem:[#allocation62_spill] sm:$0xff] }
 0x34f   : > { %23592 = vmatprep.mubr.msk.f32.mxu1 %vm264_vm12, %v34592_v36  ;;  %vm34599_vm10 = vnez %v34598_v29  ;;  %v28960_v29 = vld [vmem:[#allocation3 + $0x109] sm:$0xff] }
 0x350   : > { %v6863_v36 = vsel %vm34599_vm10, %v28664_v30, 0.0 }
 0x352   : > { %23593 = vmatmul.mubr.msk.f32.gmra.mrb[52].mxu1 %vm264_vm12, %v6859_v46  ;;  %v6865_v46 = vsel %vm34409_vm0, %v28674_v35, 0.0 }
 0x353   : > { %23595 = vmatprep.mubr.msk.f32.mxu1 %vm264_vm12, %v34595_v1 }
 0x356   : > { %23596 = vmatmul.mubr.msk.f32.gmra.mrb[54].mxu1 %vm264_vm12, %v6861_v40  ;;  %v7256_v40 = vsel %vm34414_vm1, %v7224_v55, 0.0  ;;  %v7227_v55 = vld [vmem:[#allocation3 + $0x3f] sm:$0xff] }
 0x357   : > { %23598 = vmatprep.mubr.msk.f32.mxu1 %vm264_vm12, %v34597_v23 }
 0x35a   : > { %23599 = vmatmul.mubr.msk.f32.gmra.mrb[56].mxu1 %vm264_vm12, %v6863_v36  ;;  %v28962_v36 = vld [vmem:[#allocation3 + $0x111] sm:$0xff] }
 0x35b   : > { %23601 = vmatprep.mubr.msk.f32.mxu1 %vm264_vm12, %v28672_v53  ;;  %34601 = vst [vmem:[#allocation44_spill] sm:$0xff] %v28962_v36 }
 0x35e   : > { %23602 = vmatmul.mubr.msk.f32.gmra.mrb[58].mxu1 %vm264_vm12, %v6865_v46  ;;  %v6869_v46 = vsel %vm27378_vm13, %v28962_v36, 0.0  ;;  %v7229_v36 = vld [vmem:[#allocation3 + $0x4f] sm:$0xff] }
 0x35f   : > { %23604 = vmatprep.mubr.msk.f32.mxu1 %vm264_vm12, %v28682_v45  ;;  %v28976_v45 = vld [vmem:[%s33208_s3 + $0x40] sm:$0xff] }
 0x362   : > { %23605 = vmatmul.mubr.msk.f32.gmra.mrb[60].mxu1 %vm264_vm12, %v6867_v11  ;;  %v7226_v11 = vld [vmem:[#allocation3 + $0x37] sm:$0xff] }
 0x363   : > { %23607 = vmatprep.mubr.msk.f32.mxu1 %vm264_vm12, %v28960_v29  ;;  %v7258_v35 = vsel %vm34372_vm15, %v7226_v11, 0.0  ;;  %vm34603_vm15 = vnez %v34431_v24 }
 0x366   : > { %23608 = vmatmul.mubr.msk.f32.gmra.mrb[62].mxu1 %vm264_vm12, %v6869_v46  ;;  %v7228_v46 = vld [vmem:[#allocation3 + $0x47] sm:$0xff] }
 0x367   : > { %23612 = vmatprep.mubr.msk.f32.mxu1 %vm264_vm12, %v7256_v40  ;;  %v7260_v40 = vsel %vm26788_vm4, %v7228_v46, 0.0  ;;  %v7234_v46 = vld [vmem:[#allocation3 + $0x77] sm:$0xff]  ;;  %vm34604_vm4 = vnez %v34434_v43 }
 0x36a   : > { %23613 = vmatmul.mubr.msk.f32.vlgmr.msra.gmra.mrb[32].mxu1 %vm264_vm12, %v7225_v9  ;;  %v7262_v9 = vsel %vm26821_vm5, %v7230_v10, 0.0  ;;  %v7235_v10 = vld [vmem:[#allocation3 + $0x7f] sm:$0xff]  ;;  %vm34605_vm5 = vnez %v34437_v37 }
 0x36b   : > { %23661 = vmatpush3.msra.mxu1 %v7674_v12  ;;  %23615 = vmatprep.mubr.msk.f32.mxu1 %vm264_vm12, %v7258_v35  ;;  %v7232_v35 = vld [vmem:[#allocation3 + $0x67] sm:$0xff]  ;;  %v7231_v12 = vld [vmem:[#allocation3 + $0x5f] sm:$0xff] }
 0x36c   : > { %23710 = vmatprep.subr.mxu1 %v28976_v45  ;;  %v7264_v11 = vsel %vm34603_vm15, %v7232_v35, 0.0  ;;  %vm34606_vm15 = vnez %v34440_v62 }
 0x36e   : > { %23616 = vmatmul.mubr.msk.f32.gmra.mrb[34].mxu1 %vm264_vm12, %v7227_v55  ;;  %v7233_v55 = vld [vmem:[#allocation3 + $0x6f] sm:$0xff] }
 0x36f   : > { %23618 = vmatprep.mubr.msk.f32.mxu1 %vm264_vm12, %v7260_v40  ;;  %v7268_v40 = vsel %vm34605_vm5, %v28239_v32, 0.0  ;;  %v7274_v32 = vsel %vm34524_vm8, %v34525_v44, 0.0  ;;  %vm34609_vm8 = vnez %v34333_v28  ;;  %v34618_v44 = vld [vmem:[#allocation10_spill] sm:$0xff] }
 0x372   : > { %23619 = vmatmul.mubr.msk.f32.gmra.mrb[36].mxu1 %vm264_vm12, %v7229_v36  ;;  %v7266_v36 = vsel %vm34604_vm4, %v7234_v46, 0.0  ;;  %vm34607_vm4 = vnez %v34443_v48  ;;  %v34626_v46 = vld [vmem:[#allocation77_spill] sm:$0xff] }
 0x373   : > { %23621 = vmatprep.mubr.msk.f32.mxu1 %vm264_vm12, %v7262_v9  ;;  %v7270_v9 = vsel %vm34606_vm15, %v28263_v56, 0.0  ;;  %v7272_v35 = vsel %vm34607_vm4, %v34522_v34, 0.0  ;;  %v7276_v56 = vsel %vm34527_vm6, %v28335_v19, 0.0  ;;  %vm34608_vm4 = vnez %v34528_v49  ;;  %v34617_v34 = vld [vmem:[#allocation9_spill] sm:$0xff] }
 0x374   : > { %vm34610_vm6 = vnez %v34388_v47 }
 0x375   : > { %v7282_v19 = vsel %vm34610_vm6, %v28392_v60, 0.0  ;;  %v34616_v60 = vld [vmem:[#allocation8_spill] sm:$0xff] }
 0x376   : > { %23622 = vmatmul.mubr.msk.f32.gmra.mrb[38].mxu1 %vm264_vm12, %v7231_v12  ;;  %v34624_v12 = vld [vmem:[#allocation75_spill] sm:$0xff] }
 0x377   : > { %23624 = vmatprep.mubr.msk.f32.mxu1 %vm264_vm12, %v7264_v11  ;;  %v34625_v11 = vld [vmem:[#allocation76_spill] sm:$0xff] }
 0x37a   : > { %23625 = vmatmul.mubr.msk.f32.gmra.mrb[40].mxu1 %vm264_vm12, %v7233_v55  ;;  %v34627_v55 = vld [vmem:[#allocation78_spill] sm:$0xff] }
 0x37b   : > { %23627 = vmatprep.mubr.msk.f32.mxu1 %vm264_vm12, %v7266_v36  ;;  %v34628_v36 = vld [vmem:[#allocation79_spill] sm:$0xff] }
 0x37e   : > { %23628 = vmatmul.mubr.msk.f32.gmra.mrb[42].mxu1 %vm264_vm12, %v7235_v10  ;;  %v34629_v10 = vld [vmem:[#allocation80_spill] sm:$0xff] }
 0x37f   : > { %23630 = vmatprep.mubr.msk.f32.mxu1 %vm264_vm12, %v7268_v40  ;;  %v34630_v40 = vld [vmem:[#allocation82_spill] sm:$0xff] }
 0x382   : > { %23631 = vmatmul.mubr.msk.f32.gmra.mrb[44].mxu1 %vm264_vm12, %v28253_v59  ;;  %v7278_v59 = vsel %vm34608_vm4, %v28359_v26, 0.0  ;;  %vm34611_vm4 = vnez %v34347_v4  ;;  %v20476_v26 = vld [vmem:[%s33208_s3 + $0x48] sm:$0xff] }
 0x383   : > { %23633 = vmatprep.mubr.msk.f32.mxu1 %vm264_vm12, %v7270_v9  ;;  %23760 = vmatprep.subr.mxu0 %v20476_v26  ;;  %v34631_v9 = vld [vmem:[#allocation84_spill] sm:$0xff] }
 0x384   : > { %23761 = vmatpush3.msra.mxu0 %v20476_v26  ;;  %v34642_v26 = vld [vmem:[#allocation92_spill] sm:$0xff] }
 0x386   : > { %23634 = vmatmul.mubr.msk.f32.gmra.mrb[46].mxu1 %vm264_vm12, %v28277_v15  ;;  %v7280_v15 = vsel %vm34609_vm8, %v28379_v57, 0.0  ;;  %vm34612_vm8 = vnez %v34531_v5  ;;  %v34614_v57 = vld [vmem:[#allocation6_spill] sm:$0xff] }
 0x387   : > { %23636 = vmatprep.mubr.msk.f32.mxu1 %vm264_vm12, %v7272_v35  ;;  %v34632_v35 = vld [vmem:[#allocation85_spill] sm:$0xff] }
 0x38a   : > { %23637 = vmatmul.mubr.msk.f32.gmra.mrb[48].mxu1 %vm264_vm12, %v28301_v39  ;;  %v7284_v39 = vsel %vm34611_vm4, %v28784_v0, 0.0  ;;  %v34619_v0 = vld [vmem:[#allocation11_spill] sm:$0xff] }
 0x38b   : > { %23639 = vmatprep.mubr.msk.f32.mxu1 %vm264_vm12, %v7274_v32  ;;  %v34633_v32 = vld [vmem:[#allocation86_spill] sm:$0xff] }
 0x38e   : > { %23640 = vmatmul.mubr.msk.f32.gmra.mrb[50].mxu1 %vm264_vm12, %v28325_v16  ;;  %v7254_v16 = vld [vmem:[#allocation3 + $0x117] sm:$0xff] }
 0x38f   : > { %23642 = vmatprep.mubr.msk.f32.mxu1 %vm264_vm12, %v7276_v56  ;;  %v34634_v56 = vld [vmem:[#allocation87_spill] sm:$0xff] }
 0x392   : > { %23643 = vmatmul.mubr.msk.f32.gmra.mrb[52].mxu1 %vm264_vm12, %v28349_v8  ;;  %v7286_v8 = vsel %vm34612_vm8, %v7254_v16, 0.0  ;;  %v34639_v16 = vld [vmem:[#allocation91_spill] sm:$0xff] }
 0x393   : > { %23645 = vmatprep.mubr.msk.f32.mxu1 %vm264_vm12, %v7278_v59  ;;  %v34635_v59 = vld [vmem:[#allocation88_spill] sm:$0xff] }
 0x396   : > { %23646 = vmatmul.mubr.msk.f32.gmra.mrb[54].mxu1 %vm264_vm12, %v28371_v50  ;;  %v7255_v50 = vld [vmem:[#allocation3 + $0x11f] sm:$0xff] }
 0x397   : > { %23648 = vmatprep.mubr.msk.f32.mxu1 %vm264_vm12, %v7280_v15  ;;  %v34637_v15 = vld [vmem:[#allocation66_spill] sm:$0xff] }
 0x39a   : > { %23649 = vmatmul.mubr.msk.f32.gmra.mrb[56].mxu1 %vm264_vm12, %v28388_v52  ;;  %v34615_v52 = vld [vmem:[#allocation7_spill] sm:$0xff] }
 0x39b   : > { %23651 = vmatprep.mubr.msk.f32.mxu1 %vm264_vm12, %v7282_v19  ;;  %v34638_v19 = vld [vmem:[#allocation39_spill] sm:$0xff] }
 0x39e   : > { %23652 = vmatmul.mubr.msk.f32.gmra.mrb[58].mxu1 %vm264_vm12, %v28398_v7  ;;  %v34613_v7 = vld [vmem:[#allocation71_spill] sm:$0xff] }
 0x39f   : > { %23654 = vmatprep.mubr.msk.f32.mxu1 %vm264_vm12, %v7284_v39  ;;  %v7673_v39 = vld [vmem:[#allocation3 + $0x120] sm:$0xff] }
 0x3a2   : > { %23655 = vmatmul.mubr.msk.f32.gmra.mrb[60].mxu1 %vm264_vm12, %v28792_v2  ;;  %v34621_v2 = vld [vmem:[#allocation72_spill] sm:$0xff] }
 0x3a3   : > { %23657 = vmatprep.mubr.msk.f32.mxu1 %vm264_vm12, %v7286_v8  ;;  %v34640_v8 = vld [vmem:[#allocation14_spill] sm:$0xff] }
 0x3a4   : > { %vm34641_vm8 = vnez %v34640_v8 }
 0x3a6   : > { %23658 = vmatmul.mubr.msk.f32.gmra.mrb[62].mxu1 %vm264_vm12, %v7255_v50  ;;  %v8061_v50 = vsel %vm34641_vm8, %v28554_v6, 0.0  ;;  %v34647_v6 = vld [vmem:[#allocation94_spill] sm:$0xff] }
 0x3a7   : > { %23662 = vmatprep.mubr.msk.f32.mxu1 %vm264_vm12, %v34535_v54  ;;  %v34622_v54 = vld [vmem:[#allocation73_spill] sm:$0xff] }
 0x3aa   : > { %23663 = vmatmul.mubr.msk.f32.vlgmr.msra.gmra.mrb[32].mxu1 %vm264_vm12, %v34536_v58  ;;  %v34623_v58 = vld [vmem:[#allocation74_spill] sm:$0xff] }
 0x3ab   : > { %23711 = vmatpush3.msra.mxu1 %v28976_v45  ;;  %23665 = vmatprep.mubr.msk.f32.mxu1 %vm264_vm12, %v34613_v7  ;;  %v34620_v45 = vld [vmem:[#allocation12_spill] sm:$0xff]  ;;  %v34643_v7 = vld [vmem:[#allocation17_spill] sm:$0xff] }
 0x3ac   : > { %vm34644_vm4 = vnez %v34643_v7 }
 0x3ae   : > { %23666 = vmatmul.mubr.msk.f32.gmra.mrb[34].mxu1 %vm264_vm12, %v34614_v57  ;;  %v8063_v57 = vsel %vm34644_vm4, %v28564_v22, 0.0  ;;  %v34650_v22 = vld [vmem:[#allocation95_spill] sm:$0xff] }
 0x3af   : > { %23668 = vmatprep.mubr.msk.f32.mxu1 %vm264_vm12, %v34615_v52  ;;  %v34645_v52 = vld [vmem:[#allocation93_spill] sm:$0xff] }
 0x3b2   : > { %23669 = vmatmul.mubr.msk.f32.gmra.mrb[36].mxu1 %vm264_vm12, %v34616_v60 }
 0x3b3   : > { %23671 = vmatprep.mubr.msk.f32.mxu1 %vm264_vm12, %v34617_v34  ;;  %v8065_v34 = vsel %vm34572_vm9, %v28574_v41, 0.0  ;;  %v34653_v41 = vld [vmem:[#allocation96_spill] sm:$0xff] }
 0x3b6   : > { %23672 = vmatmul.mubr.msk.f32.gmra.mrb[38].mxu1 %vm264_vm12, %v34618_v44  ;;  %v34648_v44 = vld [vmem:[#allocation30_spill] sm:$0xff] }
 0x3b7   : > { %23674 = vmatprep.mubr.msk.f32.mxu1 %vm264_vm12, %v34619_v0  ;;  %vm34649_vm8 = vnez %v34648_v44 }
 0x3b8   : > { %v8067_v0 = vsel %vm34649_vm8, %v28584_v17, 0.0  ;;  %v34655_v17 = vld [vmem:[#allocation97_spill] sm:$0xff] }
 0x3ba   : > { %23675 = vmatmul.mubr.msk.f32.gmra.mrb[40].mxu1 %vm264_vm12, %v34620_v45  ;;  %v34651_v45 = vld [vmem:[#allocation36_spill] sm:$0xff] }
 0x3bb   : > { %23677 = vmatprep.mubr.msk.f32.mxu1 %vm264_vm12, %v34621_v2  ;;  %vm34652_vm4 = vnez %v34651_v45 }
 0x3bc   : > { %v8069_v2 = vsel %vm34652_vm4, %v28594_v31, 0.0  ;;  %v34658_v31 = vld [vmem:[#allocation98_spill] sm:$0xff] }
 0x3be   : > { %23678 = vmatmul.mubr.msk.f32.gmra.mrb[42].mxu1 %vm264_vm12, %v34622_v54 }
 0x3bf   : > { %23680 = vmatprep.mubr.msk.f32.mxu1 %vm264_vm12, %v34623_v58  ;;  %v8071_v58 = vsel %vm34502_vm14, %v28604_v25, 0.0  ;;  %v34661_v25 = vld [vmem:[#allocation99_spill] sm:$0xff] }
 0x3c2   : > { %23681 = vmatmul.mubr.msk.f32.gmra.mrb[44].mxu1 %vm264_vm12, %v34624_v12  ;;  %v34656_v12 = vld [vmem:[#allocation48_spill] sm:$0xff] }
 0x3c3   : > { %23683 = vmatprep.mubr.msk.f32.mxu1 %vm264_vm12, %v34625_v11  ;;  %vm34657_vm8 = vnez %v34656_v12 }
 0x3c4   : > { %v8073_v11 = vsel %vm34657_vm8, %v28614_v63, 0.0  ;;  %v34663_v63 = vld [vmem:[#allocation100_spill] sm:$0xff] }
 0x3c6   : > { %23684 = vmatmul.mubr.msk.f32.gmra.mrb[46].mxu1 %vm264_vm12, %v34626_v46  ;;  %v34659_v46 = vld [vmem:[#allocation51_spill] sm:$0xff] }
 0x3c7   : > { %23686 = vmatprep.mubr.msk.f32.mxu1 %vm264_vm12, %v34627_v55  ;;  %vm34660_vm4 = vnez %v34659_v46 }
 0x3c8   : > { %v8075_v55 = vsel %vm34660_vm4, %v28624_v42, 0.0  ;;  %v8081_v42 = vsel %vm34594_vm7, %v28654_v51, 0.0  ;;  %v34669_v51 = vld [vmem:[#allocation104_spill] sm:$0xff] }
 0x3ca   : > { %23687 = vmatmul.mubr.msk.f32.gmra.mrb[48].mxu1 %vm264_vm12, %v34628_v36 }
 0x3cb   : > { %23689 = vmatprep.mubr.msk.f32.mxu1 %vm264_vm12, %v34629_v10  ;;  %v8077_v10 = vsel %vm34507_vm2, %v28634_v18, 0.0 }
 0x3ce   : > { %23690 = vmatmul.mubr.msk.f32.gmra.mrb[50].mxu1 %vm264_vm12, %v34554_v21  ;;  %v34636_v21 = vld [vmem:[#allocation89_spill] sm:$0xff] }
 0x3cf   : > { %23692 = vmatprep.mubr.msk.f32.mxu1 %vm264_vm12, %v34630_v40  ;;  %v34664_v40 = vld [vmem:[#allocation55_spill] sm:$0xff] }
 0x3d0   : > { %vm34665_vm8 = vnez %v34664_v40 }
 0x3d2   : > { %23693 = vmatmul.mubr.msk.f32.gmra.mrb[52].mxu1 %vm264_vm12, %v34556_v14  ;;  %v7672_v14 = vld [vmem:[#allocation3 + $0x118] sm:$0xff] }
 0x3d3   : > { %23695 = vmatprep.mubr.msk.f32.mxu1 %vm264_vm12, %v34631_v9  ;;  %v8079_v9 = vsel %vm34665_vm8, %v28644_v61, 0.0  ;;  %v34667_v61 = vld [vmem:[#allocation103_spill] sm:$0xff] }
 0x3d6   : > { %23696 = vmatmul.mubr.msk.f32.gmra.mrb[54].mxu1 %vm264_vm12, %v34632_v35  ;;  %v8083_v35 = vsel %vm34512_vm11, %v28664_v30, 0.0  ;;  %v8058_v30 = vld [vmem:[#allocation3 + $0x119] sm:$0xff] }
 0x3d7   : > { %23698 = vmatprep.mubr.msk.f32.mxu1 %vm264_vm12, %v34633_v32  ;;  %v8085_v32 = vsel %vm34599_vm10, %v34667_v61, 0.0  ;;  %v34684_v61 = vld [vmem:[#allocation18_spill] sm:$0xff] }
 0x3da   : > { %23699 = vmatmul.mubr.msk.f32.gmra.mrb[56].mxu1 %vm264_vm12, %v34634_v56  ;;  %v34670_v56 = vld [vmem:[#allocation105_spill] sm:$0xff] }
 0x3db   : > { %23701 = vmatprep.mubr.msk.f32.mxu1 %vm264_vm12, %v34635_v59  ;;  %v8087_v59 = vsel %vm34409_vm0, %v34670_v56, 0.0 }
 0x3de   : > { %23702 = vmatmul.mubr.msk.f32.gmra.mrb[58].mxu1 %vm264_vm12, %v34636_v21  ;;  %v34672_v21 = vld [vmem:[#allocation44_spill] sm:$0xff] }
 0x3df   : > { %23704 = vmatprep.mubr.msk.f32.mxu1 %vm264_vm12, %v34637_v15 }
 0x3e2   : > { %23705 = vmatmul.mubr.msk.f32.gmra.mrb[60].mxu1 %vm264_vm12, %v34638_v19 }
 0x3e3   : > { %23707 = vmatprep.mubr.msk.f32.mxu1 %vm264_vm12, %v7672_v14  ;;  %v8089_v14 = vsel %vm34517_vm3, %v34672_v21, 0.0  ;;  %v34688_v21 = vld [vmem:[#allocation27_spill] sm:$0xff] }
 0x3e6   : > { %23708 = vmatmul.mubr.msk.f32.gmra.mrb[62].mxu1 %vm264_vm12, %v7673_v39 }
 0x3e7   : > { %23712 = vmatprep.mubr.msk.f32.mxu1 %vm264_vm12, %v34639_v16  ;;  %v8550_v16 = vld [vmem:[#allocation3 + $0x7] sm:$0xff] }
 0x3ea   : > { %23713 = vmatmul.mubr.msk.f32.vlgmr.msra.gmra.mrb[32].mxu1 %vm264_vm12, %v8061_v50  ;;  %v34675_v50 = vld [vmem:[#allocation5_spill] sm:$0xff] }
 0x3eb   : > { %23715 = vmatprep.mubr.msk.f32.mxu1 %vm264_vm12, %v34642_v26  ;;  %v8582_v26 = vsel %vm34414_vm1, %v8550_v16, 0.0  ;;  %vm34700_vm1 = vnez %v34175_v33 }
 0x3ec   : > { %23762 = vmatprep.mubr.msk.f32.mxu0 %vm264_vm12, %v8582_v26 }
 0x3ee   : > { %23716 = vmatmul.mubr.msk.f32.gmra.mrb[34].mxu1 %vm264_vm12, %v8063_v57  ;;  %v20509_v57 = vld [vmem:[%s33208_s3 + $0x50] sm:$0xff] }
 0x3ef   : > { %23718 = vmatprep.mubr.msk.f32.mxu1 %vm264_vm12, %v34645_v52  ;;  %23810 = vmatprep.subr.mxu0 %v20509_v57  ;;  %v29228_v52 = vld [vmem:[%s33208_s3 + $0x58] sm:$0xff] }
 0x3f2   : > { %23719 = vmatmul.mubr.msk.f32.gmra.mrb[36].mxu1 %vm264_vm12, %v8065_v34  ;;  %v29234_v34 = vld [vmem:[%s33209_s4] ss:$0 sm:$0xff] }
 0x3f3   : > { %23721 = vmatprep.mubr.msk.f32.mxu1 %vm264_vm12, %v34647_v6  ;;  %v34676_v6 = vld [vmem:[#allocation4_spill] sm:$0xff] }
 0x3f6   : > { %23722 = vmatmul.mubr.msk.f32.gmra.mrb[38].mxu1 %vm264_vm12, %v8067_v0  ;;  %v34677_v0 = vmax.f32 %v34676_v6, 0.0 }
 0x3f7   : > { %23724 = vmatprep.mubr.msk.f32.mxu1 %vm264_vm12, %v34650_v22 }
 0x3f8   : > { %v4749_v22 = vadd.f32 %v29234_v34, %v34677_v0 }
 0x3fa   : > { %23725 = vmatmul.mubr.msk.f32.gmra.mrb[40].mxu1 %vm264_vm12, %v8069_v2 }
 0x3fb   : > { %23727 = vmatprep.mubr.msk.f32.mxu1 %vm264_vm12, %v34653_v41  ;;  %v34678_v41 = vld [vmem:[#allocation22_spill] sm:$0xff] }
 0x3fe   : > { %23728 = vmatmul.mubr.msk.f32.gmra.mrb[42].mxu1 %vm264_vm12, %v8071_v58  ;;  %v34679_v58 = vmax.f32 %v34678_v41, 0.0 }
 0x3ff   : > { %23730 = vmatprep.mubr.msk.f32.mxu1 %vm264_vm12, %v34655_v17 }
 0x400   : > { %v4748_v17 = vadd.f32 %v29234_v34, %v34679_v58  ;;  %v34694_v58 = vld [vmem:[#allocation23_spill] sm:$0xff] }
 0x402   : > { %23731 = vmatmul.mubr.msk.f32.gmra.mrb[44].mxu1 %vm264_vm12, %v8073_v11 }
 0x403   : > { %23733 = vmatprep.mubr.msk.f32.mxu1 %vm264_vm12, %v34658_v31 }
 0x406   : > { %23734 = vmatmul.mubr.msk.f32.gmra.mrb[46].mxu1 %vm264_vm12, %v8075_v55 }
 0x407   : > { %23736 = vmatprep.mubr.msk.f32.mxu1 %vm264_vm12, %v34661_v25 }
 0x40a   : > { %23737 = vmatmul.mubr.msk.f32.gmra.mrb[48].mxu1 %vm264_vm12, %v8077_v10  ;;  %v34682_v10 = vld [vmem:[#allocation19_spill] sm:$0xff] }
 0x40b   : > { %23739 = vmatprep.mubr.msk.f32.mxu1 %vm264_vm12, %v34663_v63  ;;  %v34683_v63 = vmax.f32 %v34682_v10, 0.0 }
 0x40e   : > { %23740 = vmatmul.mubr.msk.f32.gmra.mrb[50].mxu1 %vm264_vm12, %v8079_v9  ;;  %v4751_v9 = vadd.f32 %v29234_v34, %v34683_v63 }
 0x40f   : > { %23742 = vmatprep.mubr.msk.f32.mxu1 %vm264_vm12, %v34595_v1 }
 0x412   : > { %23743 = vmatmul.mubr.msk.f32.gmra.mrb[52].mxu1 %vm264_vm12, %v8081_v42 }
 0x413   : > { %23745 = vmatprep.mubr.msk.f32.mxu1 %vm264_vm12, %v34597_v23  ;;  %v34671_v23 = vld [vmem:[#allocation65_spill] sm:$0xff] }
 0x416   : > { %23746 = vmatmul.mubr.msk.f32.gmra.mrb[54].mxu1 %vm264_vm12, %v8083_v35 }
 0x417   : > { %23748 = vmatprep.mubr.msk.f32.mxu1 %vm264_vm12, %v28672_v53  ;;  %v8059_v53 = vld [vmem:[#allocation3 + $0x121] sm:$0xff] }
 0x418   : > { %v8091_v39 = vsel %vm27378_vm13, %v8059_v53, 0.0 }
 0x41a   : > { %23749 = vmatmul.mubr.msk.f32.gmra.mrb[56].mxu1 %vm264_vm12, %v8085_v32  ;;  %v34685_v32 = vmax.f32 %v34684_v61, 0.0 }
 0x41b   : > { %23751 = vmatprep.mubr.msk.f32.mxu1 %vm264_vm12, %v34669_v51 }
 0x41c   : > { %v4750_v51 = vadd.f32 %v29234_v34, %v34685_v32 }
 0x41e   : > { %23752 = vmatmul.mubr.msk.f32.gmra.mrb[58].mxu1 %vm264_vm12, %v8087_v59 }
 0x41f   : > { %23754 = vmatprep.mubr.msk.f32.mxu1 %vm264_vm12, %v28960_v29  ;;  %v8551_v29 = vld [vmem:[#allocation3 + $0xf] sm:$0xff] }
 0x420   : > { %23763 = vmatmul.mubr.msk.f32.vlgmr.msra.gmra.mrb[32].mxu0 %vm264_vm12, %v8551_v29  ;;  %v34690_v29 = vld [vmem:[#allocation28_spill] sm:$0xff] }
 0x421   : > { %23811 = vmatpush3.msra.mxu0 %v20509_v57  ;;  %v34691_v57 = vmax.f32 %v34690_v29, 0.0 }
 0x422   : > { %23755 = vmatmul.mubr.msk.f32.gmra.mrb[60].mxu1 %vm264_vm12, %v8089_v14  ;;  %23860 = vmatprep.subr.mxu0 %v29228_v52  ;;  %v34689_v14 = vmax.f32 %v34688_v21, 0.0 }
 0x423   : > { %23757 = vmatprep.mubr.msk.f32.mxu1 %vm264_vm12, %v8058_v30  ;;  %v4752_v6 = vadd.f32 %v29234_v34, %v34691_v57 }
 0x426   : > { %23758 = vmatmul.mubr.msk.f32.gmra.mrb[62].mxu1 %vm264_vm12, %v8091_v39  ;;  %v4753_v39 = vadd.f32 %v29234_v34, %v34689_v14 }
 0x4bd   : > { %v23714_v2 = vpop.f32.mrb[32].mxu1 }
 0x4be   : > { %v29242_v11 = vadd.f32 %v23714_v2, %v4749_v22  ;;  %v8255_v31 = vpop.f32.mrb[33].mxu1 }
 0x4bf   : > { %v29244_v55 = vadd.f32 %v8255_v31, %v4748_v17  ;;  %v34695_v17 = vmax.f32 %v34694_v58, 0.0 }
 0x4c0   : > { %34680 = vst [vmem:[#allocation15_spill] sm:$0xff] %v29242_v11  ;;  %v33587_v25 = vmax.f32 %v29242_v11, 0.0 }
 0x4c1   : > { %34681 = vst [vmem:[#allocation50_spill] sm:$0xff] %v29244_v55  ;;  %v33585_v42 = vmax.f32 %v29244_v55, 0.0  ;;  %v23717_v35 = vpop.f32.mrb[34].mxu1  ;;  %v4755_v31 = vadd.f32 %v29234_v34, %v34695_v17  ;;  %v34703_v17 = vld [vmem:[#allocation34_spill] sm:$0xff] }
 0x4c2   : > { %8479 = vst.msk [vmem:[#allocation3 + $0x20] sm:$0xff] %vm264_vm12, %v33587_v25  ;;  %v29257_v56 = vadd.f32 %v23717_v35, %v4751_v9  ;;  %v8265_v59 = vpop.f32.mrb[35].mxu1  ;;  %v34696_v9 = vld [vmem:[#allocation25_spill] sm:$0xff] }
 0x4c3   : > { %8478 = vst.msk [vmem:[#allocation3 + $0x18] sm:$0xff] %vm264_vm12, %v33585_v42  ;;  %v29262_v30 = vadd.f32 %v8265_v59, %v4750_v51  ;;  %v34697_v35 = vmax.f32 %v34696_v9, 0.0 }
 0x4c4   : > { %34686 = vst [vmem:[#allocation21_spill] sm:$0xff] %v29257_v56  ;;  %v33583_v53 = vmax.f32 %v29257_v56, 0.0 }
 0x4c5   : > { %34687 = vst [vmem:[#allocation69_spill] sm:$0xff] %v29262_v30  ;;  %v33582_v16 = vmax.f32 %v29262_v30, 0.0  ;;  %v23720_v26 = vpop.f32.mrb[36].mxu1  ;;  %v4754_v61 = vadd.f32 %v29234_v34, %v34697_v35 }
 0x4c6   : > { %8481 = vst.msk [vmem:[#allocation3 + $0x30] sm:$0xff] %vm264_vm12, %v33583_v53  ;;  %v29275_v0 = vadd.f32 %v23720_v26, %v4753_v39  ;;  %v8275_v22 = vpop.f32.mrb[37].mxu1  ;;  %v34701_v26 = vld [vmem:[#allocation33_spill] sm:$0xff] }
 0x4c7   : > { %8480 = vst.msk [vmem:[#allocation3 + $0x28] sm:$0xff] %vm264_vm12, %v33582_v16  ;;  %v29280_v2 = vadd.f32 %v8275_v22, %v4752_v6  ;;  %v34702_v29 = vmax.f32 %v34701_v26, 0.0 }
 0x4c8   : > { %34692 = vst [vmem:[#allocation81_spill] sm:$0xff] %v29275_v0  ;;  %v33581_v41 = vmax.f32 %v29275_v0, 0.0 }
 0x4c9   : > { %34693 = vst [vmem:[#allocation83_spill] sm:$0xff] %v29280_v2  ;;  %v33579_v10 = vmax.f32 %v29280_v2, 0.0  ;;  %v23723_v63 = vpop.f32.mrb[38].mxu1  ;;  %v4757_v57 = vadd.f32 %v29234_v34, %v34702_v29  ;;  %v34708_v29 = vld [vmem:[#allocation29_spill] sm:$0xff] }
 0x4ca   : > { %8483 = vst.msk [vmem:[#allocation3 + $0x40] sm:$0xff] %vm264_vm12, %v33581_v41  ;;  %v29293_v32 = vadd.f32 %v23723_v63, %v4755_v31  ;;  %v8285_v51 = vpop.f32.mrb[39].mxu1  ;;  %v29295_v59 = vld [vmem:[#allocation3 + $0x17] sm:$0xff]  ;;  %v29310_v6 = vld [vmem:[#allocation3 + $0x1f] sm:$0xff]  ;;  %v34704_v31 = vmax.f32 %v34703_v17, 0.0 }
 0x4cb   : > { %8482 = vst.msk [vmem:[#allocation3 + $0x38] sm:$0xff] %vm264_vm12, %v33579_v10  ;;  %v29300_v21 = vadd.f32 %v8285_v51, %v4754_v61  ;;  %v8584_v14 = vsel %vm34700_vm1, %v29295_v59, 0.0  ;;  %vm34707_vm1 = vnez %v34425_v13 }
 0x4cc   : > { %34698 = vst [vmem:[#allocation90_spill] sm:$0xff] %v29293_v32  ;;  %v33577_v39 = vmax.f32 %v29293_v32, 0.0  ;;  %23765 = vmatprep.mubr.msk.f32.mxu0 %vm264_vm12, %v8584_v14  ;;  %v4756_v63 = vadd.f32 %v29234_v34, %v34704_v31 }
 0x4cd   : > { %34699 = vst [vmem:[#allocation101_spill] sm:$0xff] %v29300_v21  ;;  %v33578_v22 = vmax.f32 %v29300_v21, 0.0  ;;  %v23726_v58 = vpop.f32.mrb[40].mxu1  ;;  %23766 = vmatmul.mubr.msk.f32.gmra.mrb[34].mxu0 %vm264_vm12, %v29310_v6 }
 0x4ce   : > { %8485 = vst.msk [vmem:[#allocation3 + $0x50] sm:$0xff] %vm264_vm12, %v33577_v39  ;;  %v29321_v9 = vadd.f32 %v23726_v58, %v4757_v57  ;;  %v8295_v35 = vpop.f32.mrb[41].mxu1  ;;  %v29323_v61 = vld [vmem:[#allocation3 + $0x27] sm:$0xff]  ;;  %v34709_v57 = vmax.f32 %v34708_v29, 0.0  ;;  %v29338_v17 = vld [vmem:[#allocation3 + $0x2f] sm:$0xff] }
 0x4cf   : > { %8484 = vst.msk [vmem:[#allocation3 + $0x48] sm:$0xff] %vm264_vm12, %v33578_v22  ;;  %v29328_v51 = vadd.f32 %v8295_v35, %v4756_v63  ;;  %v8586_v14 = vsel %vm34707_vm1, %v29323_v61, 0.0  ;;  %v34710_v63 = vld [vmem:[#allocation31_spill] sm:$0xff]  ;;  %vm34714_vm1 = vnez %v34428_v38 }
 0x4d0   : > { %34705 = vst [vmem:[#allocation102_spill] sm:$0xff] %v29321_v9  ;;  %v33580_v26 = vmax.f32 %v29321_v9, 0.0  ;;  %23768 = vmatprep.mubr.msk.f32.mxu0 %vm264_vm12, %v8586_v14  ;;  %v4759_v58 = vadd.f32 %v29234_v34, %v34709_v57  ;;  %v34711_v35 = vmax.f32 %v34710_v63, 0.0 }
 0x4d1   : > { %34706 = vst [vmem:[#allocation71_spill] sm:$0xff] %v29328_v51  ;;  %v33584_v31 = vmax.f32 %v29328_v51, 0.0  ;;  %v23729_v39 = vpop.f32.mrb[42].mxu1  ;;  %23769 = vmatmul.mubr.msk.f32.gmra.mrb[36].mxu0 %vm264_vm12, %v29338_v17 }
 0x4d2   : > { %v4758_v22 = vadd.f32 %v29234_v34, %v34711_v35  ;;  %8487 = vst.msk [vmem:[#allocation3 + $0x60] sm:$0xff] %vm264_vm12, %v33580_v26  ;;  %v29349_v14 = vadd.f32 %v23729_v39, %v4759_v58  ;;  %v8305_v29 = vpop.f32.mrb[43].mxu1  ;;  %v29351_v57 = vld [vmem:[#allocation3 + $0x37] sm:$0xff]  ;;  %v34715_v26 = vld [vmem:[#allocation35_spill] sm:$0xff]  ;;  %v29366_v41 = vld [vmem:[#allocation3 + $0x3f] sm:$0xff] }
 0x4d3   : > { %8486 = vst.msk [vmem:[#allocation3 + $0x58] sm:$0xff] %vm264_vm12, %v33584_v31  ;;  %v8588_v63 = vsel %vm34714_vm1, %v29351_v57, 0.0  ;;  %v34716_v39 = vmax.f32 %v34715_v26, 0.0  ;;  %vm34721_vm1 = vnez %v34431_v24 }
 0x4d4   : > { %34712 = vst [vmem:[#allocation6_spill] sm:$0xff] %v29349_v14  ;;  %v29356_v10 = vadd.f32 %v8305_v29, %v4758_v22  ;;  %v33586_v35 = vmax.f32 %v29349_v14, 0.0  ;;  %23771 = vmatprep.mubr.msk.f32.mxu0 %vm264_vm12, %v8588_v63  ;;  %v34717_v22 = vld [vmem:[#allocation41_spill] sm:$0xff] }
 0x4d5   : > { %v4761_v58 = vadd.f32 %v29234_v34, %v34716_v39  ;;  %v23732_v53 = vpop.f32.mrb[44].mxu1  ;;  %23772 = vmatmul.mubr.msk.f32.gmra.mrb[38].mxu0 %vm264_vm12, %v29366_v41  ;;  %v34718_v29 = vmax.f32 %v34717_v22, 0.0 }
 0x4d6   : > { %34713 = vst [vmem:[#allocation7_spill] sm:$0xff] %v29356_v10  ;;  %v33590_v16 = vmax.f32 %v29356_v10, 0.0  ;;  %8489 = vst.msk [vmem:[#allocation3 + $0x70] sm:$0xff] %vm264_vm12, %v33586_v35  ;;  %v8315_v26 = vpop.f32.mrb[45].mxu1  ;;  %v29379_v39 = vld [vmem:[#allocation3 + $0x47] sm:$0xff]  ;;  %v29394_v25 = vld [vmem:[#allocation3 + $0x4f] sm:$0xff] }
 0x4d7   : > { %v4760_v31 = vadd.f32 %v29234_v34, %v34718_v29  ;;  %v29377_v63 = vadd.f32 %v23732_v53, %v4761_v58  ;;  %v8590_v22 = vsel %vm34721_vm1, %v29379_v39, 0.0  ;;  %v34722_v35 = vld [vmem:[#allocation38_spill] sm:$0xff]  ;;  %vm34728_vm1 = vnez %v34434_v43 }
 0x4d8   : > { %8488 = vst.msk [vmem:[#allocation3 + $0x68] sm:$0xff] %vm264_vm12, %v33590_v16  ;;  %23774 = vmatprep.mubr.msk.f32.mxu0 %vm264_vm12, %v8590_v22  ;;  %v34723_v53 = vmax.f32 %v34722_v35, 0.0 }
 0x4d9   : > { %34719 = vst [vmem:[#allocation8_spill] sm:$0xff] %v29377_v63  ;;  %v29384_v42 = vadd.f32 %v8315_v26, %v4760_v31  ;;  %v33592_v29 = vmax.f32 %v29377_v63, 0.0  ;;  %v23735_v14 = vpop.f32.mrb[46].mxu1  ;;  %23775 = vmatmul.mubr.msk.f32.gmra.mrb[40].mxu0 %vm264_vm12, %v29394_v25  ;;  %v34724_v31 = vld [vmem:[#allocation47_spill] sm:$0xff] }
 0x4da   : > { %v4763_v58 = vadd.f32 %v29234_v34, %v34723_v53  ;;  %v34725_v26 = vmax.f32 %v34724_v31, 0.0  ;;  %v8325_v35 = vpop.f32.mrb[47].mxu1  ;;  %v29407_v53 = vld [vmem:[#allocation3 + $0x57] sm:$0xff]  ;;  %v29422_v63 = vld [vmem:[#allocation3 + $0x5f] sm:$0xff] }
 0x4db   : > { %34720 = vst [vmem:[#allocation9_spill] sm:$0xff] %v29384_v42  ;;  %v33596_v10 = vmax.f32 %v29384_v42, 0.0  ;;  %8491 = vst.msk [vmem:[#allocation3 + $0x80] sm:$0xff] %vm264_vm12, %v33592_v29  ;;  %v8592_v31 = vsel %vm34728_vm1, %v29407_v53, 0.0  ;;  %v34729_v29 = vld [vmem:[#allocation49_spill] sm:$0xff] }
 0x4dc   : > { %v4762_v16 = vadd.f32 %v29234_v34, %v34725_v26  ;;  %v29405_v22 = vadd.f32 %v23735_v14, %v4763_v58  ;;  %23777 = vmatprep.mubr.msk.f32.mxu0 %vm264_vm12, %v8592_v31  ;;  %v34730_v14 = vmax.f32 %v34729_v29, 0.0  ;;  %v29854_v60 = vld [vmem:[#allocation3 + $0x59] sm:$0xff] }
 0x4dd   : > { %8490 = vst.msk [vmem:[#allocation3 + $0x78] sm:$0xff] %vm264_vm12, %v33596_v10  ;;  %v23738_v9 = vpop.f32.mrb[48].mxu1  ;;  %23778 = vmatmul.mubr.msk.f32.gmra.mrb[42].mxu0 %vm264_vm12, %v29422_v63 }
 0x4de   : > { %34726 = vst [vmem:[#allocation10_spill] sm:$0xff] %v29405_v22  ;;  %v29412_v51 = vadd.f32 %v8325_v35, %v4762_v16  ;;  %v33598_v26 = vmax.f32 %v29405_v22, 0.0  ;;  %v4765_v58 = vadd.f32 %v29234_v34, %v34730_v14  ;;  %v34731_v16 = vld [vmem:[#allocation52_spill] sm:$0xff]  ;;  %v8335_v29 = vpop.f32.mrb[49].mxu1 }
 0x4df   : > { %v34732_v35 = vmax.f32 %v34731_v16, 0.0  ;;  %v29435_v14 = vld [vmem:[#allocation3 + $0x67] sm:$0xff]  ;;  %v29450_v22 = vld [vmem:[#allocation3 + $0x6f] sm:$0xff] }
 0x4e0   : > { %34727 = vst [vmem:[#allocation11_spill] sm:$0xff] %v29412_v51  ;;  %v33602_v42 = vmax.f32 %v29412_v51, 0.0  ;;  %8493 = vst.msk [vmem:[#allocation3 + $0x90] sm:$0xff] %vm264_vm12, %v33598_v26  ;;  %v29433_v31 = vadd.f32 %v23738_v9, %v4765_v58  ;;  %v8594_v16 = vsel %vm34605_vm5, %v29435_v14, 0.0  ;;  %v34735_v26 = vld [vmem:[#allocation53_spill] sm:$0xff] }
 0x4e1   : > { %v4764_v10 = vadd.f32 %v29234_v34, %v34732_v35  ;;  %23780 = vmatprep.mubr.msk.f32.mxu0 %vm264_vm12, %v8594_v16  ;;  %v34736_v9 = vmax.f32 %v34735_v26, 0.0  ;;  %v23741_v32 = vpop.f32.mrb[50].mxu1 }
 0x4e2   : > { %34733 = vst [vmem:[#allocation12_spill] sm:$0xff] %v29433_v31  ;;  %8492 = vst.msk [vmem:[#allocation3 + $0x88] sm:$0xff] %vm264_vm12, %v33602_v42  ;;  %v33604_v35 = vmax.f32 %v29433_v31, 0.0  ;;  %23781 = vmatmul.mubr.msk.f32.gmra.mrb[44].mxu0 %vm264_vm12, %v29450_v22  ;;  %v8345_v26 = vpop.f32.mrb[51].mxu1 }
 0x4e3   : > { %v29440_v21 = vadd.f32 %v8335_v29, %v4764_v10  ;;  %v4767_v58 = vadd.f32 %v29234_v34, %v34736_v9  ;;  %v34737_v10 = vld [vmem:[#allocation56_spill] sm:$0xff] }
 0x4e4   : > { %v34738_v29 = vmax.f32 %v34737_v10, 0.0  ;;  %8495 = vst.msk [vmem:[#allocation3 + $0xa0] sm:$0xff] %vm264_vm12, %v33604_v35  ;;  %v29463_v9 = vld [vmem:[#allocation3 + $0x77] sm:$0xff]  ;;  %v34741_v35 = vld [vmem:[#allocation58_spill] sm:$0xff]  ;;  %34824 = vst [vmem:[#allocation56_spill] sm:$0xff] %v29854_v60 }
 0x4e5   : > { %34734 = vst [vmem:[#allocation72_spill] sm:$0xff] %v29440_v21  ;;  %v33608_v51 = vmax.f32 %v29440_v21, 0.0  ;;  %v29461_v16 = vadd.f32 %v23741_v32, %v4767_v58  ;;  %v8596_v10 = vsel %vm34606_vm15, %v29463_v9, 0.0  ;;  %v34742_v32 = vmax.f32 %v34741_v35, 0.0  ;;  %v29478_v31 = vld [vmem:[#allocation3 + $0x7f] sm:$0xff]  ;;  %v23744_v0 = vpop.f32.mrb[52].mxu1 }
 0x4e6   : > { %v4766_v42 = vadd.f32 %v29234_v34, %v34738_v29  ;;  %23783 = vmatprep.mubr.msk.f32.mxu0 %vm264_vm12, %v8596_v10  ;;  %v8355_v35 = vpop.f32.mrb[53].mxu1  ;;  %vm34747_vm15 = vnez %v34443_v48 }
 0x4e7   : > { %34739 = vst [vmem:[#allocation73_spill] sm:$0xff] %v29461_v16  ;;  %8494 = vst.msk [vmem:[#allocation3 + $0x98] sm:$0xff] %vm264_vm12, %v33608_v51  ;;  %v33611_v29 = vmax.f32 %v29461_v16, 0.0  ;;  %v4769_v58 = vadd.f32 %v29234_v34, %v34742_v32  ;;  %23784 = vmatmul.mubr.msk.f32.gmra.mrb[46].mxu0 %vm264_vm12, %v29478_v31 }
 0x4e8   : > { %v29468_v2 = vadd.f32 %v8345_v26, %v4766_v42  ;;  %v34743_v42 = vld [vmem:[#allocation59_spill] sm:$0xff] }
 0x4e9   : > { %v34744_v26 = vmax.f32 %v34743_v42, 0.0  ;;  %8497 = vst.msk [vmem:[#allocation3 + $0xb0] sm:$0xff] %vm264_vm12, %v33611_v29  ;;  %v29489_v10 = vadd.f32 %v23744_v0, %v4769_v58  ;;  %v29491_v32 = vld [vmem:[#allocation3 + $0x87] sm:$0xff]  ;;  %v34748_v29 = vld [vmem:[#allocation61_spill] sm:$0xff]  ;;  %v29506_v16 = vld [vmem:[#allocation3 + $0x8f] sm:$0xff]  ;;  %v23747_v56 = vpop.f32.mrb[54].mxu1 }
 0x4ea   : > { %34740 = vst [vmem:[#allocation74_spill] sm:$0xff] %v29468_v2  ;;  %v33615_v21 = vmax.f32 %v29468_v2, 0.0  ;;  %v8598_v42 = vsel %vm34747_vm15, %v29491_v32, 0.0  ;;  %v34749_v0 = vmax.f32 %v34748_v29, 0.0  ;;  %v8365_v29 = vpop.f32.mrb[55].mxu1  ;;  %vm34754_vm15 = vnez %v34523_v20  ;;  %v29884_v54 = vld [vmem:[#allocation3 + $0x89] sm:$0xff] }
 0x4eb   : > { %v4768_v51 = vadd.f32 %v29234_v34, %v34744_v26  ;;  %34745 = vst [vmem:[#allocation75_spill] sm:$0xff] %v29489_v10  ;;  %v33617_v26 = vmax.f32 %v29489_v10, 0.0  ;;  %23786 = vmatprep.mubr.msk.f32.mxu0 %vm264_vm12, %v8598_v42  ;;  %34828 = vst [vmem:[#allocation61_spill] sm:$0xff] %v29884_v54 }
 0x4ec   : > { %8496 = vst.msk [vmem:[#allocation3 + $0xa8] sm:$0xff] %vm264_vm12, %v33615_v21  ;;  %v4771_v58 = vadd.f32 %v29234_v34, %v34749_v0  ;;  %23787 = vmatmul.mubr.msk.f32.gmra.mrb[48].mxu0 %vm264_vm12, %v29506_v16 }
 0x4ed   : > { %v29496_v30 = vadd.f32 %v8355_v35, %v4768_v51  ;;  %v34750_v51 = vld [vmem:[#allocation63_spill] sm:$0xff]  ;;  %8499 = vst.msk [vmem:[#allocation3 + $0xc0] sm:$0xff] %vm264_vm12, %v33617_v26  ;;  %v34755_v26 = vld [vmem:[#allocation64_spill] sm:$0xff]  ;;  %v23750_v11 = vpop.f32.mrb[56].mxu1 }
 0x4ee   : > { %v34751_v35 = vmax.f32 %v34750_v51, 0.0  ;;  %v29517_v42 = vadd.f32 %v23747_v56, %v4771_v58  ;;  %v29519_v0 = vld [vmem:[#allocation3 + $0x97] sm:$0xff]  ;;  %v34756_v56 = vmax.f32 %v34755_v26, 0.0  ;;  %v29534_v10 = vld [vmem:[#allocation3 + $0x9f] sm:$0xff]  ;;  %v8375_v26 = vpop.f32.mrb[57].mxu1 }
 0x4ef   : > { %34746 = vst [vmem:[#allocation76_spill] sm:$0xff] %v29496_v30  ;;  %v33621_v2 = vmax.f32 %v29496_v30, 0.0  ;;  %v8600_v51 = vsel %vm34754_vm15, %v29519_v0, 0.0  ;;  %34757 = vst [vmem:[#allocation79_spill] sm:$0xff] %v29534_v10  ;;  %vm34762_vm15 = vnez %v34526_v27 }
 0x4f0   : > { %v4770_v21 = vadd.f32 %v29234_v34, %v34751_v35  ;;  %34752 = vst [vmem:[#allocation77_spill] sm:$0xff] %v29517_v42  ;;  %v33623_v35 = vmax.f32 %v29517_v42, 0.0  ;;  %23789 = vmatprep.mubr.msk.f32.mxu0 %vm264_vm12, %v8600_v51  ;;  %v4773_v58 = vadd.f32 %v29234_v34, %v34756_v56 }
 0x4f1   : > { %8498 = vst.msk [vmem:[#allocation3 + $0xb8] sm:$0xff] %vm264_vm12, %v33621_v2  ;;  %23790 = vmatmul.mubr.msk.f32.gmra.mrb[50].mxu0 %vm264_vm12, %v29534_v10  ;;  %v23753_v10 = vpop.f32.mrb[58].mxu1 }
 0x4f2   : > { %v29524_v55 = vadd.f32 %v8365_v29, %v4770_v21  ;;  %v34758_v21 = vld [vmem:[#allocation68_spill] sm:$0xff]  ;;  %8501 = vst.msk [vmem:[#allocation3 + $0xd0] sm:$0xff] %vm264_vm12, %v33623_v35  ;;  %v29545_v51 = vadd.f32 %v23750_v11, %v4773_v58  ;;  %v34763_v35 = vld [vmem:[#allocation37_spill] sm:$0xff] }
 0x4f3   : > { %v34759_v29 = vmax.f32 %v34758_v21, 0.0  ;;  %v29547_v56 = vld [vmem:[#allocation3 + $0xa7] sm:$0xff]  ;;  %v34764_v11 = vmax.f32 %v34763_v35, 0.0  ;;  %v29562_v42 = vld [vmem:[#allocation3 + $0xaf] sm:$0xff]  ;;  %v8385_v35 = vpop.f32.mrb[59].mxu1 }
 0x4f4   : > { %34753 = vst [vmem:[#allocation78_spill] sm:$0xff] %v29524_v55  ;;  %v33628_v30 = vmax.f32 %v29524_v55, 0.0  ;;  %34760 = vst [vmem:[#allocation80_spill] sm:$0xff] %v29545_v51  ;;  %v8602_v21 = vsel %vm34762_vm15, %v29547_v56, 0.0  ;;  %vm34770_vm15 = vnez %v34528_v49  ;;  %v29904_v46 = vld [vmem:[#allocation3 + $0xa9] sm:$0xff] }
 0x4f5   : > { %v4772_v2 = vadd.f32 %v29234_v34, %v34759_v29  ;;  %v33630_v29 = vmax.f32 %v29545_v51, 0.0  ;;  %23792 = vmatprep.mubr.msk.f32.mxu0 %vm264_vm12, %v8602_v21  ;;  %v4775_v58 = vadd.f32 %v29234_v34, %v34764_v11  ;;  %34765 = vst [vmem:[#allocation84_spill] sm:$0xff] %v29562_v42  ;;  %34830 = vst [vmem:[#allocation64_spill] sm:$0xff] %v29904_v46 }
 0x4f6   : > { %8500 = vst.msk [vmem:[#allocation3 + $0xc8] sm:$0xff] %vm264_vm12, %v33628_v30  ;;  %23793 = vmatmul.mubr.msk.f32.gmra.mrb[52].mxu0 %vm264_vm12, %v29562_v42  ;;  %v23756_v42 = vpop.f32.mrb[60].mxu1 }
 0x4f7   : > { %v29552_v20 = vadd.f32 %v8375_v26, %v4772_v2  ;;  %v34766_v2 = vld [vmem:[#allocation32_spill] sm:$0xff]  ;;  %8503 = vst.msk [vmem:[#allocation3 + $0xe0] sm:$0xff] %vm264_vm12, %v33630_v29  ;;  %v29573_v21 = vadd.f32 %v23753_v10, %v4775_v58 }
 0x4f8   : > { %v34767_v26 = vmax.f32 %v34766_v2, 0.0  ;;  %v29575_v11 = vld [vmem:[#allocation3 + $0xb7] sm:$0xff]  ;;  %v29590_v51 = vld [vmem:[#allocation3 + $0xbf] sm:$0xff] }
 0x4f9   : > { %34761 = vst [vmem:[#allocation82_spill] sm:$0xff] %v29552_v20  ;;  %v33635_v55 = vmax.f32 %v29552_v20, 0.0  ;;  %34768 = vst [vmem:[#allocation85_spill] sm:$0xff] %v29573_v21  ;;  %v8604_v2 = vsel %vm34770_vm15, %v29575_v11, 0.0  ;;  %v34771_v29 = vld [vmem:[#allocation40_spill] sm:$0xff]  ;;  %vm34778_vm15 = vnez %v34333_v28  ;;  %v29914_v36 = vld [vmem:[#allocation3 + $0xb9] sm:$0xff] }
 0x4fa   : > { %v4774_v30 = vadd.f32 %v29234_v34, %v34767_v26  ;;  %v33637_v26 = vmax.f32 %v29573_v21, 0.0  ;;  %23795 = vmatprep.mubr.msk.f32.mxu0 %vm264_vm12, %v8604_v2  ;;  %v34772_v10 = vmax.f32 %v34771_v29, 0.0  ;;  %34773 = vst [vmem:[#allocation87_spill] sm:$0xff] %v29590_v51  ;;  %v8395_v29 = vpop.f32.mrb[61].mxu1  ;;  %34831 = vst [vmem:[#allocation68_spill] sm:$0xff] %v29914_v36 }
 0x4fb   : > { %8502 = vst.msk [vmem:[#allocation3 + $0xd8] sm:$0xff] %vm264_vm12, %v33635_v55  ;;  %23796 = vmatmul.mubr.msk.f32.gmra.mrb[54].mxu0 %vm264_vm12, %v29590_v51  ;;  %v23759_v51 = vpop.f32.mrb[62].mxu1 }
 0x4fc   : > { %v29580_v27 = vadd.f32 %v8385_v35, %v4774_v30  ;;  %v4777_v58 = vadd.f32 %v29234_v34, %v34772_v10  ;;  %v34774_v30 = vld [vmem:[#allocation43_spill] sm:$0xff]  ;;  %8505 = vst.msk [vmem:[#allocation3 + $0xf0] sm:$0xff] %vm264_vm12, %v33637_v26  ;;  %v34779_v26 = vld [vmem:[#allocation45_spill] sm:$0xff] }
 0x4fd   : > { %v34775_v35 = vmax.f32 %v34774_v30, 0.0  ;;  %v29603_v10 = vld [vmem:[#allocation3 + $0xc7] sm:$0xff]  ;;  %v29618_v21 = vld [vmem:[#allocation3 + $0xcf] sm:$0xff] }
 0x4fe   : > { %34769 = vst [vmem:[#allocation86_spill] sm:$0xff] %v29580_v27  ;;  %v33642_v20 = vmax.f32 %v29580_v27, 0.0  ;;  %v29601_v2 = vadd.f32 %v23756_v42, %v4777_v58  ;;  %v8606_v30 = vsel %vm34778_vm15, %v29603_v10, 0.0  ;;  %v34780_v42 = vmax.f32 %v34779_v26, 0.0  ;;  %v8405_v26 = vpop.f32.mrb[63].mxu1  ;;  %v29924_v40 = vld [vmem:[#allocation3 + $0xc9] sm:$0xff] }
 0x4ff   : > { %v4776_v55 = vadd.f32 %v29234_v34, %v34775_v35  ;;  %23798 = vmatprep.mubr.msk.f32.mxu0 %vm264_vm12, %v8606_v30  ;;  %vm34786_vm15 = vnez %v34531_v5  ;;  %34832 = vst [vmem:[#allocation37_spill] sm:$0xff] %v29924_v40 }
 0x500   : > { %34776 = vst [vmem:[#allocation88_spill] sm:$0xff] %v29601_v2  ;;  %8504 = vst.msk [vmem:[#allocation3 + $0xe8] sm:$0xff] %vm264_vm12, %v33642_v20  ;;  %v33648_v35 = vmax.f32 %v29601_v2, 0.0  ;;  %v4779_v58 = vadd.f32 %v29234_v34, %v34780_v42  ;;  %23799 = vmatmul.mubr.msk.f32.gmra.mrb[56].mxu0 %vm264_vm12, %v29618_v21  ;;  %v29711_v2 = vld [vmem:[#allocation3 + $0x50] sm:$0xff] }
 0x501   : > { %v29608_v49 = vadd.f32 %v8395_v29, %v4776_v55  ;;  %v34781_v55 = vld [vmem:[#allocation46_spill] sm:$0xff]  ;;  %34793 = vst [vmem:[#allocation97_spill] sm:$0xff] %v29711_v2 }
 0x502   : > { %v34782_v29 = vmax.f32 %v34781_v55, 0.0  ;;  %8507 = vst.msk [vmem:[#allocation3 + $0x100] sm:$0xff] %vm264_vm12, %v33648_v35  ;;  %v29629_v30 = vadd.f32 %v23759_v51, %v4779_v58  ;;  %v29631_v42 = vld [vmem:[#allocation3 + $0xd7] sm:$0xff] }
 0x503   : > { %34777 = vst [vmem:[#allocation89_spill] sm:$0xff] %v29608_v49  ;;  %v33646_v27 = vmax.f32 %v29608_v49, 0.0  ;;  %v8608_v55 = vsel %vm34610_vm6, %v29631_v42, 0.0  ;;  %vm34785_vm6 = vnez %v34347_v4  ;;  %v29678_v35 = vld [vmem:[%s33208_s3 + $0x60] sm:$0xff]  ;;  %v29707_v49 = vld [vmem:[#allocation3 + $0x48] sm:$0xff]  ;;  %v29934_v3 = vld [vmem:[#allocation3 + $0xd9] sm:$0xff] }
 0x504   : > { %v4778_v20 = vadd.f32 %v29234_v34, %v34782_v29  ;;  %34783 = vst [vmem:[#allocation66_spill] sm:$0xff] %v29629_v30  ;;  %v33645_v34 = vmax.f32 %v29629_v30, 0.0  ;;  %23801 = vmatprep.mubr.msk.f32.mxu0 %vm264_vm12, %v8608_v55  ;;  %v29643_v29 = vld [vmem:[#allocation3 + $0xdf] sm:$0xff]  ;;  %34792 = vst [vmem:[#allocation96_spill] sm:$0xff] %v29707_v49 }
 0x505   : > { %8506 = vst.msk [vmem:[#allocation3 + $0xf8] sm:$0xff] %vm264_vm12, %v33646_v27  ;;  %23802 = vmatmul.mubr.msk.f32.gmra.mrb[58].mxu0 %vm264_vm12, %v29643_v29  ;;  %v8969_v27 = vld [vmem:[#allocation3 + $0x8] sm:$0xff]  ;;  %v29703_v30 = vld [vmem:[#allocation3 + $0x40] sm:$0xff]  ;;  %34833 = vst [vmem:[#allocation32_spill] sm:$0xff] %v29934_v3 }
 0x506   : > { %v29636_v28 = vadd.f32 %v8405_v26, %v4778_v20  ;;  %8509 = vst.msk [vmem:[#allocation3 + $0x110] sm:$0xff] %vm264_vm12, %v33645_v34  ;;  %34791 = vst [vmem:[#allocation95_spill] sm:$0xff] %v29703_v30 }
 0x507   : > { %v29651_v20 = vld [vmem:[#allocation3 + $0xe7] sm:$0xff]  ;;  %v29660_v26 = vld [vmem:[#allocation3 + $0xef] sm:$0xff] }
 0x508   : > { %34784 = vst [vmem:[#allocation39_spill] sm:$0xff] %v29636_v28  ;;  %v33647_v51 = vmax.f32 %v29636_v28, 0.0  ;;  %v8610_v58 = vsel %vm34785_vm6, %v29651_v20, 0.0  ;;  %v29681_v28 = vld [vmem:[#allocation3 + $0x18] sm:$0xff]  ;;  %v29944_v18 = vld [vmem:[#allocation3 + $0xe9] sm:$0xff] }
 0x509   : > { %23804 = vmatprep.mubr.msk.f32.mxu0 %vm264_vm12, %v8610_v58  ;;  %v8970_v58 = vld [vmem:[#allocation3 + $0x10] sm:$0xff] }
 0x50a   : > { %8508 = vst.msk [vmem:[#allocation3 + $0x108] sm:$0xff] %vm264_vm12, %v33647_v51  ;;  %23805 = vmatmul.mubr.msk.f32.gmra.mrb[60].mxu0 %vm264_vm12, %v29660_v26 }
 0x50c   : > { %v29664_v55 = vld [vmem:[#allocation3 + $0xf7] sm:$0xff]  ;;  %v29670_v51 = vld [vmem:[#allocation3 + $0xff] sm:$0xff] }
 0x50d   : > { %v8612_v34 = vsel %vm34786_vm15, %v29664_v55, 0.0  ;;  %vm34816_vm15 = vnez %v34640_v8  ;;  %v29834_v8 = vld [vmem:[#allocation3 + $0x39] sm:$0xff] }
 0x50e   : > { %23807 = vmatprep.mubr.msk.f32.mxu0 %vm264_vm12, %v8612_v34  ;;  %v29687_v34 = vld [vmem:[#allocation3 + $0x20] sm:$0xff]  ;;  %34820 = vst [vmem:[#allocation52_spill] sm:$0xff] %v29834_v8 }
 0x50f   : > { %23808 = vmatmul.mubr.msk.f32.gmra.mrb[62].mxu0 %vm264_vm12, %v29670_v51  ;;  %34787 = vst [vmem:[#allocation91_spill] sm:$0xff] %v29687_v34  ;;  %v29954_v1 = vld [vmem:[#allocation3 + $0xf9] sm:$0xff] }
 0x510   : > { %23812 = vmatprep.mubr.msk.f32.mxu0 %vm264_vm12, %v8969_v27  ;;  %v29691_v27 = vld [vmem:[#allocation3 + $0x28] sm:$0xff]  ;;  %34835 = vst [vmem:[#allocation43_spill] sm:$0xff] %v29954_v1 }
 0x511   : > { %34788 = vst [vmem:[#allocation92_spill] sm:$0xff] %v29691_v27 }
 0x513   : > { %23813 = vmatmul.mubr.msk.f32.vlgmr.msra.gmra.mrb[32].mxu0 %vm264_vm12, %v8970_v58  ;;  %v29695_v58 = vld [vmem:[#allocation3 + $0x30] sm:$0xff] }
 0x514   : > { %23861 = vmatpush3.msra.mxu0 %v29228_v52  ;;  %23815 = vmatprep.mubr.msk.f32.mxu0 %vm264_vm12, %v29681_v28  ;;  %34789 = vst [vmem:[#allocation93_spill] sm:$0xff] %v29695_v58  ;;  %v29699_v52 = vld [vmem:[#allocation3 + $0x38] sm:$0xff] }
 0x515   : > { %23910 = vmatprep.subr.mxu0 %v29678_v35  ;;  %34790 = vst [vmem:[#allocation94_spill] sm:$0xff] %v29699_v52 }
 0x517   : > { %23816 = vmatmul.mubr.msk.f32.gmra.mrb[34].mxu0 %vm264_vm12, %v29687_v34  ;;  %v29814_v34 = vld [vmem:[#allocation3 + $0x21] sm:$0xff] }
 0x518   : > { %23818 = vmatprep.mubr.msk.f32.mxu0 %vm264_vm12, %v29691_v27  ;;  %v29799_v27 = vld [vmem:[#allocation3 + $0x100] sm:$0xff] }
 0x519   : > { %34815 = vst [vmem:[#allocation38_spill] sm:$0xff] %v29799_v27 }
 0x51b   : > { %23819 = vmatmul.mubr.msk.f32.gmra.mrb[36].mxu0 %vm264_vm12, %v29695_v58  ;;  %v29715_v58 = vld [vmem:[#allocation3 + $0x58] sm:$0xff] }
 0x51c   : > { %23821 = vmatprep.mubr.msk.f32.mxu0 %vm264_vm12, %v29699_v52  ;;  %34794 = vst [vmem:[#allocation98_spill] sm:$0xff] %v29715_v58  ;;  %v29719_v52 = vld [vmem:[#allocation3 + $0x60] sm:$0xff] }
 0x51d   : > { %34795 = vst [vmem:[#allocation99_spill] sm:$0xff] %v29719_v52 }
 0x51f   : > { %23822 = vmatmul.mubr.msk.f32.gmra.mrb[38].mxu0 %vm264_vm12, %v29703_v30  ;;  %v29723_v30 = vld [vmem:[#allocation3 + $0x68] sm:$0xff] }
 0x520   : > { %23824 = vmatprep.mubr.msk.f32.mxu0 %vm264_vm12, %v29707_v49  ;;  %34796 = vst [vmem:[#allocation100_spill] sm:$0xff] %v29723_v30  ;;  %v29727_v49 = vld [vmem:[#allocation3 + $0x70] sm:$0xff] }
 0x521   : > { %34797 = vst [vmem:[#allocation103_spill] sm:$0xff] %v29727_v49 }
 0x523   : > { %23825 = vmatmul.mubr.msk.f32.gmra.mrb[40].mxu0 %vm264_vm12, %v29711_v2  ;;  %v29731_v2 = vld [vmem:[#allocation3 + $0x78] sm:$0xff] }
 0x524   : > { %23827 = vmatprep.mubr.msk.f32.mxu0 %vm264_vm12, %v29715_v58  ;;  %34798 = vst [vmem:[#allocation104_spill] sm:$0xff] %v29731_v2  ;;  %v29735_v58 = vld [vmem:[#allocation3 + $0x80] sm:$0xff] }
 0x525   : > { %34799 = vst [vmem:[#allocation105_spill] sm:$0xff] %v29735_v58 }
 0x527   : > { %23828 = vmatmul.mubr.msk.f32.gmra.mrb[42].mxu0 %vm264_vm12, %v29719_v52  ;;  %v29739_v52 = vld [vmem:[#allocation3 + $0x88] sm:$0xff] }
 0x528   : > { %23830 = vmatprep.mubr.msk.f32.mxu0 %vm264_vm12, %v29723_v30  ;;  %34800 = vst [vmem:[#allocation44_spill] sm:$0xff] %v29739_v52  ;;  %v29743_v30 = vld [vmem:[#allocation3 + $0x90] sm:$0xff] }
 0x529   : > { %34801 = vst [vmem:[#allocation4_spill] sm:$0xff] %v29743_v30 }
 0x52b   : > { %23831 = vmatmul.mubr.msk.f32.gmra.mrb[44].mxu0 %vm264_vm12, %v29727_v49  ;;  %v29747_v49 = vld [vmem:[#allocation3 + $0x98] sm:$0xff] }
 0x52c   : > { %23833 = vmatprep.mubr.msk.f32.mxu0 %vm264_vm12, %v29731_v2  ;;  %34802 = vst [vmem:[#allocation22_spill] sm:$0xff] %v29747_v49  ;;  %v29751_v2 = vld [vmem:[#allocation3 + $0xa0] sm:$0xff] }
 0x52d   : > { %34803 = vst [vmem:[#allocation19_spill] sm:$0xff] %v29751_v2 }
 0x52f   : > { %23834 = vmatmul.mubr.msk.f32.gmra.mrb[46].mxu0 %vm264_vm12, %v29735_v58  ;;  %v29755_v58 = vld [vmem:[#allocation3 + $0xa8] sm:$0xff] }
 0x530   : > { %23836 = vmatprep.mubr.msk.f32.mxu0 %vm264_vm12, %v29739_v52  ;;  %34804 = vst [vmem:[#allocation18_spill] sm:$0xff] %v29755_v58  ;;  %v29759_v52 = vld [vmem:[#allocation3 + $0xb0] sm:$0xff] }
 0x531   : > { %34805 = vst [vmem:[#allocation27_spill] sm:$0xff] %v29759_v52 }
 0x533   : > { %23837 = vmatmul.mubr.msk.f32.gmra.mrb[48].mxu0 %vm264_vm12, %v29743_v30  ;;  %v29763_v30 = vld [vmem:[#allocation3 + $0xb8] sm:$0xff] }
 0x534   : > { %23839 = vmatprep.mubr.msk.f32.mxu0 %vm264_vm12, %v29747_v49  ;;  %34806 = vst [vmem:[#allocation28_spill] sm:$0xff] %v29763_v30  ;;  %v29767_v49 = vld [vmem:[#allocation3 + $0xc0] sm:$0xff] }
 0x535   : > { %34807 = vst [vmem:[#allocation23_spill] sm:$0xff] %v29767_v49 }
 0x537   : > { %23840 = vmatmul.mubr.msk.f32.gmra.mrb[50].mxu0 %vm264_vm12, %v29751_v2  ;;  %v29771_v2 = vld [vmem:[#allocation3 + $0xc8] sm:$0xff] }
 0x538   : > { %23842 = vmatprep.mubr.msk.f32.mxu0 %vm264_vm12, %v29755_v58  ;;  %34808 = vst [vmem:[#allocation25_spill] sm:$0xff] %v29771_v2  ;;  %v29775_v58 = vld [vmem:[#allocation3 + $0xd0] sm:$0xff] }
 0x539   : > { %34809 = vst [vmem:[#allocation33_spill] sm:$0xff] %v29775_v58 }
 0x53b   : > { %23843 = vmatmul.mubr.msk.f32.gmra.mrb[52].mxu0 %vm264_vm12, %v29759_v52  ;;  %v29779_v52 = vld [vmem:[#allocation3 + $0xd8] sm:$0xff] }
 0x53c   : > { %23845 = vmatprep.mubr.msk.f32.mxu0 %vm264_vm12, %v29763_v30  ;;  %34810 = vst [vmem:[#allocation34_spill] sm:$0xff] %v29779_v52  ;;  %v29783_v30 = vld [vmem:[#allocation3 + $0xe0] sm:$0xff] }
 0x53d   : > { %34811 = vst [vmem:[#allocation29_spill] sm:$0xff] %v29783_v30 }
 0x53f   : > { %23846 = vmatmul.mubr.msk.f32.gmra.mrb[54].mxu0 %vm264_vm12, %v29767_v49  ;;  %v29787_v49 = vld [vmem:[#allocation3 + $0xe8] sm:$0xff] }
 0x540   : > { %23848 = vmatprep.mubr.msk.f32.mxu0 %vm264_vm12, %v29771_v2  ;;  %34812 = vst [vmem:[#allocation31_spill] sm:$0xff] %v29787_v49  ;;  %v29791_v2 = vld [vmem:[#allocation3 + $0xf0] sm:$0xff] }
 0x541   : > { %34813 = vst [vmem:[#allocation35_spill] sm:$0xff] %v29791_v2 }
 0x543   : > { %23849 = vmatmul.mubr.msk.f32.gmra.mrb[56].mxu0 %vm264_vm12, %v29775_v58  ;;  %v29795_v58 = vld [vmem:[#allocation3 + $0xf8] sm:$0xff] }
 0x544   : > { %23851 = vmatprep.mubr.msk.f32.mxu0 %vm264_vm12, %v29779_v52  ;;  %34814 = vst [vmem:[#allocation41_spill] sm:$0xff] %v29795_v58  ;;  %v9355_v52 = vld [vmem:[#allocation3 + $0x9] sm:$0xff] }
 0x547   : > { %23852 = vmatmul.mubr.msk.f32.gmra.mrb[58].mxu0 %vm264_vm12, %v29783_v30  ;;  %v9356_v30 = vld [vmem:[#allocation3 + $0x11] sm:$0xff] }
 0x548   : > { %23854 = vmatprep.mubr.msk.f32.mxu0 %vm264_vm12, %v29787_v49  ;;  %v9388_v49 = vsel %vm34816_vm15, %v9356_v30, 0.0  ;;  %vm34818_vm15 = vnez %v34643_v7  ;;  %v29844_v7 = vld [vmem:[#allocation3 + $0x49] sm:$0xff] }
 0x549   : > { %v9390_v30 = vsel %vm34818_vm15, %v29814_v34, 0.0  ;;  %vm34821_vm15 = vnez %v34648_v44  ;;  %34822 = vst [vmem:[#allocation53_spill] sm:$0xff] %v29844_v7  ;;  %v29864_v44 = vld [vmem:[#allocation3 + $0x69] sm:$0xff] }
 0x54a   : > { %34825 = vst [vmem:[#allocation58_spill] sm:$0xff] %v29864_v44 }
 0x54b   : > { %23855 = vmatmul.mubr.msk.f32.gmra.mrb[60].mxu0 %vm264_vm12, %v29791_v2  ;;  %v29809_v2 = vld [vmem:[%s33208_s3 + $0x68] sm:$0xff] }
 0x54c   : > { %23857 = vmatprep.mubr.msk.f32.mxu0 %vm264_vm12, %v29795_v58  ;;  %v29812_v58 = vld [vmem:[#allocation3 + $0x19] sm:$0xff] }
 0x54d   : > { %34817 = vst [vmem:[#allocation47_spill] sm:$0xff] %v29812_v58 }
 0x54f   : > { %23858 = vmatmul.mubr.msk.f32.gmra.mrb[62].mxu0 %vm264_vm12, %v29799_v27 }
 0x550   : > { %23862 = vmatprep.mubr.msk.f32.mxu0 %vm264_vm12, %v9355_v52  ;;  %v29824_v52 = vld [vmem:[#allocation3 + $0x29] sm:$0xff] }
 0x551   : > { %34819 = vst [vmem:[#allocation49_spill] sm:$0xff] %v29824_v52 }
 0x553   : > { %23863 = vmatmul.mubr.msk.f32.vlgmr.msra.gmra.mrb[32].mxu0 %vm264_vm12, %v9388_v49  ;;  %v29826_v49 = vld [vmem:[#allocation3 + $0x31] sm:$0xff] }
 0x554   : > { %23911 = vmatpush3.msra.mxu0 %v29678_v35  ;;  %23865 = vmatprep.mubr.msk.f32.mxu0 %vm264_vm12, %v29812_v58  ;;  %v9392_v35 = vsel %vm34572_vm9, %v29826_v49, 0.0  ;;  %v29836_v58 = vld [vmem:[#allocation3 + $0x41] sm:$0xff]  ;;  %vm34823_vm9 = vnez %v34651_v45  ;;  %v29874_v45 = vld [vmem:[#allocation3 + $0x79] sm:$0xff] }
 0x555   : > { %23960 = vmatprep.subr.mxu0 %v29809_v2  ;;  %34827 = vst [vmem:[#allocation59_spill] sm:$0xff] %v29874_v45 }
 0x557   : > { %23866 = vmatmul.mubr.msk.f32.gmra.mrb[34].mxu0 %vm264_vm12, %v9390_v30  ;;  %v9394_v30 = vsel %vm34821_vm15, %v29836_v58, 0.0 }
 0x558   : > { %23868 = vmatprep.mubr.msk.f32.mxu0 %vm264_vm12, %v29824_v52  ;;  %v29846_v52 = vld [vmem:[#allocation3 + $0x51] sm:$0xff] }
 0x55b   : > { %23869 = vmatmul.mubr.msk.f32.gmra.mrb[36].mxu0 %vm264_vm12, %v9392_v35  ;;  %v9396_v35 = vsel %vm34823_vm9, %v29846_v52, 0.0  ;;  %vm34826_vm9 = vnez %v34656_v12  ;;  %v29894_v12 = vld [vmem:[#allocation3 + $0x99] sm:$0xff] }
 0x55c   : > { %23871 = vmatprep.mubr.msk.f32.mxu0 %vm264_vm12, %v29834_v8  ;;  %v29856_v8 = vld [vmem:[#allocation3 + $0x61] sm:$0xff]  ;;  %34829 = vst [vmem:[#allocation63_spill] sm:$0xff] %v29894_v12 }
 0x55f   : > { %23872 = vmatmul.mubr.msk.f32.gmra.mrb[38].mxu0 %vm264_vm12, %v9394_v30  ;;  %v9398_v30 = vsel %vm34502_vm14, %v29856_v8, 0.0 }
 0x560   : > { %23874 = vmatprep.mubr.msk.f32.mxu0 %vm264_vm12, %v29844_v7  ;;  %v29866_v7 = vld [vmem:[#allocation3 + $0x71] sm:$0xff] }
 0x563   : > { %23875 = vmatmul.mubr.msk.f32.gmra.mrb[40].mxu0 %vm264_vm12, %v9396_v35  ;;  %v9400_v35 = vsel %vm34826_vm9, %v29866_v7, 0.0 }
 0x564   : > { %23877 = vmatprep.mubr.msk.f32.mxu0 %vm264_vm12, %v29854_v60  ;;  %v29876_v60 = vld [vmem:[#allocation3 + $0x81] sm:$0xff] }
 0x567   : > { %23878 = vmatmul.mubr.msk.f32.gmra.mrb[42].mxu0 %vm264_vm12, %v9398_v30  ;;  %v9402_v30 = vsel %vm34660_vm4, %v29876_v60, 0.0 }
 0x568   : > { %23880 = vmatprep.mubr.msk.f32.mxu0 %vm264_vm12, %v29864_v44  ;;  %v29886_v44 = vld [vmem:[#allocation3 + $0x91] sm:$0xff] }
 0x56b   : > { %23881 = vmatmul.mubr.msk.f32.gmra.mrb[44].mxu0 %vm264_vm12, %v9400_v35  ;;  %v9404_v35 = vsel %vm34507_vm2, %v29886_v44, 0.0 }
 0x56c   : > { %23883 = vmatprep.mubr.msk.f32.mxu0 %vm264_vm12, %v29874_v45  ;;  %v29896_v45 = vld [vmem:[#allocation3 + $0xa1] sm:$0xff] }
 0x56f   : > { %23884 = vmatmul.mubr.msk.f32.gmra.mrb[46].mxu0 %vm264_vm12, %v9402_v30  ;;  %v9406_v30 = vsel %vm34665_vm8, %v29896_v45, 0.0 }
 0x570   : > { %23886 = vmatprep.mubr.msk.f32.mxu0 %vm264_vm12, %v29884_v54  ;;  %v29906_v54 = vld [vmem:[#allocation3 + $0xb1] sm:$0xff] }
 0x573   : > { %23887 = vmatmul.mubr.msk.f32.gmra.mrb[48].mxu0 %vm264_vm12, %v9404_v35  ;;  %v9408_v35 = vsel %vm34594_vm7, %v29906_v54, 0.0 }
 0x574   : > { %23889 = vmatprep.mubr.msk.f32.mxu0 %vm264_vm12, %v29894_v12  ;;  %v29916_v12 = vld [vmem:[#allocation3 + $0xc1] sm:$0xff] }
 0x577   : > { %23890 = vmatmul.mubr.msk.f32.gmra.mrb[50].mxu0 %vm264_vm12, %v9406_v30  ;;  %v9410_v30 = vsel %vm34512_vm11, %v29916_v12, 0.0 }
 0x578   : > { %23892 = vmatprep.mubr.msk.f32.mxu0 %vm264_vm12, %v29904_v46  ;;  %v29926_v46 = vld [vmem:[#allocation3 + $0xd1] sm:$0xff] }
 0x57b   : > { %23893 = vmatmul.mubr.msk.f32.gmra.mrb[52].mxu0 %vm264_vm12, %v9408_v35  ;;  %v9412_v35 = vsel %vm34599_vm10, %v29926_v46, 0.0 }
 0x57c   : > { %23895 = vmatprep.mubr.msk.f32.mxu0 %vm264_vm12, %v29914_v36  ;;  %v29936_v36 = vld [vmem:[#allocation3 + $0xe1] sm:$0xff] }
 0x57f   : > { %23896 = vmatmul.mubr.msk.f32.gmra.mrb[54].mxu0 %vm264_vm12, %v9410_v30  ;;  %v9414_v30 = vsel %vm34409_vm0, %v29936_v36, 0.0  ;;  %vm34837_vm0 = vnez %v34675_v50 }
 0x580   : > { %23898 = vmatprep.mubr.msk.f32.mxu0 %vm264_vm12, %v29924_v40  ;;  %v29946_v40 = vld [vmem:[#allocation3 + $0xf1] sm:$0xff]  ;;  %v9805_v15 = vsel %vm34837_vm0, %v29295_v59, 0.0  ;;  %vm34839_vm0 = vnez %v34425_v13 }
 0x581   : > { %34834 = vst [vmem:[#allocation40_spill] sm:$0xff] %v29946_v40 }
 0x583   : > { %23899 = vmatmul.mubr.msk.f32.gmra.mrb[56].mxu0 %vm264_vm12, %v9412_v35  ;;  %v9416_v35 = vsel %vm34517_vm3, %v29946_v40, 0.0  ;;  %vm34838_vm3 = vnez %v34175_v33 }
 0x584   : > { %23901 = vmatprep.mubr.msk.f32.mxu0 %vm264_vm12, %v29934_v3  ;;  %v29956_v3 = vld [vmem:[#allocation3 + $0x101] sm:$0xff]  ;;  %v9807_v19 = vsel %vm34838_vm3, %v29323_v61, 0.0  ;;  %vm34840_vm3 = vnez %v34428_v38 }
 0x585   : > { %34836 = vst [vmem:[#allocation45_spill] sm:$0xff] %v29956_v3  ;;  %v9811_v59 = vsel %vm34840_vm3, %v29379_v39, 0.0  ;;  %v34847_v39 = vld [vmem:[#allocation84_spill] sm:$0xff] }
 0x587   : > { %23902 = vmatmul.mubr.msk.f32.gmra.mrb[58].mxu0 %vm264_vm12, %v9414_v30  ;;  %v9418_v30 = vsel %vm27378_vm13, %v29956_v3, 0.0  ;;  %vm34841_vm13 = vnez %v34431_v24 }
 0x588   : > { %23904 = vmatprep.mubr.msk.f32.mxu0 %vm264_vm12, %v29944_v18 }
 0x58b   : > { %23905 = vmatmul.mubr.msk.f32.gmra.mrb[60].mxu0 %vm264_vm12, %v9416_v35  ;;  %v20641_v35 = vld [vmem:[%s33208_s3 + $0x70] sm:$0xff] }
 0x58c   : > { %23907 = vmatprep.mubr.msk.f32.mxu0 %vm264_vm12, %v29954_v1 }
 0x58f   : > { %23908 = vmatmul.mubr.msk.f32.gmra.mrb[62].mxu0 %vm264_vm12, %v9418_v30  ;;  %v34853_v30 = vld [vmem:[#allocation26_spill] sm:$0xff] }
 0x590   : > { %23912 = vmatprep.mubr.msk.f32.mxu0 %vm264_vm12, %v9805_v15  ;;  %v9809_v15 = vsel %vm34839_vm0, %v29351_v57, 0.0  ;;  %v34845_v57 = vld [vmem:[#allocation13_spill] sm:$0xff] }
 0x593   : > { %23913 = vmatmul.mubr.msk.f32.vlgmr.msra.gmra.mrb[32].mxu0 %vm264_vm12, %v29310_v6 }
 0x594   : > { %23961 = vmatpush3.msra.mxu0 %v29809_v2  ;;  %23915 = vmatprep.mubr.msk.f32.mxu0 %vm264_vm12, %v9807_v19  ;;  %v9813_v19 = vsel %vm34841_vm13, %v29407_v53, 0.0  ;;  %vm34842_vm13 = vnez %v34440_v62 }
 0x595   : > { %24010 = vmatprep.subr.mxu0 %v20641_v35  ;;  %v9819_v6 = vsel %vm34842_vm13, %v29491_v32, 0.0 }
 0x597   : > { %23916 = vmatmul.mubr.msk.f32.gmra.mrb[34].mxu0 %vm264_vm12, %v29338_v17  ;;  %v34844_v17 = vld [vmem:[#allocation79_spill] sm:$0xff] }
 0x598   : > { %23918 = vmatprep.mubr.msk.f32.mxu0 %vm264_vm12, %v9809_v15 }
 0x59b   : > { %23919 = vmatmul.mubr.msk.f32.gmra.mrb[36].mxu0 %vm264_vm12, %v29366_v41  ;;  %v9815_v41 = vsel %vm34728_vm1, %v29435_v14, 0.0  ;;  %vm34843_vm1 = vnez %v34443_v48  ;;  %v34850_v14 = vld [vmem:[#allocation87_spill] sm:$0xff] }
 0x59c   : > { %23921 = vmatprep.mubr.msk.f32.mxu0 %vm264_vm12, %v9811_v59  ;;  %v9821_v61 = vsel %vm34843_vm1, %v29519_v0, 0.0 }
 0x59f   : > { %23922 = vmatmul.mubr.msk.f32.gmra.mrb[38].mxu0 %vm264_vm12, %v29394_v25  ;;  %v9817_v25 = vsel %vm34605_vm5, %v29463_v9, 0.0  ;;  %vm34846_vm5 = vnez %v34845_v57  ;;  %v34851_v9 = vld [vmem:[#allocation20_spill] sm:$0xff] }
 0x5a0   : > { %23924 = vmatprep.mubr.msk.f32.mxu0 %vm264_vm12, %v9813_v19  ;;  %vm34852_vm1 = vnez %v34851_v9  ;;  %v9833_v19 = vsel %vm34785_vm6, %v29664_v55, 0.0 }
 0x5a1   : > { %v9827_v2 = vsel %vm34852_vm1, %v29603_v10, 0.0 }
 0x5a3   : > { %23925 = vmatmul.mubr.msk.f32.gmra.mrb[40].mxu0 %vm264_vm12, %v29422_v63  ;;  %v9823_v63 = vsel %vm34846_vm5, %v29547_v56, 0.0  ;;  %vm34854_vm5 = vnez %v34853_v30 }
 0x5a4   : > { %23927 = vmatprep.mubr.msk.f32.mxu0 %vm264_vm12, %v9815_v41  ;;  %v9829_v15 = vsel %vm34854_vm5, %v29631_v42, 0.0  ;;  %v30056_v41 = vld [vmem:[#allocation3 + $0x107] sm:$0xff]  ;;  %vm34856_vm5 = vnez %v34531_v5 }
 0x5a7   : > { %23928 = vmatmul.mubr.msk.f32.gmra.mrb[42].mxu0 %vm264_vm12, %v29450_v22  ;;  %v34848_v22 = vld [vmem:[#allocation16_spill] sm:$0xff] }
 0x5a8   : > { %23930 = vmatprep.mubr.msk.f32.mxu0 %vm264_vm12, %v9817_v25  ;;  %vm34849_vm13 = vnez %v34848_v22  ;;  %v9835_v25 = vsel %vm34856_vm5, %v30056_v41, 0.0 }
 0x5a9   : > { %v9825_v53 = vsel %vm34849_vm13, %v29575_v11, 0.0  ;;  %vm34855_vm13 = vnez %v34388_v47 }
 0x5aa   : > { %v9831_v59 = vsel %vm34855_vm13, %v29651_v20, 0.0 }
 0x5ab   : > { %23931 = vmatmul.mubr.msk.f32.gmra.mrb[44].mxu0 %vm264_vm12, %v29478_v31 }
 0x5ac   : > { %23933 = vmatprep.mubr.msk.f32.mxu0 %vm264_vm12, %v9819_v6  ;;  %v30064_v6 = vld [vmem:[#allocation3 + $0x10f] sm:$0xff] }
 0x5af   : > { %23934 = vmatmul.mubr.msk.f32.gmra.mrb[46].mxu0 %vm264_vm12, %v29506_v16 }
 0x5b0   : > { %23936 = vmatprep.mubr.msk.f32.mxu0 %vm264_vm12, %v9821_v61  ;;  %v20674_v61 = vld [vmem:[%s33208_s3 + $0x78] sm:$0xff] }
 0x5b3   : > { %23937 = vmatmul.mubr.msk.f32.gmra.mrb[48].mxu0 %vm264_vm12, %v34844_v17 }
 0x5b4   : > { %23939 = vmatprep.mubr.msk.f32.mxu0 %vm264_vm12, %v9823_v63  ;;  %v34857_v63 = vld [vmem:[#allocation91_spill] sm:$0xff] }
 0x5b7   : > { %23940 = vmatmul.mubr.msk.f32.gmra.mrb[50].mxu0 %vm264_vm12, %v34847_v39 }
 0x5b8   : > { %23942 = vmatprep.mubr.msk.f32.mxu0 %vm264_vm12, %v9825_v53  ;;  %v34858_v53 = vld [vmem:[#allocation92_spill] sm:$0xff] }
 0x5bb   : > { %23943 = vmatmul.mubr.msk.f32.gmra.mrb[52].mxu0 %vm264_vm12, %v34850_v14 }
 0x5bc   : > { %23945 = vmatprep.mubr.msk.f32.mxu0 %vm264_vm12, %v9827_v2  ;;  %v34859_v2 = vld [vmem:[#allocation93_spill] sm:$0xff] }
 0x5bf   : > { %23946 = vmatmul.mubr.msk.f32.gmra.mrb[54].mxu0 %vm264_vm12, %v29618_v21 }
 0x5c0   : > { %23948 = vmatprep.mubr.msk.f32.mxu0 %vm264_vm12, %v9829_v15  ;;  %v34860_v15 = vld [vmem:[#allocation94_spill] sm:$0xff] }
 0x5c3   : > { %23949 = vmatmul.mubr.msk.f32.gmra.mrb[56].mxu0 %vm264_vm12, %v29643_v29 }
 0x5c4   : > { %23951 = vmatprep.mubr.msk.f32.mxu0 %vm264_vm12, %v9831_v59  ;;  %v34861_v59 = vld [vmem:[#allocation95_spill] sm:$0xff] }
 0x5c7   : > { %23952 = vmatmul.mubr.msk.f32.gmra.mrb[58].mxu0 %vm264_vm12, %v29660_v26 }
 0x5c8   : > { %23954 = vmatprep.mubr.msk.f32.mxu0 %vm264_vm12, %v9833_v19  ;;  %v34863_v19 = vld [vmem:[#allocation97_spill] sm:$0xff] }
 0x5cb   : > { %23955 = vmatmul.mubr.msk.f32.gmra.mrb[60].mxu0 %vm264_vm12, %v29670_v51 }
 0x5cc   : > { %23957 = vmatprep.mubr.msk.f32.mxu0 %vm264_vm12, %v9835_v25  ;;  %v34865_v25 = vld [vmem:[#allocation99_spill] sm:$0xff] }
 0x5cf   : > { %23958 = vmatmul.mubr.msk.f32.gmra.mrb[62].mxu0 %vm264_vm12, %v30064_v6 }
 0x5d0   : > { %23962 = vmatprep.mubr.msk.f32.mxu0 %vm264_vm12, %v29681_v28  ;;  %v34862_v28 = vld [vmem:[#allocation96_spill] sm:$0xff] }
 0x5d3   : > { %23963 = vmatmul.mubr.msk.f32.vlgmr.msra.gmra.mrb[32].mxu0 %vm264_vm12, %v34857_v63  ;;  %v34866_v63 = vld [vmem:[#allocation100_spill] sm:$0xff] }
 0x5d4   : > { %24011 = vmatpush3.msra.mxu0 %v20641_v35  ;;  %23965 = vmatprep.mubr.msk.f32.mxu0 %vm264_vm12, %v34858_v53  ;;  %v34864_v35 = vld [vmem:[#allocation98_spill] sm:$0xff] }
 0x5d5   : > { %24060 = vmatprep.subr.mxu0 %v20674_v61 }
 0x5d7   : > { %23966 = vmatmul.mubr.msk.f32.gmra.mrb[34].mxu0 %vm264_vm12, %v34859_v2  ;;  %v34867_v2 = vld [vmem:[#allocation103_spill] sm:$0xff] }
 0x5d8   : > { %23968 = vmatprep.mubr.msk.f32.mxu0 %vm264_vm12, %v34860_v15  ;;  %v34868_v15 = vld [vmem:[#allocation104_spill] sm:$0xff] }
 0x5db   : > { %23969 = vmatmul.mubr.msk.f32.gmra.mrb[36].mxu0 %vm264_vm12, %v34861_v59  ;;  %v34869_v59 = vld [vmem:[#allocation105_spill] sm:$0xff] }
 0x5dc   : > { %23971 = vmatprep.mubr.msk.f32.mxu0 %vm264_vm12, %v34862_v28  ;;  %v34870_v28 = vld [vmem:[#allocation44_spill] sm:$0xff] }
 0x5df   : > { %23972 = vmatmul.mubr.msk.f32.gmra.mrb[38].mxu0 %vm264_vm12, %v34863_v19  ;;  %v34871_v19 = vld [vmem:[#allocation4_spill] sm:$0xff] }
 0x5e0   : > { %23974 = vmatprep.mubr.msk.f32.mxu0 %vm264_vm12, %v34864_v35  ;;  %v34872_v35 = vld [vmem:[#allocation22_spill] sm:$0xff] }
 0x5e3   : > { %23975 = vmatmul.mubr.msk.f32.gmra.mrb[40].mxu0 %vm264_vm12, %v34865_v25  ;;  %v34873_v25 = vld [vmem:[#allocation19_spill] sm:$0xff] }
 0x5e4   : > { %23977 = vmatprep.mubr.msk.f32.mxu0 %vm264_vm12, %v34866_v63  ;;  %v34874_v63 = vld [vmem:[#allocation18_spill] sm:$0xff] }
 0x5e7   : > { %23978 = vmatmul.mubr.msk.f32.gmra.mrb[42].mxu0 %vm264_vm12, %v34867_v2  ;;  %v34875_v2 = vld [vmem:[#allocation27_spill] sm:$0xff] }
 0x5e8   : > { %23980 = vmatprep.mubr.msk.f32.mxu0 %vm264_vm12, %v34868_v15  ;;  %v34876_v15 = vld [vmem:[#allocation28_spill] sm:$0xff] }
 0x5eb   : > { %23981 = vmatmul.mubr.msk.f32.gmra.mrb[44].mxu0 %vm264_vm12, %v34869_v59  ;;  %v34877_v59 = vld [vmem:[#allocation23_spill] sm:$0xff] }
 0x5ec   : > { %23983 = vmatprep.mubr.msk.f32.mxu0 %vm264_vm12, %v34870_v28  ;;  %v34878_v28 = vld [vmem:[#allocation25_spill] sm:$0xff] }
 0x5ef   : > { %23984 = vmatmul.mubr.msk.f32.gmra.mrb[46].mxu0 %vm264_vm12, %v34871_v19  ;;  %v34879_v19 = vld [vmem:[#allocation33_spill] sm:$0xff] }
 0x5f0   : > { %23986 = vmatprep.mubr.msk.f32.mxu0 %vm264_vm12, %v34872_v35  ;;  %v34880_v35 = vld [vmem:[#allocation34_spill] sm:$0xff] }
 0x5f3   : > { %23987 = vmatmul.mubr.msk.f32.gmra.mrb[48].mxu0 %vm264_vm12, %v34873_v25  ;;  %v34881_v25 = vld [vmem:[#allocation29_spill] sm:$0xff] }
 0x5f4   : > { %23989 = vmatprep.mubr.msk.f32.mxu0 %vm264_vm12, %v34874_v63  ;;  %v34882_v63 = vld [vmem:[#allocation31_spill] sm:$0xff] }
 0x5f7   : > { %23990 = vmatmul.mubr.msk.f32.gmra.mrb[50].mxu0 %vm264_vm12, %v34875_v2  ;;  %v34883_v2 = vld [vmem:[#allocation35_spill] sm:$0xff] }
 0x5f8   : > { %23992 = vmatprep.mubr.msk.f32.mxu0 %vm264_vm12, %v34876_v15  ;;  %v34884_v15 = vld [vmem:[#allocation41_spill] sm:$0xff] }
 0x5fb   : > { %23993 = vmatmul.mubr.msk.f32.gmra.mrb[52].mxu0 %vm264_vm12, %v34877_v59 }
 0x5fc   : > { %23995 = vmatprep.mubr.msk.f32.mxu0 %vm264_vm12, %v34878_v28  ;;  %v30131_v28 = vld [vmem:[#allocation3 + $0x108] sm:$0xff] }
 0x5fd   : > { %34885 = vst [vmem:[#allocation46_spill] sm:$0xff] %v30131_v28 }
 0x5ff   : > { %23996 = vmatmul.mubr.msk.f32.gmra.mrb[54].mxu0 %vm264_vm12, %v34879_v19 }
 0x600   : > { %23998 = vmatprep.mubr.msk.f32.mxu0 %vm264_vm12, %v34880_v35  ;;  %v30135_v35 = vld [vmem:[#allocation3 + $0x110] sm:$0xff] }
 0x601   : > { %34886 = vst [vmem:[#allocation79_spill] sm:$0xff] %v30135_v35 }
 0x603   : > { %23999 = vmatmul.mubr.msk.f32.gmra.mrb[56].mxu0 %vm264_vm12, %v34881_v25 }
 0x604   : > { %24001 = vmatprep.mubr.msk.f32.mxu0 %vm264_vm12, %v34882_v63  ;;  %v34887_v63 = vld [vmem:[#allocation47_spill] sm:$0xff] }
 0x607   : > { %24002 = vmatmul.mubr.msk.f32.gmra.mrb[58].mxu0 %vm264_vm12, %v34883_v2  ;;  %v34888_v2 = vld [vmem:[#allocation14_spill] sm:$0xff] }
 0x608   : > { %24004 = vmatprep.mubr.msk.f32.mxu0 %vm264_vm12, %v34884_v15  ;;  %vm34889_vm5 = vnez %v34888_v2 }
 0x609   : > { %v10610_v15 = vsel %vm34889_vm5, %v29814_v34, 0.0  ;;  %v34894_v34 = vld [vmem:[#allocation24_spill] sm:$0xff] }
 0x60a   : > { %vm34895_vm5 = vnez %v34894_v34  ;;  %v34901_v34 = vld [vmem:[#allocation58_spill] sm:$0xff] }
 0x60b   : > { %24005 = vmatmul.mubr.msk.f32.gmra.mrb[60].mxu0 %vm264_vm12, %v29799_v27  ;;  %v20707_v27 = vld [vmem:[%s33208_s3 + $0x80] sm:$0xff]  ;;  %v10614_v2 = vsel %vm34895_vm5, %v29836_v58, 0.0 }
 0x60c   : > { %24007 = vmatprep.mubr.msk.f32.mxu0 %vm264_vm12, %v30131_v28  ;;  %v34890_v28 = vld [vmem:[#allocation49_spill] sm:$0xff] }
 0x60f   : > { %24008 = vmatmul.mubr.msk.f32.gmra.mrb[62].mxu0 %vm264_vm12, %v30135_v35  ;;  %v34891_v35 = vld [vmem:[#allocation17_spill] sm:$0xff] }
 0x610   : > { %24012 = vmatprep.mubr.msk.f32.mxu0 %vm264_vm12, %v34887_v63  ;;  %vm34892_vm6 = vnez %v34891_v35  ;;  %v34893_v63 = vld [vmem:[#allocation52_spill] sm:$0xff] }
 0x611   : > { %v10612_v25 = vsel %vm34892_vm6, %v29826_v49, 0.0  ;;  %v34898_v35 = vld [vmem:[#allocation56_spill] sm:$0xff] }
 0x613   : > { %24013 = vmatmul.mubr.msk.f32.vlgmr.msra.gmra.mrb[32].mxu0 %vm264_vm12, %v10610_v15  ;;  %v34903_v15 = vld [vmem:[#allocation59_spill] sm:$0xff] }
 0x614   : > { %24061 = vmatpush3.msra.mxu0 %v20674_v61  ;;  %24015 = vmatprep.mubr.msk.f32.mxu0 %vm264_vm12, %v34890_v28  ;;  %v34896_v61 = vld [vmem:[#allocation53_spill] sm:$0xff]  ;;  %v10616_v28 = vsel %vm34821_vm15, %v29846_v52, 0.0 }
 0x615   : > { %24110 = vmatprep.subr.mxu0 %v20707_v27 }
 0x617   : > { %24016 = vmatmul.mubr.msk.f32.gmra.mrb[34].mxu0 %vm264_vm12, %v10612_v25  ;;  %v34899_v25 = vld [vmem:[#allocation36_spill] sm:$0xff] }
 0x618   : > { %24018 = vmatprep.mubr.msk.f32.mxu0 %vm264_vm12, %v34893_v63  ;;  %vm34900_vm6 = vnez %v34899_v25  ;;  %v34905_v25 = vld [vmem:[#allocation61_spill] sm:$0xff] }
 0x619   : > { %v10618_v63 = vsel %vm34900_vm6, %v29856_v8, 0.0 }
 0x61b   : > { %24019 = vmatmul.mubr.msk.f32.gmra.mrb[36].mxu0 %vm264_vm12, %v10614_v2  ;;  %v34907_v2 = vld [vmem:[#allocation63_spill] sm:$0xff] }
 0x61c   : > { %24021 = vmatprep.mubr.msk.f32.mxu0 %vm264_vm12, %v34896_v61  ;;  %v10620_v61 = vsel %vm34502_vm14, %v29866_v7, 0.0 }
 0x61f   : > { %24022 = vmatmul.mubr.msk.f32.gmra.mrb[38].mxu0 %vm264_vm12, %v10616_v28  ;;  %v34909_v28 = vld [vmem:[#allocation64_spill] sm:$0xff] }
 0x620   : > { %24024 = vmatprep.mubr.msk.f32.mxu0 %vm264_vm12, %v34898_v35  ;;  %v10622_v35 = vsel %vm34826_vm9, %v29876_v60, 0.0 }
 0x623   : > { %24025 = vmatmul.mubr.msk.f32.gmra.mrb[40].mxu0 %vm264_vm12, %v10618_v63  ;;  %v34911_v63 = vld [vmem:[#allocation68_spill] sm:$0xff] }
 0x624   : > { %24027 = vmatprep.mubr.msk.f32.mxu0 %vm264_vm12, %v34901_v34  ;;  %v10624_v34 = vsel %vm34660_vm4, %v29886_v44, 0.0 }
 0x627   : > { %24028 = vmatmul.mubr.msk.f32.gmra.mrb[42].mxu0 %vm264_vm12, %v10620_v61  ;;  %v34913_v61 = vld [vmem:[#allocation37_spill] sm:$0xff] }
 0x628   : > { %24030 = vmatprep.mubr.msk.f32.mxu0 %vm264_vm12, %v34903_v15  ;;  %v10626_v15 = vsel %vm34507_vm2, %v29896_v45, 0.0 }
 0x62b   : > { %24031 = vmatmul.mubr.msk.f32.gmra.mrb[44].mxu0 %vm264_vm12, %v10622_v35  ;;  %v34915_v35 = vld [vmem:[#allocation32_spill] sm:$0xff] }
 0x62c   : > { %24033 = vmatprep.mubr.msk.f32.mxu0 %vm264_vm12, %v34905_v25  ;;  %v10628_v25 = vsel %vm34665_vm8, %v29906_v54, 0.0 }
 0x62f   : > { %24034 = vmatmul.mubr.msk.f32.gmra.mrb[46].mxu0 %vm264_vm12, %v10624_v34  ;;  %v34912_v34 = vld [vmem:[#allocation57_spill] sm:$0xff] }
 0x630   : > { %24036 = vmatprep.mubr.msk.f32.mxu0 %vm264_vm12, %v34907_v2  ;;  %v10630_v2 = vsel %vm34594_vm7, %v29916_v12, 0.0  ;;  %vm34917_vm7 = vnez %v34671_v23  ;;  %v10995_v23 = vld [vmem:[#allocation3 + $0x27] sm:$0xff] }
 0x633   : > { %24037 = vmatmul.mubr.msk.f32.gmra.mrb[48].mxu0 %vm264_vm12, %v10626_v15 }
 0x634   : > { %24039 = vmatprep.mubr.msk.f32.mxu0 %vm264_vm12, %v34909_v28  ;;  %v10632_v28 = vsel %vm34512_vm11, %v29926_v46, 0.0 }
 0x637   : > { %24040 = vmatmul.mubr.msk.f32.gmra.mrb[50].mxu0 %vm264_vm12, %v10628_v25  ;;  %v30232_v25 = vld [vmem:[#allocation3 + $0x109] sm:$0xff] }
 0x638   : > { %24042 = vmatprep.mubr.msk.f32.mxu0 %vm264_vm12, %v34911_v63  ;;  %v10634_v63 = vsel %vm34599_vm10, %v29936_v36, 0.0  ;;  %vm34923_vm10 = vnez %v34675_v50  ;;  %v11001_v50 = vld [vmem:[#allocation3 + $0x57] sm:$0xff] }
 0x63b   : > { %24043 = vmatmul.mubr.msk.f32.gmra.mrb[52].mxu0 %vm264_vm12, %v10630_v2  ;;  %v10636_v2 = vsel %vm34917_vm7, %v29946_v40, 0.0  ;;  %v34921_v40 = vld [vmem:[#allocation70_spill] sm:$0xff] }
 0x63c   : > { %24045 = vmatprep.mubr.msk.f32.mxu0 %vm264_vm12, %v34913_v61  ;;  %vm34922_vm7 = vnez %v34921_v40 }
 0x63f   : > { %24046 = vmatmul.mubr.msk.f32.gmra.mrb[54].mxu0 %vm264_vm12, %v10632_v28  ;;  %v34918_v28 = vld [vmem:[#allocation67_spill] sm:$0xff] }
 0x640   : > { %24048 = vmatprep.mubr.msk.f32.mxu0 %vm264_vm12, %v34915_v35  ;;  %vm34919_vm11 = vnez %v34918_v28  ;;  %v11027_v28 = vsel %vm34923_vm10, %v10995_v23, 0.0  ;;  %v10998_v23 = vld [vmem:[#allocation3 + $0x3f] sm:$0xff] }
 0x641   : > { %v10638_v15 = vsel %vm34919_vm11, %v29956_v3, 0.0  ;;  %v10996_v3 = vld [vmem:[#allocation3 + $0x2f] sm:$0xff]  ;;  %vm34924_vm11 = vnez %v34175_v33 }
 0x643   : > { %24049 = vmatmul.mubr.msk.f32.gmra.mrb[56].mxu0 %vm264_vm12, %v10634_v63  ;;  %v30234_v63 = vld [vmem:[#allocation3 + $0x111] sm:$0xff] }
 0x644   : > { %24051 = vmatprep.mubr.msk.f32.mxu0 %vm264_vm12, %v29944_v18  ;;  %34920 = vst [vmem:[#allocation84_spill] sm:$0xff] %v30234_v63 }
 0x647   : > { %24052 = vmatmul.mubr.msk.f32.gmra.mrb[58].mxu0 %vm264_vm12, %v10636_v2  ;;  %v10640_v2 = vsel %vm34922_vm7, %v30234_v63, 0.0  ;;  %v11000_v63 = vld [vmem:[#allocation3 + $0x4f] sm:$0xff] }
 0x648   : > { %24054 = vmatprep.mubr.msk.f32.mxu0 %vm264_vm12, %v29954_v1  ;;  %v30248_v1 = vld [vmem:[%s33208_s3 + $0x88] sm:$0xff] }
 0x64b   : > { %24055 = vmatmul.mubr.msk.f32.gmra.mrb[60].mxu0 %vm264_vm12, %v10638_v15  ;;  %v10997_v15 = vld [vmem:[#allocation3 + $0x37] sm:$0xff] }
 0x64c   : > { %24057 = vmatprep.mubr.msk.f32.mxu0 %vm264_vm12, %v30232_v25  ;;  %v11029_v40 = vsel %vm34924_vm11, %v10997_v15, 0.0  ;;  %vm34925_vm11 = vnez %v34431_v24 }
 0x64f   : > { %24058 = vmatmul.mubr.msk.f32.gmra.mrb[62].mxu0 %vm264_vm12, %v10640_v2  ;;  %v10999_v2 = vld [vmem:[#allocation3 + $0x47] sm:$0xff] }
 0x650   : > { %24062 = vmatprep.mubr.msk.f32.mxu0 %vm264_vm12, %v11027_v28  ;;  %v11031_v28 = vsel %vm34839_vm0, %v10999_v2, 0.0  ;;  %v11005_v2 = vld [vmem:[#allocation3 + $0x77] sm:$0xff]  ;;  %vm34926_vm0 = vnez %v34434_v43 }
 0x653   : > { %24063 = vmatmul.mubr.msk.f32.vlgmr.msra.gmra.mrb[32].mxu0 %vm264_vm12, %v10996_v3  ;;  %v11033_v3 = vsel %vm34840_vm3, %v11001_v50, 0.0  ;;  %vm34927_vm3 = vnez %v34437_v37 }
 0x654   : > { %24111 = vmatpush3.msra.mxu0 %v20707_v27  ;;  %24065 = vmatprep.mubr.msk.f32.mxu0 %vm264_vm12, %v11029_v40  ;;  %v11003_v40 = vld [vmem:[#allocation3 + $0x67] sm:$0xff]  ;;  %v11002_v27 = vld [vmem:[#allocation3 + $0x5f] sm:$0xff]  ;;  %v11039_v50 = vsel %vm34927_vm3, %v29491_v32, 0.0  ;;  %vm34930_vm3 = vnez %v34845_v57 }
 0x655   : > { %24160 = vmatprep.subr.mxu0 %v30248_v1  ;;  %v11035_v15 = vsel %vm34925_vm11, %v11003_v40, 0.0  ;;  %vm34928_vm11 = vnez %v34440_v62  ;;  %v34946_v40 = vld [vmem:[#allocation44_spill] sm:$0xff] }
 0x657   : > { %24066 = vmatmul.mubr.msk.f32.gmra.mrb[34].mxu0 %vm264_vm12, %v10998_v23  ;;  %v11004_v23 = vld [vmem:[#allocation3 + $0x6f] sm:$0xff] }
 0x658   : > { %24068 = vmatprep.mubr.msk.f32.mxu0 %vm264_vm12, %v11031_v28  ;;  %v11041_v28 = vsel %vm34928_vm11, %v29519_v0, 0.0  ;;  %vm34931_vm11 = vnez %v34848_v22  ;;  %v11049_v0 = vsel %vm34852_vm1, %v29631_v42, 0.0  ;;  %vm34933_vm1 = vnez %v34347_v4 }
 0x659   : > { %v11047_v32 = vsel %vm34931_vm11, %v29603_v10, 0.0  ;;  %v11025_v10 = vld [vmem:[#allocation3 + $0x117] sm:$0xff] }
 0x65b   : > { %24069 = vmatmul.mubr.msk.f32.gmra.mrb[36].mxu0 %vm264_vm12, %v11000_v63  ;;  %v11037_v63 = vsel %vm34926_vm0, %v11005_v2, 0.0  ;;  %vm34929_vm0 = vnez %v34443_v48  ;;  %v34949_v2 = vld [vmem:[#allocation19_spill] sm:$0xff] }
 0x65c   : > { %24071 = vmatprep.mubr.msk.f32.mxu0 %vm264_vm12, %v11033_v3  ;;  %v34945_v3 = vld [vmem:[#allocation105_spill] sm:$0xff] }
 0x65f   : > { %24072 = vmatmul.mubr.msk.f32.gmra.mrb[38].mxu0 %vm264_vm12, %v11002_v27  ;;  %v34947_v27 = vld [vmem:[#allocation4_spill] sm:$0xff] }
 0x660   : > { %24074 = vmatprep.mubr.msk.f32.mxu0 %vm264_vm12, %v11035_v15  ;;  %v34948_v15 = vld [vmem:[#allocation22_spill] sm:$0xff] }
 0x663   : > { %24075 = vmatmul.mubr.msk.f32.gmra.mrb[40].mxu0 %vm264_vm12, %v11004_v23  ;;  %v34950_v23 = vld [vmem:[#allocation18_spill] sm:$0xff] }
 0x664   : > { %24077 = vmatprep.mubr.msk.f32.mxu0 %vm264_vm12, %v11037_v63  ;;  %v34951_v63 = vld [vmem:[#allocation27_spill] sm:$0xff] }
 0x667   : > { %24078 = vmatmul.mubr.msk.f32.gmra.mrb[42].mxu0 %vm264_vm12, %v29478_v31  ;;  %v11043_v31 = vsel %vm34929_vm0, %v29547_v56, 0.0 }
 0x668   : > { %24080 = vmatprep.mubr.msk.f32.mxu0 %vm264_vm12, %v11039_v50  ;;  %v34952_v50 = vld [vmem:[#allocation28_spill] sm:$0xff] }
 0x66b   : > { %24081 = vmatmul.mubr.msk.f32.gmra.mrb[44].mxu0 %vm264_vm12, %v29506_v16  ;;  %v11045_v16 = vsel %vm34930_vm3, %v29575_v11, 0.0  ;;  %vm34932_vm3 = vnez %v34853_v30  ;;  %v11055_v11 = vsel %vm34933_vm1, %v30056_v41, 0.0  ;;  %v34941_v41 = vld [vmem:[#allocation99_spill] sm:$0xff] }
 0x66c   : > { %24083 = vmatprep.mubr.msk.f32.mxu0 %vm264_vm12, %v11041_v28  ;;  %v11051_v56 = vsel %vm34932_vm3, %v29651_v20, 0.0  ;;  %vm34934_vm3 = vnez %v34531_v5  ;;  %v34935_v20 = vld [vmem:[#allocation93_spill] sm:$0xff] }
 0x66d   : > { %v11057_v42 = vsel %vm34934_vm3, %v11025_v10, 0.0  ;;  %v34953_v28 = vld [vmem:[#allocation25_spill] sm:$0xff]  ;;  %v11444_v10 = vld [vmem:[#allocation3 + $0x120] sm:$0xff] }
 0x66f   : > { %24084 = vmatmul.mubr.msk.f32.gmra.mrb[46].mxu0 %vm264_vm12, %v34844_v17  ;;  %v34938_v17 = vld [vmem:[#allocation96_spill] sm:$0xff] }
 0x670   : > { %24086 = vmatprep.mubr.msk.f32.mxu0 %vm264_vm12, %v11043_v31  ;;  %v34954_v31 = vld [vmem:[#allocation34_spill] sm:$0xff] }
 0x673   : > { %24087 = vmatmul.mubr.msk.f32.gmra.mrb[48].mxu0 %vm264_vm12, %v34847_v39  ;;  %v34939_v39 = vld [vmem:[#allocation97_spill] sm:$0xff] }
 0x674   : > { %24089 = vmatprep.mubr.msk.f32.mxu0 %vm264_vm12, %v11045_v16  ;;  %v34955_v16 = vld [vmem:[#allocation29_spill] sm:$0xff] }
 0x677   : > { %24090 = vmatmul.mubr.msk.f32.gmra.mrb[50].mxu0 %vm264_vm12, %v34850_v14  ;;  %v34940_v14 = vld [vmem:[#allocation98_spill] sm:$0xff] }
 0x678   : > { %24092 = vmatprep.mubr.msk.f32.mxu0 %vm264_vm12, %v11047_v32  ;;  %v34956_v32 = vld [vmem:[#allocation31_spill] sm:$0xff] }
 0x67b   : > { %24093 = vmatmul.mubr.msk.f32.gmra.mrb[52].mxu0 %vm264_vm12, %v29618_v21  ;;  %v11053_v21 = vsel %vm34855_vm13, %v29664_v55, 0.0  ;;  %v34937_v55 = vld [vmem:[#allocation95_spill] sm:$0xff] }
 0x67c   : > { %24095 = vmatprep.mubr.msk.f32.mxu0 %vm264_vm12, %v11049_v0  ;;  %v34957_v0 = vld [vmem:[#allocation35_spill] sm:$0xff] }
 0x67f   : > { %24096 = vmatmul.mubr.msk.f32.gmra.mrb[54].mxu0 %vm264_vm12, %v29643_v29  ;;  %v11026_v29 = vld [vmem:[#allocation3 + $0x11f] sm:$0xff] }
 0x680   : > { %24098 = vmatprep.mubr.msk.f32.mxu0 %vm264_vm12, %v11051_v56  ;;  %v34958_v56 = vld [vmem:[#allocation41_spill] sm:$0xff] }
 0x683   : > { %24099 = vmatmul.mubr.msk.f32.gmra.mrb[56].mxu0 %vm264_vm12, %v29660_v26  ;;  %v34936_v26 = vld [vmem:[#allocation94_spill] sm:$0xff] }
 0x684   : > { %24101 = vmatprep.mubr.msk.f32.mxu0 %vm264_vm12, %v11053_v21  ;;  %v34960_v21 = vld [vmem:[#allocation46_spill] sm:$0xff] }
 0x687   : > { %24102 = vmatmul.mubr.msk.f32.gmra.mrb[58].mxu0 %vm264_vm12, %v29670_v51  ;;  %v20775_v51 = vld [vmem:[%s33208_s3 + $0x90] sm:$0xff] }
 0x688   : > { %24104 = vmatprep.mubr.msk.f32.mxu0 %vm264_vm12, %v11055_v11  ;;  %24210 = vmatprep.subr.mxu1 %v20775_v51  ;;  %v34961_v11 = vld [vmem:[#allocation79_spill] sm:$0xff] }
 0x689   : > { %24211 = vmatpush3.msra.mxu1 %v20775_v51 }
 0x68b   : > { %24105 = vmatmul.mubr.msk.f32.gmra.mrb[60].mxu0 %vm264_vm12, %v30064_v6  ;;  %v34942_v6 = vld [vmem:[#allocation100_spill] sm:$0xff] }
 0x68c   : > { %24107 = vmatprep.mubr.msk.f32.mxu0 %vm264_vm12, %v11057_v42  ;;  %v34962_v42 = vld [vmem:[#allocation49_spill] sm:$0xff] }
 0x68f   : > { %24108 = vmatmul.mubr.msk.f32.gmra.mrb[62].mxu0 %vm264_vm12, %v11026_v29  ;;  %v34963_v29 = vld [vmem:[#allocation14_spill] sm:$0xff] }
 0x690   : > { %24112 = vmatprep.mubr.msk.f32.mxu0 %vm264_vm12, %v34858_v53  ;;  %v34944_v53 = vld [vmem:[#allocation104_spill] sm:$0xff]  ;;  %vm34964_vm3 = vnez %v34963_v29 }
 0x691   : > { %v11832_v51 = vsel %vm34964_vm3, %v29826_v49, 0.0  ;;  %v34970_v49 = vld [vmem:[#allocation56_spill] sm:$0xff] }
 0x693   : > { %24113 = vmatmul.mubr.msk.f32.vlgmr.msra.gmra.mrb[32].mxu0 %vm264_vm12, %v34935_v20  ;;  %v34965_v20 = vld [vmem:[#allocation52_spill] sm:$0xff] }
 0x694   : > { %24161 = vmatpush3.msra.mxu0 %v30248_v1  ;;  %24115 = vmatprep.mubr.msk.f32.mxu0 %vm264_vm12, %v34936_v26  ;;  %v34943_v1 = vld [vmem:[#allocation103_spill] sm:$0xff]  ;;  %v34966_v26 = vld [vmem:[#allocation17_spill] sm:$0xff] }
 0x695   : > { %vm34967_vm1 = vnez %v34966_v26 }
 0x697   : > { %24116 = vmatmul.mubr.msk.f32.gmra.mrb[34].mxu0 %vm264_vm12, %v34937_v55  ;;  %v11834_v55 = vsel %vm34967_vm1, %v29836_v58, 0.0  ;;  %v34972_v58 = vld [vmem:[#allocation58_spill] sm:$0xff] }
 0x698   : > { %24118 = vmatprep.mubr.msk.f32.mxu0 %vm264_vm12, %v34938_v17  ;;  %v34968_v17 = vld [vmem:[#allocation53_spill] sm:$0xff] }
 0x69b   : > { %24119 = vmatmul.mubr.msk.f32.gmra.mrb[36].mxu0 %vm264_vm12, %v34939_v39 }
 0x69c   : > { %24121 = vmatprep.mubr.msk.f32.mxu0 %vm264_vm12, %v34940_v14  ;;  %v11836_v14 = vsel %vm34895_vm5, %v29846_v52, 0.0  ;;  %v34974_v52 = vld [vmem:[#allocation59_spill] sm:$0xff] }
 0x69f   : > { %24122 = vmatmul.mubr.msk.f32.gmra.mrb[38].mxu0 %vm264_vm12, %v34941_v41 }
 0x6a0   : > { %24124 = vmatprep.mubr.msk.f32.mxu0 %vm264_vm12, %v34942_v6  ;;  %v11838_v6 = vsel %vm34821_vm15, %v29856_v8, 0.0  ;;  %v34976_v8 = vld [vmem:[#allocation61_spill] sm:$0xff] }
 0x6a3   : > { %24125 = vmatmul.mubr.msk.f32.gmra.mrb[40].mxu0 %vm264_vm12, %v34943_v1 }
 0x6a4   : > { %24127 = vmatprep.mubr.msk.f32.mxu0 %vm264_vm12, %v34944_v53  ;;  %v11840_v53 = vsel %vm34900_vm6, %v29866_v7, 0.0  ;;  %v34978_v7 = vld [vmem:[#allocation63_spill] sm:$0xff] }
 0x6a7   : > { %24128 = vmatmul.mubr.msk.f32.gmra.mrb[42].mxu0 %vm264_vm12, %v34945_v3 }
 0x6a8   : > { %24130 = vmatprep.mubr.msk.f32.mxu0 %vm264_vm12, %v34946_v40  ;;  %v11842_v40 = vsel %vm34502_vm14, %v29876_v60, 0.0  ;;  %v34980_v60 = vld [vmem:[#allocation64_spill] sm:$0xff] }
 0x6ab   : > { %24131 = vmatmul.mubr.msk.f32.gmra.mrb[44].mxu0 %vm264_vm12, %v34947_v27 }
 0x6ac   : > { %24133 = vmatprep.mubr.msk.f32.mxu0 %vm264_vm12, %v34948_v15  ;;  %v11844_v15 = vsel %vm34826_vm9, %v29886_v44, 0.0  ;;  %v34982_v44 = vld [vmem:[#allocation68_spill] sm:$0xff] }
 0x6af   : > { %24134 = vmatmul.mubr.msk.f32.gmra.mrb[46].mxu0 %vm264_vm12, %v34949_v2  ;;  %v34979_v2 = vld [vmem:[#allocation51_spill] sm:$0xff] }
 0x6b0   : > { %24136 = vmatprep.mubr.msk.f32.mxu0 %vm264_vm12, %v34950_v23  ;;  %v11846_v23 = vsel %vm34660_vm4, %v29896_v45, 0.0  ;;  %vm34984_vm4 = vnez %v34912_v34 }
 0x6b1   : > { %v11852_v45 = vsel %vm34984_vm4, %v29926_v46, 0.0  ;;  %v34990_v46 = vld [vmem:[#allocation43_spill] sm:$0xff] }
 0x6b3   : > { %24137 = vmatmul.mubr.msk.f32.gmra.mrb[48].mxu0 %vm264_vm12, %v34951_v63  ;;  %v34981_v63 = vld [vmem:[#allocation54_spill] sm:$0xff] }
 0x6b4   : > { %24139 = vmatprep.mubr.msk.f32.mxu0 %vm264_vm12, %v34952_v50  ;;  %v11848_v50 = vsel %vm34507_vm2, %v29906_v54, 0.0  ;;  %v34985_v54 = vld [vmem:[#allocation60_spill] sm:$0xff] }
 0x6b5   : > { %vm34986_vm2 = vnez %v34985_v54 }
 0x6b7   : > { %24140 = vmatmul.mubr.msk.f32.gmra.mrb[50].mxu0 %vm264_vm12, %v34877_v59  ;;  %v34959_v59 = vld [vmem:[#allocation38_spill] sm:$0xff] }
 0x6b8   : > { %24142 = vmatprep.mubr.msk.f32.mxu0 %vm264_vm12, %v34953_v28  ;;  %v34983_v28 = vld [vmem:[#allocation55_spill] sm:$0xff] }
 0x6bb   : > { %24143 = vmatmul.mubr.msk.f32.gmra.mrb[52].mxu0 %vm264_vm12, %v34879_v19  ;;  %v11443_v19 = vld [vmem:[#allocation3 + $0x118] sm:$0xff] }
 0x6bc   : > { %24145 = vmatprep.mubr.msk.f32.mxu0 %vm264_vm12, %v34954_v31  ;;  %v11850_v31 = vsel %vm34665_vm8, %v29916_v12, 0.0  ;;  %v34987_v12 = vld [vmem:[#allocation40_spill] sm:$0xff] }
 0x6bf   : > { %24146 = vmatmul.mubr.msk.f32.gmra.mrb[54].mxu0 %vm264_vm12, %v34955_v16  ;;  %v11854_v16 = vsel %vm34986_vm2, %v29936_v36, 0.0  ;;  %v11829_v36 = vld [vmem:[#allocation3 + $0x119] sm:$0xff] }
 0x6c0   : > { %24148 = vmatprep.mubr.msk.f32.mxu0 %vm264_vm12, %v34956_v32 }
 0x6c3   : > { %24149 = vmatmul.mubr.msk.f32.gmra.mrb[56].mxu0 %vm264_vm12, %v34957_v0  ;;  %v34991_v0 = vld [vmem:[#allocation45_spill] sm:$0xff] }
 0x6c4   : > { %24151 = vmatprep.mubr.msk.f32.mxu0 %vm264_vm12, %v34958_v56 }
 0x6c7   : > { %24152 = vmatmul.mubr.msk.f32.gmra.mrb[58].mxu0 %vm264_vm12, %v34959_v59  ;;  %v34994_v59 = vld [vmem:[#allocation84_spill] sm:$0xff] }
 0x6c8   : > { %24154 = vmatprep.mubr.msk.f32.mxu0 %vm264_vm12, %v34960_v21  ;;  %v34995_v21 = vld [vmem:[#allocation67_spill] sm:$0xff] }
 0x6c9   : > { %vm34996_vm2 = vnez %v34995_v21 }
 0x6cb   : > { %24155 = vmatmul.mubr.msk.f32.gmra.mrb[60].mxu0 %vm264_vm12, %v34961_v11 }
 0x6cc   : > { %24157 = vmatprep.mubr.msk.f32.mxu0 %vm264_vm12, %v11443_v19  ;;  %v11860_v19 = vsel %vm34996_vm2, %v34994_v59, 0.0  ;;  %v35011_v59 = vld [vmem:[#allocation81_spill] sm:$0xff] }
 0x6cf   : > { %24158 = vmatmul.mubr.msk.f32.gmra.mrb[62].mxu0 %vm264_vm12, %v11444_v10 }
 0x6d0   : > { %24162 = vmatprep.mubr.msk.f32.mxu0 %vm264_vm12, %v34962_v42  ;;  %v12321_v42 = vld [vmem:[#allocation3 + $0x7] sm:$0xff] }
 0x6d3   : > { %24163 = vmatmul.mubr.msk.f32.vlgmr.msra.gmra.mrb[32].mxu0 %vm264_vm12, %v11832_v51  ;;  %v34998_v51 = vld [vmem:[#allocation5_spill] sm:$0xff] }
 0x6d4   : > { %24165 = vmatprep.mubr.msk.f32.mxu0 %vm264_vm12, %v34965_v20  ;;  %v12353_v20 = vsel %vm34923_vm10, %v12321_v42, 0.0  ;;  %vm35023_vm10 = vnez %v34175_v33 }
 0x6d5   : > { %24212 = vmatprep.mubr.msk.f32.mxu1 %vm264_vm12, %v12353_v20 }
 0x6d7   : > { %24166 = vmatmul.mubr.msk.f32.gmra.mrb[34].mxu0 %vm264_vm12, %v11834_v55  ;;  %v20808_v55 = vld [vmem:[%s33208_s3 + $0x98] sm:$0xff] }
 0x6d8   : > { %24168 = vmatprep.mubr.msk.f32.mxu0 %vm264_vm12, %v34968_v17  ;;  %24260 = vmatprep.subr.mxu1 %v20808_v55  ;;  %v30501_v17 = vld [vmem:[%s33208_s3 + $0xa0] sm:$0xff] }
 0x6db   : > { %24169 = vmatmul.mubr.msk.f32.gmra.mrb[36].mxu0 %vm264_vm12, %v11836_v14  ;;  %v30507_v14 = vld [vmem:[%s33209_s4 + $0x1] ss:$0 sm:$0xff] }
 0x6dc   : > { %24171 = vmatprep.mubr.msk.f32.mxu0 %vm264_vm12, %v34970_v49  ;;  %v34999_v49 = vld [vmem:[#allocation15_spill] sm:$0xff] }
 0x6df   : > { %24172 = vmatmul.mubr.msk.f32.gmra.mrb[38].mxu0 %vm264_vm12, %v11838_v6  ;;  %v35000_v6 = vmax.f32 %v34999_v49, 0.0 }
 0x6e0   : > { %24174 = vmatprep.mubr.msk.f32.mxu0 %vm264_vm12, %v34972_v58 }
 0x6e1   : > { %v8519_v58 = vadd.f32 %v30507_v14, %v35000_v6 }
 0x6e3   : > { %24175 = vmatmul.mubr.msk.f32.gmra.mrb[40].mxu0 %vm264_vm12, %v11840_v53 }
 0x6e4   : > { %24177 = vmatprep.mubr.msk.f32.mxu0 %vm264_vm12, %v34974_v52  ;;  %v35001_v52 = vld [vmem:[#allocation50_spill] sm:$0xff] }
 0x6e7   : > { %24178 = vmatmul.mubr.msk.f32.gmra.mrb[42].mxu0 %vm264_vm12, %v11842_v40  ;;  %v35002_v40 = vmax.f32 %v35001_v52, 0.0 }
 0x6e8   : > { %24180 = vmatprep.mubr.msk.f32.mxu0 %vm264_vm12, %v34976_v8 }
 0x6e9   : > { %v8518_v8 = vadd.f32 %v30507_v14, %v35002_v40  ;;  %v35017_v40 = vld [vmem:[#allocation90_spill] sm:$0xff] }
 0x6eb   : > { %24181 = vmatmul.mubr.msk.f32.gmra.mrb[44].mxu0 %vm264_vm12, %v11844_v15 }
 0x6ec   : > { %24183 = vmatprep.mubr.msk.f32.mxu0 %vm264_vm12, %v34978_v7 }
 0x6ef   : > { %24184 = vmatmul.mubr.msk.f32.gmra.mrb[46].mxu0 %vm264_vm12, %v11846_v23 }
 0x6f0   : > { %24186 = vmatprep.mubr.msk.f32.mxu0 %vm264_vm12, %v34980_v60 }
 0x6f3   : > { %24187 = vmatmul.mubr.msk.f32.gmra.mrb[48].mxu0 %vm264_vm12, %v11848_v50  ;;  %v35005_v50 = vld [vmem:[#allocation21_spill] sm:$0xff] }
 0x6f4   : > { %24189 = vmatprep.mubr.msk.f32.mxu0 %vm264_vm12, %v34982_v44  ;;  %v35006_v44 = vmax.f32 %v35005_v50, 0.0 }
 0x6f7   : > { %24190 = vmatmul.mubr.msk.f32.gmra.mrb[50].mxu0 %vm264_vm12, %v11850_v31  ;;  %v8521_v31 = vadd.f32 %v30507_v14, %v35006_v44 }
 0x6f8   : > { %24192 = vmatprep.mubr.msk.f32.mxu0 %vm264_vm12, %v34913_v61  ;;  %v34988_v61 = vld [vmem:[#allocation62_spill] sm:$0xff] }
 0x6f9   : > { %vm34989_vm8 = vnez %v34988_v61 }
 0x6fa   : > { %v11856_v32 = vsel %vm34989_vm8, %v34987_v12, 0.0  ;;  %v35007_v12 = vld [vmem:[#allocation69_spill] sm:$0xff] }
 0x6fb   : > { %24193 = vmatmul.mubr.msk.f32.gmra.mrb[52].mxu0 %vm264_vm12, %v11852_v45 }
 0x6fc   : > { %24195 = vmatprep.mubr.msk.f32.mxu0 %vm264_vm12, %v34915_v35  ;;  %v34992_v35 = vld [vmem:[#allocation65_spill] sm:$0xff] }
 0x6fd   : > { %vm34993_vm4 = vnez %v34992_v35 }
 0x6fe   : > { %v11858_v56 = vsel %vm34993_vm4, %v34991_v0, 0.0 }
 0x6ff   : > { %24196 = vmatmul.mubr.msk.f32.gmra.mrb[54].mxu0 %vm264_vm12, %v11854_v16 }
 0x700   : > { %24198 = vmatprep.mubr.msk.f32.mxu0 %vm264_vm12, %v29944_v18  ;;  %v11830_v18 = vld [vmem:[#allocation3 + $0x121] sm:$0xff] }
 0x701   : > { %v11862_v10 = vsel %vm34922_vm7, %v11830_v18, 0.0 }
 0x703   : > { %24199 = vmatmul.mubr.msk.f32.gmra.mrb[56].mxu0 %vm264_vm12, %v11856_v32  ;;  %v35008_v32 = vmax.f32 %v35007_v12, 0.0 }
 0x704   : > { %24201 = vmatprep.mubr.msk.f32.mxu0 %vm264_vm12, %v34990_v46 }
 0x705   : > { %v8520_v46 = vadd.f32 %v30507_v14, %v35008_v32 }
 0x707   : > { %24202 = vmatmul.mubr.msk.f32.gmra.mrb[58].mxu0 %vm264_vm12, %v11858_v56 }
 0x708   : > { %24204 = vmatprep.mubr.msk.f32.mxu0 %vm264_vm12, %v30232_v25  ;;  %v12322_v25 = vld [vmem:[#allocation3 + $0xf] sm:$0xff] }
 0x709   : > { %24213 = vmatmul.mubr.msk.f32.vlgmr.msra.gmra.mrb[64].mxu1 %vm264_vm12, %v12322_v25  ;;  %v35013_v25 = vld [vmem:[#allocation83_spill] sm:$0xff] }
 0x70a   : > { %24261 = vmatpush3.msra.mxu1 %v20808_v55  ;;  %v35014_v55 = vmax.f32 %v35013_v25, 0.0 }
 0x70b   : > { %24205 = vmatmul.mubr.msk.f32.gmra.mrb[60].mxu0 %vm264_vm12, %v11860_v19  ;;  %24310 = vmatprep.subr.mxu1 %v30501_v17  ;;  %v35012_v19 = vmax.f32 %v35011_v59, 0.0 }
 0x70c   : > { %24207 = vmatprep.mubr.msk.f32.mxu0 %vm264_vm12, %v11829_v36  ;;  %v8522_v49 = vadd.f32 %v30507_v14, %v35014_v55 }
 0x70f   : > { %24208 = vmatmul.mubr.msk.f32.gmra.mrb[62].mxu0 %vm264_vm12, %v11862_v10  ;;  %v8523_v10 = vadd.f32 %v30507_v14, %v35012_v19 }
 0x7a6   : > { %v24164_v53 = vpop.f32.mrb[32].mxu0 }
 0x7a7   : > { %v30515_v15 = vadd.f32 %v24164_v53, %v8519_v58  ;;  %v12026_v7 = vpop.f32.mrb[33].mxu0 }
 0x7a8   : > { %v30517_v23 = vadd.f32 %v12026_v7, %v8518_v8  ;;  %v35018_v8 = vmax.f32 %v35017_v40, 0.0 }
 0x7a9   : > { %35003 = vst [vmem:[#allocation87_spill] sm:$0xff] %v30515_v15  ;;  %v33785_v60 = vmax.f32 %v30515_v15, 0.0 }
 0x7aa   : > { %35004 = vst [vmem:[#allocation91_spill] sm:$0xff] %v30517_v23  ;;  %v33783_v45 = vmax.f32 %v30517_v23, 0.0  ;;  %v24167_v16 = vpop.f32.mrb[34].mxu0  ;;  %v8525_v7 = vadd.f32 %v30507_v14, %v35018_v8  ;;  %v35026_v8 = vld [vmem:[#allocation71_spill] sm:$0xff] }
 0x7ab   : > { %12250 = vst.msk [vmem:[#allocation3 + $0x20] sm:$0xff] %vm264_vm12, %v33785_v60  ;;  %v30530_v0 = vadd.f32 %v24167_v16, %v8521_v31  ;;  %v12036_v56 = vpop.f32.mrb[35].mxu0  ;;  %v35019_v31 = vld [vmem:[#allocation101_spill] sm:$0xff] }
 0x7ac   : > { %12249 = vst.msk [vmem:[#allocation3 + $0x18] sm:$0xff] %vm264_vm12, %v33783_v45  ;;  %v30535_v36 = vadd.f32 %v12036_v56, %v8520_v46  ;;  %v35020_v16 = vmax.f32 %v35019_v31, 0.0 }
 0x7ad   : > { %35009 = vst [vmem:[#allocation92_spill] sm:$0xff] %v30530_v0  ;;  %v33781_v18 = vmax.f32 %v30530_v0, 0.0 }
 0x7ae   : > { %35010 = vst [vmem:[#allocation23_spill] sm:$0xff] %v30535_v36  ;;  %v33780_v42 = vmax.f32 %v30535_v36, 0.0  ;;  %v24170_v20 = vpop.f32.mrb[36].mxu0  ;;  %v8524_v12 = vadd.f32 %v30507_v14, %v35020_v16 }
 0x7af   : > { %12252 = vst.msk [vmem:[#allocation3 + $0x30] sm:$0xff] %vm264_vm12, %v33781_v18  ;;  %v30548_v6 = vadd.f32 %v24170_v20, %v8523_v10  ;;  %v12046_v58 = vpop.f32.mrb[37].mxu0  ;;  %v35024_v20 = vld [vmem:[#allocation102_spill] sm:$0xff] }
 0x7b0   : > { %12251 = vst.msk [vmem:[#allocation3 + $0x28] sm:$0xff] %vm264_vm12, %v33780_v42  ;;  %v30553_v53 = vadd.f32 %v12046_v58, %v8522_v49  ;;  %v35025_v25 = vmax.f32 %v35024_v20, 0.0 }
 0x7b1   : > { %35015 = vst [vmem:[#allocation33_spill] sm:$0xff] %v30548_v6  ;;  %v33779_v52 = vmax.f32 %v30548_v6, 0.0 }
 0x7b2   : > { %35016 = vst [vmem:[#allocation47_spill] sm:$0xff] %v30553_v53  ;;  %v33777_v50 = vmax.f32 %v30553_v53, 0.0  ;;  %v24173_v44 = vpop.f32.mrb[38].mxu0  ;;  %v8527_v55 = vadd.f32 %v30507_v14, %v35025_v25  ;;  %v35031_v25 = vld [vmem:[#allocation6_spill] sm:$0xff] }
 0x7b3   : > { %12254 = vst.msk [vmem:[#allocation3 + $0x40] sm:$0xff] %vm264_vm12, %v33779_v52  ;;  %v30566_v32 = vadd.f32 %v24173_v44, %v8525_v7  ;;  %v12056_v46 = vpop.f32.mrb[39].mxu0  ;;  %v30568_v56 = vld [vmem:[#allocation3 + $0x17] sm:$0xff]  ;;  %v30583_v49 = vld [vmem:[#allocation3 + $0x1f] sm:$0xff]  ;;  %v35027_v7 = vmax.f32 %v35026_v8, 0.0 }
 0x7b4   : > { %12253 = vst.msk [vmem:[#allocation3 + $0x38] sm:$0xff] %vm264_vm12, %v33777_v50  ;;  %v30573_v59 = vadd.f32 %v12056_v46, %v8524_v12  ;;  %v12355_v19 = vsel %vm35023_vm10, %v30568_v56, 0.0  ;;  %vm35030_vm10 = vnez %v34425_v13 }
 0x7b5   : > { %35021 = vst [vmem:[#allocation37_spill] sm:$0xff] %v30566_v32  ;;  %v33775_v10 = vmax.f32 %v30566_v32, 0.0  ;;  %24215 = vmatprep.mubr.msk.f32.mxu1 %vm264_vm12, %v12355_v19  ;;  %v8526_v44 = vadd.f32 %v30507_v14, %v35027_v7 }
 0x7b6   : > { %35022 = vst [vmem:[#allocation32_spill] sm:$0xff] %v30573_v59  ;;  %v33776_v58 = vmax.f32 %v30573_v59, 0.0  ;;  %v24176_v40 = vpop.f32.mrb[40].mxu0  ;;  %24216 = vmatmul.mubr.msk.f32.gmra.mrb[66].mxu1 %vm264_vm12, %v30583_v49 }
 0x7b7   : > { %12256 = vst.msk [vmem:[#allocation3 + $0x50] sm:$0xff] %vm264_vm12, %v33775_v10  ;;  %v30594_v31 = vadd.f32 %v24176_v40, %v8527_v55  ;;  %v12066_v16 = vpop.f32.mrb[41].mxu0  ;;  %v30596_v12 = vld [vmem:[#allocation3 + $0x27] sm:$0xff]  ;;  %v35032_v55 = vmax.f32 %v35031_v25, 0.0  ;;  %v30611_v8 = vld [vmem:[#allocation3 + $0x2f] sm:$0xff] }
 0x7b8   : > { %12255 = vst.msk [vmem:[#allocation3 + $0x48] sm:$0xff] %vm264_vm12, %v33776_v58  ;;  %v30601_v46 = vadd.f32 %v12066_v16, %v8526_v44  ;;  %v12357_v19 = vsel %vm35030_vm10, %v30596_v12, 0.0  ;;  %v35033_v44 = vld [vmem:[#allocation7_spill] sm:$0xff]  ;;  %vm35037_vm10 = vnez %v34428_v38 }
 0x7b9   : > { %35028 = vst [vmem:[#allocation93_spill] sm:$0xff] %v30594_v31  ;;  %v33778_v20 = vmax.f32 %v30594_v31, 0.0  ;;  %24218 = vmatprep.mubr.msk.f32.mxu1 %vm264_vm12, %v12357_v19  ;;  %v8529_v40 = vadd.f32 %v30507_v14, %v35032_v55  ;;  %v35034_v16 = vmax.f32 %v35033_v44, 0.0 }
 0x7ba   : > { %35029 = vst [vmem:[#allocation94_spill] sm:$0xff] %v30601_v46  ;;  %v33782_v7 = vmax.f32 %v30601_v46, 0.0  ;;  %v24179_v10 = vpop.f32.mrb[42].mxu0  ;;  %24219 = vmatmul.mubr.msk.f32.gmra.mrb[68].mxu1 %vm264_vm12, %v30611_v8 }
 0x7bb   : > { %v8528_v58 = vadd.f32 %v30507_v14, %v35034_v16  ;;  %12258 = vst.msk [vmem:[#allocation3 + $0x60] sm:$0xff] %vm264_vm12, %v33778_v20  ;;  %v30622_v19 = vadd.f32 %v24179_v10, %v8529_v40  ;;  %v12076_v25 = vpop.f32.mrb[43].mxu0  ;;  %v30624_v55 = vld [vmem:[#allocation3 + $0x37] sm:$0xff]  ;;  %v30639_v52 = vld [vmem:[#allocation3 + $0x3f] sm:$0xff] }
 0x7bc   : > { %12257 = vst.msk [vmem:[#allocation3 + $0x58] sm:$0xff] %vm264_vm12, %v33782_v7  ;;  %v12359_v44 = vsel %vm35037_vm10, %v30624_v55, 0.0  ;;  %v35038_v20 = vld [vmem:[#allocation8_spill] sm:$0xff]  ;;  %vm35044_vm10 = vnez %v34431_v24  ;;  %v31107_v29 = vld [vmem:[#allocation3 + $0x39] sm:$0xff] }
 0x7bd   : > { %35035 = vst [vmem:[#allocation95_spill] sm:$0xff] %v30622_v19  ;;  %v30629_v50 = vadd.f32 %v12076_v25, %v8528_v58  ;;  %v33784_v16 = vmax.f32 %v30622_v19, 0.0  ;;  %24221 = vmatprep.mubr.msk.f32.mxu1 %vm264_vm12, %v12359_v44  ;;  %v35039_v10 = vmax.f32 %v35038_v20, 0.0  ;;  %v35040_v58 = vld [vmem:[#allocation9_spill] sm:$0xff] }
 0x7be   : > { %v24182_v18 = vpop.f32.mrb[44].mxu0  ;;  %24222 = vmatmul.mubr.msk.f32.gmra.mrb[70].mxu1 %vm264_vm12, %v30639_v52  ;;  %v35041_v25 = vmax.f32 %v35040_v58, 0.0 }
 0x7bf   : > { %35036 = vst [vmem:[#allocation96_spill] sm:$0xff] %v30629_v50  ;;  %v8531_v40 = vadd.f32 %v30507_v14, %v35039_v10  ;;  %v33788_v42 = vmax.f32 %v30629_v50, 0.0  ;;  %12260 = vst.msk [vmem:[#allocation3 + $0x70] sm:$0xff] %vm264_vm12, %v33784_v16  ;;  %v12086_v20 = vpop.f32.mrb[45].mxu0  ;;  %v30652_v10 = vld [vmem:[#allocation3 + $0x47] sm:$0xff]  ;;  %v30667_v60 = vld [vmem:[#allocation3 + $0x4f] sm:$0xff] }
 0x7c0   : > { %v8530_v7 = vadd.f32 %v30507_v14, %v35041_v25  ;;  %v12361_v58 = vsel %vm35044_vm10, %v30652_v10, 0.0  ;;  %v35045_v16 = vld [vmem:[#allocation10_spill] sm:$0xff]  ;;  %vm35051_vm10 = vnez %v34434_v43  ;;  %v31117_v26 = vld [vmem:[#allocation3 + $0x49] sm:$0xff] }
 0x7c1   : > { %v30650_v44 = vadd.f32 %v24182_v18, %v8531_v40  ;;  %12259 = vst.msk [vmem:[#allocation3 + $0x68] sm:$0xff] %vm264_vm12, %v33788_v42  ;;  %24224 = vmatprep.mubr.msk.f32.mxu1 %vm264_vm12, %v12361_v58  ;;  %v35046_v18 = vmax.f32 %v35045_v16, 0.0 }
 0x7c2   : > { %v30657_v45 = vadd.f32 %v12086_v20, %v8530_v7  ;;  %v24185_v19 = vpop.f32.mrb[46].mxu0  ;;  %24225 = vmatmul.mubr.msk.f32.gmra.mrb[72].mxu1 %vm264_vm12, %v30667_v60  ;;  %v35047_v7 = vld [vmem:[#allocation11_spill] sm:$0xff] }
 0x7c3   : > { %35042 = vst [vmem:[#allocation97_spill] sm:$0xff] %v30650_v44  ;;  %v33790_v25 = vmax.f32 %v30650_v44, 0.0  ;;  %v8533_v40 = vadd.f32 %v30507_v14, %v35046_v18  ;;  %v35048_v20 = vmax.f32 %v35047_v7, 0.0  ;;  %v12096_v16 = vpop.f32.mrb[47].mxu0  ;;  %v30680_v18 = vld [vmem:[#allocation3 + $0x57] sm:$0xff]  ;;  %v30695_v44 = vld [vmem:[#allocation3 + $0x5f] sm:$0xff] }
 0x7c4   : > { %35043 = vst [vmem:[#allocation98_spill] sm:$0xff] %v30657_v45  ;;  %v33794_v50 = vmax.f32 %v30657_v45, 0.0  ;;  %v12363_v7 = vsel %vm35051_vm10, %v30680_v18, 0.0  ;;  %vm35058_vm10 = vnez %v34437_v37  ;;  %v31127_v39 = vld [vmem:[#allocation3 + $0x59] sm:$0xff] }
 0x7c5   : > { %v8532_v42 = vadd.f32 %v30507_v14, %v35048_v20  ;;  %12262 = vst.msk [vmem:[#allocation3 + $0x80] sm:$0xff] %vm264_vm12, %v33790_v25  ;;  %v30678_v58 = vadd.f32 %v24185_v19, %v8533_v40  ;;  %24227 = vmatprep.mubr.msk.f32.mxu1 %vm264_vm12, %v12363_v7  ;;  %v35052_v25 = vld [vmem:[#allocation12_spill] sm:$0xff] }
 0x7c6   : > { %12261 = vst.msk [vmem:[#allocation3 + $0x78] sm:$0xff] %vm264_vm12, %v33794_v50  ;;  %v35053_v19 = vmax.f32 %v35052_v25, 0.0  ;;  %v24188_v31 = vpop.f32.mrb[48].mxu0  ;;  %24228 = vmatmul.mubr.msk.f32.gmra.mrb[74].mxu1 %vm264_vm12, %v30695_v44 }
 0x7c7   : > { %35049 = vst [vmem:[#allocation99_spill] sm:$0xff] %v30678_v58  ;;  %v30685_v46 = vadd.f32 %v12096_v16, %v8532_v42  ;;  %v33796_v20 = vmax.f32 %v30678_v58, 0.0  ;;  %v35054_v42 = vld [vmem:[#allocation72_spill] sm:$0xff]  ;;  %v12106_v25 = vpop.f32.mrb[49].mxu0 }
 0x7c8   : > { %v8535_v40 = vadd.f32 %v30507_v14, %v35053_v19  ;;  %v35055_v16 = vmax.f32 %v35054_v42, 0.0  ;;  %v30708_v19 = vld [vmem:[#allocation3 + $0x67] sm:$0xff]  ;;  %v30723_v58 = vld [vmem:[#allocation3 + $0x6f] sm:$0xff]  ;;  %35141 = vst [vmem:[#allocation72_spill] sm:$0xff] %v31107_v29 }
 0x7c9   : > { %35050 = vst [vmem:[#allocation100_spill] sm:$0xff] %v30685_v46  ;;  %v33800_v45 = vmax.f32 %v30685_v46, 0.0  ;;  %12264 = vst.msk [vmem:[#allocation3 + $0x90] sm:$0xff] %vm264_vm12, %v33796_v20  ;;  %v12365_v42 = vsel %vm35058_vm10, %v30708_v19, 0.0  ;;  %v35059_v20 = vld [vmem:[#allocation73_spill] sm:$0xff]  ;;  %vm35065_vm10 = vnez %v34440_v62  ;;  %v31137_v41 = vld [vmem:[#allocation3 + $0x69] sm:$0xff] }
 0x7ca   : > { %v8534_v50 = vadd.f32 %v30507_v14, %v35055_v16  ;;  %v30706_v7 = vadd.f32 %v24188_v31, %v8535_v40  ;;  %24230 = vmatprep.mubr.msk.f32.mxu1 %vm264_vm12, %v12365_v42  ;;  %v35060_v31 = vmax.f32 %v35059_v20, 0.0  ;;  %v24191_v32 = vpop.f32.mrb[50].mxu0  ;;  %35142 = vst [vmem:[#allocation73_spill] sm:$0xff] %v31117_v26 }
 0x7cb   : > { %12263 = vst.msk [vmem:[#allocation3 + $0x88] sm:$0xff] %vm264_vm12, %v33800_v45  ;;  %24231 = vmatmul.mubr.msk.f32.gmra.mrb[76].mxu1 %vm264_vm12, %v30723_v58  ;;  %v12116_v20 = vpop.f32.mrb[51].mxu0 }
 0x7cc   : > { %35056 = vst [vmem:[#allocation103_spill] sm:$0xff] %v30706_v7  ;;  %v30713_v59 = vadd.f32 %v12106_v25, %v8534_v50  ;;  %v33802_v16 = vmax.f32 %v30706_v7, 0.0  ;;  %v8537_v40 = vadd.f32 %v30507_v14, %v35060_v31  ;;  %v35061_v50 = vld [vmem:[#allocation74_spill] sm:$0xff] }
 0x7cd   : > { %v35062_v25 = vmax.f32 %v35061_v50, 0.0  ;;  %v30736_v31 = vld [vmem:[#allocation3 + $0x77] sm:$0xff]  ;;  %v30751_v7 = vld [vmem:[#allocation3 + $0x7f] sm:$0xff]  ;;  %35143 = vst [vmem:[#allocation74_spill] sm:$0xff] %v31127_v39 }
 0x7ce   : > { %35057 = vst [vmem:[#allocation104_spill] sm:$0xff] %v30713_v59  ;;  %v33806_v46 = vmax.f32 %v30713_v59, 0.0  ;;  %12266 = vst.msk [vmem:[#allocation3 + $0xa0] sm:$0xff] %vm264_vm12, %v33802_v16  ;;  %v30734_v42 = vadd.f32 %v24191_v32, %v8537_v40  ;;  %v12367_v50 = vsel %vm35065_vm10, %v30736_v31, 0.0  ;;  %v35066_v16 = vld [vmem:[#allocation75_spill] sm:$0xff]  ;;  %v24194_v6 = vpop.f32.mrb[52].mxu0 }
 0x7cf   : > { %v8536_v45 = vadd.f32 %v30507_v14, %v35062_v25  ;;  %24233 = vmatprep.mubr.msk.f32.mxu1 %vm264_vm12, %v12367_v50  ;;  %v35067_v32 = vmax.f32 %v35066_v16, 0.0  ;;  %v12126_v16 = vpop.f32.mrb[53].mxu0  ;;  %35144 = vst [vmem:[#allocation75_spill] sm:$0xff] %v31137_v41  ;;  %v31147_v1 = vld [vmem:[#allocation3 + $0x79] sm:$0xff] }
 0x7d0   : > { %35063 = vst [vmem:[#allocation105_spill] sm:$0xff] %v30734_v42  ;;  %12265 = vst.msk [vmem:[#allocation3 + $0x98] sm:$0xff] %vm264_vm12, %v33806_v46  ;;  %v33808_v25 = vmax.f32 %v30734_v42, 0.0  ;;  %24234 = vmatmul.mubr.msk.f32.gmra.mrb[78].mxu1 %vm264_vm12, %v30751_v7 }
 0x7d1   : > { %v30741_v53 = vadd.f32 %v12116_v20, %v8536_v45  ;;  %v8539_v40 = vadd.f32 %v30507_v14, %v35067_v32  ;;  %v35068_v45 = vld [vmem:[#allocation76_spill] sm:$0xff] }
 0x7d2   : > { %v35069_v20 = vmax.f32 %v35068_v45, 0.0  ;;  %12268 = vst.msk [vmem:[#allocation3 + $0xb0] sm:$0xff] %vm264_vm12, %v33808_v25  ;;  %v30764_v32 = vld [vmem:[#allocation3 + $0x87] sm:$0xff]  ;;  %v35072_v25 = vld [vmem:[#allocation77_spill] sm:$0xff]  ;;  %v30779_v42 = vld [vmem:[#allocation3 + $0x8f] sm:$0xff]  ;;  %v24197_v0 = vpop.f32.mrb[54].mxu0 }
 0x7d3   : > { %35064 = vst [vmem:[#allocation44_spill] sm:$0xff] %v30741_v53  ;;  %v33812_v59 = vmax.f32 %v30741_v53, 0.0  ;;  %v30762_v50 = vadd.f32 %v24194_v6, %v8539_v40  ;;  %v12369_v45 = vsel %vm34929_vm0, %v30764_v32, 0.0  ;;  %v35073_v6 = vmax.f32 %v35072_v25, 0.0  ;;  %v12136_v25 = vpop.f32.mrb[55].mxu0  ;;  %35145 = vst [vmem:[#allocation76_spill] sm:$0xff] %v31147_v1 }
 0x7d4   : > { %v8538_v46 = vadd.f32 %v30507_v14, %v35069_v20  ;;  %24236 = vmatprep.mubr.msk.f32.mxu1 %vm264_vm12, %v12369_v45  ;;  %vm35078_vm0 = vnez %v34845_v57  ;;  %v31157_v3 = vld [vmem:[#allocation3 + $0x89] sm:$0xff] }
 0x7d5   : > { %35070 = vst [vmem:[#allocation4_spill] sm:$0xff] %v30762_v50  ;;  %12267 = vst.msk [vmem:[#allocation3 + $0xa8] sm:$0xff] %vm264_vm12, %v33812_v59  ;;  %v33815_v20 = vmax.f32 %v30762_v50, 0.0  ;;  %v8541_v40 = vadd.f32 %v30507_v14, %v35073_v6  ;;  %24237 = vmatmul.mubr.msk.f32.gmra.mrb[80].mxu1 %vm264_vm12, %v30779_v42 }
 0x7d6   : > { %v30769_v36 = vadd.f32 %v12126_v16, %v8538_v46  ;;  %v35074_v46 = vld [vmem:[#allocation78_spill] sm:$0xff]  ;;  %v24200_v15 = vpop.f32.mrb[56].mxu0  ;;  %35147 = vst [vmem:[#allocation77_spill] sm:$0xff] %v31157_v3 }
 0x7d7   : > { %v35075_v16 = vmax.f32 %v35074_v46, 0.0  ;;  %12270 = vst.msk [vmem:[#allocation3 + $0xc0] sm:$0xff] %vm264_vm12, %v33815_v20  ;;  %v30790_v45 = vadd.f32 %v24197_v0, %v8541_v40  ;;  %v30792_v6 = vld [vmem:[#allocation3 + $0x97] sm:$0xff]  ;;  %v30807_v50 = vld [vmem:[#allocation3 + $0x9f] sm:$0xff] }
 0x7d8   : > { %35071 = vst [vmem:[#allocation22_spill] sm:$0xff] %v30769_v36  ;;  %v33819_v53 = vmax.f32 %v30769_v36, 0.0  ;;  %v12371_v46 = vsel %vm35078_vm0, %v30792_v6, 0.0  ;;  %v35079_v20 = vld [vmem:[#allocation80_spill] sm:$0xff]  ;;  %35081 = vst [vmem:[#allocation27_spill] sm:$0xff] %v30807_v50  ;;  %v31167_v27 = vld [vmem:[#allocation3 + $0x99] sm:$0xff] }
 0x7d9   : > { %v8540_v59 = vadd.f32 %v30507_v14, %v35075_v16  ;;  %35076 = vst [vmem:[#allocation19_spill] sm:$0xff] %v30790_v45  ;;  %v33821_v16 = vmax.f32 %v30790_v45, 0.0  ;;  %24239 = vmatprep.mubr.msk.f32.mxu1 %vm264_vm12, %v12371_v46  ;;  %v35080_v0 = vmax.f32 %v35079_v20, 0.0  ;;  %v12146_v20 = vpop.f32.mrb[57].mxu0  ;;  %35149 = vst [vmem:[#allocation78_spill] sm:$0xff] %v31167_v27 }
 0x7da   : > { %12269 = vst.msk [vmem:[#allocation3 + $0xb8] sm:$0xff] %vm264_vm12, %v33819_v53  ;;  %24240 = vmatmul.mubr.msk.f32.gmra.mrb[82].mxu1 %vm264_vm12, %v30807_v50  ;;  %v24203_v50 = vpop.f32.mrb[58].mxu0 }
 0x7db   : > { %v30797_v23 = vadd.f32 %v12136_v25, %v8540_v59  ;;  %v8543_v40 = vadd.f32 %v30507_v14, %v35080_v0  ;;  %v35082_v59 = vld [vmem:[#allocation82_spill] sm:$0xff]  ;;  %12272 = vst.msk [vmem:[#allocation3 + $0xd0] sm:$0xff] %vm264_vm12, %v33821_v16  ;;  %v35086_v16 = vld [vmem:[#allocation85_spill] sm:$0xff] }
 0x7dc   : > { %v35083_v25 = vmax.f32 %v35082_v59, 0.0  ;;  %v30820_v0 = vld [vmem:[#allocation3 + $0xa7] sm:$0xff]  ;;  %v30835_v45 = vld [vmem:[#allocation3 + $0xaf] sm:$0xff] }
 0x7dd   : > { %35077 = vst [vmem:[#allocation18_spill] sm:$0xff] %v30797_v23  ;;  %v33826_v36 = vmax.f32 %v30797_v23, 0.0  ;;  %v30818_v46 = vadd.f32 %v24200_v15, %v8543_v40  ;;  %v12373_v59 = vsel %vm34931_vm11, %v30820_v0, 0.0  ;;  %v35087_v15 = vmax.f32 %v35086_v16, 0.0  ;;  %35088 = vst [vmem:[#allocation34_spill] sm:$0xff] %v30835_v45  ;;  %v12156_v16 = vpop.f32.mrb[59].mxu0 }
 0x7de   : > { %v8542_v53 = vadd.f32 %v30507_v14, %v35083_v25  ;;  %24242 = vmatprep.mubr.msk.f32.mxu1 %vm264_vm12, %v12373_v59  ;;  %vm35093_vm11 = vnez %v34851_v9 }
 0x7df   : > { %35084 = vst [vmem:[#allocation28_spill] sm:$0xff] %v30818_v46  ;;  %12271 = vst.msk [vmem:[#allocation3 + $0xc8] sm:$0xff] %vm264_vm12, %v33826_v36  ;;  %v33829_v25 = vmax.f32 %v30818_v46, 0.0  ;;  %v8545_v40 = vadd.f32 %v30507_v14, %v35087_v15  ;;  %24243 = vmatmul.mubr.msk.f32.gmra.mrb[84].mxu1 %vm264_vm12, %v30835_v45  ;;  %v24206_v45 = vpop.f32.mrb[60].mxu0 }
 0x7e0   : > { %v30825_v57 = vadd.f32 %v12146_v20, %v8542_v53  ;;  %v35089_v53 = vld [vmem:[#allocation86_spill] sm:$0xff] }
 0x7e1   : > { %v35090_v20 = vmax.f32 %v35089_v53, 0.0  ;;  %12274 = vst.msk [vmem:[#allocation3 + $0xe0] sm:$0xff] %vm264_vm12, %v33829_v25  ;;  %v30846_v59 = vadd.f32 %v24203_v50, %v8545_v40  ;;  %v30848_v15 = vld [vmem:[#allocation3 + $0xb7] sm:$0xff]  ;;  %v30863_v46 = vld [vmem:[#allocation3 + $0xbf] sm:$0xff] }
 0x7e2   : > { %35085 = vst [vmem:[#allocation25_spill] sm:$0xff] %v30825_v57  ;;  %v33834_v23 = vmax.f32 %v30825_v57, 0.0  ;;  %v12375_v53 = vsel %vm35093_vm11, %v30848_v15, 0.0  ;;  %v35094_v25 = vld [vmem:[#allocation88_spill] sm:$0xff]  ;;  %35096 = vst [vmem:[#allocation35_spill] sm:$0xff] %v30863_v46  ;;  %vm35101_vm11 = vnez %v34853_v30 }
 0x7e3   : > { %v8544_v36 = vadd.f32 %v30507_v14, %v35090_v20  ;;  %35091 = vst [vmem:[#allocation29_spill] sm:$0xff] %v30846_v59  ;;  %v33836_v20 = vmax.f32 %v30846_v59, 0.0  ;;  %24245 = vmatprep.mubr.msk.f32.mxu1 %vm264_vm12, %v12375_v53  ;;  %v35095_v50 = vmax.f32 %v35094_v25, 0.0  ;;  %v12166_v25 = vpop.f32.mrb[61].mxu0 }
 0x7e4   : > { %12273 = vst.msk [vmem:[#allocation3 + $0xd8] sm:$0xff] %vm264_vm12, %v33834_v23  ;;  %24246 = vmatmul.mubr.msk.f32.gmra.mrb[86].mxu1 %vm264_vm12, %v30863_v46  ;;  %v24209_v46 = vpop.f32.mrb[62].mxu0 }
 0x7e5   : > { %v30853_v22 = vadd.f32 %v12156_v16, %v8544_v36  ;;  %v8547_v40 = vadd.f32 %v30507_v14, %v35095_v50  ;;  %v35097_v36 = vld [vmem:[#allocation89_spill] sm:$0xff]  ;;  %12276 = vst.msk [vmem:[#allocation3 + $0xf0] sm:$0xff] %vm264_vm12, %v33836_v20  ;;  %v35102_v20 = vld [vmem:[#allocation66_spill] sm:$0xff] }
 0x7e6   : > { %v35098_v16 = vmax.f32 %v35097_v36, 0.0  ;;  %v30876_v50 = vld [vmem:[#allocation3 + $0xc7] sm:$0xff]  ;;  %v30891_v59 = vld [vmem:[#allocation3 + $0xcf] sm:$0xff] }
 0x7e7   : > { %35092 = vst [vmem:[#allocation31_spill] sm:$0xff] %v30853_v22  ;;  %v33841_v57 = vmax.f32 %v30853_v22, 0.0  ;;  %v30874_v53 = vadd.f32 %v24206_v45, %v8547_v40  ;;  %v12377_v36 = vsel %vm35101_vm11, %v30876_v50, 0.0  ;;  %v35103_v45 = vmax.f32 %v35102_v20, 0.0  ;;  %v12176_v20 = vpop.f32.mrb[63].mxu0 }
 0x7e8   : > { %v8546_v23 = vadd.f32 %v30507_v14, %v35098_v16  ;;  %24248 = vmatprep.mubr.msk.f32.mxu1 %vm264_vm12, %v12377_v36  ;;  %vm35109_vm11 = vnez %v34531_v5 }
 0x7e9   : > { %35099 = vst [vmem:[#allocation41_spill] sm:$0xff] %v30874_v53  ;;  %12275 = vst.msk [vmem:[#allocation3 + $0xe8] sm:$0xff] %vm264_vm12, %v33841_v57  ;;  %v33847_v16 = vmax.f32 %v30874_v53, 0.0  ;;  %v8549_v40 = vadd.f32 %v30507_v14, %v35103_v45  ;;  %24249 = vmatmul.mubr.msk.f32.gmra.mrb[88].mxu1 %vm264_vm12, %v30891_v59  ;;  %v30984_v53 = vld [vmem:[#allocation3 + $0x50] sm:$0xff] }
 0x7ea   : > { %v30881_v9 = vadd.f32 %v12166_v25, %v8546_v23  ;;  %v35104_v23 = vld [vmem:[#allocation39_spill] sm:$0xff]  ;;  %35116 = vst [vmem:[#allocation61_spill] sm:$0xff] %v30984_v53 }
 0x7eb   : > { %v35105_v25 = vmax.f32 %v35104_v23, 0.0  ;;  %12278 = vst.msk [vmem:[#allocation3 + $0x100] sm:$0xff] %vm264_vm12, %v33847_v16  ;;  %v30902_v36 = vadd.f32 %v24209_v46, %v8549_v40  ;;  %v30904_v45 = vld [vmem:[#allocation3 + $0xd7] sm:$0xff] }
 0x7ec   : > { %35100 = vst [vmem:[#allocation38_spill] sm:$0xff] %v30881_v9  ;;  %v33845_v22 = vmax.f32 %v30881_v9, 0.0  ;;  %v12379_v23 = vsel %vm34855_vm13, %v30904_v45, 0.0  ;;  %vm35108_vm13 = vnez %v34347_v4  ;;  %v30951_v16 = vld [vmem:[%s33208_s3 + $0xa8] sm:$0xff]  ;;  %v30980_v9 = vld [vmem:[#allocation3 + $0x48] sm:$0xff] }
 0x7ed   : > { %v8548_v57 = vadd.f32 %v30507_v14, %v35105_v25  ;;  %35106 = vst [vmem:[#allocation46_spill] sm:$0xff] %v30902_v36  ;;  %v33844_v14 = vmax.f32 %v30902_v36, 0.0  ;;  %24251 = vmatprep.mubr.msk.f32.mxu1 %vm264_vm12, %v12379_v23  ;;  %v30916_v25 = vld [vmem:[#allocation3 + $0xdf] sm:$0xff]  ;;  %35115 = vst [vmem:[#allocation59_spill] sm:$0xff] %v30980_v9 }
 0x7ee   : > { %12277 = vst.msk [vmem:[#allocation3 + $0xf8] sm:$0xff] %vm264_vm12, %v33845_v22  ;;  %24252 = vmatmul.mubr.msk.f32.gmra.mrb[90].mxu1 %vm264_vm12, %v30916_v25  ;;  %v12740_v22 = vld [vmem:[#allocation3 + $0x8] sm:$0xff]  ;;  %v30976_v36 = vld [vmem:[#allocation3 + $0x40] sm:$0xff] }
 0x7ef   : > { %v30909_v30 = vadd.f32 %v12176_v20, %v8548_v57  ;;  %12280 = vst.msk [vmem:[#allocation3 + $0x110] sm:$0xff] %vm264_vm12, %v33844_v14  ;;  %35114 = vst [vmem:[#allocation58_spill] sm:$0xff] %v30976_v36 }
 0x7f0   : > { %v30924_v57 = vld [vmem:[#allocation3 + $0xe7] sm:$0xff]  ;;  %v30933_v20 = vld [vmem:[#allocation3 + $0xef] sm:$0xff] }
 0x7f1   : > { %35107 = vst [vmem:[#allocation79_spill] sm:$0xff] %v30909_v30  ;;  %v33846_v46 = vmax.f32 %v30909_v30, 0.0  ;;  %v12381_v40 = vsel %vm35108_vm13, %v30924_v57, 0.0  ;;  %v30954_v30 = vld [vmem:[#allocation3 + $0x18] sm:$0xff] }
 0x7f2   : > { %24254 = vmatprep.mubr.msk.f32.mxu1 %vm264_vm12, %v12381_v40  ;;  %v12741_v40 = vld [vmem:[#allocation3 + $0x10] sm:$0xff] }
 0x7f3   : > { %12279 = vst.msk [vmem:[#allocation3 + $0x108] sm:$0xff] %vm264_vm12, %v33846_v46  ;;  %24255 = vmatmul.mubr.msk.f32.gmra.mrb[92].mxu1 %vm264_vm12, %v30933_v20 }
 0x7f5   : > { %v30937_v23 = vld [vmem:[#allocation3 + $0xf7] sm:$0xff]  ;;  %v30943_v46 = vld [vmem:[#allocation3 + $0xff] sm:$0xff] }
 0x7f6   : > { %v12383_v14 = vsel %vm35109_vm11, %v30937_v23, 0.0  ;;  %v31227_v61 = vld [vmem:[#allocation3 + $0xf9] sm:$0xff] }
 0x7f7   : > { %24257 = vmatprep.mubr.msk.f32.mxu1 %vm264_vm12, %v12383_v14  ;;  %v30960_v14 = vld [vmem:[#allocation3 + $0x20] sm:$0xff]  ;;  %35158 = vst [vmem:[#allocation89_spill] sm:$0xff] %v31227_v61 }
 0x7f8   : > { %24258 = vmatmul.mubr.msk.f32.gmra.mrb[94].mxu1 %vm264_vm12, %v30943_v46  ;;  %35110 = vst [vmem:[#allocation49_spill] sm:$0xff] %v30960_v14 }
 0x7f9   : > { %24262 = vmatprep.mubr.msk.f32.mxu1 %vm264_vm12, %v12740_v22  ;;  %v30964_v22 = vld [vmem:[#allocation3 + $0x28] sm:$0xff] }
 0x7fa   : > { %35111 = vst [vmem:[#allocation52_spill] sm:$0xff] %v30964_v22 }
 0x7fc   : > { %24263 = vmatmul.mubr.msk.f32.vlgmr.msra.gmra.mrb[64].mxu1 %vm264_vm12, %v12741_v40  ;;  %v30968_v40 = vld [vmem:[#allocation3 + $0x30] sm:$0xff] }
 0x7fd   : > { %24311 = vmatpush3.msra.mxu1 %v30501_v17  ;;  %24265 = vmatprep.mubr.msk.f32.mxu1 %vm264_vm12, %v30954_v30  ;;  %35112 = vst [vmem:[#allocation53_spill] sm:$0xff] %v30968_v40  ;;  %v30972_v17 = vld [vmem:[#allocation3 + $0x38] sm:$0xff] }
 0x7fe   : > { %24360 = vmatprep.subr.mxu1 %v30951_v16  ;;  %35113 = vst [vmem:[#allocation56_spill] sm:$0xff] %v30972_v17 }
 0x800   : > { %24266 = vmatmul.mubr.msk.f32.gmra.mrb[66].mxu1 %vm264_vm12, %v30960_v14  ;;  %v31087_v14 = vld [vmem:[#allocation3 + $0x21] sm:$0xff] }
 0x801   : > { %24268 = vmatprep.mubr.msk.f32.mxu1 %vm264_vm12, %v30964_v22  ;;  %v31072_v22 = vld [vmem:[#allocation3 + $0x100] sm:$0xff] }
 0x802   : > { %35138 = vst [vmem:[#allocation10_spill] sm:$0xff] %v31072_v22 }
 0x804   : > { %24269 = vmatmul.mubr.msk.f32.gmra.mrb[68].mxu1 %vm264_vm12, %v30968_v40  ;;  %v30988_v40 = vld [vmem:[#allocation3 + $0x58] sm:$0xff] }
 0x805   : > { %24271 = vmatprep.mubr.msk.f32.mxu1 %vm264_vm12, %v30972_v17  ;;  %35117 = vst [vmem:[#allocation63_spill] sm:$0xff] %v30988_v40  ;;  %v30992_v17 = vld [vmem:[#allocation3 + $0x60] sm:$0xff] }
 0x806   : > { %35118 = vst [vmem:[#allocation64_spill] sm:$0xff] %v30992_v17 }
 0x808   : > { %24272 = vmatmul.mubr.msk.f32.gmra.mrb[70].mxu1 %vm264_vm12, %v30976_v36  ;;  %v30996_v36 = vld [vmem:[#allocation3 + $0x68] sm:$0xff] }
 0x809   : > { %24274 = vmatprep.mubr.msk.f32.mxu1 %vm264_vm12, %v30980_v9  ;;  %35119 = vst [vmem:[#allocation68_spill] sm:$0xff] %v30996_v36  ;;  %v31000_v9 = vld [vmem:[#allocation3 + $0x70] sm:$0xff] }
 0x80a   : > { %35120 = vst [vmem:[#allocation40_spill] sm:$0xff] %v31000_v9 }
 0x80c   : > { %24275 = vmatmul.mubr.msk.f32.gmra.mrb[72].mxu1 %vm264_vm12, %v30984_v53  ;;  %v31004_v53 = vld [vmem:[#allocation3 + $0x78] sm:$0xff] }
 0x80d   : > { %24277 = vmatprep.mubr.msk.f32.mxu1 %vm264_vm12, %v30988_v40  ;;  %35121 = vst [vmem:[#allocation43_spill] sm:$0xff] %v31004_v53  ;;  %v31008_v40 = vld [vmem:[#allocation3 + $0x80] sm:$0xff] }
 0x80e   : > { %35122 = vst [vmem:[#allocation45_spill] sm:$0xff] %v31008_v40 }
 0x810   : > { %24278 = vmatmul.mubr.msk.f32.gmra.mrb[74].mxu1 %vm264_vm12, %v30992_v17  ;;  %v31012_v17 = vld [vmem:[#allocation3 + $0x88] sm:$0xff] }
 0x811   : > { %24280 = vmatprep.mubr.msk.f32.mxu1 %vm264_vm12, %v30996_v36  ;;  %35123 = vst [vmem:[#allocation84_spill] sm:$0xff] %v31012_v17  ;;  %v31016_v36 = vld [vmem:[#allocation3 + $0x90] sm:$0xff] }
 0x812   : > { %35124 = vst [vmem:[#allocation15_spill] sm:$0xff] %v31016_v36 }
 0x814   : > { %24281 = vmatmul.mubr.msk.f32.gmra.mrb[76].mxu1 %vm264_vm12, %v31000_v9  ;;  %v31020_v9 = vld [vmem:[#allocation3 + $0x98] sm:$0xff] }
 0x815   : > { %24283 = vmatprep.mubr.msk.f32.mxu1 %vm264_vm12, %v31004_v53  ;;  %35125 = vst [vmem:[#allocation50_spill] sm:$0xff] %v31020_v9  ;;  %v31024_v53 = vld [vmem:[#allocation3 + $0xa0] sm:$0xff] }
 0x816   : > { %35126 = vst [vmem:[#allocation21_spill] sm:$0xff] %v31024_v53 }
 0x818   : > { %24284 = vmatmul.mubr.msk.f32.gmra.mrb[78].mxu1 %vm264_vm12, %v31008_v40  ;;  %v31028_v40 = vld [vmem:[#allocation3 + $0xa8] sm:$0xff] }
 0x819   : > { %24286 = vmatprep.mubr.msk.f32.mxu1 %vm264_vm12, %v31012_v17  ;;  %35127 = vst [vmem:[#allocation69_spill] sm:$0xff] %v31028_v40  ;;  %v31032_v17 = vld [vmem:[#allocation3 + $0xb0] sm:$0xff] }
 0x81a   : > { %35128 = vst [vmem:[#allocation81_spill] sm:$0xff] %v31032_v17 }
 0x81c   : > { %24287 = vmatmul.mubr.msk.f32.gmra.mrb[80].mxu1 %vm264_vm12, %v31016_v36  ;;  %v31036_v36 = vld [vmem:[#allocation3 + $0xb8] sm:$0xff] }
 0x81d   : > { %24289 = vmatprep.mubr.msk.f32.mxu1 %vm264_vm12, %v31020_v9  ;;  %35129 = vst [vmem:[#allocation83_spill] sm:$0xff] %v31036_v36  ;;  %v31040_v9 = vld [vmem:[#allocation3 + $0xc0] sm:$0xff] }
 0x81e   : > { %35130 = vst [vmem:[#allocation90_spill] sm:$0xff] %v31040_v9 }
 0x820   : > { %24290 = vmatmul.mubr.msk.f32.gmra.mrb[82].mxu1 %vm264_vm12, %v31024_v53  ;;  %v31044_v53 = vld [vmem:[#allocation3 + $0xc8] sm:$0xff] }
 0x821   : > { %24292 = vmatprep.mubr.msk.f32.mxu1 %vm264_vm12, %v31028_v40  ;;  %35131 = vst [vmem:[#allocation101_spill] sm:$0xff] %v31044_v53  ;;  %v31048_v40 = vld [vmem:[#allocation3 + $0xd0] sm:$0xff] }
 0x822   : > { %35132 = vst [vmem:[#allocation102_spill] sm:$0xff] %v31048_v40 }
 0x824   : > { %24293 = vmatmul.mubr.msk.f32.gmra.mrb[84].mxu1 %vm264_vm12, %v31032_v17  ;;  %v31052_v17 = vld [vmem:[#allocation3 + $0xd8] sm:$0xff] }
 0x825   : > { %24295 = vmatprep.mubr.msk.f32.mxu1 %vm264_vm12, %v31036_v36  ;;  %35133 = vst [vmem:[#allocation71_spill] sm:$0xff] %v31052_v17  ;;  %v31056_v36 = vld [vmem:[#allocation3 + $0xe0] sm:$0xff] }
 0x826   : > { %35134 = vst [vmem:[#allocation6_spill] sm:$0xff] %v31056_v36 }
 0x828   : > { %24296 = vmatmul.mubr.msk.f32.gmra.mrb[86].mxu1 %vm264_vm12, %v31040_v9  ;;  %v31060_v9 = vld [vmem:[#allocation3 + $0xe8] sm:$0xff] }
 0x829   : > { %24298 = vmatprep.mubr.msk.f32.mxu1 %vm264_vm12, %v31044_v53  ;;  %35135 = vst [vmem:[#allocation7_spill] sm:$0xff] %v31060_v9  ;;  %v31064_v53 = vld [vmem:[#allocation3 + $0xf0] sm:$0xff] }
 0x82a   : > { %35136 = vst [vmem:[#allocation8_spill] sm:$0xff] %v31064_v53 }
 0x82c   : > { %24299 = vmatmul.mubr.msk.f32.gmra.mrb[88].mxu1 %vm264_vm12, %v31048_v40  ;;  %v31068_v40 = vld [vmem:[#allocation3 + $0xf8] sm:$0xff] }
 0x82d   : > { %24301 = vmatprep.mubr.msk.f32.mxu1 %vm264_vm12, %v31052_v17  ;;  %35137 = vst [vmem:[#allocation9_spill] sm:$0xff] %v31068_v40  ;;  %v13126_v17 = vld [vmem:[#allocation3 + $0x9] sm:$0xff] }
 0x830   : > { %24302 = vmatmul.mubr.msk.f32.gmra.mrb[90].mxu1 %vm264_vm12, %v31056_v36  ;;  %v13127_v36 = vld [vmem:[#allocation3 + $0x11] sm:$0xff] }
 0x831   : > { %24304 = vmatprep.mubr.msk.f32.mxu1 %vm264_vm12, %v31060_v9  ;;  %v13159_v9 = vsel %vm34964_vm3, %v13127_v36, 0.0  ;;  %v13161_v36 = vsel %vm34967_vm1, %v31087_v14, 0.0 }
 0x834   : > { %24305 = vmatmul.mubr.msk.f32.gmra.mrb[92].mxu1 %vm264_vm12, %v31064_v53  ;;  %v31082_v53 = vld [vmem:[%s33208_s3 + $0xb0] sm:$0xff] }
 0x835   : > { %24307 = vmatprep.mubr.msk.f32.mxu1 %vm264_vm12, %v31068_v40  ;;  %v31085_v40 = vld [vmem:[#allocation3 + $0x19] sm:$0xff] }
 0x836   : > { %35139 = vst [vmem:[#allocation11_spill] sm:$0xff] %v31085_v40 }
 0x838   : > { %24308 = vmatmul.mubr.msk.f32.gmra.mrb[94].mxu1 %vm264_vm12, %v31072_v22 }
 0x839   : > { %24312 = vmatprep.mubr.msk.f32.mxu1 %vm264_vm12, %v13126_v17  ;;  %v31097_v17 = vld [vmem:[#allocation3 + $0x29] sm:$0xff] }
 0x83a   : > { %35140 = vst [vmem:[#allocation12_spill] sm:$0xff] %v31097_v17 }
 0x83c   : > { %24313 = vmatmul.mubr.msk.f32.vlgmr.msra.gmra.mrb[64].mxu1 %vm264_vm12, %v13159_v9  ;;  %v31099_v9 = vld [vmem:[#allocation3 + $0x31] sm:$0xff] }
 0x83d   : > { %24361 = vmatpush3.msra.mxu1 %v30951_v16  ;;  %24315 = vmatprep.mubr.msk.f32.mxu1 %vm264_vm12, %v31085_v40  ;;  %v13163_v16 = vsel %vm34895_vm5, %v31099_v9, 0.0  ;;  %v31109_v40 = vld [vmem:[#allocation3 + $0x41] sm:$0xff] }
 0x83e   : > { %24410 = vmatprep.subr.mxu1 %v31082_v53 }
 0x840   : > { %24316 = vmatmul.mubr.msk.f32.gmra.mrb[66].mxu1 %vm264_vm12, %v13161_v36  ;;  %v13165_v36 = vsel %vm34821_vm15, %v31109_v40, 0.0 }
 0x841   : > { %24318 = vmatprep.mubr.msk.f32.mxu1 %vm264_vm12, %v31097_v17  ;;  %v31119_v17 = vld [vmem:[#allocation3 + $0x51] sm:$0xff] }
 0x844   : > { %24319 = vmatmul.mubr.msk.f32.gmra.mrb[68].mxu1 %vm264_vm12, %v13163_v16  ;;  %v13167_v16 = vsel %vm34900_vm6, %v31119_v17, 0.0 }
 0x845   : > { %24321 = vmatprep.mubr.msk.f32.mxu1 %vm264_vm12, %v31107_v29  ;;  %v31129_v29 = vld [vmem:[#allocation3 + $0x61] sm:$0xff] }
 0x848   : > { %24322 = vmatmul.mubr.msk.f32.gmra.mrb[70].mxu1 %vm264_vm12, %v13165_v36  ;;  %v13169_v36 = vsel %vm34502_vm14, %v31129_v29, 0.0  ;;  %vm35146_vm14 = vnez %v34979_v2  ;;  %v31177_v2 = vld [vmem:[#allocation3 + $0xa9] sm:$0xff] }
 0x849   : > { %24324 = vmatprep.mubr.msk.f32.mxu1 %vm264_vm12, %v31117_v26  ;;  %v31139_v26 = vld [vmem:[#allocation3 + $0x71] sm:$0xff]  ;;  %35151 = vst [vmem:[#allocation80_spill] sm:$0xff] %v31177_v2 }
 0x84c   : > { %24325 = vmatmul.mubr.msk.f32.gmra.mrb[72].mxu1 %vm264_vm12, %v13167_v16  ;;  %v13171_v16 = vsel %vm34826_vm9, %v31139_v26, 0.0  ;;  %vm35148_vm9 = vnez %v34981_v63  ;;  %v31187_v63 = vld [vmem:[#allocation3 + $0xb9] sm:$0xff] }
 0x84d   : > { %24327 = vmatprep.mubr.msk.f32.mxu1 %vm264_vm12, %v31127_v39  ;;  %v31149_v39 = vld [vmem:[#allocation3 + $0x81] sm:$0xff]  ;;  %35153 = vst [vmem:[#allocation82_spill] sm:$0xff] %v31187_v63 }
 0x850   : > { %24328 = vmatmul.mubr.msk.f32.gmra.mrb[74].mxu1 %vm264_vm12, %v13169_v36  ;;  %v13173_v36 = vsel %vm35146_vm14, %v31149_v39, 0.0  ;;  %vm35150_vm14 = vnez %v34983_v28  ;;  %v31197_v28 = vld [vmem:[#allocation3 + $0xc9] sm:$0xff] }
 0x851   : > { %24330 = vmatprep.mubr.msk.f32.mxu1 %vm264_vm12, %v31137_v41  ;;  %v31159_v41 = vld [vmem:[#allocation3 + $0x91] sm:$0xff]  ;;  %35155 = vst [vmem:[#allocation85_spill] sm:$0xff] %v31197_v28 }
 0x854   : > { %24331 = vmatmul.mubr.msk.f32.gmra.mrb[76].mxu1 %vm264_vm12, %v13171_v16  ;;  %v13175_v16 = vsel %vm35148_vm9, %v31159_v41, 0.0  ;;  %vm35152_vm9 = vnez %v34912_v34  ;;  %v31207_v34 = vld [vmem:[#allocation3 + $0xd9] sm:$0xff] }
 0x855   : > { %24333 = vmatprep.mubr.msk.f32.mxu1 %vm264_vm12, %v31147_v1  ;;  %v31169_v1 = vld [vmem:[#allocation3 + $0xa1] sm:$0xff]  ;;  %35156 = vst [vmem:[#allocation86_spill] sm:$0xff] %v31207_v34 }
 0x858   : > { %24334 = vmatmul.mubr.msk.f32.gmra.mrb[78].mxu1 %vm264_vm12, %v13173_v36  ;;  %v13177_v36 = vsel %vm35150_vm14, %v31169_v1, 0.0  ;;  %vm35154_vm14 = vnez %v34985_v54  ;;  %v31217_v54 = vld [vmem:[#allocation3 + $0xe9] sm:$0xff] }
 0x859   : > { %24336 = vmatprep.mubr.msk.f32.mxu1 %vm264_vm12, %v31157_v3  ;;  %v31179_v3 = vld [vmem:[#allocation3 + $0xb1] sm:$0xff] }
 0x85c   : > { %24337 = vmatmul.mubr.msk.f32.gmra.mrb[80].mxu1 %vm264_vm12, %v13175_v16  ;;  %v13179_v16 = vsel %vm35152_vm9, %v31179_v3, 0.0 }
 0x85d   : > { %24339 = vmatprep.mubr.msk.f32.mxu1 %vm264_vm12, %v31167_v27  ;;  %v31189_v27 = vld [vmem:[#allocation3 + $0xc1] sm:$0xff] }
 0x860   : > { %24340 = vmatmul.mubr.msk.f32.gmra.mrb[82].mxu1 %vm264_vm12, %v13177_v36  ;;  %v13181_v36 = vsel %vm35154_vm14, %v31189_v27, 0.0 }
 0x861   : > { %24342 = vmatprep.mubr.msk.f32.mxu1 %vm264_vm12, %v31177_v2  ;;  %v31199_v2 = vld [vmem:[#allocation3 + $0xd1] sm:$0xff] }
 0x864   : > { %24343 = vmatmul.mubr.msk.f32.gmra.mrb[84].mxu1 %vm264_vm12, %v13179_v16  ;;  %v13183_v16 = vsel %vm34989_vm8, %v31199_v2, 0.0 }
 0x865   : > { %24345 = vmatprep.mubr.msk.f32.mxu1 %vm264_vm12, %v31187_v63  ;;  %v31209_v63 = vld [vmem:[#allocation3 + $0xe1] sm:$0xff] }
 0x868   : > { %24346 = vmatmul.mubr.msk.f32.gmra.mrb[86].mxu1 %vm264_vm12, %v13181_v36  ;;  %v13185_v36 = vsel %vm34993_vm4, %v31209_v63, 0.0  ;;  %vm35160_vm4 = vnez %v34998_v51 }
 0x869   : > { %24348 = vmatprep.mubr.msk.f32.mxu1 %vm264_vm12, %v31197_v28  ;;  %v31219_v28 = vld [vmem:[#allocation3 + $0xf1] sm:$0xff]  ;;  %v13576_v21 = vsel %vm35160_vm4, %v30568_v56, 0.0  ;;  %vm35162_vm4 = vnez %v34425_v13 }
 0x86a   : > { %35157 = vst [vmem:[#allocation88_spill] sm:$0xff] %v31219_v28 }
 0x86c   : > { %24349 = vmatmul.mubr.msk.f32.gmra.mrb[88].mxu1 %vm264_vm12, %v13183_v16  ;;  %v13187_v16 = vsel %vm34996_vm2, %v31219_v28, 0.0  ;;  %vm35161_vm2 = vnez %v34175_v33 }
 0x86d   : > { %24351 = vmatprep.mubr.msk.f32.mxu1 %vm264_vm12, %v31207_v34  ;;  %v31229_v34 = vld [vmem:[#allocation3 + $0x101] sm:$0xff]  ;;  %v13578_v11 = vsel %vm35161_vm2, %v30596_v12, 0.0  ;;  %vm35163_vm2 = vnez %v34428_v38 }
 0x86e   : > { %35159 = vst [vmem:[#allocation66_spill] sm:$0xff] %v31229_v34  ;;  %v13582_v56 = vsel %vm35163_vm2, %v30652_v10, 0.0  ;;  %vm35166_vm2 = vnez %v34437_v37  ;;  %v35170_v10 = vld [vmem:[#allocation34_spill] sm:$0xff] }
 0x870   : > { %24352 = vmatmul.mubr.msk.f32.gmra.mrb[90].mxu1 %vm264_vm12, %v13185_v36  ;;  %v13189_v36 = vsel %vm34922_vm7, %v31229_v34, 0.0  ;;  %vm35164_vm7 = vnez %v34431_v24 }
 0x871   : > { %24354 = vmatprep.mubr.msk.f32.mxu1 %vm264_vm12, %v31217_v54 }
 0x874   : > { %24355 = vmatmul.mubr.msk.f32.gmra.mrb[92].mxu1 %vm264_vm12, %v13187_v16  ;;  %v20940_v16 = vld [vmem:[%s33208_s3 + $0xb8] sm:$0xff] }
 0x875   : > { %24357 = vmatprep.mubr.msk.f32.mxu1 %vm264_vm12, %v31227_v61 }
 0x878   : > { %24358 = vmatmul.mubr.msk.f32.gmra.mrb[94].mxu1 %vm264_vm12, %v13189_v36  ;;  %v35176_v36 = vld [vmem:[#allocation26_spill] sm:$0xff] }
 0x879   : > { %24362 = vmatprep.mubr.msk.f32.mxu1 %vm264_vm12, %v13576_v21  ;;  %v13580_v21 = vsel %vm35162_vm4, %v30624_v55, 0.0  ;;  %vm35165_vm4 = vnez %v34434_v43  ;;  %v35169_v55 = vld [vmem:[#allocation13_spill] sm:$0xff] }
 0x87c   : > { %24363 = vmatmul.mubr.msk.f32.vlgmr.msra.gmra.mrb[64].mxu1 %vm264_vm12, %v30583_v49  ;;  %v13590_v49 = vsel %vm35065_vm10, %v30764_v32, 0.0 }
 0x87d   : > { %24411 = vmatpush3.msra.mxu1 %v31082_v53  ;;  %24365 = vmatprep.mubr.msk.f32.mxu1 %vm264_vm12, %v13578_v11  ;;  %v13584_v11 = vsel %vm35164_vm7, %v30680_v18, 0.0 }
 0x87e   : > { %24460 = vmatprep.subr.mxu1 %v20940_v16 }
 0x880   : > { %24366 = vmatmul.mubr.msk.f32.gmra.mrb[66].mxu1 %vm264_vm12, %v30611_v8  ;;  %v35168_v8 = vld [vmem:[#allocation27_spill] sm:$0xff] }
 0x881   : > { %24368 = vmatprep.mubr.msk.f32.mxu1 %vm264_vm12, %v13580_v21 }
 0x884   : > { %24369 = vmatmul.mubr.msk.f32.gmra.mrb[68].mxu1 %vm264_vm12, %v30639_v52  ;;  %v13586_v52 = vsel %vm35165_vm4, %v30708_v19, 0.0  ;;  %vm35167_vm4 = vnez %v34443_v48  ;;  %v35173_v19 = vld [vmem:[#allocation35_spill] sm:$0xff] }
 0x885   : > { %24371 = vmatprep.mubr.msk.f32.mxu1 %vm264_vm12, %v13582_v56  ;;  %v13592_v12 = vsel %vm35167_vm4, %v30792_v6, 0.0 }
 0x888   : > { %24372 = vmatmul.mubr.msk.f32.gmra.mrb[70].mxu1 %vm264_vm12, %v30667_v60  ;;  %v13588_v60 = vsel %vm35166_vm2, %v30736_v31, 0.0  ;;  %v35174_v31 = vld [vmem:[#allocation20_spill] sm:$0xff] }
 0x889   : > { %24374 = vmatprep.mubr.msk.f32.mxu1 %vm264_vm12, %v13584_v11  ;;  %vm35175_vm4 = vnez %v35174_v31  ;;  %v13604_v11 = vsel %vm35108_vm13, %v30937_v23, 0.0 }
 0x88a   : > { %v13598_v53 = vsel %vm35175_vm4, %v30876_v50, 0.0 }
 0x88c   : > { %24375 = vmatmul.mubr.msk.f32.gmra.mrb[72].mxu1 %vm264_vm12, %v30695_v44  ;;  %v13594_v44 = vsel %vm35078_vm0, %v30820_v0, 0.0  ;;  %vm35177_vm0 = vnez %v35176_v36 }
 0x88d   : > { %24377 = vmatprep.mubr.msk.f32.mxu1 %vm264_vm12, %v13586_v52  ;;  %v13600_v21 = vsel %vm35177_vm0, %v30904_v45, 0.0  ;;  %v31329_v52 = vld [vmem:[#allocation3 + $0x107] sm:$0xff] }
 0x890   : > { %24378 = vmatmul.mubr.msk.f32.gmra.mrb[74].mxu1 %vm264_vm12, %v30723_v58  ;;  %v35171_v58 = vld [vmem:[#allocation16_spill] sm:$0xff] }
 0x891   : > { %24380 = vmatprep.mubr.msk.f32.mxu1 %vm264_vm12, %v13588_v60  ;;  %vm35172_vm10 = vnez %v35171_v58  ;;  %v13606_v60 = vsel %vm35109_vm11, %v31329_v52, 0.0 }
 0x892   : > { %v13596_v18 = vsel %vm35172_vm10, %v30848_v15, 0.0  ;;  %vm35178_vm10 = vnez %v34388_v47 }
 0x893   : > { %v13602_v56 = vsel %vm35178_vm10, %v30924_v57, 0.0 }
 0x894   : > { %24381 = vmatmul.mubr.msk.f32.gmra.mrb[76].mxu1 %vm264_vm12, %v30751_v7 }
 0x895   : > { %24383 = vmatprep.mubr.msk.f32.mxu1 %vm264_vm12, %v13590_v49  ;;  %v31337_v49 = vld [vmem:[#allocation3 + $0x10f] sm:$0xff] }
 0x898   : > { %24384 = vmatmul.mubr.msk.f32.gmra.mrb[78].mxu1 %vm264_vm12, %v30779_v42 }
 0x899   : > { %24386 = vmatprep.mubr.msk.f32.mxu1 %vm264_vm12, %v13592_v12  ;;  %v20973_v12 = vld [vmem:[%s33208_s3 + $0xc0] sm:$0xff] }
 0x89c   : > { %24387 = vmatmul.mubr.msk.f32.gmra.mrb[80].mxu1 %vm264_vm12, %v35168_v8 }
 0x89d   : > { %24389 = vmatprep.mubr.msk.f32.mxu1 %vm264_vm12, %v13594_v44  ;;  %v35179_v44 = vld [vmem:[#allocation49_spill] sm:$0xff] }
 0x8a0   : > { %24390 = vmatmul.mubr.msk.f32.gmra.mrb[82].mxu1 %vm264_vm12, %v35170_v10 }
 0x8a1   : > { %24392 = vmatprep.mubr.msk.f32.mxu1 %vm264_vm12, %v13596_v18  ;;  %v35180_v18 = vld [vmem:[#allocation52_spill] sm:$0xff] }
 0x8a4   : > { %24393 = vmatmul.mubr.msk.f32.gmra.mrb[84].mxu1 %vm264_vm12, %v35173_v19 }
 0x8a5   : > { %24395 = vmatprep.mubr.msk.f32.mxu1 %vm264_vm12, %v13598_v53  ;;  %v35181_v53 = vld [vmem:[#allocation53_spill] sm:$0xff] }
 0x8a8   : > { %24396 = vmatmul.mubr.msk.f32.gmra.mrb[86].mxu1 %vm264_vm12, %v30891_v59 }
 0x8a9   : > { %24398 = vmatprep.mubr.msk.f32.mxu1 %vm264_vm12, %v13600_v21  ;;  %v35182_v21 = vld [vmem:[#allocation56_spill] sm:$0xff] }
 0x8ac   : > { %24399 = vmatmul.mubr.msk.f32.gmra.mrb[88].mxu1 %vm264_vm12, %v30916_v25 }
 0x8ad   : > { %24401 = vmatprep.mubr.msk.f32.mxu1 %vm264_vm12, %v13602_v56  ;;  %v35183_v56 = vld [vmem:[#allocation58_spill] sm:$0xff] }
 0x8b0   : > { %24402 = vmatmul.mubr.msk.f32.gmra.mrb[90].mxu1 %vm264_vm12, %v30933_v20 }
 0x8b1   : > { %24404 = vmatprep.mubr.msk.f32.mxu1 %vm264_vm12, %v13604_v11  ;;  %v35185_v11 = vld [vmem:[#allocation61_spill] sm:$0xff] }
 0x8b4   : > { %24405 = vmatmul.mubr.msk.f32.gmra.mrb[92].mxu1 %vm264_vm12, %v30943_v46 }
 0x8b5   : > { %24407 = vmatprep.mubr.msk.f32.mxu1 %vm264_vm12, %v13606_v60  ;;  %v35187_v60 = vld [vmem:[#allocation64_spill] sm:$0xff] }
 0x8b8   : > { %24408 = vmatmul.mubr.msk.f32.gmra.mrb[94].mxu1 %vm264_vm12, %v31337_v49 }
 0x8b9   : > { %24412 = vmatprep.mubr.msk.f32.mxu1 %vm264_vm12, %v30954_v30  ;;  %v35184_v30 = vld [vmem:[#allocation59_spill] sm:$0xff] }
 0x8bc   : > { %24413 = vmatmul.mubr.msk.f32.vlgmr.msra.gmra.mrb[64].mxu1 %vm264_vm12, %v35179_v44  ;;  %v35188_v44 = vld [vmem:[#allocation68_spill] sm:$0xff] }
 0x8bd   : > { %24461 = vmatpush3.msra.mxu1 %v20940_v16  ;;  %24415 = vmatprep.mubr.msk.f32.mxu1 %vm264_vm12, %v35180_v18  ;;  %v35186_v16 = vld [vmem:[#allocation63_spill] sm:$0xff] }
 0x8be   : > { %24510 = vmatprep.subr.mxu1 %v20973_v12 }
 0x8c0   : > { %24416 = vmatmul.mubr.msk.f32.gmra.mrb[66].mxu1 %vm264_vm12, %v35181_v53  ;;  %v35189_v53 = vld [vmem:[#allocation40_spill] sm:$0xff] }
 0x8c1   : > { %24418 = vmatprep.mubr.msk.f32.mxu1 %vm264_vm12, %v35182_v21  ;;  %v35190_v21 = vld [vmem:[#allocation43_spill] sm:$0xff] }
 0x8c4   : > { %24419 = vmatmul.mubr.msk.f32.gmra.mrb[68].mxu1 %vm264_vm12, %v35183_v56  ;;  %v35191_v56 = vld [vmem:[#allocation45_spill] sm:$0xff] }
 0x8c5   : > { %24421 = vmatprep.mubr.msk.f32.mxu1 %vm264_vm12, %v35184_v30  ;;  %v35192_v30 = vld [vmem:[#allocation84_spill] sm:$0xff] }
 0x8c8   : > { %24422 = vmatmul.mubr.msk.f32.gmra.mrb[70].mxu1 %vm264_vm12, %v35185_v11  ;;  %v35193_v11 = vld [vmem:[#allocation15_spill] sm:$0xff] }
 0x8c9   : > { %24424 = vmatprep.mubr.msk.f32.mxu1 %vm264_vm12, %v35186_v16  ;;  %v35194_v16 = vld [vmem:[#allocation50_spill] sm:$0xff] }
 0x8cc   : > { %24425 = vmatmul.mubr.msk.f32.gmra.mrb[72].mxu1 %vm264_vm12, %v35187_v60  ;;  %v35195_v60 = vld [vmem:[#allocation21_spill] sm:$0xff] }
 0x8cd   : > { %24427 = vmatprep.mubr.msk.f32.mxu1 %vm264_vm12, %v35188_v44  ;;  %v35196_v44 = vld [vmem:[#allocation69_spill] sm:$0xff] }
 0x8d0   : > { %24428 = vmatmul.mubr.msk.f32.gmra.mrb[74].mxu1 %vm264_vm12, %v35189_v53  ;;  %v35197_v53 = vld [vmem:[#allocation81_spill] sm:$0xff] }
 0x8d1   : > { %24430 = vmatprep.mubr.msk.f32.mxu1 %vm264_vm12, %v35190_v21  ;;  %v35198_v21 = vld [vmem:[#allocation83_spill] sm:$0xff] }
 0x8d4   : > { %24431 = vmatmul.mubr.msk.f32.gmra.mrb[76].mxu1 %vm264_vm12, %v35191_v56  ;;  %v35199_v56 = vld [vmem:[#allocation90_spill] sm:$0xff] }
 0x8d5   : > { %24433 = vmatprep.mubr.msk.f32.mxu1 %vm264_vm12, %v35192_v30  ;;  %v35200_v30 = vld [vmem:[#allocation101_spill] sm:$0xff] }
 0x8d8   : > { %24434 = vmatmul.mubr.msk.f32.gmra.mrb[78].mxu1 %vm264_vm12, %v35193_v11  ;;  %v35201_v11 = vld [vmem:[#allocation102_spill] sm:$0xff] }
 0x8d9   : > { %24436 = vmatprep.mubr.msk.f32.mxu1 %vm264_vm12, %v35194_v16  ;;  %v35202_v16 = vld [vmem:[#allocation71_spill] sm:$0xff] }
 0x8dc   : > { %24437 = vmatmul.mubr.msk.f32.gmra.mrb[80].mxu1 %vm264_vm12, %v35195_v60  ;;  %v35203_v60 = vld [vmem:[#allocation6_spill] sm:$0xff] }
 0x8dd   : > { %24439 = vmatprep.mubr.msk.f32.mxu1 %vm264_vm12, %v35196_v44  ;;  %v35204_v44 = vld [vmem:[#allocation7_spill] sm:$0xff] }
 0x8e0   : > { %24440 = vmatmul.mubr.msk.f32.gmra.mrb[82].mxu1 %vm264_vm12, %v35197_v53  ;;  %v35205_v53 = vld [vmem:[#allocation8_spill] sm:$0xff] }
 0x8e1   : > { %24442 = vmatprep.mubr.msk.f32.mxu1 %vm264_vm12, %v35198_v21  ;;  %v35206_v21 = vld [vmem:[#allocation9_spill] sm:$0xff] }
 0x8e4   : > { %24443 = vmatmul.mubr.msk.f32.gmra.mrb[84].mxu1 %vm264_vm12, %v35199_v56 }
 0x8e5   : > { %24445 = vmatprep.mubr.msk.f32.mxu1 %vm264_vm12, %v35200_v30  ;;  %v31404_v30 = vld [vmem:[#allocation3 + $0x108] sm:$0xff] }
 0x8e6   : > { %35207 = vst [vmem:[#allocation39_spill] sm:$0xff] %v31404_v30 }
 0x8e8   : > { %24446 = vmatmul.mubr.msk.f32.gmra.mrb[86].mxu1 %vm264_vm12, %v35201_v11 }
 0x8e9   : > { %24448 = vmatprep.mubr.msk.f32.mxu1 %vm264_vm12, %v35202_v16  ;;  %v31408_v16 = vld [vmem:[#allocation3 + $0x110] sm:$0xff] }
 0x8ea   : > { %35208 = vst [vmem:[#allocation27_spill] sm:$0xff] %v31408_v16 }
 0x8ec   : > { %24449 = vmatmul.mubr.msk.f32.gmra.mrb[88].mxu1 %vm264_vm12, %v35203_v60  ;;  %v14383_v60 = vsel %vm34967_vm1, %v31099_v9, 0.0 }
 0x8ed   : > { %24451 = vmatprep.mubr.msk.f32.mxu1 %vm264_vm12, %v35204_v44  ;;  %v35209_v44 = vld [vmem:[#allocation11_spill] sm:$0xff] }
 0x8f0   : > { %24452 = vmatmul.mubr.msk.f32.gmra.mrb[90].mxu1 %vm264_vm12, %v35205_v53  ;;  %v14385_v53 = vsel %vm34895_vm5, %v31109_v40, 0.0 }
 0x8f1   : > { %24454 = vmatprep.mubr.msk.f32.mxu1 %vm264_vm12, %v35206_v21  ;;  %v14381_v21 = vsel %vm34964_vm3, %v31087_v14, 0.0  ;;  %v35219_v14 = vld [vmem:[#allocation75_spill] sm:$0xff] }
 0x8f4   : > { %24455 = vmatmul.mubr.msk.f32.gmra.mrb[92].mxu1 %vm264_vm12, %v31072_v22  ;;  %v21006_v22 = vld [vmem:[%s33208_s3 + $0xc8] sm:$0xff] }
 0x8f5   : > { %24457 = vmatprep.mubr.msk.f32.mxu1 %vm264_vm12, %v31404_v30  ;;  %v35211_v30 = vld [vmem:[#allocation12_spill] sm:$0xff] }
 0x8f8   : > { %24458 = vmatmul.mubr.msk.f32.gmra.mrb[94].mxu1 %vm264_vm12, %v31408_v16  ;;  %v35217_v16 = vld [vmem:[#allocation74_spill] sm:$0xff] }
 0x8f9   : > { %24462 = vmatprep.mubr.msk.f32.mxu1 %vm264_vm12, %v35209_v44  ;;  %v35213_v44 = vld [vmem:[#allocation72_spill] sm:$0xff] }
 0x8fc   : > { %24463 = vmatmul.mubr.msk.f32.vlgmr.msra.gmra.mrb[64].mxu1 %vm264_vm12, %v14381_v21  ;;  %v35222_v21 = vld [vmem:[#allocation76_spill] sm:$0xff] }
 0x8fd   : > { %24511 = vmatpush3.msra.mxu1 %v20973_v12  ;;  %24465 = vmatprep.mubr.msk.f32.mxu1 %vm264_vm12, %v35211_v30  ;;  %v35215_v12 = vld [vmem:[#allocation73_spill] sm:$0xff]  ;;  %v14387_v30 = vsel %vm34821_vm15, %v31119_v17, 0.0 }
 0x8fe   : > { %24560 = vmatprep.subr.mxu1 %v21006_v22 }
 0x900   : > { %24466 = vmatmul.mubr.msk.f32.gmra.mrb[66].mxu1 %vm264_vm12, %v14383_v60  ;;  %v35225_v60 = vld [vmem:[#allocation77_spill] sm:$0xff] }
 0x901   : > { %24468 = vmatprep.mubr.msk.f32.mxu1 %vm264_vm12, %v35213_v44  ;;  %v14389_v44 = vsel %vm34900_vm6, %v31129_v29, 0.0 }
 0x904   : > { %24469 = vmatmul.mubr.msk.f32.gmra.mrb[68].mxu1 %vm264_vm12, %v14385_v53  ;;  %v35220_v53 = vld [vmem:[#allocation42_spill] sm:$0xff] }
 0x905   : > { %24471 = vmatprep.mubr.msk.f32.mxu1 %vm264_vm12, %v35215_v12  ;;  %vm35221_vm5 = vnez %v35220_v53  ;;  %v35228_v53 = vld [vmem:[#allocation78_spill] sm:$0xff] }
 0x906   : > { %v14391_v12 = vsel %vm35221_vm5, %v31139_v26, 0.0 }
 0x908   : > { %24472 = vmatmul.mubr.msk.f32.gmra.mrb[70].mxu1 %vm264_vm12, %v14387_v30  ;;  %v35223_v30 = vld [vmem:[#allocation48_spill] sm:$0xff] }
 0x909   : > { %24474 = vmatprep.mubr.msk.f32.mxu1 %vm264_vm12, %v35217_v16  ;;  %vm35224_vm15 = vnez %v35223_v30  ;;  %v35231_v30 = vld [vmem:[#allocation80_spill] sm:$0xff] }
 0x90a   : > { %v14393_v16 = vsel %vm35224_vm15, %v31149_v39, 0.0 }
 0x90c   : > { %24475 = vmatmul.mubr.msk.f32.gmra.mrb[72].mxu1 %vm264_vm12, %v14389_v44  ;;  %v35226_v44 = vld [vmem:[#allocation51_spill] sm:$0xff] }
 0x90d   : > { %24477 = vmatprep.mubr.msk.f32.mxu1 %vm264_vm12, %v35219_v14  ;;  %vm35227_vm6 = vnez %v35226_v44  ;;  %v35234_v44 = vld [vmem:[#allocation82_spill] sm:$0xff] }
 0x90e   : > { %v14395_v14 = vsel %vm35227_vm6, %v31159_v41, 0.0 }
 0x910   : > { %24478 = vmatmul.mubr.msk.f32.gmra.mrb[74].mxu1 %vm264_vm12, %v14391_v12  ;;  %v35229_v12 = vld [vmem:[#allocation54_spill] sm:$0xff] }
 0x911   : > { %24480 = vmatprep.mubr.msk.f32.mxu1 %vm264_vm12, %v35222_v21  ;;  %vm35230_vm5 = vnez %v35229_v12  ;;  %v35236_v12 = vld [vmem:[#allocation85_spill] sm:$0xff] }
 0x912   : > { %v14397_v21 = vsel %vm35230_vm5, %v31169_v1, 0.0 }
 0x914   : > { %24481 = vmatmul.mubr.msk.f32.gmra.mrb[76].mxu1 %vm264_vm12, %v14393_v16  ;;  %v35232_v16 = vld [vmem:[#allocation55_spill] sm:$0xff] }
 0x915   : > { %24483 = vmatprep.mubr.msk.f32.mxu1 %vm264_vm12, %v35225_v60  ;;  %vm35233_vm15 = vnez %v35232_v16  ;;  %v35238_v16 = vld [vmem:[#allocation86_spill] sm:$0xff] }
 0x916   : > { %v14399_v60 = vsel %vm35233_vm15, %v31179_v3, 0.0 }
 0x918   : > { %24484 = vmatmul.mubr.msk.f32.gmra.mrb[78].mxu1 %vm264_vm12, %v14395_v14  ;;  %v35235_v14 = vld [vmem:[#allocation57_spill] sm:$0xff] }
 0x919   : > { %24486 = vmatprep.mubr.msk.f32.mxu1 %vm264_vm12, %v35228_v53  ;;  %v14401_v53 = vsel %vm35152_vm9, %v31189_v27, 0.0  ;;  %vm35240_vm9 = vnez %v34992_v35  ;;  %v14766_v35 = vld [vmem:[#allocation3 + $0x27] sm:$0xff] }
 0x91c   : > { %24487 = vmatmul.mubr.msk.f32.gmra.mrb[80].mxu1 %vm264_vm12, %v14397_v21 }
 0x91d   : > { %24489 = vmatprep.mubr.msk.f32.mxu1 %vm264_vm12, %v35231_v30  ;;  %v14403_v30 = vsel %vm35154_vm14, %v31199_v2, 0.0 }
 0x920   : > { %24490 = vmatmul.mubr.msk.f32.gmra.mrb[82].mxu1 %vm264_vm12, %v14399_v60  ;;  %v31505_v60 = vld [vmem:[#allocation3 + $0x109] sm:$0xff] }
 0x921   : > { %24492 = vmatprep.mubr.msk.f32.mxu1 %vm264_vm12, %v35234_v44  ;;  %v14405_v44 = vsel %vm34989_vm8, %v31209_v63, 0.0  ;;  %vm35246_vm8 = vnez %v34998_v51  ;;  %v14772_v51 = vld [vmem:[#allocation3 + $0x57] sm:$0xff] }
 0x924   : > { %24493 = vmatmul.mubr.msk.f32.gmra.mrb[84].mxu1 %vm264_vm12, %v14401_v53  ;;  %v14407_v53 = vsel %vm35240_vm9, %v31219_v28, 0.0  ;;  %v35244_v28 = vld [vmem:[#allocation70_spill] sm:$0xff] }
 0x925   : > { %24495 = vmatprep.mubr.msk.f32.mxu1 %vm264_vm12, %v35236_v12  ;;  %vm35245_vm9 = vnez %v35244_v28 }
 0x928   : > { %24496 = vmatmul.mubr.msk.f32.gmra.mrb[86].mxu1 %vm264_vm12, %v14403_v30  ;;  %v35241_v30 = vld [vmem:[#allocation67_spill] sm:$0xff] }
 0x929   : > { %24498 = vmatprep.mubr.msk.f32.mxu1 %vm264_vm12, %v35238_v16  ;;  %vm35242_vm14 = vnez %v35241_v30  ;;  %v14798_v30 = vsel %vm35246_vm8, %v14766_v35, 0.0  ;;  %v14769_v35 = vld [vmem:[#allocation3 + $0x3f] sm:$0xff]  ;;  %vm35248_vm8 = vnez %v34425_v13 }
 0x92a   : > { %v14409_v21 = vsel %vm35242_vm14, %v31229_v34, 0.0  ;;  %v14767_v34 = vld [vmem:[#allocation3 + $0x2f] sm:$0xff]  ;;  %vm35247_vm14 = vnez %v34175_v33 }
 0x92c   : > { %24499 = vmatmul.mubr.msk.f32.gmra.mrb[88].mxu1 %vm264_vm12, %v14405_v44  ;;  %v31507_v44 = vld [vmem:[#allocation3 + $0x111] sm:$0xff] }
 0x92d   : > { %24501 = vmatprep.mubr.msk.f32.mxu1 %vm264_vm12, %v31217_v54  ;;  %35243 = vst [vmem:[#allocation34_spill] sm:$0xff] %v31507_v44 }
 0x930   : > { %24502 = vmatmul.mubr.msk.f32.gmra.mrb[90].mxu1 %vm264_vm12, %v14407_v53  ;;  %v14411_v53 = vsel %vm35245_vm9, %v31507_v44, 0.0  ;;  %v14771_v44 = vld [vmem:[#allocation3 + $0x4f] sm:$0xff] }
 0x931   : > { %24504 = vmatprep.mubr.msk.f32.mxu1 %vm264_vm12, %v31227_v61  ;;  %v31521_v61 = vld [vmem:[%s33208_s3 + $0xd0] sm:$0xff] }
 0x934   : > { %24505 = vmatmul.mubr.msk.f32.gmra.mrb[92].mxu1 %vm264_vm12, %v14409_v21  ;;  %v14768_v21 = vld [vmem:[#allocation3 + $0x37] sm:$0xff] }
 0x935   : > { %24507 = vmatprep.mubr.msk.f32.mxu1 %vm264_vm12, %v31505_v60  ;;  %v14800_v28 = vsel %vm35247_vm14, %v14768_v21, 0.0  ;;  %vm35249_vm14 = vnez %v34428_v38 }
 0x938   : > { %24508 = vmatmul.mubr.msk.f32.gmra.mrb[94].mxu1 %vm264_vm12, %v14411_v53  ;;  %v14770_v53 = vld [vmem:[#allocation3 + $0x47] sm:$0xff] }
 0x939   : > { %24512 = vmatprep.mubr.msk.f32.mxu1 %vm264_vm12, %v14798_v30  ;;  %v14802_v30 = vsel %vm35248_vm8, %v14770_v53, 0.0  ;;  %v14776_v53 = vld [vmem:[#allocation3 + $0x77] sm:$0xff]  ;;  %vm35250_vm8 = vnez %v34434_v43 }
 0x93c   : > { %24513 = vmatmul.mubr.msk.f32.vlgmr.msra.gmra.mrb[64].mxu1 %vm264_vm12, %v14767_v34  ;;  %v14804_v34 = vsel %vm35249_vm14, %v14772_v51, 0.0  ;;  %v14810_v51 = vsel %vm35166_vm2, %v30764_v32, 0.0  ;;  %vm35253_vm2 = vnez %v35169_v55 }
 0x93d   : > { %24561 = vmatpush3.msra.mxu1 %v21006_v22  ;;  %24515 = vmatprep.mubr.msk.f32.mxu1 %vm264_vm12, %v14800_v28  ;;  %v14774_v28 = vld [vmem:[#allocation3 + $0x67] sm:$0xff]  ;;  %v14773_v22 = vld [vmem:[#allocation3 + $0x5f] sm:$0xff] }
 0x93e   : > { %24610 = vmatprep.subr.mxu1 %v31521_v61  ;;  %v14806_v21 = vsel %vm35164_vm7, %v14774_v28, 0.0  ;;  %vm35251_vm7 = vnez %v34440_v62  ;;  %v35266_v28 = vld [vmem:[#allocation84_spill] sm:$0xff] }
 0x940   : > { %24516 = vmatmul.mubr.msk.f32.gmra.mrb[66].mxu1 %vm264_vm12, %v14769_v35  ;;  %v14775_v35 = vld [vmem:[#allocation3 + $0x6f] sm:$0xff] }
 0x941   : > { %24518 = vmatprep.mubr.msk.f32.mxu1 %vm264_vm12, %v14802_v30  ;;  %v14812_v30 = vsel %vm35251_vm7, %v30792_v6, 0.0  ;;  %vm35254_vm7 = vnez %v35171_v58  ;;  %v14820_v6 = vsel %vm35175_vm4, %v30904_v45, 0.0 }
 0x942   : > { %v14818_v32 = vsel %vm35254_vm7, %v30876_v50, 0.0  ;;  %v14796_v50 = vld [vmem:[#allocation3 + $0x117] sm:$0xff] }
 0x943   : > { %v14828_v45 = vsel %vm35109_vm11, %v14796_v50, 0.0  ;;  %v15215_v50 = vld [vmem:[#allocation3 + $0x120] sm:$0xff] }
 0x944   : > { %24519 = vmatmul.mubr.msk.f32.gmra.mrb[68].mxu1 %vm264_vm12, %v14771_v44  ;;  %v14808_v44 = vsel %vm35250_vm8, %v14776_v53, 0.0  ;;  %vm35252_vm8 = vnez %v34443_v48  ;;  %v35269_v53 = vld [vmem:[#allocation21_spill] sm:$0xff] }
 0x945   : > { %24521 = vmatprep.mubr.msk.f32.mxu1 %vm264_vm12, %v14804_v34  ;;  %v35265_v34 = vld [vmem:[#allocation45_spill] sm:$0xff] }
 0x948   : > { %24522 = vmatmul.mubr.msk.f32.gmra.mrb[70].mxu1 %vm264_vm12, %v14773_v22  ;;  %v35267_v22 = vld [vmem:[#allocation15_spill] sm:$0xff] }
 0x949   : > { %24524 = vmatprep.mubr.msk.f32.mxu1 %vm264_vm12, %v14806_v21  ;;  %v35268_v21 = vld [vmem:[#allocation50_spill] sm:$0xff] }
 0x94c   : > { %24525 = vmatmul.mubr.msk.f32.gmra.mrb[72].mxu1 %vm264_vm12, %v14775_v35  ;;  %v35270_v35 = vld [vmem:[#allocation69_spill] sm:$0xff] }
 0x94d   : > { %24527 = vmatprep.mubr.msk.f32.mxu1 %vm264_vm12, %v14808_v44  ;;  %v35271_v44 = vld [vmem:[#allocation81_spill] sm:$0xff] }
 0x950   : > { %24528 = vmatmul.mubr.msk.f32.gmra.mrb[74].mxu1 %vm264_vm12, %v30751_v7  ;;  %v14814_v7 = vsel %vm35252_vm8, %v30820_v0, 0.0  ;;  %v14822_v0 = vsel %vm35177_vm0, %v30924_v57, 0.0  ;;  %v35255_v57 = vld [vmem:[#allocation53_spill] sm:$0xff] }
 0x951   : > { %24530 = vmatprep.mubr.msk.f32.mxu1 %vm264_vm12, %v14810_v51  ;;  %v35272_v51 = vld [vmem:[#allocation83_spill] sm:$0xff] }
 0x954   : > { %24531 = vmatmul.mubr.msk.f32.gmra.mrb[76].mxu1 %vm264_vm12, %v30779_v42  ;;  %v14816_v42 = vsel %vm35253_vm2, %v30848_v15, 0.0  ;;  %v14826_v15 = vsel %vm35108_vm13, %v31329_v52, 0.0  ;;  %v35261_v52 = vld [vmem:[#allocation64_spill] sm:$0xff] }
 0x955   : > { %24533 = vmatprep.mubr.msk.f32.mxu1 %vm264_vm12, %v14812_v30  ;;  %v35273_v30 = vld [vmem:[#allocation101_spill] sm:$0xff] }
 0x958   : > { %24534 = vmatmul.mubr.msk.f32.gmra.mrb[78].mxu1 %vm264_vm12, %v35168_v8  ;;  %v35258_v8 = vld [vmem:[#allocation59_spill] sm:$0xff] }
 0x959   : > { %24536 = vmatprep.mubr.msk.f32.mxu1 %vm264_vm12, %v14814_v7  ;;  %v35274_v7 = vld [vmem:[#allocation71_spill] sm:$0xff] }
 0x95c   : > { %24537 = vmatmul.mubr.msk.f32.gmra.mrb[80].mxu1 %vm264_vm12, %v35170_v10  ;;  %v35259_v10 = vld [vmem:[#allocation61_spill] sm:$0xff] }
 0x95d   : > { %24539 = vmatprep.mubr.msk.f32.mxu1 %vm264_vm12, %v14816_v42  ;;  %v35275_v42 = vld [vmem:[#allocation6_spill] sm:$0xff] }
 0x960   : > { %24540 = vmatmul.mubr.msk.f32.gmra.mrb[82].mxu1 %vm264_vm12, %v35173_v19  ;;  %v35260_v19 = vld [vmem:[#allocation63_spill] sm:$0xff] }
 0x961   : > { %24542 = vmatprep.mubr.msk.f32.mxu1 %vm264_vm12, %v14818_v32  ;;  %v35276_v32 = vld [vmem:[#allocation7_spill] sm:$0xff] }
 0x964   : > { %24543 = vmatmul.mubr.msk.f32.gmra.mrb[84].mxu1 %vm264_vm12, %v30891_v59  ;;  %v14824_v59 = vsel %vm35178_vm10, %v30937_v23, 0.0  ;;  %v35257_v23 = vld [vmem:[#allocation58_spill] sm:$0xff] }
 0x965   : > { %24545 = vmatprep.mubr.msk.f32.mxu1 %vm264_vm12, %v14820_v6  ;;  %v35277_v6 = vld [vmem:[#allocation8_spill] sm:$0xff] }
 0x968   : > { %24546 = vmatmul.mubr.msk.f32.gmra.mrb[86].mxu1 %vm264_vm12, %v30916_v25  ;;  %v14797_v25 = vld [vmem:[#allocation3 + $0x11f] sm:$0xff] }
 0x969   : > { %24548 = vmatprep.mubr.msk.f32.mxu1 %vm264_vm12, %v14822_v0  ;;  %v35278_v0 = vld [vmem:[#allocation9_spill] sm:$0xff] }
 0x96c   : > { %24549 = vmatmul.mubr.msk.f32.gmra.mrb[88].mxu1 %vm264_vm12, %v30933_v20  ;;  %v35256_v20 = vld [vmem:[#allocation56_spill] sm:$0xff] }
 0x96d   : > { %24551 = vmatprep.mubr.msk.f32.mxu1 %vm264_vm12, %v14824_v59  ;;  %v35280_v59 = vld [vmem:[#allocation39_spill] sm:$0xff] }
 0x970   : > { %24552 = vmatmul.mubr.msk.f32.gmra.mrb[90].mxu1 %vm264_vm12, %v30943_v46  ;;  %v21074_v46 = vld [vmem:[%s33208_s3 + $0xd8] sm:$0xff] }
 0x971   : > { %24554 = vmatprep.mubr.msk.f32.mxu1 %vm264_vm12, %v14826_v15  ;;  %24660 = vmatprep.subr.mxu0 %v21074_v46  ;;  %v35281_v15 = vld [vmem:[#allocation27_spill] sm:$0xff] }
 0x972   : > { %24661 = vmatpush3.msra.mxu0 %v21074_v46  ;;  %v15603_v46 = vsel %vm34964_vm3, %v31099_v9, 0.0  ;;  %v35289_v9 = vld [vmem:[#allocation74_spill] sm:$0xff] }
 0x974   : > { %24555 = vmatmul.mubr.msk.f32.gmra.mrb[92].mxu1 %vm264_vm12, %v31337_v49  ;;  %v35262_v49 = vld [vmem:[#allocation68_spill] sm:$0xff] }
 0x975   : > { %24557 = vmatprep.mubr.msk.f32.mxu1 %vm264_vm12, %v14828_v45  ;;  %v35282_v45 = vld [vmem:[#allocation12_spill] sm:$0xff] }
 0x978   : > { %24558 = vmatmul.mubr.msk.f32.gmra.mrb[94].mxu1 %vm264_vm12, %v14797_v25  ;;  %v35283_v25 = vld [vmem:[#allocation14_spill] sm:$0xff] }
 0x979   : > { %24562 = vmatprep.mubr.msk.f32.mxu1 %vm264_vm12, %v35180_v18  ;;  %v35264_v18 = vld [vmem:[#allocation43_spill] sm:$0xff] }
 0x97c   : > { %24563 = vmatmul.mubr.msk.f32.vlgmr.msra.gmra.mrb[64].mxu1 %vm264_vm12, %v35255_v57  ;;  %v35284_v57 = vld [vmem:[#allocation72_spill] sm:$0xff] }
 0x97d   : > { %24611 = vmatpush3.msra.mxu1 %v31521_v61  ;;  %24565 = vmatprep.mubr.msk.f32.mxu1 %vm264_vm12, %v35256_v20  ;;  %v35263_v61 = vld [vmem:[#allocation40_spill] sm:$0xff]  ;;  %v35285_v20 = vld [vmem:[#allocation17_spill] sm:$0xff] }
 0x980   : > { %24566 = vmatmul.mubr.msk.f32.gmra.mrb[66].mxu1 %vm264_vm12, %v35257_v23  ;;  %v15605_v23 = vsel %vm34967_vm1, %v31109_v40, 0.0  ;;  %v35292_v40 = vld [vmem:[#allocation75_spill] sm:$0xff] }
 0x981   : > { %24568 = vmatprep.mubr.msk.f32.mxu1 %vm264_vm12, %v35258_v8  ;;  %v35286_v8 = vld [vmem:[#allocation73_spill] sm:$0xff] }
 0x984   : > { %24569 = vmatmul.mubr.msk.f32.gmra.mrb[68].mxu1 %vm264_vm12, %v35259_v10  ;;  %v35287_v10 = vld [vmem:[#allocation24_spill] sm:$0xff] }
 0x985   : > { %24571 = vmatprep.mubr.msk.f32.mxu1 %vm264_vm12, %v35260_v19  ;;  %vm35288_vm11 = vnez %v35287_v10 }
 0x986   : > { %v15607_v19 = vsel %vm35288_vm11, %v31119_v17, 0.0  ;;  %v35295_v17 = vld [vmem:[#allocation76_spill] sm:$0xff] }
 0x988   : > { %24572 = vmatmul.mubr.msk.f32.gmra.mrb[70].mxu1 %vm264_vm12, %v35261_v52  ;;  %v35290_v52 = vld [vmem:[#allocation30_spill] sm:$0xff] }
 0x989   : > { %24574 = vmatprep.mubr.msk.f32.mxu1 %vm264_vm12, %v35262_v49  ;;  %vm35291_vm3 = vnez %v35290_v52 }
 0x98a   : > { %v15609_v49 = vsel %vm35291_vm3, %v31129_v29, 0.0  ;;  %v35298_v29 = vld [vmem:[#allocation77_spill] sm:$0xff] }
 0x98c   : > { %24575 = vmatmul.mubr.msk.f32.gmra.mrb[72].mxu1 %vm264_vm12, %v35263_v61  ;;  %v35293_v61 = vld [vmem:[#allocation36_spill] sm:$0xff] }
 0x98d   : > { %24577 = vmatprep.mubr.msk.f32.mxu1 %vm264_vm12, %v35264_v18  ;;  %vm35294_vm1 = vnez %v35293_v61 }
 0x98e   : > { %v15611_v18 = vsel %vm35294_vm1, %v31139_v26, 0.0  ;;  %v35301_v26 = vld [vmem:[#allocation78_spill] sm:$0xff] }
 0x990   : > { %24578 = vmatmul.mubr.msk.f32.gmra.mrb[74].mxu1 %vm264_vm12, %v35265_v34  ;;  %v35296_v34 = vld [vmem:[#allocation42_spill] sm:$0xff] }
 0x991   : > { %24580 = vmatprep.mubr.msk.f32.mxu1 %vm264_vm12, %v35266_v28  ;;  %vm35297_vm11 = vnez %v35296_v34 }
 0x992   : > { %v15613_v28 = vsel %vm35297_vm11, %v31149_v39, 0.0  ;;  %v35303_v39 = vld [vmem:[#allocation80_spill] sm:$0xff] }
 0x994   : > { %24581 = vmatmul.mubr.msk.f32.gmra.mrb[76].mxu1 %vm264_vm12, %v35267_v22  ;;  %v35299_v22 = vld [vmem:[#allocation48_spill] sm:$0xff] }
 0x995   : > { %24583 = vmatprep.mubr.msk.f32.mxu1 %vm264_vm12, %v35268_v21  ;;  %vm35300_vm3 = vnez %v35299_v22 }
 0x996   : > { %v15615_v21 = vsel %vm35300_vm3, %v31159_v41, 0.0  ;;  %v35305_v41 = vld [vmem:[#allocation82_spill] sm:$0xff] }
 0x998   : > { %24584 = vmatmul.mubr.msk.f32.gmra.mrb[78].mxu1 %vm264_vm12, %v35269_v53  ;;  %v35302_v53 = vld [vmem:[#allocation51_spill] sm:$0xff] }
 0x999   : > { %24586 = vmatprep.mubr.msk.f32.mxu1 %vm264_vm12, %v35270_v35  ;;  %v15617_v35 = vsel %vm35227_vm6, %v31169_v1, 0.0  ;;  %vm35307_vm6 = vnez %v35235_v14 }
 0x99a   : > { %v15623_v1 = vsel %vm35307_vm6, %v31199_v2, 0.0  ;;  %v35313_v2 = vld [vmem:[#allocation89_spill] sm:$0xff] }
 0x99c   : > { %24587 = vmatmul.mubr.msk.f32.gmra.mrb[80].mxu1 %vm264_vm12, %v35271_v44  ;;  %v35304_v44 = vld [vmem:[#allocation54_spill] sm:$0xff] }
 0x99d   : > { %24589 = vmatprep.mubr.msk.f32.mxu1 %vm264_vm12, %v35272_v51  ;;  %v15619_v51 = vsel %vm35230_vm5, %v31179_v3, 0.0  ;;  %v35308_v3 = vld [vmem:[#allocation60_spill] sm:$0xff] }
 0x99e   : > { %vm35309_vm5 = vnez %v35308_v3 }
 0x9a0   : > { %24590 = vmatmul.mubr.msk.f32.gmra.mrb[82].mxu1 %vm264_vm12, %v35199_v56  ;;  %v35279_v56 = vld [vmem:[#allocation10_spill] sm:$0xff] }
 0x9a1   : > { %24592 = vmatprep.mubr.msk.f32.mxu1 %vm264_vm12, %v35273_v30  ;;  %v35306_v30 = vld [vmem:[#allocation55_spill] sm:$0xff] }
 0x9a4   : > { %24593 = vmatmul.mubr.msk.f32.gmra.mrb[84].mxu1 %vm264_vm12, %v35201_v11  ;;  %v15214_v11 = vld [vmem:[#allocation3 + $0x118] sm:$0xff] }
 0x9a5   : > { %24595 = vmatprep.mubr.msk.f32.mxu1 %vm264_vm12, %v35274_v7  ;;  %v15621_v7 = vsel %vm35233_vm15, %v31189_v27, 0.0  ;;  %v35310_v27 = vld [vmem:[#allocation88_spill] sm:$0xff] }
 0x9a8   : > { %24596 = vmatmul.mubr.msk.f32.gmra.mrb[86].mxu1 %vm264_vm12, %v35275_v42  ;;  %v15625_v42 = vsel %vm35309_vm5, %v31209_v63, 0.0  ;;  %v15600_v63 = vld [vmem:[#allocation3 + $0x119] sm:$0xff] }
 0x9a9   : > { %24598 = vmatprep.mubr.msk.f32.mxu1 %vm264_vm12, %v35276_v32 }
 0x9ac   : > { %24599 = vmatmul.mubr.msk.f32.gmra.mrb[88].mxu1 %vm264_vm12, %v35277_v6  ;;  %v35314_v6 = vld [vmem:[#allocation66_spill] sm:$0xff] }
 0x9ad   : > { %24601 = vmatprep.mubr.msk.f32.mxu1 %vm264_vm12, %v35278_v0 }
 0x9b0   : > { %24602 = vmatmul.mubr.msk.f32.gmra.mrb[90].mxu1 %vm264_vm12, %v35279_v56  ;;  %v35317_v56 = vld [vmem:[#allocation34_spill] sm:$0xff] }
 0x9b1   : > { %24604 = vmatprep.mubr.msk.f32.mxu1 %vm264_vm12, %v35280_v59  ;;  %v35318_v59 = vld [vmem:[#allocation67_spill] sm:$0xff] }
 0x9b2   : > { %vm35319_vm5 = vnez %v35318_v59 }
 0x9b4   : > { %24605 = vmatmul.mubr.msk.f32.gmra.mrb[92].mxu1 %vm264_vm12, %v35281_v15 }
 0x9b5   : > { %24607 = vmatprep.mubr.msk.f32.mxu1 %vm264_vm12, %v15214_v11  ;;  %v15631_v11 = vsel %vm35319_vm5, %v35317_v56, 0.0  ;;  %v35335_v56 = vld [vmem:[#allocation33_spill] sm:$0xff] }
 0x9b8   : > { %24608 = vmatmul.mubr.msk.f32.gmra.mrb[94].mxu1 %vm264_vm12, %v15215_v50 }
 0x9b9   : > { %24612 = vmatprep.mubr.msk.f32.mxu1 %vm264_vm12, %v35282_v45  ;;  %v16092_v45 = vld [vmem:[#allocation3 + $0x7] sm:$0xff] }
 0x9bc   : > { %24613 = vmatmul.mubr.msk.f32.vlgmr.msra.gmra.mrb[64].mxu1 %vm264_vm12, %v15603_v46  ;;  %v35321_v46 = vld [vmem:[#allocation5_spill] sm:$0xff] }
 0x9bd   : > { %24615 = vmatprep.mubr.msk.f32.mxu1 %vm264_vm12, %v35284_v57 }
 0x9c0   : > { %24616 = vmatmul.mubr.msk.f32.gmra.mrb[66].mxu1 %vm264_vm12, %v15605_v23  ;;  %v21107_v23 = vld [vmem:[%s33208_s3 + $0xe0] sm:$0xff] }
 0x9c1   : > { %24618 = vmatprep.mubr.msk.f32.mxu1 %vm264_vm12, %v35286_v8  ;;  %24710 = vmatprep.subr.mxu0 %v21107_v23  ;;  %v31774_v8 = vld [vmem:[%s33208_s3 + $0xe8] sm:$0xff] }
 0x9c4   : > { %24619 = vmatmul.mubr.msk.f32.gmra.mrb[68].mxu1 %vm264_vm12, %v15607_v19  ;;  %v31780_v19 = vld [vmem:[%s33209_s4 + $0x2] ss:$0 sm:$0xff] }
 0x9c5   : > { %24621 = vmatprep.mubr.msk.f32.mxu1 %vm264_vm12, %v35289_v9  ;;  %v35323_v9 = vld [vmem:[#allocation87_spill] sm:$0xff] }
 0x9c8   : > { %24622 = vmatmul.mubr.msk.f32.gmra.mrb[70].mxu1 %vm264_vm12, %v15609_v49  ;;  %v35324_v49 = vmax.f32 %v35323_v9, 0.0 }
 0x9c9   : > { %24624 = vmatprep.mubr.msk.f32.mxu1 %vm264_vm12, %v35292_v40 }
 0x9ca   : > { %v12290_v40 = vadd.f32 %v31780_v19, %v35324_v49 }
 0x9cc   : > { %24625 = vmatmul.mubr.msk.f32.gmra.mrb[72].mxu1 %vm264_vm12, %v15611_v18 }
 0x9cd   : > { %24627 = vmatprep.mubr.msk.f32.mxu1 %vm264_vm12, %v35295_v17  ;;  %v35325_v17 = vld [vmem:[#allocation91_spill] sm:$0xff] }
 0x9d0   : > { %24628 = vmatmul.mubr.msk.f32.gmra.mrb[74].mxu1 %vm264_vm12, %v15613_v28  ;;  %v35326_v28 = vmax.f32 %v35325_v17, 0.0 }
 0x9d1   : > { %24630 = vmatprep.mubr.msk.f32.mxu1 %vm264_vm12, %v35298_v29 }
 0x9d2   : > { %v12289_v29 = vadd.f32 %v31780_v19, %v35326_v28  ;;  %v35341_v28 = vld [vmem:[#allocation37_spill] sm:$0xff] }
 0x9d4   : > { %24631 = vmatmul.mubr.msk.f32.gmra.mrb[76].mxu1 %vm264_vm12, %v15615_v21 }
 0x9d5   : > { %24633 = vmatprep.mubr.msk.f32.mxu1 %vm264_vm12, %v35301_v26 }
 0x9d8   : > { %24634 = vmatmul.mubr.msk.f32.gmra.mrb[78].mxu1 %vm264_vm12, %v15617_v35 }
 0x9d9   : > { %24636 = vmatprep.mubr.msk.f32.mxu1 %vm264_vm12, %v35303_v39 }
 0x9dc   : > { %24637 = vmatmul.mubr.msk.f32.gmra.mrb[80].mxu1 %vm264_vm12, %v15619_v51  ;;  %v35329_v51 = vld [vmem:[#allocation92_spill] sm:$0xff] }
 0x9dd   : > { %24639 = vmatprep.mubr.msk.f32.mxu1 %vm264_vm12, %v35305_v41  ;;  %v35330_v41 = vmax.f32 %v35329_v51, 0.0 }
 0x9e0   : > { %24640 = vmatmul.mubr.msk.f32.gmra.mrb[82].mxu1 %vm264_vm12, %v15621_v7  ;;  %v12292_v7 = vadd.f32 %v31780_v19, %v35330_v41 }
 0x9e1   : > { %24642 = vmatprep.mubr.msk.f32.mxu1 %vm264_vm12, %v35236_v12  ;;  %v35311_v12 = vld [vmem:[#allocation62_spill] sm:$0xff] }
 0x9e2   : > { %vm35312_vm15 = vnez %v35311_v12 }
 0x9e3   : > { %v15627_v32 = vsel %vm35312_vm15, %v35310_v27, 0.0  ;;  %v35331_v27 = vld [vmem:[#allocation23_spill] sm:$0xff] }
 0x9e4   : > { %24643 = vmatmul.mubr.msk.f32.gmra.mrb[84].mxu1 %vm264_vm12, %v15623_v1 }
 0x9e5   : > { %24645 = vmatprep.mubr.msk.f32.mxu1 %vm264_vm12, %v35238_v16  ;;  %v35315_v16 = vld [vmem:[#allocation65_spill] sm:$0xff] }
 0x9e6   : > { %vm35316_vm6 = vnez %v35315_v16 }
 0x9e7   : > { %v15629_v0 = vsel %vm35316_vm6, %v35314_v6, 0.0  ;;  %vm35322_vm6 = vnez %v35321_v46 }
 0x9e8   : > { %24646 = vmatmul.mubr.msk.f32.gmra.mrb[86].mxu1 %vm264_vm12, %v15625_v42  ;;  %v16124_v57 = vsel %vm35322_vm6, %v16092_v45, 0.0  ;;  %vm35347_vm6 = vnez %v34175_v33 }
 0x9e9   : > { %24648 = vmatprep.mubr.msk.f32.mxu1 %vm264_vm12, %v31217_v54  ;;  %v15601_v54 = vld [vmem:[#allocation3 + $0x121] sm:$0xff]  ;;  %24662 = vmatprep.mubr.msk.f32.mxu0 %vm264_vm12, %v16124_v57 }
 0x9ea   : > { %v15633_v50 = vsel %vm35245_vm9, %v15601_v54, 0.0 }
 0x9ec   : > { %24649 = vmatmul.mubr.msk.f32.gmra.mrb[88].mxu1 %vm264_vm12, %v15627_v32  ;;  %v35332_v32 = vmax.f32 %v35331_v27, 0.0 }
 0x9ed   : > { %24651 = vmatprep.mubr.msk.f32.mxu1 %vm264_vm12, %v35313_v2 }
 0x9ee   : > { %v12291_v2 = vadd.f32 %v31780_v19, %v35332_v32 }
 0x9f0   : > { %24652 = vmatmul.mubr.msk.f32.gmra.mrb[90].mxu1 %vm264_vm12, %v15629_v0 }
 0x9f1   : > { %24654 = vmatprep.mubr.msk.f32.mxu1 %vm264_vm12, %v31505_v60  ;;  %v16093_v60 = vld [vmem:[#allocation3 + $0xf] sm:$0xff] }
 0x9f2   : > { %24663 = vmatmul.mubr.msk.f32.vlgmr.msra.gmra.mrb[64].mxu0 %vm264_vm12, %v16093_v60  ;;  %v35337_v60 = vld [vmem:[#allocation47_spill] sm:$0xff] }
 0x9f3   : > { %24711 = vmatpush3.msra.mxu0 %v21107_v23  ;;  %v35338_v23 = vmax.f32 %v35337_v60, 0.0 }
 0x9f4   : > { %24655 = vmatmul.mubr.msk.f32.gmra.mrb[92].mxu1 %vm264_vm12, %v15631_v11  ;;  %24760 = vmatprep.subr.mxu0 %v31774_v8  ;;  %v35336_v11 = vmax.f32 %v35335_v56, 0.0 }
 0x9f5   : > { %24657 = vmatprep.mubr.msk.f32.mxu1 %vm264_vm12, %v15600_v63  ;;  %v12293_v9 = vadd.f32 %v31780_v19, %v35338_v23 }
 0x9f8   : > { %24658 = vmatmul.mubr.msk.f32.gmra.mrb[94].mxu1 %vm264_vm12, %v15633_v50  ;;  %v12294_v50 = vadd.f32 %v31780_v19, %v35336_v11 }
 0xa8f   : > { %v24614_v18 = vpop.f32.mrb[64].mxu1 }
 0xa90   : > { %v31788_v21 = vadd.f32 %v24614_v18, %v12290_v40  ;;  %v15797_v26 = vpop.f32.mrb[65].mxu1 }
 0xa91   : > { %v31790_v35 = vadd.f32 %v15797_v26, %v12289_v29  ;;  %v35342_v29 = vmax.f32 %v35341_v28, 0.0 }
 0xa92   : > { %35327 = vst [vmem:[#allocation35_spill] sm:$0xff] %v31788_v21  ;;  %v33988_v39 = vmax.f32 %v31788_v21, 0.0 }
 0xa93   : > { %35328 = vst [vmem:[#allocation49_spill] sm:$0xff] %v31790_v35  ;;  %v33985_v1 = vmax.f32 %v31790_v35, 0.0  ;;  %v24617_v42 = vpop.f32.mrb[66].mxu1  ;;  %v12296_v26 = vadd.f32 %v31780_v19, %v35342_v29  ;;  %v35350_v29 = vld [vmem:[#allocation94_spill] sm:$0xff] }
 0xa94   : > { %16021 = vst.msk [vmem:[#allocation3 + $0x20] sm:$0xff] %vm264_vm12, %v33988_v39  ;;  %v31803_v6 = vadd.f32 %v24617_v42, %v12292_v7  ;;  %v15807_v0 = vpop.f32.mrb[67].mxu1  ;;  %v35343_v7 = vld [vmem:[#allocation32_spill] sm:$0xff] }
 0xa95   : > { %16020 = vst.msk [vmem:[#allocation3 + $0x18] sm:$0xff] %vm264_vm12, %v33985_v1  ;;  %v31808_v63 = vadd.f32 %v15807_v0, %v12291_v2  ;;  %v35344_v42 = vmax.f32 %v35343_v7, 0.0 }
 0xa96   : > { %35333 = vst [vmem:[#allocation52_spill] sm:$0xff] %v31803_v6  ;;  %v33983_v54 = vmax.f32 %v31803_v6, 0.0 }
 0xa97   : > { %35334 = vst [vmem:[#allocation90_spill] sm:$0xff] %v31808_v63  ;;  %v33982_v45 = vmax.f32 %v31808_v63, 0.0  ;;  %v24620_v57 = vpop.f32.mrb[68].mxu1  ;;  %v12295_v27 = vadd.f32 %v31780_v19, %v35344_v42 }
 0xa98   : > { %16023 = vst.msk [vmem:[#allocation3 + $0x30] sm:$0xff] %vm264_vm12, %v33983_v54  ;;  %v31821_v49 = vadd.f32 %v24620_v57, %v12294_v50  ;;  %v15817_v40 = vpop.f32.mrb[69].mxu1  ;;  %v35348_v57 = vld [vmem:[#allocation93_spill] sm:$0xff] }
 0xa99   : > { %16022 = vst.msk [vmem:[#allocation3 + $0x28] sm:$0xff] %vm264_vm12, %v33982_v45  ;;  %v31826_v18 = vadd.f32 %v15817_v40, %v12293_v9  ;;  %v35349_v60 = vmax.f32 %v35348_v57, 0.0 }
 0xa9a   : > { %35339 = vst [vmem:[#allocation102_spill] sm:$0xff] %v31821_v49  ;;  %v33981_v17 = vmax.f32 %v31821_v49, 0.0 }
 0xa9b   : > { %35340 = vst [vmem:[#allocation11_spill] sm:$0xff] %v31826_v18  ;;  %v33979_v51 = vmax.f32 %v31826_v18, 0.0  ;;  %v24623_v41 = vpop.f32.mrb[70].mxu1  ;;  %v12298_v23 = vadd.f32 %v31780_v19, %v35349_v60  ;;  %v35355_v60 = vld [vmem:[#allocation95_spill] sm:$0xff] }
 0xa9c   : > { %16025 = vst.msk [vmem:[#allocation3 + $0x40] sm:$0xff] %vm264_vm12, %v33981_v17  ;;  %v31839_v32 = vadd.f32 %v24623_v41, %v12296_v26  ;;  %v15827_v2 = vpop.f32.mrb[71].mxu1  ;;  %v31841_v0 = vld [vmem:[#allocation3 + $0x17] sm:$0xff]  ;;  %v31856_v9 = vld [vmem:[#allocation3 + $0x1f] sm:$0xff]  ;;  %v35351_v26 = vmax.f32 %v35350_v29, 0.0 }
 0xa9d   : > { %16024 = vst.msk [vmem:[#allocation3 + $0x38] sm:$0xff] %vm264_vm12, %v33979_v51  ;;  %v31846_v56 = vadd.f32 %v15827_v2, %v12295_v27  ;;  %v16126_v11 = vsel %vm35347_vm6, %v31841_v0, 0.0  ;;  %vm35354_vm6 = vnez %v34425_v13 }
 0xa9e   : > { %35345 = vst [vmem:[#allocation85_spill] sm:$0xff] %v31839_v32  ;;  %v33977_v50 = vmax.f32 %v31839_v32, 0.0  ;;  %24665 = vmatprep.mubr.msk.f32.mxu0 %vm264_vm12, %v16126_v11  ;;  %v12297_v41 = vadd.f32 %v31780_v19, %v35351_v26 }
 0xa9f   : > { %35346 = vst [vmem:[#allocation86_spill] sm:$0xff] %v31846_v56  ;;  %v33978_v40 = vmax.f32 %v31846_v56, 0.0  ;;  %v24626_v28 = vpop.f32.mrb[72].mxu1  ;;  %24666 = vmatmul.mubr.msk.f32.gmra.mrb[66].mxu0 %vm264_vm12, %v31856_v9 }
 0xaa0   : > { %16027 = vst.msk [vmem:[#allocation3 + $0x50] sm:$0xff] %vm264_vm12, %v33977_v50  ;;  %v31867_v7 = vadd.f32 %v24626_v28, %v12298_v23  ;;  %v15837_v42 = vpop.f32.mrb[73].mxu1  ;;  %v31869_v27 = vld [vmem:[#allocation3 + $0x27] sm:$0xff]  ;;  %v35356_v23 = vmax.f32 %v35355_v60, 0.0  ;;  %v31884_v29 = vld [vmem:[#allocation3 + $0x2f] sm:$0xff] }
 0xaa1   : > { %16026 = vst.msk [vmem:[#allocation3 + $0x48] sm:$0xff] %vm264_vm12, %v33978_v40  ;;  %v31874_v2 = vadd.f32 %v15837_v42, %v12297_v41  ;;  %v16128_v11 = vsel %vm35354_vm6, %v31869_v27, 0.0  ;;  %v35357_v41 = vld [vmem:[#allocation96_spill] sm:$0xff] }
 0xaa2   : > { %35352 = vst [vmem:[#allocation53_spill] sm:$0xff] %v31867_v7  ;;  %v33980_v57 = vmax.f32 %v31867_v7, 0.0  ;;  %24668 = vmatprep.mubr.msk.f32.mxu0 %vm264_vm12, %v16128_v11  ;;  %v12300_v28 = vadd.f32 %v31780_v19, %v35356_v23  ;;  %v35358_v42 = vmax.f32 %v35357_v41, 0.0 }
 0xaa3   : > { %35353 = vst [vmem:[#allocation56_spill] sm:$0xff] %v31874_v2  ;;  %v33984_v26 = vmax.f32 %v31874_v2, 0.0  ;;  %v24629_v50 = vpop.f32.mrb[74].mxu1  ;;  %24669 = vmatmul.mubr.msk.f32.gmra.mrb[68].mxu0 %vm264_vm12, %v31884_v29 }
 0xaa4   : > { %v12299_v40 = vadd.f32 %v31780_v19, %v35358_v42  ;;  %16029 = vst.msk [vmem:[#allocation3 + $0x60] sm:$0xff] %vm264_vm12, %v33980_v57  ;;  %v31895_v11 = vadd.f32 %v24629_v50, %v12300_v28  ;;  %v15847_v60 = vpop.f32.mrb[75].mxu1  ;;  %v31897_v23 = vld [vmem:[#allocation3 + $0x37] sm:$0xff]  ;;  %v31912_v17 = vld [vmem:[#allocation3 + $0x3f] sm:$0xff] }
 0xaa5   : > { %16028 = vst.msk [vmem:[#allocation3 + $0x58] sm:$0xff] %vm264_vm12, %v33984_v26  ;;  %v16130_v41 = vsel %vm35249_vm14, %v31897_v23, 0.0  ;;  %v35361_v57 = vld [vmem:[#allocation97_spill] sm:$0xff]  ;;  %vm35367_vm14 = vnez %v34431_v24 }
 0xaa6   : > { %35359 = vst [vmem:[#allocation58_spill] sm:$0xff] %v31895_v11  ;;  %v31902_v51 = vadd.f32 %v15847_v60, %v12299_v40  ;;  %v33987_v42 = vmax.f32 %v31895_v11, 0.0  ;;  %24671 = vmatprep.mubr.msk.f32.mxu0 %vm264_vm12, %v16130_v41  ;;  %v35362_v50 = vmax.f32 %v35361_v57, 0.0  ;;  %v35363_v40 = vld [vmem:[#allocation98_spill] sm:$0xff] }
 0xaa7   : > { %v24632_v54 = vpop.f32.mrb[76].mxu1  ;;  %24672 = vmatmul.mubr.msk.f32.gmra.mrb[70].mxu0 %vm264_vm12, %v31912_v17  ;;  %v35364_v60 = vmax.f32 %v35363_v40, 0.0 }
 0xaa8   : > { %35360 = vst [vmem:[#allocation59_spill] sm:$0xff] %v31902_v51  ;;  %v12302_v28 = vadd.f32 %v31780_v19, %v35362_v50  ;;  %v33991_v45 = vmax.f32 %v31902_v51, 0.0  ;;  %16031 = vst.msk [vmem:[#allocation3 + $0x70] sm:$0xff] %vm264_vm12, %v33987_v42  ;;  %v15857_v57 = vpop.f32.mrb[77].mxu1  ;;  %v31925_v50 = vld [vmem:[#allocation3 + $0x47] sm:$0xff]  ;;  %v31940_v39 = vld [vmem:[#allocation3 + $0x4f] sm:$0xff] }
 0xaa9   : > { %v12301_v26 = vadd.f32 %v31780_v19, %v35364_v60  ;;  %v16132_v40 = vsel %vm35367_vm14, %v31925_v50, 0.0  ;;  %v35368_v42 = vld [vmem:[#allocation99_spill] sm:$0xff]  ;;  %vm35374_vm14 = vnez %v34434_v43 }
 0xaaa   : > { %v31923_v41 = vadd.f32 %v24632_v54, %v12302_v28  ;;  %16030 = vst.msk [vmem:[#allocation3 + $0x68] sm:$0xff] %vm264_vm12, %v33991_v45  ;;  %24674 = vmatprep.mubr.msk.f32.mxu0 %vm264_vm12, %v16132_v40  ;;  %v35369_v54 = vmax.f32 %v35368_v42, 0.0 }
 0xaab   : > { %v31930_v1 = vadd.f32 %v15857_v57, %v12301_v26  ;;  %v24635_v11 = vpop.f32.mrb[78].mxu1  ;;  %24675 = vmatmul.mubr.msk.f32.gmra.mrb[72].mxu0 %vm264_vm12, %v31940_v39  ;;  %v35370_v26 = vld [vmem:[#allocation100_spill] sm:$0xff] }
 0xaac   : > { %35365 = vst [vmem:[#allocation61_spill] sm:$0xff] %v31923_v41  ;;  %v33993_v60 = vmax.f32 %v31923_v41, 0.0  ;;  %v12304_v28 = vadd.f32 %v31780_v19, %v35369_v54  ;;  %v35371_v57 = vmax.f32 %v35370_v26, 0.0  ;;  %v15867_v42 = vpop.f32.mrb[79].mxu1  ;;  %v31953_v54 = vld [vmem:[#allocation3 + $0x57] sm:$0xff]  ;;  %v31968_v41 = vld [vmem:[#allocation3 + $0x5f] sm:$0xff] }
 0xaad   : > { %35366 = vst [vmem:[#allocation63_spill] sm:$0xff] %v31930_v1  ;;  %v33997_v51 = vmax.f32 %v31930_v1, 0.0  ;;  %v16134_v26 = vsel %vm35374_vm14, %v31953_v54, 0.0  ;;  %vm35381_vm14 = vnez %v34437_v37 }
 0xaae   : > { %v12303_v45 = vadd.f32 %v31780_v19, %v35371_v57  ;;  %16033 = vst.msk [vmem:[#allocation3 + $0x80] sm:$0xff] %vm264_vm12, %v33993_v60  ;;  %v31951_v40 = vadd.f32 %v24635_v11, %v12304_v28  ;;  %24677 = vmatprep.mubr.msk.f32.mxu0 %vm264_vm12, %v16134_v26  ;;  %v35375_v60 = vld [vmem:[#allocation103_spill] sm:$0xff] }
 0xaaf   : > { %16032 = vst.msk [vmem:[#allocation3 + $0x78] sm:$0xff] %vm264_vm12, %v33997_v51  ;;  %v35376_v11 = vmax.f32 %v35375_v60, 0.0  ;;  %v24638_v7 = vpop.f32.mrb[80].mxu1  ;;  %24678 = vmatmul.mubr.msk.f32.gmra.mrb[74].mxu0 %vm264_vm12, %v31968_v41 }
 0xab0   : > { %35372 = vst [vmem:[#allocation64_spill] sm:$0xff] %v31951_v40  ;;  %v31958_v2 = vadd.f32 %v15867_v42, %v12303_v45  ;;  %v33999_v57 = vmax.f32 %v31951_v40, 0.0  ;;  %v35377_v45 = vld [vmem:[#allocation104_spill] sm:$0xff]  ;;  %v15877_v60 = vpop.f32.mrb[81].mxu1 }
 0xab1   : > { %v12306_v28 = vadd.f32 %v31780_v19, %v35376_v11  ;;  %v35378_v42 = vmax.f32 %v35377_v45, 0.0  ;;  %v31981_v11 = vld [vmem:[#allocation3 + $0x67] sm:$0xff]  ;;  %v31996_v40 = vld [vmem:[#allocation3 + $0x6f] sm:$0xff] }
 0xab2   : > { %35373 = vst [vmem:[#allocation68_spill] sm:$0xff] %v31958_v2  ;;  %v34003_v1 = vmax.f32 %v31958_v2, 0.0  ;;  %16035 = vst.msk [vmem:[#allocation3 + $0x90] sm:$0xff] %vm264_vm12, %v33999_v57  ;;  %v16136_v45 = vsel %vm35381_vm14, %v31981_v11, 0.0  ;;  %v35382_v57 = vld [vmem:[#allocation105_spill] sm:$0xff]  ;;  %vm35388_vm14 = vnez %v34440_v62 }
 0xab3   : > { %v12305_v51 = vadd.f32 %v31780_v19, %v35378_v42  ;;  %v31979_v26 = vadd.f32 %v24638_v7, %v12306_v28  ;;  %24680 = vmatprep.mubr.msk.f32.mxu0 %vm264_vm12, %v16136_v45  ;;  %v35383_v7 = vmax.f32 %v35382_v57, 0.0  ;;  %v24641_v32 = vpop.f32.mrb[82].mxu1 }
 0xab4   : > { %16034 = vst.msk [vmem:[#allocation3 + $0x88] sm:$0xff] %vm264_vm12, %v34003_v1  ;;  %24681 = vmatmul.mubr.msk.f32.gmra.mrb[76].mxu0 %vm264_vm12, %v31996_v40  ;;  %v15887_v57 = vpop.f32.mrb[83].mxu1 }
 0xab5   : > { %35379 = vst [vmem:[#allocation40_spill] sm:$0xff] %v31979_v26  ;;  %v31986_v56 = vadd.f32 %v15877_v60, %v12305_v51  ;;  %v34005_v42 = vmax.f32 %v31979_v26, 0.0  ;;  %v12308_v28 = vadd.f32 %v31780_v19, %v35383_v7  ;;  %v35384_v51 = vld [vmem:[#allocation44_spill] sm:$0xff] }
 0xab6   : > { %v35385_v60 = vmax.f32 %v35384_v51, 0.0  ;;  %v32009_v7 = vld [vmem:[#allocation3 + $0x77] sm:$0xff]  ;;  %v32024_v26 = vld [vmem:[#allocation3 + $0x7f] sm:$0xff] }
 0xab7   : > { %35380 = vst [vmem:[#allocation43_spill] sm:$0xff] %v31986_v56  ;;  %v34009_v2 = vmax.f32 %v31986_v56, 0.0  ;;  %16037 = vst.msk [vmem:[#allocation3 + $0xa0] sm:$0xff] %vm264_vm12, %v34005_v42  ;;  %v32007_v45 = vadd.f32 %v24641_v32, %v12308_v28  ;;  %v16138_v51 = vsel %vm35388_vm14, %v32009_v7, 0.0  ;;  %v35389_v42 = vld [vmem:[#allocation4_spill] sm:$0xff]  ;;  %v24644_v49 = vpop.f32.mrb[84].mxu1 }
 0xab8   : > { %v12307_v1 = vadd.f32 %v31780_v19, %v35385_v60  ;;  %24683 = vmatprep.mubr.msk.f32.mxu0 %vm264_vm12, %v16138_v51  ;;  %v35390_v32 = vmax.f32 %v35389_v42, 0.0  ;;  %v15897_v42 = vpop.f32.mrb[85].mxu1  ;;  %v32420_v61 = vld [vmem:[#allocation3 + $0x79] sm:$0xff] }
 0xab9   : > { %35386 = vst [vmem:[#allocation45_spill] sm:$0xff] %v32007_v45  ;;  %16036 = vst.msk [vmem:[#allocation3 + $0x98] sm:$0xff] %vm264_vm12, %v34009_v2  ;;  %v34011_v60 = vmax.f32 %v32007_v45, 0.0  ;;  %24684 = vmatmul.mubr.msk.f32.gmra.mrb[78].mxu0 %vm264_vm12, %v32024_v26 }
 0xaba   : > { %v32014_v18 = vadd.f32 %v15887_v57, %v12307_v1  ;;  %v12310_v28 = vadd.f32 %v31780_v19, %v35390_v32  ;;  %v35391_v1 = vld [vmem:[#allocation22_spill] sm:$0xff]  ;;  %35468 = vst [vmem:[#allocation4_spill] sm:$0xff] %v32420_v61 }
 0xabb   : > { %v35392_v57 = vmax.f32 %v35391_v1, 0.0  ;;  %16039 = vst.msk [vmem:[#allocation3 + $0xb0] sm:$0xff] %vm264_vm12, %v34011_v60  ;;  %v32037_v32 = vld [vmem:[#allocation3 + $0x87] sm:$0xff]  ;;  %v32052_v45 = vld [vmem:[#allocation3 + $0x8f] sm:$0xff]  ;;  %v24647_v6 = vpop.f32.mrb[86].mxu1 }
 0xabc   : > { %35387 = vst [vmem:[#allocation84_spill] sm:$0xff] %v32014_v18  ;;  %v34015_v56 = vmax.f32 %v32014_v18, 0.0  ;;  %v32035_v51 = vadd.f32 %v24644_v49, %v12310_v28  ;;  %v16140_v1 = vsel %vm35252_vm8, %v32037_v32, 0.0  ;;  %v35395_v60 = vld [vmem:[#allocation19_spill] sm:$0xff] }
 0xabd   : > { %v12309_v2 = vadd.f32 %v31780_v19, %v35392_v57  ;;  %24686 = vmatprep.mubr.msk.f32.mxu0 %vm264_vm12, %v16140_v1  ;;  %v35396_v49 = vmax.f32 %v35395_v60, 0.0  ;;  %v15907_v60 = vpop.f32.mrb[87].mxu1  ;;  %v32430_v34 = vld [vmem:[#allocation3 + $0x89] sm:$0xff] }
 0xabe   : > { %35393 = vst [vmem:[#allocation15_spill] sm:$0xff] %v32035_v51  ;;  %16038 = vst.msk [vmem:[#allocation3 + $0xa8] sm:$0xff] %vm264_vm12, %v34015_v56  ;;  %v34017_v57 = vmax.f32 %v32035_v51, 0.0  ;;  %24687 = vmatmul.mubr.msk.f32.gmra.mrb[80].mxu0 %vm264_vm12, %v32052_v45 }
 0xabf   : > { %v32042_v63 = vadd.f32 %v15897_v42, %v12309_v2  ;;  %v12312_v28 = vadd.f32 %v31780_v19, %v35396_v49  ;;  %v35397_v2 = vld [vmem:[#allocation18_spill] sm:$0xff]  ;;  %v24650_v21 = vpop.f32.mrb[88].mxu1  ;;  %35470 = vst [vmem:[#allocation22_spill] sm:$0xff] %v32430_v34 }
 0xac0   : > { %v35398_v42 = vmax.f32 %v35397_v2, 0.0  ;;  %16041 = vst.msk [vmem:[#allocation3 + $0xc0] sm:$0xff] %vm264_vm12, %v34017_v57  ;;  %v32065_v49 = vld [vmem:[#allocation3 + $0x97] sm:$0xff]  ;;  %v32080_v51 = vld [vmem:[#allocation3 + $0x9f] sm:$0xff] }
 0xac1   : > { %35394 = vst [vmem:[#allocation50_spill] sm:$0xff] %v32042_v63  ;;  %v34021_v18 = vmax.f32 %v32042_v63, 0.0  ;;  %v32063_v1 = vadd.f32 %v24647_v6, %v12312_v28  ;;  %v16142_v2 = vsel %vm35253_vm2, %v32065_v49, 0.0  ;;  %v35401_v57 = vld [vmem:[#allocation28_spill] sm:$0xff]  ;;  %35403 = vst [vmem:[#allocation81_spill] sm:$0xff] %v32080_v51  ;;  %v32440_v22 = vld [vmem:[#allocation3 + $0x99] sm:$0xff] }
 0xac2   : > { %v12311_v56 = vadd.f32 %v31780_v19, %v35398_v42  ;;  %24689 = vmatprep.mubr.msk.f32.mxu0 %vm264_vm12, %v16142_v2  ;;  %v35402_v6 = vmax.f32 %v35401_v57, 0.0  ;;  %v15917_v57 = vpop.f32.mrb[89].mxu1  ;;  %35472 = vst [vmem:[#allocation19_spill] sm:$0xff] %v32440_v22 }
 0xac3   : > { %35399 = vst [vmem:[#allocation21_spill] sm:$0xff] %v32063_v1  ;;  %16040 = vst.msk [vmem:[#allocation3 + $0xb8] sm:$0xff] %vm264_vm12, %v34021_v18  ;;  %v34023_v42 = vmax.f32 %v32063_v1, 0.0  ;;  %24690 = vmatmul.mubr.msk.f32.gmra.mrb[82].mxu0 %vm264_vm12, %v32080_v51  ;;  %v24653_v51 = vpop.f32.mrb[90].mxu1 }
 0xac4   : > { %v32070_v35 = vadd.f32 %v15907_v60, %v12311_v56  ;;  %v12314_v28 = vadd.f32 %v31780_v19, %v35402_v6  ;;  %v35404_v56 = vld [vmem:[#allocation25_spill] sm:$0xff] }
 0xac5   : > { %v35405_v60 = vmax.f32 %v35404_v56, 0.0  ;;  %16043 = vst.msk [vmem:[#allocation3 + $0xd0] sm:$0xff] %vm264_vm12, %v34023_v42  ;;  %v32093_v6 = vld [vmem:[#allocation3 + $0xa7] sm:$0xff]  ;;  %v35408_v42 = vld [vmem:[#allocation29_spill] sm:$0xff]  ;;  %v32108_v1 = vld [vmem:[#allocation3 + $0xaf] sm:$0xff] }
 0xac6   : > { %35400 = vst [vmem:[#allocation69_spill] sm:$0xff] %v32070_v35  ;;  %v34028_v63 = vmax.f32 %v32070_v35, 0.0  ;;  %v32091_v2 = vadd.f32 %v24650_v21, %v12314_v28  ;;  %v16144_v56 = vsel %vm35254_vm7, %v32093_v6, 0.0  ;;  %v35409_v21 = vmax.f32 %v35408_v42, 0.0  ;;  %35410 = vst [vmem:[#allocation71_spill] sm:$0xff] %v32108_v1  ;;  %v15927_v42 = vpop.f32.mrb[91].mxu1 }
 0xac7   : > { %v12313_v18 = vadd.f32 %v31780_v19, %v35405_v60  ;;  %24692 = vmatprep.mubr.msk.f32.mxu0 %vm264_vm12, %v16144_v56 }
 0xac8   : > { %35406 = vst [vmem:[#allocation83_spill] sm:$0xff] %v32091_v2  ;;  %16042 = vst.msk [vmem:[#allocation3 + $0xc8] sm:$0xff] %vm264_vm12, %v34028_v63  ;;  %v34030_v60 = vmax.f32 %v32091_v2, 0.0  ;;  %v12316_v28 = vadd.f32 %v31780_v19, %v35409_v21  ;;  %24693 = vmatmul.mubr.msk.f32.gmra.mrb[84].mxu0 %vm264_vm12, %v32108_v1  ;;  %v24656_v1 = vpop.f32.mrb[92].mxu1 }
 0xac9   : > { %v32098_v55 = vadd.f32 %v15917_v57, %v12313_v18  ;;  %v35411_v18 = vld [vmem:[#allocation31_spill] sm:$0xff] }
 0xaca   : > { %v35412_v57 = vmax.f32 %v35411_v18, 0.0  ;;  %16045 = vst.msk [vmem:[#allocation3 + $0xe0] sm:$0xff] %vm264_vm12, %v34030_v60  ;;  %v32119_v56 = vadd.f32 %v24653_v51, %v12316_v28  ;;  %v32121_v21 = vld [vmem:[#allocation3 + $0xb7] sm:$0xff]  ;;  %v32136_v2 = vld [vmem:[#allocation3 + $0xbf] sm:$0xff] }
 0xacb   : > { %35407 = vst [vmem:[#allocation101_spill] sm:$0xff] %v32098_v55  ;;  %v34035_v35 = vmax.f32 %v32098_v55, 0.0  ;;  %v16146_v18 = vsel %vm35175_vm4, %v32121_v21, 0.0  ;;  %v35415_v60 = vld [vmem:[#allocation41_spill] sm:$0xff]  ;;  %35417 = vst [vmem:[#allocation8_spill] sm:$0xff] %v32136_v2 }
 0xacc   : > { %v12315_v63 = vadd.f32 %v31780_v19, %v35412_v57  ;;  %35413 = vst [vmem:[#allocation6_spill] sm:$0xff] %v32119_v56  ;;  %v34037_v57 = vmax.f32 %v32119_v56, 0.0  ;;  %24695 = vmatprep.mubr.msk.f32.mxu0 %vm264_vm12, %v16146_v18  ;;  %v35416_v51 = vmax.f32 %v35415_v60, 0.0  ;;  %v15937_v60 = vpop.f32.mrb[93].mxu1 }
 0xacd   : > { %16044 = vst.msk [vmem:[#allocation3 + $0xd8] sm:$0xff] %vm264_vm12, %v34035_v35  ;;  %24696 = vmatmul.mubr.msk.f32.gmra.mrb[86].mxu0 %vm264_vm12, %v32136_v2  ;;  %v24659_v2 = vpop.f32.mrb[94].mxu1 }
 0xace   : > { %v32126_v58 = vadd.f32 %v15927_v42, %v12315_v63  ;;  %v12318_v28 = vadd.f32 %v31780_v19, %v35416_v51  ;;  %v35418_v63 = vld [vmem:[#allocation38_spill] sm:$0xff]  ;;  %16047 = vst.msk [vmem:[#allocation3 + $0xf0] sm:$0xff] %vm264_vm12, %v34037_v57 }
 0xacf   : > { %v35419_v42 = vmax.f32 %v35418_v63, 0.0  ;;  %v32149_v51 = vld [vmem:[#allocation3 + $0xc7] sm:$0xff]  ;;  %v32164_v56 = vld [vmem:[#allocation3 + $0xcf] sm:$0xff] }
 0xad0   : > { %35414 = vst [vmem:[#allocation7_spill] sm:$0xff] %v32126_v58  ;;  %v34042_v55 = vmax.f32 %v32126_v58, 0.0  ;;  %v32147_v18 = vadd.f32 %v24656_v1, %v12318_v28  ;;  %v16148_v63 = vsel %vm35177_vm0, %v32149_v51, 0.0  ;;  %v35422_v57 = vld [vmem:[#allocation46_spill] sm:$0xff] }
 0xad1   : > { %v12317_v35 = vadd.f32 %v31780_v19, %v35419_v42  ;;  %24698 = vmatprep.mubr.msk.f32.mxu0 %vm264_vm12, %v16148_v63  ;;  %v35423_v1 = vmax.f32 %v35422_v57, 0.0  ;;  %v15947_v57 = vpop.f32.mrb[95].mxu1 }
 0xad2   : > { %35420 = vst [vmem:[#allocation9_spill] sm:$0xff] %v32147_v18  ;;  %16046 = vst.msk [vmem:[#allocation3 + $0xe8] sm:$0xff] %vm264_vm12, %v34042_v55  ;;  %v34048_v42 = vmax.f32 %v32147_v18, 0.0  ;;  %24699 = vmatmul.mubr.msk.f32.gmra.mrb[88].mxu0 %vm264_vm12, %v32164_v56  ;;  %v32257_v18 = vld [vmem:[#allocation3 + $0x50] sm:$0xff] }
 0xad3   : > { %v32154_v31 = vadd.f32 %v15937_v60, %v12317_v35  ;;  %v12320_v28 = vadd.f32 %v31780_v19, %v35423_v1  ;;  %v35424_v35 = vld [vmem:[#allocation79_spill] sm:$0xff]  ;;  %35435 = vst [vmem:[#allocation77_spill] sm:$0xff] %v32257_v18 }
 0xad4   : > { %v35425_v60 = vmax.f32 %v35424_v35, 0.0  ;;  %16049 = vst.msk [vmem:[#allocation3 + $0x100] sm:$0xff] %vm264_vm12, %v34048_v42  ;;  %v32177_v1 = vld [vmem:[#allocation3 + $0xd7] sm:$0xff]  ;;  %v32224_v42 = vld [vmem:[%s33208_s3 + $0xf0] sm:$0xff] }
 0xad5   : > { %35421 = vst [vmem:[#allocation10_spill] sm:$0xff] %v32154_v31  ;;  %v34046_v58 = vmax.f32 %v32154_v31, 0.0  ;;  %v32175_v63 = vadd.f32 %v24659_v2, %v12320_v28  ;;  %v16150_v35 = vsel %vm35178_vm10, %v32177_v1, 0.0  ;;  %vm35428_vm10 = vnez %v34531_v5  ;;  %v32253_v31 = vld [vmem:[#allocation3 + $0x48] sm:$0xff] }
 0xad6   : > { %v12319_v55 = vadd.f32 %v31780_v19, %v35425_v60  ;;  %24701 = vmatprep.mubr.msk.f32.mxu0 %vm264_vm12, %v16150_v35  ;;  %v32189_v60 = vld [vmem:[#allocation3 + $0xdf] sm:$0xff]  ;;  %35434 = vst [vmem:[#allocation76_spill] sm:$0xff] %v32253_v31 }
 0xad7   : > { %35426 = vst [vmem:[#allocation39_spill] sm:$0xff] %v32175_v63  ;;  %16048 = vst.msk [vmem:[#allocation3 + $0xf8] sm:$0xff] %vm264_vm12, %v34046_v58  ;;  %v34045_v19 = vmax.f32 %v32175_v63, 0.0  ;;  %24702 = vmatmul.mubr.msk.f32.gmra.mrb[90].mxu0 %vm264_vm12, %v32189_v60  ;;  %v16511_v58 = vld [vmem:[#allocation3 + $0x8] sm:$0xff]  ;;  %v32249_v63 = vld [vmem:[#allocation3 + $0x40] sm:$0xff] }
 0xad8   : > { %v32182_v36 = vadd.f32 %v15947_v57, %v12319_v55  ;;  %35433 = vst [vmem:[#allocation75_spill] sm:$0xff] %v32249_v63 }
 0xad9   : > { %16051 = vst.msk [vmem:[#allocation3 + $0x110] sm:$0xff] %vm264_vm12, %v34045_v19  ;;  %v32197_v55 = vld [vmem:[#allocation3 + $0xe7] sm:$0xff]  ;;  %v32206_v57 = vld [vmem:[#allocation3 + $0xef] sm:$0xff] }
 0xada   : > { %35427 = vst [vmem:[#allocation27_spill] sm:$0xff] %v32182_v36  ;;  %v34047_v2 = vmax.f32 %v32182_v36, 0.0  ;;  %v16152_v28 = vsel %vm35108_vm13, %v32197_v55, 0.0  ;;  %v32227_v36 = vld [vmem:[#allocation3 + $0x18] sm:$0xff]  ;;  %vm35462_vm13 = vnez %v35287_v10 }
 0xadb   : > { %24704 = vmatprep.mubr.msk.f32.mxu0 %vm264_vm12, %v16152_v28  ;;  %v16512_v28 = vld [vmem:[#allocation3 + $0x10] sm:$0xff]  ;;  %v32400_v10 = vld [vmem:[#allocation3 + $0x59] sm:$0xff] }
 0xadc   : > { %16050 = vst.msk [vmem:[#allocation3 + $0x108] sm:$0xff] %vm264_vm12, %v34047_v2  ;;  %24705 = vmatmul.mubr.msk.f32.gmra.mrb[92].mxu0 %vm264_vm12, %v32206_v57  ;;  %35466 = vst [vmem:[#allocation105_spill] sm:$0xff] %v32400_v10 }
 0xade   : > { %v32210_v35 = vld [vmem:[#allocation3 + $0xf7] sm:$0xff]  ;;  %v32216_v2 = vld [vmem:[#allocation3 + $0xff] sm:$0xff] }
 0xadf   : > { %v16154_v19 = vsel %vm35428_vm10, %v32210_v35, 0.0  ;;  %vm35458_vm10 = vnez %v35283_v25  ;;  %v32380_v25 = vld [vmem:[#allocation3 + $0x39] sm:$0xff] }
 0xae0   : > { %24707 = vmatprep.mubr.msk.f32.mxu0 %vm264_vm12, %v16154_v19  ;;  %v32233_v19 = vld [vmem:[#allocation3 + $0x20] sm:$0xff]  ;;  %35463 = vst [vmem:[#allocation103_spill] sm:$0xff] %v32380_v25 }
 0xae1   : > { %24708 = vmatmul.mubr.msk.f32.gmra.mrb[94].mxu0 %vm264_vm12, %v32216_v2  ;;  %35429 = vst [vmem:[#allocation12_spill] sm:$0xff] %v32233_v19  ;;  %v32500_v12 = vld [vmem:[#allocation3 + $0xf9] sm:$0xff] }
 0xae2   : > { %24712 = vmatprep.mubr.msk.f32.mxu0 %vm264_vm12, %v16511_v58  ;;  %v32237_v58 = vld [vmem:[#allocation3 + $0x28] sm:$0xff]  ;;  %35482 = vst [vmem:[#allocation41_spill] sm:$0xff] %v32500_v12 }
 0xae3   : > { %35430 = vst [vmem:[#allocation72_spill] sm:$0xff] %v32237_v58 }
 0xae5   : > { %24713 = vmatmul.mubr.msk.f32.vlgmr.msra.gmra.mrb[64].mxu0 %vm264_vm12, %v16512_v28  ;;  %v32241_v28 = vld [vmem:[#allocation3 + $0x30] sm:$0xff] }
 0xae6   : > { %24761 = vmatpush3.msra.mxu0 %v31774_v8  ;;  %24715 = vmatprep.mubr.msk.f32.mxu0 %vm264_vm12, %v32227_v36  ;;  %35431 = vst [vmem:[#allocation73_spill] sm:$0xff] %v32241_v28  ;;  %v32245_v8 = vld [vmem:[#allocation3 + $0x38] sm:$0xff] }
 0xae7   : > { %24810 = vmatprep.subr.mxu0 %v32224_v42  ;;  %35432 = vst [vmem:[#allocation74_spill] sm:$0xff] %v32245_v8 }
 0xae9   : > { %24716 = vmatmul.mubr.msk.f32.gmra.mrb[66].mxu0 %vm264_vm12, %v32233_v19  ;;  %v32360_v19 = vld [vmem:[#allocation3 + $0x21] sm:$0xff] }
 0xaea   : > { %24718 = vmatprep.mubr.msk.f32.mxu0 %vm264_vm12, %v32237_v58  ;;  %v32345_v58 = vld [vmem:[#allocation3 + $0x100] sm:$0xff] }
 0xaeb   : > { %35457 = vst [vmem:[#allocation98_spill] sm:$0xff] %v32345_v58 }
 0xaed   : > { %24719 = vmatmul.mubr.msk.f32.gmra.mrb[68].mxu0 %vm264_vm12, %v32241_v28  ;;  %v32261_v28 = vld [vmem:[#allocation3 + $0x58] sm:$0xff] }
 0xaee   : > { %24721 = vmatprep.mubr.msk.f32.mxu0 %vm264_vm12, %v32245_v8  ;;  %35436 = vst [vmem:[#allocation78_spill] sm:$0xff] %v32261_v28  ;;  %v32265_v8 = vld [vmem:[#allocation3 + $0x60] sm:$0xff] }
 0xaef   : > { %35437 = vst [vmem:[#allocation80_spill] sm:$0xff] %v32265_v8 }
 0xaf1   : > { %24722 = vmatmul.mubr.msk.f32.gmra.mrb[70].mxu0 %vm264_vm12, %v32249_v63  ;;  %v32269_v63 = vld [vmem:[#allocation3 + $0x68] sm:$0xff] }
 0xaf2   : > { %24724 = vmatprep.mubr.msk.f32.mxu0 %vm264_vm12, %v32253_v31  ;;  %35438 = vst [vmem:[#allocation82_spill] sm:$0xff] %v32269_v63  ;;  %v32273_v31 = vld [vmem:[#allocation3 + $0x70] sm:$0xff] }
 0xaf3   : > { %35439 = vst [vmem:[#allocation88_spill] sm:$0xff] %v32273_v31 }
 0xaf5   : > { %24725 = vmatmul.mubr.msk.f32.gmra.mrb[72].mxu0 %vm264_vm12, %v32257_v18  ;;  %v32277_v18 = vld [vmem:[#allocation3 + $0x78] sm:$0xff] }
 0xaf6   : > { %24727 = vmatprep.mubr.msk.f32.mxu0 %vm264_vm12, %v32261_v28  ;;  %35440 = vst [vmem:[#allocation89_spill] sm:$0xff] %v32277_v18  ;;  %v32281_v28 = vld [vmem:[#allocation3 + $0x80] sm:$0xff] }
 0xaf7   : > { %35441 = vst [vmem:[#allocation66_spill] sm:$0xff] %v32281_v28 }
 0xaf9   : > { %24728 = vmatmul.mubr.msk.f32.gmra.mrb[74].mxu0 %vm264_vm12, %v32265_v8  ;;  %v32285_v8 = vld [vmem:[#allocation3 + $0x88] sm:$0xff] }
 0xafa   : > { %24730 = vmatprep.mubr.msk.f32.mxu0 %vm264_vm12, %v32269_v63  ;;  %35442 = vst [vmem:[#allocation34_spill] sm:$0xff] %v32285_v8  ;;  %v32289_v63 = vld [vmem:[#allocation3 + $0x90] sm:$0xff] }
 0xafb   : > { %35443 = vst [vmem:[#allocation5_spill] sm:$0xff] %v32289_v63 }
 0xafd   : > { %24731 = vmatmul.mubr.msk.f32.gmra.mrb[76].mxu0 %vm264_vm12, %v32273_v31  ;;  %v32293_v31 = vld [vmem:[#allocation3 + $0x98] sm:$0xff] }
 0xafe   : > { %24733 = vmatprep.mubr.msk.f32.mxu0 %vm264_vm12, %v32277_v18  ;;  %35444 = vst [vmem:[#allocation87_spill] sm:$0xff] %v32293_v31  ;;  %v32297_v18 = vld [vmem:[#allocation3 + $0xa0] sm:$0xff] }
 0xaff   : > { %35445 = vst [vmem:[#allocation91_spill] sm:$0xff] %v32297_v18 }
 0xb01   : > { %24734 = vmatmul.mubr.msk.f32.gmra.mrb[78].mxu0 %vm264_vm12, %v32281_v28  ;;  %v32301_v28 = vld [vmem:[#allocation3 + $0xa8] sm:$0xff] }
 0xb02   : > { %24736 = vmatprep.mubr.msk.f32.mxu0 %vm264_vm12, %v32285_v8  ;;  %35446 = vst [vmem:[#allocation92_spill] sm:$0xff] %v32301_v28  ;;  %v32305_v8 = vld [vmem:[#allocation3 + $0xb0] sm:$0xff] }
 0xb03   : > { %35447 = vst [vmem:[#allocation23_spill] sm:$0xff] %v32305_v8 }
 0xb05   : > { %24737 = vmatmul.mubr.msk.f32.gmra.mrb[80].mxu0 %vm264_vm12, %v32289_v63  ;;  %v32309_v63 = vld [vmem:[#allocation3 + $0xb8] sm:$0xff] }
 0xb06   : > { %24739 = vmatprep.mubr.msk.f32.mxu0 %vm264_vm12, %v32293_v31  ;;  %35448 = vst [vmem:[#allocation33_spill] sm:$0xff] %v32309_v63  ;;  %v32313_v31 = vld [vmem:[#allocation3 + $0xc0] sm:$0xff] }
 0xb07   : > { %35449 = vst [vmem:[#allocation47_spill] sm:$0xff] %v32313_v31 }
 0xb09   : > { %24740 = vmatmul.mubr.msk.f32.gmra.mrb[82].mxu0 %vm264_vm12, %v32297_v18  ;;  %v32317_v18 = vld [vmem:[#allocation3 + $0xc8] sm:$0xff] }
 0xb0a   : > { %24742 = vmatprep.mubr.msk.f32.mxu0 %vm264_vm12, %v32301_v28  ;;  %35450 = vst [vmem:[#allocation37_spill] sm:$0xff] %v32317_v18  ;;  %v32321_v28 = vld [vmem:[#allocation3 + $0xd0] sm:$0xff] }
 0xb0b   : > { %35451 = vst [vmem:[#allocation32_spill] sm:$0xff] %v32321_v28 }
 0xb0d   : > { %24743 = vmatmul.mubr.msk.f32.gmra.mrb[84].mxu0 %vm264_vm12, %v32305_v8  ;;  %v32325_v8 = vld [vmem:[#allocation3 + $0xd8] sm:$0xff] }
 0xb0e   : > { %24745 = vmatprep.mubr.msk.f32.mxu0 %vm264_vm12, %v32309_v63  ;;  %35452 = vst [vmem:[#allocation93_spill] sm:$0xff] %v32325_v8  ;;  %v32329_v63 = vld [vmem:[#allocation3 + $0xe0] sm:$0xff] }
 0xb0f   : > { %35453 = vst [vmem:[#allocation94_spill] sm:$0xff] %v32329_v63 }
 0xb11   : > { %24746 = vmatmul.mubr.msk.f32.gmra.mrb[86].mxu0 %vm264_vm12, %v32313_v31  ;;  %v32333_v31 = vld [vmem:[#allocation3 + $0xe8] sm:$0xff] }
 0xb12   : > { %24748 = vmatprep.mubr.msk.f32.mxu0 %vm264_vm12, %v32317_v18  ;;  %35454 = vst [vmem:[#allocation95_spill] sm:$0xff] %v32333_v31  ;;  %v32337_v18 = vld [vmem:[#allocation3 + $0xf0] sm:$0xff] }
 0xb13   : > { %35455 = vst [vmem:[#allocation96_spill] sm:$0xff] %v32337_v18 }
 0xb15   : > { %24749 = vmatmul.mubr.msk.f32.gmra.mrb[88].mxu0 %vm264_vm12, %v32321_v28  ;;  %v32341_v28 = vld [vmem:[#allocation3 + $0xf8] sm:$0xff] }
 0xb16   : > { %24751 = vmatprep.mubr.msk.f32.mxu0 %vm264_vm12, %v32325_v8  ;;  %35456 = vst [vmem:[#allocation97_spill] sm:$0xff] %v32341_v28  ;;  %v16897_v8 = vld [vmem:[#allocation3 + $0x9] sm:$0xff] }
 0xb19   : > { %24752 = vmatmul.mubr.msk.f32.gmra.mrb[90].mxu0 %vm264_vm12, %v32329_v63  ;;  %v16898_v63 = vld [vmem:[#allocation3 + $0x11] sm:$0xff] }
 0xb1a   : > { %24754 = vmatprep.mubr.msk.f32.mxu0 %vm264_vm12, %v32333_v31  ;;  %v16930_v31 = vsel %vm35458_vm10, %v16898_v63, 0.0  ;;  %vm35460_vm10 = vnez %v35285_v20  ;;  %v32390_v20 = vld [vmem:[#allocation3 + $0x49] sm:$0xff] }
 0xb1b   : > { %v16932_v63 = vsel %vm35460_vm10, %v32360_v19, 0.0  ;;  %vm35464_vm10 = vnez %v35290_v52  ;;  %35465 = vst [vmem:[#allocation104_spill] sm:$0xff] %v32390_v20  ;;  %v32410_v52 = vld [vmem:[#allocation3 + $0x69] sm:$0xff] }
 0xb1c   : > { %35467 = vst [vmem:[#allocation44_spill] sm:$0xff] %v32410_v52 }
 0xb1d   : > { %24755 = vmatmul.mubr.msk.f32.gmra.mrb[92].mxu0 %vm264_vm12, %v32337_v18  ;;  %v32355_v18 = vld [vmem:[%s33208_s3 + $0xf8] sm:$0xff] }
 0xb1e   : > { %24757 = vmatprep.mubr.msk.f32.mxu0 %vm264_vm12, %v32341_v28  ;;  %v32358_v28 = vld [vmem:[#allocation3 + $0x19] sm:$0xff] }
 0xb1f   : > { %35459 = vst [vmem:[#allocation99_spill] sm:$0xff] %v32358_v28 }
 0xb21   : > { %24758 = vmatmul.mubr.msk.f32.gmra.mrb[94].mxu0 %vm264_vm12, %v32345_v58 }
 0xb22   : > { %24762 = vmatprep.mubr.msk.f32.mxu0 %vm264_vm12, %v16897_v8  ;;  %v32370_v8 = vld [vmem:[#allocation3 + $0x29] sm:$0xff] }
 0xb23   : > { %35461 = vst [vmem:[#allocation100_spill] sm:$0xff] %v32370_v8 }
 0xb25   : > { %24763 = vmatmul.mubr.msk.f32.vlgmr.msra.gmra.mrb[64].mxu0 %vm264_vm12, %v16930_v31  ;;  %v32372_v31 = vld [vmem:[#allocation3 + $0x31] sm:$0xff] }
 0xb26   : > { %24811 = vmatpush3.msra.mxu0 %v32224_v42  ;;  %24765 = vmatprep.mubr.msk.f32.mxu0 %vm264_vm12, %v32358_v28  ;;  %v16934_v42 = vsel %vm35462_vm13, %v32372_v31, 0.0  ;;  %v32382_v28 = vld [vmem:[#allocation3 + $0x41] sm:$0xff] }
 0xb27   : > { %24860 = vmatprep.subr.mxu0 %v32355_v18 }
 0xb29   : > { %24766 = vmatmul.mubr.msk.f32.gmra.mrb[66].mxu0 %vm264_vm12, %v16932_v63  ;;  %v16936_v63 = vsel %vm35464_vm10, %v32382_v28, 0.0 }
 0xb2a   : > { %24768 = vmatprep.mubr.msk.f32.mxu0 %vm264_vm12, %v32370_v8  ;;  %v32392_v8 = vld [vmem:[#allocation3 + $0x51] sm:$0xff] }
 0xb2d   : > { %24769 = vmatmul.mubr.msk.f32.gmra.mrb[68].mxu0 %vm264_vm12, %v16934_v42  ;;  %v16938_v42 = vsel %vm35294_vm1, %v32392_v8, 0.0 }
 0xb2e   : > { %24771 = vmatprep.mubr.msk.f32.mxu0 %vm264_vm12, %v32380_v25  ;;  %v32402_v25 = vld [vmem:[#allocation3 + $0x61] sm:$0xff] }
 0xb31   : > { %24772 = vmatmul.mubr.msk.f32.gmra.mrb[70].mxu0 %vm264_vm12, %v16936_v63  ;;  %v16940_v63 = vsel %vm35297_vm11, %v32402_v25, 0.0  ;;  %vm35469_vm11 = vnez %v35302_v53  ;;  %v32450_v53 = vld [vmem:[#allocation3 + $0xa9] sm:$0xff] }
 0xb32   : > { %24774 = vmatprep.mubr.msk.f32.mxu0 %vm264_vm12, %v32390_v20  ;;  %v32412_v20 = vld [vmem:[#allocation3 + $0x71] sm:$0xff]  ;;  %35474 = vst [vmem:[#allocation18_spill] sm:$0xff] %v32450_v53 }
 0xb35   : > { %24775 = vmatmul.mubr.msk.f32.gmra.mrb[72].mxu0 %vm264_vm12, %v16938_v42  ;;  %v16942_v42 = vsel %vm35300_vm3, %v32412_v20, 0.0  ;;  %vm35471_vm3 = vnez %v35304_v44  ;;  %v32460_v44 = vld [vmem:[#allocation3 + $0xb9] sm:$0xff] }
 0xb36   : > { %24777 = vmatprep.mubr.msk.f32.mxu0 %vm264_vm12, %v32400_v10  ;;  %v32422_v10 = vld [vmem:[#allocation3 + $0x81] sm:$0xff]  ;;  %35476 = vst [vmem:[#allocation28_spill] sm:$0xff] %v32460_v44 }
 0xb39   : > { %24778 = vmatmul.mubr.msk.f32.gmra.mrb[74].mxu0 %vm264_vm12, %v16940_v63  ;;  %v16944_v63 = vsel %vm35469_vm11, %v32422_v10, 0.0  ;;  %vm35473_vm11 = vnez %v35306_v30  ;;  %v32470_v30 = vld [vmem:[#allocation3 + $0xc9] sm:$0xff] }
 0xb3a   : > { %24780 = vmatprep.mubr.msk.f32.mxu0 %vm264_vm12, %v32410_v52  ;;  %v32432_v52 = vld [vmem:[#allocation3 + $0x91] sm:$0xff]  ;;  %35478 = vst [vmem:[#allocation25_spill] sm:$0xff] %v32470_v30 }
 0xb3d   : > { %24781 = vmatmul.mubr.msk.f32.gmra.mrb[76].mxu0 %vm264_vm12, %v16942_v42  ;;  %v16946_v42 = vsel %vm35471_vm3, %v32432_v52, 0.0  ;;  %vm35475_vm3 = vnez %v35235_v14  ;;  %v32480_v14 = vld [vmem:[#allocation3 + $0xd9] sm:$0xff] }
 0xb3e   : > { %24783 = vmatprep.mubr.msk.f32.mxu0 %vm264_vm12, %v32420_v61  ;;  %v32442_v61 = vld [vmem:[#allocation3 + $0xa1] sm:$0xff]  ;;  %35479 = vst [vmem:[#allocation29_spill] sm:$0xff] %v32480_v14 }
 0xb41   : > { %24784 = vmatmul.mubr.msk.f32.gmra.mrb[78].mxu0 %vm264_vm12, %v16944_v63  ;;  %v16948_v63 = vsel %vm35473_vm11, %v32442_v61, 0.0  ;;  %vm35477_vm11 = vnez %v35308_v3  ;;  %v32490_v3 = vld [vmem:[#allocation3 + $0xe9] sm:$0xff] }
 0xb42   : > { %24786 = vmatprep.mubr.msk.f32.mxu0 %vm264_vm12, %v32430_v34  ;;  %v32452_v34 = vld [vmem:[#allocation3 + $0xb1] sm:$0xff] }
 0xb45   : > { %24787 = vmatmul.mubr.msk.f32.gmra.mrb[80].mxu0 %vm264_vm12, %v16946_v42  ;;  %v16950_v42 = vsel %vm35475_vm3, %v32452_v34, 0.0 }
 0xb46   : > { %24789 = vmatprep.mubr.msk.f32.mxu0 %vm264_vm12, %v32440_v22  ;;  %v32462_v22 = vld [vmem:[#allocation3 + $0xc1] sm:$0xff] }
 0xb49   : > { %24790 = vmatmul.mubr.msk.f32.gmra.mrb[82].mxu0 %vm264_vm12, %v16948_v63  ;;  %v16952_v63 = vsel %vm35477_vm11, %v32462_v22, 0.0  ;;  %vm35480_vm11 = vnez %v35315_v16 }
 0xb4a   : > { %24792 = vmatprep.mubr.msk.f32.mxu0 %vm264_vm12, %v32450_v53  ;;  %v32472_v53 = vld [vmem:[#allocation3 + $0xd1] sm:$0xff] }
 0xb4d   : > { %24793 = vmatmul.mubr.msk.f32.gmra.mrb[84].mxu0 %vm264_vm12, %v16950_v42  ;;  %v16954_v42 = vsel %vm35312_vm15, %v32472_v53, 0.0 }
 0xb4e   : > { %24795 = vmatprep.mubr.msk.f32.mxu0 %vm264_vm12, %v32460_v44  ;;  %v32482_v44 = vld [vmem:[#allocation3 + $0xe1] sm:$0xff] }
 0xb51   : > { %24796 = vmatmul.mubr.msk.f32.gmra.mrb[86].mxu0 %vm264_vm12, %v16952_v63  ;;  %v16956_v63 = vsel %vm35480_vm11, %v32482_v44, 0.0  ;;  %vm35484_vm11 = vnez %v35321_v46 }
 0xb52   : > { %24798 = vmatprep.mubr.msk.f32.mxu0 %vm264_vm12, %v32470_v30  ;;  %v32492_v30 = vld [vmem:[#allocation3 + $0xf1] sm:$0xff]  ;;  %v17347_v59 = vsel %vm35484_vm11, %v31841_v0, 0.0  ;;  %vm35487_vm11 = vnez %v34431_v24  ;;  %v18583_v24 = vsel %vm35388_vm14, %v32065_v49, 0.0 }
 0xb53   : > { %35481 = vst [vmem:[#allocation31_spill] sm:$0xff] %v32492_v30 }
 0xb55   : > { %24799 = vmatmul.mubr.msk.f32.gmra.mrb[88].mxu0 %vm264_vm12, %v16954_v42  ;;  %v16958_v42 = vsel %vm35319_vm5, %v32492_v30, 0.0  ;;  %vm35485_vm5 = vnez %v34175_v33 }
 0xb56   : > { %24801 = vmatprep.mubr.msk.f32.mxu0 %vm264_vm12, %v32480_v14  ;;  %v32502_v14 = vld [vmem:[#allocation3 + $0x101] sm:$0xff]  ;;  %v17349_v15 = vsel %vm35485_vm5, %v31869_v27, 0.0  ;;  %vm35486_vm5 = vnez %v34428_v38  ;;  %v17363_v27 = vsel %vm35252_vm8, %v32065_v49, 0.0  ;;  %v18567_v49 = vld [vmem:[#allocation3 + $0x117] sm:$0xff] }
 0xb57   : > { %35483 = vst [vmem:[#allocation38_spill] sm:$0xff] %v32502_v14  ;;  %v17353_v0 = vsel %vm35486_vm5, %v31925_v50, 0.0  ;;  %vm35489_vm5 = vnez %v34437_v37  ;;  %v35492_v50 = vld [vmem:[#allocation71_spill] sm:$0xff]  ;;  %v18587_v37 = vsel %vm35253_vm2, %v32121_v21, 0.0 }
 0xb59   : > { %24802 = vmatmul.mubr.msk.f32.gmra.mrb[90].mxu0 %vm264_vm12, %v16956_v63  ;;  %v16960_v63 = vsel %vm35245_vm9, %v32502_v14, 0.0 }
 0xb5a   : > { %24804 = vmatprep.mubr.msk.f32.mxu0 %vm264_vm12, %v32490_v3 }
 0xb5d   : > { %24805 = vmatmul.mubr.msk.f32.gmra.mrb[92].mxu0 %vm264_vm12, %v16958_v42  ;;  %v21239_v42 = vld [vmem:[%s33208_s3 + $0x100] sm:$0xff] }
 0xb5e   : > { %24807 = vmatprep.mubr.msk.f32.mxu0 %vm264_vm12, %v32500_v12 }
 0xb61   : > { %24808 = vmatmul.mubr.msk.f32.gmra.mrb[94].mxu0 %vm264_vm12, %v16960_v63  ;;  %v35496_v63 = vld [vmem:[#allocation26_spill] sm:$0xff] }
 0xb62   : > { %24812 = vmatprep.mubr.msk.f32.mxu0 %vm264_vm12, %v17347_v59  ;;  %v17351_v59 = vsel %vm35354_vm6, %v31897_v23, 0.0  ;;  %vm35488_vm6 = vnez %v34434_v43  ;;  %v18585_v43 = vsel %vm35252_vm8, %v32093_v6, 0.0  ;;  %vm35575_vm8 = vnez %v35496_v63  ;;  %v35591_v23 = vld [vmem:[#allocation87_spill] sm:$0xff]  ;;  %v35596_v63 = vld [vmem:[#allocation37_spill] sm:$0xff] }
 0xb65   : > { %24813 = vmatmul.mubr.msk.f32.vlgmr.msra.gmra.mrb[64].mxu0 %vm264_vm12, %v31856_v9  ;;  %v17361_v9 = vsel %vm35388_vm14, %v32037_v32, 0.0  ;;  %vm35577_vm14 = vnez %v34531_v5 }
 0xb66   : > { %24861 = vmatpush3.msra.mxu0 %v32355_v18  ;;  %24815 = vmatprep.mubr.msk.f32.mxu0 %vm264_vm12, %v17349_v15  ;;  %v17355_v15 = vsel %vm35487_vm11, %v31953_v54, 0.0  ;;  %v17367_v54 = vsel %vm35254_vm7, %v32121_v21, 0.0  ;;  %v17369_v18 = vsel %vm35175_vm4, %v32149_v51, 0.0  ;;  %vm35497_vm7 = vnez %v34388_v47  ;;  %v18568_v47 = vld [vmem:[#allocation3 + $0x11f] sm:$0xff]  ;;  %v35580_v21 = vld [vmem:[#allocation75_spill] sm:$0xff] }
 0xb67   : > { %24910 = vmatprep.subr.mxu0 %v21239_v42  ;;  %vm35498_vm4 = vnez %v34347_v4 }
 0xb69   : > { %24816 = vmatmul.mubr.msk.f32.gmra.mrb[66].mxu0 %vm264_vm12, %v31884_v29  ;;  %v35490_v29 = vld [vmem:[#allocation81_spill] sm:$0xff] }
 0xb6a   : > { %24818 = vmatprep.mubr.msk.f32.mxu0 %vm264_vm12, %v17351_v59  ;;  %v17371_v59 = vsel %vm35177_vm0, %v32177_v1, 0.0  ;;  %vm35499_vm0 = vnez %v34531_v5  ;;  %v35581_v5 = vld [vmem:[#allocation76_spill] sm:$0xff] }
 0xb6d   : > { %24819 = vmatmul.mubr.msk.f32.gmra.mrb[68].mxu0 %vm264_vm12, %v31912_v17  ;;  %v17357_v17 = vsel %vm35488_vm6, %v31981_v11, 0.0  ;;  %v35494_v11 = vld [vmem:[#allocation8_spill] sm:$0xff] }
 0xb6e   : > { %24821 = vmatprep.mubr.msk.f32.mxu0 %vm264_vm12, %v17353_v0  ;;  %v17373_v0 = vsel %vm35497_vm7, %v32197_v55, 0.0 }
 0xb71   : > { %24822 = vmatmul.mubr.msk.f32.gmra.mrb[70].mxu0 %vm264_vm12, %v31940_v39  ;;  %v17359_v39 = vsel %vm35489_vm5, %v32009_v7, 0.0  ;;  %v35495_v7 = vld [vmem:[#allocation20_spill] sm:$0xff] }
 0xb72   : > { %24824 = vmatprep.mubr.msk.f32.mxu0 %vm264_vm12, %v17355_v15  ;;  %v17375_v15 = vsel %vm35498_vm4, %v32210_v35, 0.0 }
 0xb75   : > { %24825 = vmatmul.mubr.msk.f32.gmra.mrb[72].mxu0 %vm264_vm12, %v31968_v41  ;;  %v17365_v41 = vsel %vm35253_vm2, %v32093_v6, 0.0  ;;  %v18599_v6 = vsel %vm35577_vm14, %v18567_v49, 0.0  ;;  %v35622_v49 = vld [vmem:[#allocation48_spill] sm:$0xff] }
 0xb76   : > { %24827 = vmatprep.mubr.msk.f32.mxu0 %vm264_vm12, %v17357_v17  ;;  %v32602_v17 = vld [vmem:[#allocation3 + $0x107] sm:$0xff]  ;;  %vm35623_vm2 = vnez %v35622_v49  ;;  %v35657_v49 = vld [vmem:[#allocation85_spill] sm:$0xff] }
 0xb79   : > { %24828 = vmatmul.mubr.msk.f32.gmra.mrb[74].mxu0 %vm264_vm12, %v31996_v40  ;;  %v35493_v40 = vld [vmem:[#allocation16_spill] sm:$0xff] }
 0xb7a   : > { %24830 = vmatprep.mubr.msk.f32.mxu0 %vm264_vm12, %v17359_v39  ;;  %v17377_v39 = vsel %vm35499_vm0, %v32602_v17, 0.0 }
 0xb7d   : > { %24831 = vmatmul.mubr.msk.f32.gmra.mrb[76].mxu0 %vm264_vm12, %v32024_v26 }
 0xb7e   : > { %24833 = vmatprep.mubr.msk.f32.mxu0 %vm264_vm12, %v17361_v9  ;;  %v32610_v9 = vld [vmem:[#allocation3 + $0x10f] sm:$0xff] }
 0xb81   : > { %24834 = vmatmul.mubr.msk.f32.gmra.mrb[78].mxu0 %vm264_vm12, %v32052_v45 }
 0xb82   : > { %24836 = vmatprep.mubr.msk.f32.mxu0 %vm264_vm12, %v17363_v27  ;;  %v21272_v27 = vld [vmem:[%s33208_s3 + $0x108] sm:$0xff] }
 0xb85   : > { %24837 = vmatmul.mubr.msk.f32.gmra.mrb[80].mxu0 %vm264_vm12, %v35490_v29 }
 0xb86   : > { %24839 = vmatprep.mubr.msk.f32.mxu0 %vm264_vm12, %v17365_v41  ;;  %v35500_v41 = vld [vmem:[#allocation12_spill] sm:$0xff] }
 0xb89   : > { %24840 = vmatmul.mubr.msk.f32.gmra.mrb[82].mxu0 %vm264_vm12, %v35492_v50 }
 0xb8a   : > { %24842 = vmatprep.mubr.msk.f32.mxu0 %vm264_vm12, %v17367_v54  ;;  %v35501_v54 = vld [vmem:[#allocation72_spill] sm:$0xff] }
 0xb8d   : > { %24843 = vmatmul.mubr.msk.f32.gmra.mrb[84].mxu0 %vm264_vm12, %v35494_v11 }
 0xb8e   : > { %24845 = vmatprep.mubr.msk.f32.mxu0 %vm264_vm12, %v17369_v18  ;;  %v35502_v18 = vld [vmem:[#allocation73_spill] sm:$0xff] }
 0xb91   : > { %24846 = vmatmul.mubr.msk.f32.gmra.mrb[86].mxu0 %vm264_vm12, %v32164_v56 }
 0xb92   : > { %24848 = vmatprep.mubr.msk.f32.mxu0 %vm264_vm12, %v17371_v59  ;;  %v35503_v59 = vld [vmem:[#allocation74_spill] sm:$0xff] }
 0xb95   : > { %24849 = vmatmul.mubr.msk.f32.gmra.mrb[88].mxu0 %vm264_vm12, %v32189_v60 }
 0xb96   : > { %24851 = vmatprep.mubr.msk.f32.mxu0 %vm264_vm12, %v17373_v0  ;;  %v35504_v0 = vld [vmem:[#allocation75_spill] sm:$0xff] }
 0xb99   : > { %24852 = vmatmul.mubr.msk.f32.gmra.mrb[90].mxu0 %vm264_vm12, %v32206_v57 }
 0xb9a   : > { %24854 = vmatprep.mubr.msk.f32.mxu0 %vm264_vm12, %v17375_v15  ;;  %v35506_v15 = vld [vmem:[#allocation77_spill] sm:$0xff] }
 0xb9d   : > { %24855 = vmatmul.mubr.msk.f32.gmra.mrb[92].mxu0 %vm264_vm12, %v32216_v2 }
 0xb9e   : > { %24857 = vmatprep.mubr.msk.f32.mxu0 %vm264_vm12, %v17377_v39  ;;  %v35508_v39 = vld [vmem:[#allocation80_spill] sm:$0xff] }
 0xba1   : > { %24858 = vmatmul.mubr.msk.f32.gmra.mrb[94].mxu0 %vm264_vm12, %v32610_v9 }
 0xba2   : > { %24862 = vmatprep.mubr.msk.f32.mxu0 %vm264_vm12, %v32227_v36  ;;  %v35505_v36 = vld [vmem:[#allocation76_spill] sm:$0xff] }
 0xba5   : > { %24863 = vmatmul.mubr.msk.f32.vlgmr.msra.gmra.mrb[64].mxu0 %vm264_vm12, %v35500_v41  ;;  %v35509_v41 = vld [vmem:[#allocation82_spill] sm:$0xff] }
 0xba6   : > { %24911 = vmatpush3.msra.mxu0 %v21239_v42  ;;  %24865 = vmatprep.mubr.msk.f32.mxu0 %vm264_vm12, %v35501_v54  ;;  %v35507_v42 = vld [vmem:[#allocation78_spill] sm:$0xff] }
 0xba7   : > { %24960 = vmatprep.subr.mxu0 %v21272_v27 }
 0xba9   : > { %24866 = vmatmul.mubr.msk.f32.gmra.mrb[66].mxu0 %vm264_vm12, %v35502_v18  ;;  %v35510_v18 = vld [vmem:[#allocation88_spill] sm:$0xff] }
 0xbaa   : > { %24868 = vmatprep.mubr.msk.f32.mxu0 %vm264_vm12, %v35503_v59  ;;  %v35511_v59 = vld [vmem:[#allocation89_spill] sm:$0xff] }
 0xbad   : > { %24869 = vmatmul.mubr.msk.f32.gmra.mrb[68].mxu0 %vm264_vm12, %v35504_v0  ;;  %v35512_v0 = vld [vmem:[#allocation66_spill] sm:$0xff] }
 0xbae   : > { %24871 = vmatprep.mubr.msk.f32.mxu0 %vm264_vm12, %v35505_v36  ;;  %v35513_v36 = vld [vmem:[#allocation34_spill] sm:$0xff] }
 0xbb1   : > { %24872 = vmatmul.mubr.msk.f32.gmra.mrb[70].mxu0 %vm264_vm12, %v35506_v15  ;;  %v35514_v15 = vld [vmem:[#allocation5_spill] sm:$0xff] }
 0xbb2   : > { %24874 = vmatprep.mubr.msk.f32.mxu0 %vm264_vm12, %v35507_v42  ;;  %v35515_v42 = vld [vmem:[#allocation87_spill] sm:$0xff] }
 0xbb5   : > { %24875 = vmatmul.mubr.msk.f32.gmra.mrb[72].mxu0 %vm264_vm12, %v35508_v39  ;;  %v35516_v39 = vld [vmem:[#allocation91_spill] sm:$0xff] }
 0xbb6   : > { %24877 = vmatprep.mubr.msk.f32.mxu0 %vm264_vm12, %v35509_v41  ;;  %v35517_v41 = vld [vmem:[#allocation92_spill] sm:$0xff] }
 0xbb9   : > { %24878 = vmatmul.mubr.msk.f32.gmra.mrb[74].mxu0 %vm264_vm12, %v35510_v18  ;;  %v35518_v18 = vld [vmem:[#allocation23_spill] sm:$0xff] }
 0xbba   : > { %24880 = vmatprep.mubr.msk.f32.mxu0 %vm264_vm12, %v35511_v59  ;;  %v35519_v59 = vld [vmem:[#allocation33_spill] sm:$0xff] }
 0xbbd   : > { %24881 = vmatmul.mubr.msk.f32.gmra.mrb[76].mxu0 %vm264_vm12, %v35512_v0  ;;  %v35520_v0 = vld [vmem:[#allocation47_spill] sm:$0xff] }
 0xbbe   : > { %24883 = vmatprep.mubr.msk.f32.mxu0 %vm264_vm12, %v35513_v36  ;;  %v35521_v36 = vld [vmem:[#allocation37_spill] sm:$0xff] }
 0xbc1   : > { %24884 = vmatmul.mubr.msk.f32.gmra.mrb[78].mxu0 %vm264_vm12, %v35514_v15  ;;  %v35522_v15 = vld [vmem:[#allocation32_spill] sm:$0xff] }
 0xbc2   : > { %24886 = vmatprep.mubr.msk.f32.mxu0 %vm264_vm12, %v35515_v42  ;;  %v35523_v42 = vld [vmem:[#allocation93_spill] sm:$0xff] }
 0xbc5   : > { %24887 = vmatmul.mubr.msk.f32.gmra.mrb[80].mxu0 %vm264_vm12, %v35516_v39  ;;  %v35524_v39 = vld [vmem:[#allocation94_spill] sm:$0xff] }
 0xbc6   : > { %24889 = vmatprep.mubr.msk.f32.mxu0 %vm264_vm12, %v35517_v41  ;;  %v35525_v41 = vld [vmem:[#allocation95_spill] sm:$0xff] }
 0xbc9   : > { %24890 = vmatmul.mubr.msk.f32.gmra.mrb[82].mxu0 %vm264_vm12, %v35518_v18  ;;  %v35526_v18 = vld [vmem:[#allocation96_spill] sm:$0xff] }
 0xbca   : > { %24892 = vmatprep.mubr.msk.f32.mxu0 %vm264_vm12, %v35519_v59  ;;  %v35527_v59 = vld [vmem:[#allocation97_spill] sm:$0xff] }
 0xbcd   : > { %24893 = vmatmul.mubr.msk.f32.gmra.mrb[84].mxu0 %vm264_vm12, %v35520_v0 }
 0xbce   : > { %24895 = vmatprep.mubr.msk.f32.mxu0 %vm264_vm12, %v35521_v36  ;;  %v32677_v36 = vld [vmem:[#allocation3 + $0x108] sm:$0xff] }
 0xbcf   : > { %35528 = vst [vmem:[#allocation46_spill] sm:$0xff] %v32677_v36 }
 0xbd1   : > { %24896 = vmatmul.mubr.msk.f32.gmra.mrb[86].mxu0 %vm264_vm12, %v35522_v15 }
 0xbd2   : > { %24898 = vmatprep.mubr.msk.f32.mxu0 %vm264_vm12, %v35523_v42  ;;  %v32681_v42 = vld [vmem:[#allocation3 + $0x110] sm:$0xff] }
 0xbd3   : > { %35529 = vst [vmem:[#allocation79_spill] sm:$0xff] %v32681_v42 }
 0xbd5   : > { %24899 = vmatmul.mubr.msk.f32.gmra.mrb[88].mxu0 %vm264_vm12, %v35524_v39 }
 0xbd6   : > { %24901 = vmatprep.mubr.msk.f32.mxu0 %vm264_vm12, %v35525_v41  ;;  %v35530_v41 = vld [vmem:[#allocation99_spill] sm:$0xff] }
 0xbd9   : > { %24902 = vmatmul.mubr.msk.f32.gmra.mrb[90].mxu0 %vm264_vm12, %v35526_v18  ;;  %v35531_v18 = vld [vmem:[#allocation14_spill] sm:$0xff] }
 0xbda   : > { %24904 = vmatprep.mubr.msk.f32.mxu0 %vm264_vm12, %v35527_v59  ;;  %vm35532_vm0 = vnez %v35531_v18  ;;  %v18156_v18 = vsel %vm35462_vm13, %v32382_v28, 0.0 }
 0xbdb   : > { %v18152_v59 = vsel %vm35532_vm0, %v32360_v19, 0.0  ;;  %v35542_v19 = vld [vmem:[#allocation44_spill] sm:$0xff] }
 0xbdd   : > { %24905 = vmatmul.mubr.msk.f32.gmra.mrb[92].mxu0 %vm264_vm12, %v32345_v58  ;;  %v21305_v58 = vld [vmem:[%s33208_s3 + $0x110] sm:$0xff] }
 0xbde   : > { %24907 = vmatprep.mubr.msk.f32.mxu0 %vm264_vm12, %v32677_v36  ;;  %v35533_v36 = vld [vmem:[#allocation100_spill] sm:$0xff] }
 0xbe1   : > { %24908 = vmatmul.mubr.msk.f32.gmra.mrb[94].mxu0 %vm264_vm12, %v32681_v42  ;;  %v35534_v42 = vld [vmem:[#allocation17_spill] sm:$0xff] }
 0xbe2   : > { %24912 = vmatprep.mubr.msk.f32.mxu0 %vm264_vm12, %v35530_v41  ;;  %vm35535_vm4 = vnez %v35534_v42  ;;  %v35536_v41 = vld [vmem:[#allocation103_spill] sm:$0xff]  ;;  %v35540_v42 = vld [vmem:[#allocation105_spill] sm:$0xff] }
 0xbe3   : > { %v18154_v39 = vsel %vm35535_vm4, %v32372_v31, 0.0 }
 0xbe5   : > { %24913 = vmatmul.mubr.msk.f32.vlgmr.msra.gmra.mrb[64].mxu0 %vm264_vm12, %v18152_v59  ;;  %v35545_v59 = vld [vmem:[#allocation4_spill] sm:$0xff] }
 0xbe6   : > { %24961 = vmatpush3.msra.mxu0 %v21272_v27  ;;  %24915 = vmatprep.mubr.msk.f32.mxu0 %vm264_vm12, %v35533_v36  ;;  %v35538_v27 = vld [vmem:[#allocation104_spill] sm:$0xff]  ;;  %v18158_v36 = vsel %vm35464_vm10, %v32392_v8, 0.0 }
 0xbe7   : > { %25010 = vmatprep.subr.mxu0 %v21305_v58 }
 0xbe9   : > { %24916 = vmatmul.mubr.msk.f32.gmra.mrb[66].mxu0 %vm264_vm12, %v18154_v39  ;;  %v35548_v39 = vld [vmem:[#allocation22_spill] sm:$0xff] }
 0xbea   : > { %24918 = vmatprep.mubr.msk.f32.mxu0 %vm264_vm12, %v35536_v41  ;;  %v18160_v41 = vsel %vm35294_vm1, %v32402_v25, 0.0 }
 0xbed   : > { %24919 = vmatmul.mubr.msk.f32.gmra.mrb[68].mxu0 %vm264_vm12, %v18156_v18  ;;  %v35543_v18 = vld [vmem:[#allocation42_spill] sm:$0xff] }
 0xbee   : > { %24921 = vmatprep.mubr.msk.f32.mxu0 %vm264_vm12, %v35538_v27  ;;  %vm35544_vm13 = vnez %v35543_v18  ;;  %v35551_v18 = vld [vmem:[#allocation19_spill] sm:$0xff] }
 0xbef   : > { %v18162_v27 = vsel %vm35544_vm13, %v32412_v20, 0.0 }
 0xbf1   : > { %24922 = vmatmul.mubr.msk.f32.gmra.mrb[70].mxu0 %vm264_vm12, %v18158_v36  ;;  %v35546_v36 = vld [vmem:[#allocation48_spill] sm:$0xff] }
 0xbf2   : > { %24924 = vmatprep.mubr.msk.f32.mxu0 %vm264_vm12, %v35540_v42  ;;  %vm35547_vm10 = vnez %v35546_v36  ;;  %v35554_v36 = vld [vmem:[#allocation18_spill] sm:$0xff] }
 0xbf3   : > { %v18164_v42 = vsel %vm35547_vm10, %v32422_v10, 0.0 }
 0xbf5   : > { %24925 = vmatmul.mubr.msk.f32.gmra.mrb[72].mxu0 %vm264_vm12, %v18160_v41  ;;  %v35549_v41 = vld [vmem:[#allocation51_spill] sm:$0xff] }
 0xbf6   : > { %24927 = vmatprep.mubr.msk.f32.mxu0 %vm264_vm12, %v35542_v19  ;;  %vm35550_vm1 = vnez %v35549_v41  ;;  %v35557_v41 = vld [vmem:[#allocation28_spill] sm:$0xff] }
 0xbf7   : > { %v18166_v19 = vsel %vm35550_vm1, %v32432_v52, 0.0 }
 0xbf9   : > { %24928 = vmatmul.mubr.msk.f32.gmra.mrb[74].mxu0 %vm264_vm12, %v18162_v27  ;;  %v35552_v27 = vld [vmem:[#allocation54_spill] sm:$0xff] }
 0xbfa   : > { %24930 = vmatprep.mubr.msk.f32.mxu0 %vm264_vm12, %v35545_v59  ;;  %vm35553_vm13 = vnez %v35552_v27  ;;  %v35559_v27 = vld [vmem:[#allocation25_spill] sm:$0xff] }
 0xbfb   : > { %v18168_v59 = vsel %vm35553_vm13, %v32442_v61, 0.0 }
 0xbfd   : > { %24931 = vmatmul.mubr.msk.f32.gmra.mrb[76].mxu0 %vm264_vm12, %v18164_v42  ;;  %v35555_v42 = vld [vmem:[#allocation55_spill] sm:$0xff] }
 0xbfe   : > { %24933 = vmatprep.mubr.msk.f32.mxu0 %vm264_vm12, %v35548_v39  ;;  %vm35556_vm10 = vnez %v35555_v42  ;;  %v35562_v42 = vld [vmem:[#allocation29_spill] sm:$0xff] }
 0xbff   : > { %v18170_v39 = vsel %vm35556_vm10, %v32452_v34, 0.0 }
 0xc01   : > { %24934 = vmatmul.mubr.msk.f32.gmra.mrb[78].mxu0 %vm264_vm12, %v18166_v19  ;;  %v35558_v19 = vld [vmem:[#allocation57_spill] sm:$0xff] }
 0xc02   : > { %24936 = vmatprep.mubr.msk.f32.mxu0 %vm264_vm12, %v35551_v18  ;;  %v18172_v18 = vsel %vm35475_vm3, %v32462_v22, 0.0  ;;  %vm35564_vm3 = vnez %v35315_v16  ;;  %v18537_v16 = vld [vmem:[#allocation3 + $0x27] sm:$0xff] }
 0xc05   : > { %24937 = vmatmul.mubr.msk.f32.gmra.mrb[80].mxu0 %vm264_vm12, %v18168_v59  ;;  %v35560_v59 = vld [vmem:[#allocation60_spill] sm:$0xff] }
 0xc06   : > { %24939 = vmatprep.mubr.msk.f32.mxu0 %vm264_vm12, %v35554_v36  ;;  %vm35561_vm13 = vnez %v35560_v59 }
 0xc07   : > { %v18174_v36 = vsel %vm35561_vm13, %v32472_v53, 0.0 }
 0xc09   : > { %24940 = vmatmul.mubr.msk.f32.gmra.mrb[82].mxu0 %vm264_vm12, %v18170_v39  ;;  %v32778_v39 = vld [vmem:[#allocation3 + $0x109] sm:$0xff] }
 0xc0a   : > { %24942 = vmatprep.mubr.msk.f32.mxu0 %vm264_vm12, %v35557_v41  ;;  %v18176_v41 = vsel %vm35312_vm15, %v32482_v44, 0.0  ;;  %35567 = vst [vmem:[#allocation81_spill] sm:$0xff] %v32778_v39 }
 0xc0d   : > { %24943 = vmatmul.mubr.msk.f32.gmra.mrb[84].mxu0 %vm264_vm12, %v18172_v18  ;;  %v18178_v18 = vsel %vm35564_vm3, %v32492_v30, 0.0  ;;  %vm35569_vm3 = vnez %v35321_v46  ;;  %v18540_v46 = vld [vmem:[#allocation3 + $0x3f] sm:$0xff]  ;;  %v18542_v30 = vld [vmem:[#allocation3 + $0x4f] sm:$0xff] }
 0xc0e   : > { %24945 = vmatprep.mubr.msk.f32.mxu0 %vm264_vm12, %v35559_v27 }
 0xc11   : > { %24946 = vmatmul.mubr.msk.f32.gmra.mrb[86].mxu0 %vm264_vm12, %v18174_v36  ;;  %v35565_v36 = vld [vmem:[#allocation67_spill] sm:$0xff] }
 0xc12   : > { %24948 = vmatprep.mubr.msk.f32.mxu0 %vm264_vm12, %v35562_v42  ;;  %vm35566_vm13 = vnez %v35565_v36  ;;  %v18569_v36 = vsel %vm35569_vm3, %v18537_v16, 0.0  ;;  %vm35571_vm3 = vnez %v34425_v13  ;;  %v18547_v13 = vld [vmem:[#allocation3 + $0x77] sm:$0xff] }
 0xc13   : > { %v18180_v59 = vsel %vm35566_vm13, %v32502_v14, 0.0  ;;  %v18538_v14 = vld [vmem:[#allocation3 + $0x2f] sm:$0xff]  ;;  %vm35570_vm13 = vnez %v34175_v33 }
 0xc15   : > { %24949 = vmatmul.mubr.msk.f32.gmra.mrb[88].mxu0 %vm264_vm12, %v18176_v41  ;;  %v32780_v41 = vld [vmem:[#allocation3 + $0x111] sm:$0xff] }
 0xc16   : > { %24951 = vmatprep.mubr.msk.f32.mxu0 %vm264_vm12, %v32490_v3 }
 0xc19   : > { %24952 = vmatmul.mubr.msk.f32.gmra.mrb[90].mxu0 %vm264_vm12, %v18178_v18  ;;  %v18182_v18 = vsel %vm35245_vm9, %v32780_v41, 0.0  ;;  %vm35572_vm9 = vnez %v34428_v38  ;;  %v18581_v38 = vsel %vm35489_vm5, %v32037_v32, 0.0  ;;  %vm35573_vm5 = vnez %v35493_v40  ;;  %v35593_v40 = vld [vmem:[#allocation92_spill] sm:$0xff] }
 0xc1a   : > { %24954 = vmatprep.mubr.msk.f32.mxu0 %vm264_vm12, %v32500_v12  ;;  %v21338_v12 = vld [vmem:[%s33208_s3 + $0x118] sm:$0xff]  ;;  %v18589_v62 = vsel %vm35573_vm5, %v32149_v51, 0.0  ;;  %v35582_v51 = vld [vmem:[#allocation77_spill] sm:$0xff] }
 0xc1d   : > { %24955 = vmatmul.mubr.msk.f32.gmra.mrb[92].mxu0 %vm264_vm12, %v18180_v59  ;;  %v18539_v59 = vld [vmem:[#allocation3 + $0x37] sm:$0xff] }
 0xc1e   : > { %24957 = vmatprep.mubr.msk.f32.mxu0 %vm264_vm12, %v32778_v39  ;;  %v18571_v39 = vsel %vm35570_vm13, %v18539_v59, 0.0  ;;  %v18546_v59 = vld [vmem:[#allocation3 + $0x6f] sm:$0xff] }
 0xc21   : > { %24958 = vmatmul.mubr.msk.f32.gmra.mrb[94].mxu0 %vm264_vm12, %v18182_v18  ;;  %v18541_v18 = vld [vmem:[#allocation3 + $0x47] sm:$0xff] }
 0xc22   : > { %24962 = vmatprep.mubr.msk.f32.mxu0 %vm264_vm12, %v18569_v36  ;;  %v18573_v16 = vsel %vm35571_vm3, %v18541_v18, 0.0  ;;  %v18543_v36 = vld [vmem:[#allocation3 + $0x57] sm:$0xff] }
 0xc23   : > { %v18575_v33 = vsel %vm35572_vm9, %v18543_v36, 0.0  ;;  %vm35576_vm9 = vnez %v34347_v4  ;;  %v35579_v4 = vld [vmem:[#allocation74_spill] sm:$0xff]  ;;  %v35600_v18 = vld [vmem:[#allocation96_spill] sm:$0xff]  ;;  %v35604_v36 = vld [vmem:[#allocation79_spill] sm:$0xff] }
 0xc24   : > { %v18597_v32 = vsel %vm35576_vm9, %v32602_v17, 0.0  ;;  %v35597_v17 = vld [vmem:[#allocation93_spill] sm:$0xff] }
 0xc25   : > { %24963 = vmatmul.mubr.msk.f32.vlgmr.msra.gmra.mrb[64].mxu0 %vm264_vm12, %v18538_v14  ;;  %v18545_v14 = vld [vmem:[#allocation3 + $0x67] sm:$0xff] }
 0xc26   : > { %25011 = vmatpush3.msra.mxu0 %v21305_v58  ;;  %24965 = vmatprep.mubr.msk.f32.mxu0 %vm264_vm12, %v18571_v39  ;;  %v18544_v58 = vld [vmem:[#allocation3 + $0x5f] sm:$0xff]  ;;  %v18577_v39 = vsel %vm35487_vm11, %v18545_v14, 0.0  ;;  %v35605_v14 = vld [vmem:[#allocation100_spill] sm:$0xff] }
 0xc27   : > { %25060 = vmatprep.subr.mxu0 %v21338_v12 }
 0xc29   : > { %24966 = vmatmul.mubr.msk.f32.gmra.mrb[66].mxu0 %vm264_vm12, %v18540_v46  ;;  %v35601_v46 = vld [vmem:[#allocation97_spill] sm:$0xff] }
 0xc2a   : > { %24968 = vmatprep.mubr.msk.f32.mxu0 %vm264_vm12, %v18573_v16  ;;  %v35603_v16 = vld [vmem:[#allocation46_spill] sm:$0xff] }
 0xc2d   : > { %24969 = vmatmul.mubr.msk.f32.gmra.mrb[68].mxu0 %vm264_vm12, %v18542_v30  ;;  %v18579_v30 = vsel %vm35488_vm6, %v18547_v13, 0.0  ;;  %vm35574_vm6 = vnez %v35495_v7  ;;  %v35595_v7 = vld [vmem:[#allocation33_spill] sm:$0xff]  ;;  %v35607_v13 = vld [vmem:[#allocation103_spill] sm:$0xff] }
 0xc2e   : > { %24971 = vmatprep.mubr.msk.f32.mxu0 %vm264_vm12, %v18575_v33  ;;  %v18591_v48 = vsel %vm35574_vm6, %v32177_v1, 0.0  ;;  %v35583_v1 = vld [vmem:[#allocation78_spill] sm:$0xff] }
 0xc2f   : > { %v18986_v33 = vld [vmem:[#allocation3 + $0x120] sm:$0xff] }
 0xc31   : > { %24972 = vmatmul.mubr.msk.f32.gmra.mrb[70].mxu0 %vm264_vm12, %v18544_v58 }
 0xc32   : > { %24974 = vmatprep.mubr.msk.f32.mxu0 %vm264_vm12, %v18577_v39  ;;  %v19374_v39 = vsel %vm35532_vm0, %v32372_v31, 0.0  ;;  %v35612_v31 = vld [vmem:[#allocation105_spill] sm:$0xff] }
 0xc35   : > { %24975 = vmatmul.mubr.msk.f32.gmra.mrb[72].mxu0 %vm264_vm12, %v18546_v59 }
 0xc36   : > { %24977 = vmatprep.mubr.msk.f32.mxu0 %vm264_vm12, %v18579_v30  ;;  %v19376_v30 = vsel %vm35535_vm4, %v32382_v28, 0.0  ;;  %v35615_v28 = vld [vmem:[#allocation44_spill] sm:$0xff] }
 0xc39   : > { %24978 = vmatmul.mubr.msk.f32.gmra.mrb[74].mxu0 %vm264_vm12, %v32024_v26  ;;  %v18593_v26 = vsel %vm35575_vm8, %v32197_v55, 0.0  ;;  %v35587_v55 = vld [vmem:[#allocation89_spill] sm:$0xff] }
 0xc3a   : > { %24980 = vmatprep.mubr.msk.f32.mxu0 %vm264_vm12, %v18581_v38  ;;  %v35609_v38 = vld [vmem:[#allocation104_spill] sm:$0xff] }
 0xc3d   : > { %24981 = vmatmul.mubr.msk.f32.gmra.mrb[76].mxu0 %vm264_vm12, %v32052_v45  ;;  %v18595_v45 = vsel %vm35497_vm7, %v32210_v35, 0.0  ;;  %v35589_v35 = vld [vmem:[#allocation34_spill] sm:$0xff] }
 0xc3e   : > { %24983 = vmatprep.mubr.msk.f32.mxu0 %vm264_vm12, %v18583_v24  ;;  %v35610_v24 = vld [vmem:[#allocation24_spill] sm:$0xff] }
 0xc3f   : > { %vm35611_vm7 = vnez %v35610_v24  ;;  %v35653_v24 = vld [vmem:[#allocation102_spill] sm:$0xff] }
 0xc41   : > { %24984 = vmatmul.mubr.msk.f32.gmra.mrb[78].mxu0 %vm264_vm12, %v35490_v29  ;;  %v35590_v29 = vld [vmem:[#allocation5_spill] sm:$0xff] }
 0xc42   : > { %24986 = vmatprep.mubr.msk.f32.mxu0 %vm264_vm12, %v18585_v43  ;;  %v19378_v43 = vsel %vm35611_vm7, %v32392_v8, 0.0  ;;  %v35618_v8 = vld [vmem:[#allocation4_spill] sm:$0xff] }
 0xc45   : > { %24987 = vmatmul.mubr.msk.f32.gmra.mrb[80].mxu0 %vm264_vm12, %v35492_v50  ;;  %v35592_v50 = vld [vmem:[#allocation91_spill] sm:$0xff] }
 0xc46   : > { %24989 = vmatprep.mubr.msk.f32.mxu0 %vm264_vm12, %v18587_v37  ;;  %v35613_v37 = vld [vmem:[#allocation30_spill] sm:$0xff] }
 0xc47   : > { %vm35614_vm0 = vnez %v35613_v37 }
 0xc49   : > { %24990 = vmatmul.mubr.msk.f32.gmra.mrb[82].mxu0 %vm264_vm12, %v35494_v11  ;;  %v35594_v11 = vld [vmem:[#allocation23_spill] sm:$0xff] }
 0xc4a   : > { %24992 = vmatprep.mubr.msk.f32.mxu0 %vm264_vm12, %v18589_v62  ;;  %v19380_v62 = vsel %vm35614_vm0, %v32402_v25, 0.0  ;;  %v35621_v25 = vld [vmem:[#allocation22_spill] sm:$0xff] }
 0xc4d   : > { %24993 = vmatmul.mubr.msk.f32.gmra.mrb[84].mxu0 %vm264_vm12, %v32164_v56  ;;  %v35578_v56 = vld [vmem:[#allocation73_spill] sm:$0xff] }
 0xc4e   : > { %24995 = vmatprep.mubr.msk.f32.mxu0 %vm264_vm12, %v18591_v48  ;;  %v35616_v48 = vld [vmem:[#allocation36_spill] sm:$0xff] }
 0xc4f   : > { %vm35617_vm4 = vnez %v35616_v48 }
 0xc51   : > { %24996 = vmatmul.mubr.msk.f32.gmra.mrb[86].mxu0 %vm264_vm12, %v32189_v60  ;;  %v35584_v60 = vld [vmem:[#allocation80_spill] sm:$0xff] }
 0xc52   : > { %24998 = vmatprep.mubr.msk.f32.mxu0 %vm264_vm12, %v18593_v26  ;;  %v19382_v26 = vsel %vm35617_vm4, %v32412_v20, 0.0  ;;  %v35624_v20 = vld [vmem:[#allocation19_spill] sm:$0xff] }
 0xc55   : > { %24999 = vmatmul.mubr.msk.f32.gmra.mrb[88].mxu0 %vm264_vm12, %v32206_v57  ;;  %v35588_v57 = vld [vmem:[#allocation66_spill] sm:$0xff] }
 0xc56   : > { %25001 = vmatprep.mubr.msk.f32.mxu0 %vm264_vm12, %v18595_v45  ;;  %v35619_v45 = vld [vmem:[#allocation42_spill] sm:$0xff] }
 0xc57   : > { %vm35620_vm13 = vnez %v35619_v45 }
 0xc59   : > { %25002 = vmatmul.mubr.msk.f32.gmra.mrb[90].mxu0 %vm264_vm12, %v32216_v2  ;;  %v35585_v2 = vld [vmem:[#allocation82_spill] sm:$0xff] }
 0xc5a   : > { %25004 = vmatprep.mubr.msk.f32.mxu0 %vm264_vm12, %v18597_v32  ;;  %v19384_v32 = vsel %vm35620_vm13, %v32422_v10, 0.0  ;;  %v35626_v10 = vld [vmem:[#allocation18_spill] sm:$0xff] }
 0xc5d   : > { %25005 = vmatmul.mubr.msk.f32.gmra.mrb[92].mxu0 %vm264_vm12, %v32610_v9  ;;  %v35598_v9 = vld [vmem:[#allocation94_spill] sm:$0xff] }
 0xc5e   : > { %25007 = vmatprep.mubr.msk.f32.mxu0 %vm264_vm12, %v18599_v6  ;;  %v19386_v6 = vsel %vm35623_vm2, %v32432_v52, 0.0  ;;  %v35629_v52 = vld [vmem:[#allocation28_spill] sm:$0xff] }
 0xc61   : > { %25008 = vmatmul.mubr.msk.f32.gmra.mrb[94].mxu0 %vm264_vm12, %v18568_v47 }
 0xc62   : > { %25012 = vmatprep.mubr.msk.f32.mxu0 %vm264_vm12, %v35501_v54  ;;  %v35599_v54 = vld [vmem:[#allocation95_spill] sm:$0xff] }
 0xc65   : > { %25013 = vmatmul.mubr.msk.f32.vlgmr.msra.gmra.mrb[64].mxu0 %vm264_vm12, %v35578_v56  ;;  %v19388_v56 = vsel %vm35550_vm1, %v32442_v61, 0.0  ;;  %vm35631_vm1 = vnez %v35558_v19  ;;  %v35637_v19 = vld [vmem:[#allocation38_spill] sm:$0xff] }
 0xc66   : > { %25061 = vmatpush3.msra.mxu0 %v21338_v12  ;;  %25015 = vmatprep.mubr.msk.f32.mxu0 %vm264_vm12, %v35579_v4  ;;  %v35586_v12 = vld [vmem:[#allocation88_spill] sm:$0xff]  ;;  %v35627_v4 = vld [vmem:[#allocation54_spill] sm:$0xff]  ;;  %v19394_v61 = vsel %vm35631_vm1, %v32472_v53, 0.0  ;;  %v35636_v53 = vld [vmem:[#allocation41_spill] sm:$0xff] }
 0xc67   : > { %vm35628_vm11 = vnez %v35627_v4 }
 0xc69   : > { %25016 = vmatmul.mubr.msk.f32.gmra.mrb[66].mxu0 %vm264_vm12, %v35580_v21  ;;  %v19390_v21 = vsel %vm35628_vm11, %v32452_v34, 0.0  ;;  %v35632_v34 = vld [vmem:[#allocation60_spill] sm:$0xff] }
 0xc6a   : > { %25018 = vmatprep.mubr.msk.f32.mxu0 %vm264_vm12, %v35581_v5  ;;  %vm35633_vm3 = vnez %v35632_v34  ;;  %v35661_v34 = vld [vmem:[#allocation53_spill] sm:$0xff] }
 0xc6d   : > { %25019 = vmatmul.mubr.msk.f32.gmra.mrb[68].mxu0 %vm264_vm12, %v35582_v51  ;;  %v19392_v51 = vsel %vm35556_vm10, %v32462_v22, 0.0  ;;  %v35634_v22 = vld [vmem:[#allocation31_spill] sm:$0xff] }
 0xc6e   : > { %25021 = vmatprep.mubr.msk.f32.mxu0 %vm264_vm12, %v35583_v1  ;;  %v19396_v1 = vsel %vm35633_vm3, %v32482_v44, 0.0  ;;  %v35640_v44 = vld [vmem:[#allocation81_spill] sm:$0xff] }
 0xc71   : > { %25022 = vmatmul.mubr.msk.f32.gmra.mrb[70].mxu0 %vm264_vm12, %v35584_v60  ;;  %v19398_v60 = vsel %vm35312_vm15, %v35634_v22, 0.0 }
 0xc72   : > { %25024 = vmatprep.mubr.msk.f32.mxu0 %vm264_vm12, %v35585_v2 }
 0xc75   : > { %25025 = vmatmul.mubr.msk.f32.gmra.mrb[72].mxu0 %vm264_vm12, %v35586_v12  ;;  %v19372_v12 = vld [vmem:[#allocation3 + $0x121] sm:$0xff] }
 0xc76   : > { %25027 = vmatprep.mubr.msk.f32.mxu0 %vm264_vm12, %v35587_v55  ;;  %v35641_v55 = vld [vmem:[#allocation67_spill] sm:$0xff] }
 0xc77   : > { %vm35642_vm15 = vnez %v35641_v55  ;;  %v35665_v55 = vld [vmem:[#allocation58_spill] sm:$0xff] }
 0xc79   : > { %25028 = vmatmul.mubr.msk.f32.gmra.mrb[74].mxu0 %vm264_vm12, %v35588_v57  ;;  %v19402_v57 = vsel %vm35642_vm15, %v32780_v41, 0.0  ;;  %v35647_v41 = vld [vmem:[#allocation49_spill] sm:$0xff] }
 0xc7a   : > { %25030 = vmatprep.mubr.msk.f32.mxu0 %vm264_vm12, %v35589_v35  ;;  %v35643_v35 = vld [vmem:[#allocation70_spill] sm:$0xff] }
 0xc7b   : > { %vm35644_vm5 = vnez %v35643_v35 }
 0xc7d   : > { %25031 = vmatmul.mubr.msk.f32.gmra.mrb[76].mxu0 %vm264_vm12, %v35590_v29  ;;  %v19404_v29 = vsel %vm35644_vm5, %v19372_v12, 0.0 }
 0xc7e   : > { %25033 = vmatprep.mubr.msk.f32.mxu0 %vm264_vm12, %v35591_v23  ;;  %v33033_v23 = vld [vmem:[%s33209_s4 + $0x3] ss:$0 sm:$0xff] }
 0xc81   : > { %25034 = vmatmul.mubr.msk.f32.gmra.mrb[78].mxu0 %vm264_vm12, %v35592_v50  ;;  %v35645_v50 = vld [vmem:[#allocation35_spill] sm:$0xff] }
 0xc82   : > { %25036 = vmatprep.mubr.msk.f32.mxu0 %vm264_vm12, %v35593_v40  ;;  %v35646_v40 = vmax.f32 %v35645_v50, 0.0 }
 0xc85   : > { %25037 = vmatmul.mubr.msk.f32.gmra.mrb[80].mxu0 %vm264_vm12, %v35594_v11  ;;  %v16061_v11 = vadd.f32 %v33033_v23, %v35646_v40  ;;  %v35667_v40 = vld [vmem:[#allocation59_spill] sm:$0xff] }
 0xc86   : > { %25039 = vmatprep.mubr.msk.f32.mxu0 %vm264_vm12, %v35595_v7 }
 0xc89   : > { %25040 = vmatmul.mubr.msk.f32.gmra.mrb[82].mxu0 %vm264_vm12, %v35520_v0  ;;  %v35602_v0 = vld [vmem:[#allocation98_spill] sm:$0xff] }
 0xc8a   : > { %25042 = vmatprep.mubr.msk.f32.mxu0 %vm264_vm12, %v35596_v63  ;;  %v35648_v63 = vmax.f32 %v35647_v41, 0.0 }
 0xc8d   : > { %25043 = vmatmul.mubr.msk.f32.gmra.mrb[84].mxu0 %vm264_vm12, %v35522_v15  ;;  %v18985_v15 = vld [vmem:[#allocation3 + $0x118] sm:$0xff] }
 0xc8e   : > { %25045 = vmatprep.mubr.msk.f32.mxu0 %vm264_vm12, %v35597_v17  ;;  %v16060_v17 = vadd.f32 %v33033_v23, %v35648_v63 }
 0xc91   : > { %25046 = vmatmul.mubr.msk.f32.gmra.mrb[86].mxu0 %vm264_vm12, %v35598_v9 }
 0xc92   : > { %25048 = vmatprep.mubr.msk.f32.mxu0 %vm264_vm12, %v35599_v54 }
 0xc95   : > { %25049 = vmatmul.mubr.msk.f32.gmra.mrb[88].mxu0 %vm264_vm12, %v35600_v18 }
 0xc96   : > { %25051 = vmatprep.mubr.msk.f32.mxu0 %vm264_vm12, %v35601_v46 }
 0xc99   : > { %25052 = vmatmul.mubr.msk.f32.gmra.mrb[90].mxu0 %vm264_vm12, %v35602_v0  ;;  %v35649_v0 = vld [vmem:[#allocation52_spill] sm:$0xff] }
 0xc9a   : > { %25054 = vmatprep.mubr.msk.f32.mxu0 %vm264_vm12, %v35603_v16  ;;  %v35650_v16 = vmax.f32 %v35649_v0, 0.0 }
 0xc9d   : > { %25055 = vmatmul.mubr.msk.f32.gmra.mrb[92].mxu0 %vm264_vm12, %v35604_v36 }
 0xc9e   : > { %25057 = vmatprep.mubr.msk.f32.mxu0 %vm264_vm12, %v18985_v15  ;;  %v16063_v15 = vadd.f32 %v33033_v23, %v35650_v16 }
 0xca1   : > { %25058 = vmatmul.mubr.msk.f32.gmra.mrb[94].mxu0 %vm264_vm12, %v18986_v33 }
 0xca2   : > { %25062 = vmatprep.mubr.msk.f32.mxu0 %vm264_vm12, %v35605_v14  ;;  %v35651_v14 = vld [vmem:[#allocation90_spill] sm:$0xff] }
 0xca3   : > { %v35652_v58 = vmax.f32 %v35651_v14, 0.0 }
 0xca5   : > { %25063 = vmatmul.mubr.msk.f32.vlgmr.msra.gmra.mrb[64].mxu0 %vm264_vm12, %v19374_v39  ;;  %v16062_v39 = vadd.f32 %v33033_v23, %v35652_v58 }
 0xca6   : > { %25065 = vmatprep.mubr.msk.f32.mxu0 %vm264_vm12, %v35607_v13 }
 0xca9   : > { %25066 = vmatmul.mubr.msk.f32.gmra.mrb[66].mxu0 %vm264_vm12, %v19376_v30 }
 0xcaa   : > { %25068 = vmatprep.mubr.msk.f32.mxu0 %vm264_vm12, %v35609_v38 }
 0xcad   : > { %25069 = vmatmul.mubr.msk.f32.gmra.mrb[68].mxu0 %vm264_vm12, %v19378_v43  ;;  %v35654_v43 = vmax.f32 %v35653_v24, 0.0 }
 0xcae   : > { %25071 = vmatprep.mubr.msk.f32.mxu0 %vm264_vm12, %v35612_v31 }
 0xcaf   : > { %v16065_v31 = vadd.f32 %v33033_v23, %v35654_v43 }
 0xcb1   : > { %25072 = vmatmul.mubr.msk.f32.gmra.mrb[70].mxu0 %vm264_vm12, %v19380_v62 }
 0xcb2   : > { %25074 = vmatprep.mubr.msk.f32.mxu0 %vm264_vm12, %v35615_v28  ;;  %v35655_v28 = vld [vmem:[#allocation11_spill] sm:$0xff] }
 0xcb3   : > { %v35656_v48 = vmax.f32 %v35655_v28, 0.0 }
 0xcb5   : > { %25075 = vmatmul.mubr.msk.f32.gmra.mrb[72].mxu0 %vm264_vm12, %v19382_v26  ;;  %v16064_v26 = vadd.f32 %v33033_v23, %v35656_v48 }
 0xcb6   : > { %25077 = vmatprep.mubr.msk.f32.mxu0 %vm264_vm12, %v35618_v8 }
 0xcb9   : > { %25078 = vmatmul.mubr.msk.f32.gmra.mrb[74].mxu0 %vm264_vm12, %v19384_v32 }
 0xcba   : > { %25080 = vmatprep.mubr.msk.f32.mxu0 %vm264_vm12, %v35621_v25 }
 0xcbd   : > { %25081 = vmatmul.mubr.msk.f32.gmra.mrb[76].mxu0 %vm264_vm12, %v19386_v6  ;;  %v35658_v6 = vmax.f32 %v35657_v49, 0.0 }
 0xcbe   : > { %25083 = vmatprep.mubr.msk.f32.mxu0 %vm264_vm12, %v35624_v20 }
 0xcbf   : > { %v16067_v20 = vadd.f32 %v33033_v23, %v35658_v6 }
 0xcc1   : > { %25084 = vmatmul.mubr.msk.f32.gmra.mrb[78].mxu0 %vm264_vm12, %v19388_v56 }
 0xcc2   : > { %25086 = vmatprep.mubr.msk.f32.mxu0 %vm264_vm12, %v35626_v10  ;;  %v35659_v10 = vld [vmem:[#allocation86_spill] sm:$0xff] }
 0xcc3   : > { %v35660_v4 = vmax.f32 %v35659_v10, 0.0 }
 0xcc5   : > { %25087 = vmatmul.mubr.msk.f32.gmra.mrb[80].mxu0 %vm264_vm12, %v19390_v21  ;;  %v16066_v21 = vadd.f32 %v33033_v23, %v35660_v4 }
 0xcc6   : > { %25089 = vmatprep.mubr.msk.f32.mxu0 %vm264_vm12, %v35629_v52 }
 0xcc9   : > { %25090 = vmatmul.mubr.msk.f32.gmra.mrb[82].mxu0 %vm264_vm12, %v19392_v51 }
 0xcca   : > { %25092 = vmatprep.mubr.msk.f32.mxu0 %vm264_vm12, %v35559_v27 }
 0xccd   : > { %25093 = vmatmul.mubr.msk.f32.gmra.mrb[84].mxu0 %vm264_vm12, %v19394_v61 }
 0xcce   : > { %25095 = vmatprep.mubr.msk.f32.mxu0 %vm264_vm12, %v35562_v42  ;;  %v35638_v42 = vld [vmem:[#allocation65_spill] sm:$0xff] }
 0xccf   : > { %vm35639_vm10 = vnez %v35638_v42 }
 0xcd0   : > { %v19400_v2 = vsel %vm35639_vm10, %v35637_v19, 0.0 }
 0xcd1   : > { %25096 = vmatmul.mubr.msk.f32.gmra.mrb[86].mxu0 %vm264_vm12, %v19396_v1  ;;  %v35662_v1 = vmax.f32 %v35661_v34, 0.0 }
 0xcd2   : > { %25098 = vmatprep.mubr.msk.f32.mxu0 %vm264_vm12, %v32490_v3  ;;  %v19371_v3 = vld [vmem:[#allocation3 + $0x119] sm:$0xff] }
 0xcd3   : > { %v16069_v22 = vadd.f32 %v33033_v23, %v35662_v1 }
 0xcd5   : > { %25099 = vmatmul.mubr.msk.f32.gmra.mrb[88].mxu0 %vm264_vm12, %v19398_v60 }
 0xcd6   : > { %25101 = vmatprep.mubr.msk.f32.mxu0 %vm264_vm12, %v35636_v53  ;;  %v35663_v53 = vld [vmem:[#allocation56_spill] sm:$0xff] }
 0xcd7   : > { %v35664_v19 = vmax.f32 %v35663_v53, 0.0 }
 0xcd9   : > { %25102 = vmatmul.mubr.msk.f32.gmra.mrb[90].mxu0 %vm264_vm12, %v19400_v2  ;;  %v16068_v42 = vadd.f32 %v33033_v23, %v35664_v19 }
 0xcda   : > { %25104 = vmatprep.mubr.msk.f32.mxu0 %vm264_vm12, %v35640_v44 }
 0xcdd   : > { %25105 = vmatmul.mubr.msk.f32.gmra.mrb[92].mxu0 %vm264_vm12, %v19402_v57  ;;  %v35666_v57 = vmax.f32 %v35665_v55, 0.0 }
 0xcde   : > { %25107 = vmatprep.mubr.msk.f32.mxu0 %vm264_vm12, %v19371_v3 }
 0xcdf   : > { %v16071_v35 = vadd.f32 %v33033_v23, %v35666_v57 }
 0xce1   : > { %25108 = vmatmul.mubr.msk.f32.gmra.mrb[94].mxu0 %vm264_vm12, %v19404_v29 }
 0xd78   : > { %v25064_v7 = vpop.f32.mrb[64].mxu0 }
 0xd79   : > { %v25272_v9 = vadd.f32 %v25064_v7, %v16061_v11  ;;  %v19568_v54 = vpop.f32.mrb[65].mxu0  ;;  %v35668_v11 = vmax.f32 %v35667_v40, 0.0 }
 0xd7a   : > { %v25273_v18 = vadd.f32 %v19568_v54, %v16060_v17  ;;  %v35669_v54 = vld [vmem:[#allocation61_spill] sm:$0xff] }
 0xd7b   : > { %v19760_v46 = vmax.f32 %v25272_v9, 0.0  ;;  %v16070_v7 = vadd.f32 %v33033_v23, %v35668_v11 }
 0xd7c   : > { %v19759_v36 = vmax.f32 %v25273_v18, 0.0  ;;  %v25067_v33 = vpop.f32.mrb[66].mxu0  ;;  %v35670_v18 = vmax.f32 %v35669_v54, 0.0 }
 0xd7d   : > { %19792 = vst.msk [vmem:[%s33046_s16 + $0x8] sm:$0xff] %vm264_vm12, %v19760_v46  ;;  %v25274_v13 = vadd.f32 %v25067_v33, %v16063_v15  ;;  %v19578_v59 = vpop.f32.mrb[67].mxu0  ;;  %v35671_v15 = vld [vmem:[#allocation63_spill] sm:$0xff] }
 0xd7e   : > { %19791 = vst.msk [vmem:[%s33046_s16] sm:$0xff] %vm264_vm12, %v19759_v36  ;;  %v25275_v30 = vadd.f32 %v19578_v59, %v16062_v39  ;;  %v16073_v46 = vadd.f32 %v33033_v23, %v35670_v18  ;;  %v35672_v36 = vmax.f32 %v35671_v15, 0.0  ;;  %v35673_v59 = vld [vmem:[#allocation64_spill] sm:$0xff] }
 0xd7f   : > { %v19762_v38 = vmax.f32 %v25274_v13, 0.0 }
 0xd80   : > { %v19761_v37 = vmax.f32 %v25275_v30, 0.0  ;;  %v25070_v62 = vpop.f32.mrb[68].mxu0  ;;  %v16072_v33 = vadd.f32 %v33033_v23, %v35672_v36  ;;  %v35674_v30 = vmax.f32 %v35673_v59, 0.0 }
 0xd81   : > { %19794 = vst.msk [vmem:[%s33046_s16 + $0x18] sm:$0xff] %vm264_vm12, %v19762_v38  ;;  %v25276_v8 = vadd.f32 %v25070_v62, %v16065_v31  ;;  %v19588_v45 = vpop.f32.mrb[69].mxu0  ;;  %v35675_v31 = vld [vmem:[#allocation68_spill] sm:$0xff] }
 0xd82   : > { %19793 = vst.msk [vmem:[%s33046_s16 + $0x10] sm:$0xff] %vm264_vm12, %v19761_v37  ;;  %v25277_v32 = vadd.f32 %v19588_v45, %v16064_v26  ;;  %v16075_v38 = vadd.f32 %v33033_v23, %v35674_v30  ;;  %v35676_v37 = vmax.f32 %v35675_v31, 0.0  ;;  %v35677_v45 = vld [vmem:[#allocation40_spill] sm:$0xff] }
 0xd83   : > { %v19764_v25 = vmax.f32 %v25276_v8, 0.0 }
 0xd84   : > { %v19763_v47 = vmax.f32 %v25277_v32, 0.0  ;;  %v25073_v56 = vpop.f32.mrb[70].mxu0  ;;  %v16074_v62 = vadd.f32 %v33033_v23, %v35676_v37  ;;  %v35678_v32 = vmax.f32 %v35677_v45, 0.0 }
 0xd85   : > { %19796 = vst.msk [vmem:[%s33046_s16 + $0x28] sm:$0xff] %vm264_vm12, %v19764_v25  ;;  %v25278_v52 = vadd.f32 %v25073_v56, %v16067_v20  ;;  %v19598_v5 = vpop.f32.mrb[71].mxu0  ;;  %v35679_v20 = vld [vmem:[#allocation43_spill] sm:$0xff] }
 0xd86   : > { %19795 = vst.msk [vmem:[%s33046_s16 + $0x20] sm:$0xff] %vm264_vm12, %v19763_v47  ;;  %v25279_v51 = vadd.f32 %v19598_v5, %v16066_v21  ;;  %v16077_v25 = vadd.f32 %v33033_v23, %v35678_v32  ;;  %v35680_v47 = vmax.f32 %v35679_v20, 0.0  ;;  %v35681_v5 = vld [vmem:[#allocation45_spill] sm:$0xff] }
 0xd87   : > { %v19766_v61 = vmax.f32 %v25278_v52, 0.0 }
 0xd88   : > { %v19765_v27 = vmax.f32 %v25279_v51, 0.0  ;;  %v25076_v60 = vpop.f32.mrb[72].mxu0  ;;  %v16076_v56 = vadd.f32 %v33033_v23, %v35680_v47  ;;  %v35682_v51 = vmax.f32 %v35681_v5, 0.0 }
 0xd89   : > { %19798 = vst.msk [vmem:[%s33046_s16 + $0x38] sm:$0xff] %vm264_vm12, %v19766_v61  ;;  %v25280_v2 = vadd.f32 %v25076_v60, %v16069_v22  ;;  %v19608_v44 = vpop.f32.mrb[73].mxu0  ;;  %v35683_v22 = vld [vmem:[#allocation84_spill] sm:$0xff] }
 0xd8a   : > { %19797 = vst.msk [vmem:[%s33046_s16 + $0x30] sm:$0xff] %vm264_vm12, %v19765_v27  ;;  %v25281_v3 = vadd.f32 %v19608_v44, %v16068_v42  ;;  %v16079_v61 = vadd.f32 %v33033_v23, %v35682_v51  ;;  %v35684_v27 = vmax.f32 %v35683_v22, 0.0  ;;  %v35685_v44 = vld [vmem:[#allocation15_spill] sm:$0xff] }
 0xd8b   : > { %v19768_v12 = vmax.f32 %v25280_v2, 0.0 }
 0xd8c   : > { %v19767_v29 = vmax.f32 %v25281_v3, 0.0  ;;  %v25079_v50 = vpop.f32.mrb[74].mxu0  ;;  %v16078_v60 = vadd.f32 %v33033_v23, %v35684_v27  ;;  %v35686_v3 = vmax.f32 %v35685_v44, 0.0 }
 0xd8d   : > { %19800 = vst.msk [vmem:[%s33046_s16 + $0x48] sm:$0xff] %vm264_vm12, %v19768_v12  ;;  %v25282_v41 = vadd.f32 %v25079_v50, %v16071_v35  ;;  %v19618_v63 = vpop.f32.mrb[75].mxu0  ;;  %v35687_v35 = vld [vmem:[#allocation50_spill] sm:$0xff] }
 0xd8e   : > { %19799 = vst.msk [vmem:[%s33046_s16 + $0x40] sm:$0xff] %vm264_vm12, %v19767_v29  ;;  %v25283_v17 = vadd.f32 %v19618_v63, %v16070_v7  ;;  %v16081_v12 = vadd.f32 %v33033_v23, %v35686_v3  ;;  %v35688_v29 = vmax.f32 %v35687_v35, 0.0  ;;  %v35689_v63 = vld [vmem:[#allocation21_spill] sm:$0xff] }
 0xd8f   : > { %v19770_v9 = vmax.f32 %v25282_v41, 0.0 }
 0xd90   : > { %v19769_v0 = vmax.f32 %v25283_v17, 0.0  ;;  %v25082_v16 = vpop.f32.mrb[76].mxu0  ;;  %v16080_v50 = vadd.f32 %v33033_v23, %v35688_v29  ;;  %v35690_v17 = vmax.f32 %v35689_v63, 0.0 }
 0xd91   : > { %19802 = vst.msk [vmem:[%s33046_s16 + $0x58] sm:$0xff] %vm264_vm12, %v19770_v9  ;;  %v25284_v14 = vadd.f32 %v25082_v16, %v16073_v46  ;;  %v19628_v58 = vpop.f32.mrb[77].mxu0  ;;  %v35691_v46 = vld [vmem:[#allocation69_spill] sm:$0xff] }
 0xd92   : > { %19801 = vst.msk [vmem:[%s33046_s16 + $0x50] sm:$0xff] %vm264_vm12, %v19769_v0  ;;  %v25285_v39 = vadd.f32 %v19628_v58, %v16072_v33  ;;  %v16083_v9 = vadd.f32 %v33033_v23, %v35690_v17  ;;  %v35692_v0 = vmax.f32 %v35691_v46, 0.0  ;;  %v35693_v58 = vld [vmem:[#allocation83_spill] sm:$0xff] }
 0xd93   : > { %v19772_v13 = vmax.f32 %v25284_v14, 0.0 }
 0xd94   : > { %v19771_v24 = vmax.f32 %v25285_v39, 0.0  ;;  %v25085_v43 = vpop.f32.mrb[78].mxu0  ;;  %v16082_v16 = vadd.f32 %v33033_v23, %v35692_v0  ;;  %v35694_v39 = vmax.f32 %v35693_v58, 0.0 }
 0xd95   : > { %19804 = vst.msk [vmem:[%s33046_s16 + $0x68] sm:$0xff] %vm264_vm12, %v19772_v13  ;;  %v25286_v28 = vadd.f32 %v25085_v43, %v16075_v38  ;;  %v19638_v48 = vpop.f32.mrb[79].mxu0  ;;  %v35695_v38 = vld [vmem:[#allocation101_spill] sm:$0xff] }
 0xd96   : > { %19803 = vst.msk [vmem:[%s33046_s16 + $0x60] sm:$0xff] %vm264_vm12, %v19771_v24  ;;  %v25287_v26 = vadd.f32 %v19638_v48, %v16074_v62  ;;  %v16085_v13 = vadd.f32 %v33033_v23, %v35694_v39  ;;  %v35696_v24 = vmax.f32 %v35695_v38, 0.0  ;;  %v35697_v48 = vld [vmem:[#allocation6_spill] sm:$0xff] }
 0xd97   : > { %v19774_v8 = vmax.f32 %v25286_v28, 0.0 }
 0xd98   : > { %v19773_v49 = vmax.f32 %v25287_v26, 0.0  ;;  %v25088_v6 = vpop.f32.mrb[80].mxu0  ;;  %v16084_v43 = vadd.f32 %v33033_v23, %v35696_v24  ;;  %v35698_v26 = vmax.f32 %v35697_v48, 0.0 }
 0xd99   : > { %19806 = vst.msk [vmem:[%s33046_s16 + $0x78] sm:$0xff] %vm264_vm12, %v19774_v8  ;;  %v25288_v10 = vadd.f32 %v25088_v6, %v16077_v25  ;;  %v19648_v4 = vpop.f32.mrb[81].mxu0  ;;  %v35699_v25 = vld [vmem:[#allocation7_spill] sm:$0xff] }
 0xd9a   : > { %19805 = vst.msk [vmem:[%s33046_s16 + $0x70] sm:$0xff] %vm264_vm12, %v19773_v49  ;;  %v25289_v21 = vadd.f32 %v19648_v4, %v16076_v56  ;;  %v16087_v8 = vadd.f32 %v33033_v23, %v35698_v26  ;;  %v35700_v49 = vmax.f32 %v35699_v25, 0.0  ;;  %v35701_v4 = vld [vmem:[#allocation9_spill] sm:$0xff] }
 0xd9b   : > { %v19776_v52 = vmax.f32 %v25288_v10, 0.0 }
 0xd9c   : > { %v19775_v34 = vmax.f32 %v25289_v21, 0.0  ;;  %v25091_v1 = vpop.f32.mrb[82].mxu0  ;;  %v16086_v6 = vadd.f32 %v33033_v23, %v35700_v49  ;;  %v35702_v21 = vmax.f32 %v35701_v4, 0.0 }
 0xd9d   : > { %19808 = vst.msk [vmem:[%s33046_s16 + $0x88] sm:$0xff] %vm264_vm12, %v19776_v52  ;;  %v25290_v53 = vadd.f32 %v25091_v1, %v16079_v61  ;;  %v19658_v19 = vpop.f32.mrb[83].mxu0  ;;  %v35703_v61 = vld [vmem:[#allocation10_spill] sm:$0xff] }
 0xd9e   : > { %19807 = vst.msk [vmem:[%s33046_s16 + $0x80] sm:$0xff] %vm264_vm12, %v19775_v34  ;;  %v25291_v42 = vadd.f32 %v19658_v19, %v16078_v60  ;;  %v16089_v52 = vadd.f32 %v33033_v23, %v35702_v21  ;;  %v35704_v34 = vmax.f32 %v35703_v61, 0.0  ;;  %v35705_v19 = vld [vmem:[#allocation39_spill] sm:$0xff] }
 0xd9f   : > { %v19778_v2 = vmax.f32 %v25290_v53, 0.0 }
 0xda0   : > { %v19777_v55 = vmax.f32 %v25291_v42, 0.0  ;;  %v25094_v57 = vpop.f32.mrb[84].mxu0  ;;  %v16088_v1 = vadd.f32 %v33033_v23, %v35704_v34  ;;  %v35706_v42 = vmax.f32 %v35705_v19, 0.0 }
 0xda1   : > { %19810 = vst.msk [vmem:[%s33046_s16 + $0x98] sm:$0xff] %vm264_vm12, %v19778_v2  ;;  %v25292_v40 = vadd.f32 %v25094_v57, %v16081_v12  ;;  %v19668_v11 = vpop.f32.mrb[85].mxu0  ;;  %v35707_v12 = vld [vmem:[#allocation27_spill] sm:$0xff] }
 0xda2   : > { %19809 = vst.msk [vmem:[%s33046_s16 + $0x90] sm:$0xff] %vm264_vm12, %v19777_v55  ;;  %v25293_v7 = vadd.f32 %v19668_v11, %v16080_v50  ;;  %v16091_v2 = vadd.f32 %v33033_v23, %v35706_v42  ;;  %v35708_v55 = vmax.f32 %v35707_v12, 0.0 }
 0xda3   : > { %v19780_v41 = vmax.f32 %v25292_v40, 0.0 }
 0xda4   : > { %v19779_v54 = vmax.f32 %v25293_v7, 0.0  ;;  %v25097_v18 = vpop.f32.mrb[86].mxu0  ;;  %v16090_v57 = vadd.f32 %v33033_v23, %v35708_v55 }
 0xda5   : > { %19812 = vst.msk [vmem:[%s33046_s16 + $0xa8] sm:$0xff] %vm264_vm12, %v19780_v41  ;;  %v25294_v15 = vadd.f32 %v25097_v18, %v16083_v9  ;;  %v19678_v36 = vpop.f32.mrb[87].mxu0 }
 0xda6   : > { %19811 = vst.msk [vmem:[%s33046_s16 + $0xa0] sm:$0xff] %vm264_vm12, %v19779_v54  ;;  %v25295_v33 = vadd.f32 %v19678_v36, %v16082_v16 }
 0xda7   : > { %v19782_v14 = vmax.f32 %v25294_v15, 0.0 }
 0xda8   : > { %v19781_v59 = vmax.f32 %v25295_v33, 0.0  ;;  %v25100_v30 = vpop.f32.mrb[88].mxu0 }
 0xda9   : > { %19814 = vst.msk [vmem:[%s33046_s16 + $0xb8] sm:$0xff] %vm264_vm12, %v19782_v14  ;;  %v25296_v31 = vadd.f32 %v25100_v30, %v16085_v13  ;;  %v19688_v37 = vpop.f32.mrb[89].mxu0 }
 0xdaa   : > { %19813 = vst.msk [vmem:[%s33046_s16 + $0xb0] sm:$0xff] %vm264_vm12, %v19781_v59  ;;  %v25297_v62 = vadd.f32 %v19688_v37, %v16084_v43 }
 0xdab   : > { %v19784_v28 = vmax.f32 %v25296_v31, 0.0 }
 0xdac   : > { %v19783_v45 = vmax.f32 %v25297_v62, 0.0  ;;  %v25103_v32 = vpop.f32.mrb[90].mxu0 }
 0xdad   : > { %19816 = vst.msk [vmem:[%s33046_s16 + $0xc8] sm:$0xff] %vm264_vm12, %v19784_v28  ;;  %v25298_v20 = vadd.f32 %v25103_v32, %v16087_v8  ;;  %v19698_v47 = vpop.f32.mrb[91].mxu0 }
 0xdae   : > { %19815 = vst.msk [vmem:[%s33046_s16 + $0xc0] sm:$0xff] %vm264_vm12, %v19783_v45  ;;  %v25299_v56 = vadd.f32 %v19698_v47, %v16086_v6 }
 0xdaf   : > { %v19786_v10 = vmax.f32 %v25298_v20, 0.0 }
 0xdb0   : > { %v19785_v5 = vmax.f32 %v25299_v56, 0.0  ;;  %v25106_v51 = vpop.f32.mrb[92].mxu0 }
 0xdb1   : > { %19818 = vst.msk [vmem:[%s33046_s16 + $0xd8] sm:$0xff] %vm264_vm12, %v19786_v10  ;;  %v25300_v22 = vadd.f32 %v25106_v51, %v16089_v52  ;;  %v19708_v27 = vpop.f32.mrb[93].mxu0 }
 0xdb2   : > { %19817 = vst.msk [vmem:[%s33046_s16 + $0xd0] sm:$0xff] %vm264_vm12, %v19785_v5  ;;  %v25301_v60 = vadd.f32 %v19708_v27, %v16088_v1 }
 0xdb3   : > { %v19788_v53 = vmax.f32 %v25300_v22, 0.0 }
 0xdb4   : > { %v19787_v44 = vmax.f32 %v25301_v60, 0.0  ;;  %v25109_v3 = vpop.f32.mrb[94].mxu0 }
 0xdb5   : > { %19820 = vst.msk [vmem:[%s33046_s16 + $0xe8] sm:$0xff] %vm264_vm12, %v19788_v53  ;;  %v25302_v35 = vadd.f32 %v25109_v3, %v16091_v2  ;;  %v19718_v29 = vpop.f32.mrb[95].mxu0 }
 0xdb6   : > { %19819 = vst.msk [vmem:[%s33046_s16 + $0xe0] sm:$0xff] %vm264_vm12, %v19787_v44  ;;  %v25303_v50 = vadd.f32 %v19718_v29, %v16090_v57 }
 0xdb7   : > { %v19790_v40 = vmax.f32 %v25302_v35, 0.0 }
 0xdb8   : > { %v19789_v11 = vmax.f32 %v25303_v50, 0.0 }
 0xdb9   : > { %19822 = vst.msk [vmem:[%s33046_s16 + $0xf8] sm:$0xff] %vm264_vm12, %v19790_v40 }
 0xdba   : > { %19821 = vst.msk [vmem:[%s33046_s16 + $0xf0] sm:$0xff] %vm264_vm12, %v19789_v11 }
 0xdbb PF: > { %s15_s18 = sadd.s32 1, %s26568_s18  }
 0xdbc   : > { %p12_p4 = scmp.ge.s32.totalorder %s15_s18, 4  }
 0xdbe   :  { %14 = sbr.rel (!%p12_p4) target bundleno = 1 (0x1), region = 76 }

</bundles_post_ra>
